<compile_context>
chip_gen: v5e
topology: v5e:2x2
jax: 0.10.0
libtpu: 0.0.40
codegen_flags: <defaults>
</compile_context>

<pallas_src>
import functools

import jax
import jax.numpy as jnp
from jax.experimental import pallas as pl
from jax.experimental.pallas import tpu as pltpu


def _round_up(x, m):
    return (x + m - 1) // m * m


def _vmem_limit(need_bytes):
    # Need is already the double-buffered block footprint; add headroom for
    # Mosaic internal scratch.  Never clamp below what we actually need.
    return int(min(max(need_bytes + (8 << 20), 16 << 20), 48 << 20))


# ----------------------------------------------------------------------------
# Kernel A: (M, K)-tiled GEMM, f32 VMEM scratch accumulator, bf16 output with
# fused activation epilogue.  M axis "parallel" (megacore), K "arbitrary".
# ----------------------------------------------------------------------------
def _gemm_act_kernel(p_ref, w_ref, o_ref, acc_ref, *, activation, slope):
    k = pl.program_id(1)
    prod = jnp.dot(p_ref[...], w_ref[...], preferred_element_type=jnp.float32)

    @pl.when(k == 0)
    def _():
        acc_ref[...] = prod            # direct write: no zero-fill + RMW

    @pl.when(k > 0)
    def _():
        acc_ref[...] += prod

    @pl.when(k == pl.num_programs(1) - 1)
    def _():
        y = acc_ref[...]
        if activation == "leaky":
            y = jnp.where(y > 0, y, slope * y)
        o_ref[...] = y.astype(o_ref.dtype)


def conv_gemm_act(patches, w, activation, *, slope=0.2):
    """patches: (M, K) bf16, w: (K_pad, N_pad) bf16 -> (M_pad, N_pad) bf16."""
    M, K = patches.shape
    K_pad, N_pad = w.shape
    tk = min(K_pad, 512)
    # Bigger M tiles when the weight / output blocks are small (layer 1).
    cap = 1024 if (K_pad * N_pad) <= 128 * 256 else 256
    tm = min(cap, _round_up(M, 8))
    M_pad = _round_up(M, tm)

    p = patches
    if (M_pad, K_pad) != (M, K):
        p = jnp.pad(p, ((0, M_pad - M), (0, K_pad - K)))

    need = 2 * (tm * tk * 2 + tk * N_pad * 2 + tm * N_pad * 2) + tm * N_pad * 4
    return pl.pallas_call(
        functools.partial(_gemm_act_kernel, activation=activation, slope=slope),
        out_shape=jax.ShapeDtypeStruct((M_pad, N_pad), jnp.bfloat16),
        grid_spec=pltpu.PrefetchScalarGridSpec(
            num_scalar_prefetch=0,
            grid=(M_pad // tm, K_pad // tk),
            in_specs=[
                pl.BlockSpec((tm, tk), lambda m, k: (m, k)),
                pl.BlockSpec((tk, N_pad), lambda m, k: (k, 0)),
            ],
            out_specs=pl.BlockSpec((tm, N_pad), lambda m, k: (m, 0)),
            scratch_shapes=[pltpu.VMEM((tm, N_pad), jnp.float32)],
        ),
        compiler_params=pltpu.CompilerParams(
            dimension_semantics=("parallel", "arbitrary"),
            vmem_limit_bytes=_vmem_limit(need)),
    )(p, w)


# ----------------------------------------------------------------------------
# Kernel B: (N, K)-tiled GEMM with training-mode BatchNorm (batch stats over
# rows) + LeakyReLU fused into the last-K epilogue.  Full M resident per N
# tile; N axis is "parallel" (exact: BN stats are per output channel), K is
# the reduction.  f32 scratch accumulator, bf16 output.
# ----------------------------------------------------------------------------
def _gemm_bn_lrelu_kernel(p_ref, w_ref, gamma_ref, beta_ref, o_ref, acc_ref, *,
                          m_true, n_pad_rows, eps, slope):
    k = pl.program_id(1)
    prod = jnp.dot(p_ref[...], w_ref[...], preferred_element_type=jnp.float32)

    @pl.when(k == 0)
    def _():
        acc_ref[...] = prod

    @pl.when(k > 0)
    def _():
        acc_ref[...] += prod

    @pl.when(k == pl.num_programs(1) - 1)
    def _():
        y = acc_ref[...]
        inv_m = 1.0 / m_true
        mean = jnp.sum(y, axis=0, keepdims=True) * inv_m   # padded rows are 0
        d = y - mean
        # Each zero-padded row contributes mean**2 to sum(d*d); subtract it
        # exactly (biased variance, PyTorch training-mode BN).
        var = (jnp.sum(d * d, axis=0, keepdims=True)
               - n_pad_rows * mean * mean) * inv_m
        inv_std = jax.lax.rsqrt(var + eps)
        out = d * (inv_std * gamma_ref[...]) + beta_ref[...]
        o_ref[...] = jnp.where(out > 0, out, slope * out).astype(o_ref.dtype)


def _bn_fused_vmem_need(M_pad, tk, tn):
    p_blk = M_pad * tk * 2
    w_blk = tk * tn * 2
    gb_blk = 2 * tn * 4
    out_blk = M_pad * tn * 2
    acc = M_pad * tn * 4
    return 2 * (p_blk + w_blk + gb_blk + out_blk) + acc


# ----------------------------------------------------------------------------
# Kernel C (fallback path only): elementwise scale/shift + LeakyReLU.
# ----------------------------------------------------------------------------
def _bn_apply_lrelu_kernel(x_ref, scale_ref, shift_ref, o_ref, *, slope):
    y = x_ref[...].astype(jnp.float32) * scale_ref[...] + shift_ref[...]
    o_ref[...] = jnp.where(y > 0, y, slope * y).astype(o_ref.dtype)


def bn_apply_lrelu(x, scale, shift, *, slope=0.2):
    M_pad, N_pad = x.shape
    tm = min(256, M_pad)
    return pl.pallas_call(
        functools.partial(_bn_apply_lrelu_kernel, slope=slope),
        out_shape=jax.ShapeDtypeStruct((M_pad, N_pad), jnp.bfloat16),
        grid_spec=pltpu.PrefetchScalarGridSpec(
            num_scalar_prefetch=0,
            grid=(M_pad // tm,),
            in_specs=[
                pl.BlockSpec((tm, N_pad), lambda m: (m, 0)),
                pl.BlockSpec((1, N_pad), lambda m: (0, 0)),
                pl.BlockSpec((1, N_pad), lambda m: (0, 0)),
            ],
            out_specs=pl.BlockSpec((tm, N_pad), lambda m: (m, 0)),
        ),
        compiler_params=pltpu.CompilerParams(
            dimension_semantics=("parallel",),
            vmem_limit_bytes=16 << 20),
    )(x, scale, shift)


def conv_gemm_bn_lrelu(patches, w, gamma, beta, *, eps=1e-5, slope=0.2,
                       resident_budget=24 << 20):
    """GEMM + fused training-mode BN + LeakyReLU.

    Uses the M-resident fused kernel when its double-buffered footprint fits
    `resident_budget`; otherwise falls back to an M-tiled conv GEMM + two-pass
    BN + Pallas scale/shift/LeakyReLU (large-batch / v7x 64 MiB VMEM safety).
    """
    M, K = patches.shape
    K_pad, N_pad = w.shape
    tk = min(K_pad, 512)
    tn = N_pad if N_pad <= 128 else N_pad // 2      # 2 N tiles -> both v7x TCs
    M_pad = _round_up(M, 8)
    need = _bn_fused_vmem_need(M_pad, tk, tn)

    if need > resident_budget:
        # Fallback: M-tiled conv, batch stats in f32 over true rows, then a
        # fused elementwise scale/shift/LeakyReLU Pallas kernel.
        conv = conv_gemm_act(patches, w, "none")            # (M_pad2, N_pad) bf16
        xt = conv[:M].astype(jnp.float32)
        mean = jnp.mean(xt, axis=0, keepdims=True)
        var = jnp.mean(jnp.square(xt - mean), axis=0, keepdims=True)
        scale = jax.lax.rsqrt(var + eps) * gamma
        shift = beta - mean * scale
        return bn_apply_lrelu(conv, scale, shift, slope=slope)

    p = patches
    if (M_pad, K_pad) != (M, K):
        p = jnp.pad(p, ((0, M_pad - M), (0, K_pad - K)))

    return pl.pallas_call(
        functools.partial(_gemm_bn_lrelu_kernel, m_true=float(M),
                          n_pad_rows=float(M_pad - M), eps=eps, slope=slope),
        out_shape=jax.ShapeDtypeStruct((M_pad, N_pad), jnp.bfloat16),
        grid_spec=pltpu.PrefetchScalarGridSpec(
            num_scalar_prefetch=0,
            grid=(N_pad // tn, K_pad // tk),
            in_specs=[
                pl.BlockSpec((M_pad, tk), lambda n, k: (0, k)),
                pl.BlockSpec((tk, tn), lambda n, k: (k, n)),
                pl.BlockSpec((1, tn), lambda n, k: (0, n)),
                pl.BlockSpec((1, tn), lambda n, k: (0, n)),
            ],
            out_specs=pl.BlockSpec((M_pad, tn), lambda n, k: (0, n)),
            scratch_shapes=[pltpu.VMEM((M_pad, tn), jnp.float32)],
        ),
        compiler_params=pltpu.CompilerParams(
            dimension_semantics=("parallel", "arbitrary"),
            vmem_limit_bytes=_vmem_limit(need)),
    )(p, w, gamma, beta)


# ----------------------------------------------------------------------------
# Kernel D: final Conv(512->1, 4, 1, 0) + Sigmoid as a VPU multiply-reduce
# over the (B, 4*4, 512) layer-4 activations (no 128-wide padded GEMM).
# ----------------------------------------------------------------------------
def _head_kernel(x_ref, w_ref, o_ref):
    prod = (x_ref[...].astype(jnp.float32)
            * w_ref[...][None, :, :].astype(jnp.float32))
    s = jnp.sum(prod, axis=1)                       # (B, C)
    val = jnp.sum(s, axis=1, keepdims=True)         # (B, 1)
    o_ref[...] = jnp.broadcast_to(jax.nn.sigmoid(val), o_ref.shape)


def final_conv_sigmoid(x_bhwc_flat, w_hw_c):
    B, HW, C = x_bhwc_flat.shape
    out = pl.pallas_call(
        _head_kernel,
        out_shape=jax.ShapeDtypeStruct((B, 128), jnp.float32),
        grid_spec=pltpu.PrefetchScalarGridSpec(
            num_scalar_prefetch=0,
            grid=(1,),
            in_specs=[
                pl.BlockSpec((B, HW, C), lambda i: (0, 0, 0)),
                pl.BlockSpec((HW, C), lambda i: (0, 0)),
            ],
            out_specs=pl.BlockSpec((B, 128), lambda i: (0, 0)),
        ),
        compiler_params=pltpu.CompilerParams(vmem_limit_bytes=16 << 20),
    )(x_bhwc_flat, w_hw_c)
    return out[:, :1]                                # (B, 1)


# ----------------------------------------------------------------------------
# JAX glue: im2col, one-time parameter prep, full forward pass
# ----------------------------------------------------------------------------
def im2col(x_nhwc, k, s, p):
    B, H, W, C = x_nhwc.shape
    xp = jnp.pad(x_nhwc, ((0, 0), (p, p), (p, p), (0, 0)))
    Ho = (H + 2 * p - k) // s + 1
    Wo = (W + 2 * p - k) // s + 1
    cols = []
    for i in range(k):
        for j in range(k):
            cols.append(xp[:, i:i + s * Ho:s, j:j + s * Wo:s, :])
    patches = jnp.stack(cols, axis=3)                 # (B, Ho, Wo, kh*kw, C)
    return patches.reshape(B * Ho * Wo, k * k * C), Ho, Wo


def _prep_conv_weight(w_oihw):
    cout, cin, kh, kw = w_oihw.shape
    K = kh * kw * cin
    K_pad = _round_up(K, 128)
    if K_pad > 512:
        K_pad = _round_up(K_pad, 512)
    N_pad = _round_up(cout, 128)
    wmat = jnp.transpose(w_oihw, (2, 3, 1, 0)).reshape(K, cout)
    return jnp.pad(wmat, ((0, K_pad - K), (0, N_pad - cout))).astype(jnp.bfloat16)


def prepare_params(params):
    """One-time hoist: conv weights -> padded bf16 GEMM form, BN gamma/beta ->
    padded (1, N_pad) f32, final conv -> (kh*kw, Cin) bf16 (no padding)."""
    pp = {"w1": _prep_conv_weight(params["w1"])}
    for wk, gk, bk in (("w2", "g2", "b2"), ("w3", "g3", "b3"),
                       ("w4", "g4", "b4")):
        wp = _prep_conv_weight(params[wk])
        n_pad = wp.shape[1]
        cout = params[gk].shape[0]
        pp[wk] = wp
        pp[gk] = jnp.pad(params[gk][None, :].astype(jnp.float32),
                         ((0, 0), (0, n_pad - cout)))
        pp[bk] = jnp.pad(params[bk][None, :].astype(jnp.float32),
                         ((0, 0), (0, n_pad - cout)))
    # Layer-5 head weight: (1, 512, 4, 4) OIHW -> (16, 512) [(h*4+w), c].
    pp["w5"] = jnp.transpose(params["w5"], (0, 2, 3, 1)).reshape(16, 512) \
                  .astype(jnp.bfloat16)
    return pp


def init_params(key):
    keys = jax.random.split(key, 5)

    def conv_w(k, cout, cin, ksz):
        # DCGAN-style init: N(0, 0.02); all convs are bias=False per the spec.
        return 0.02 * jax.random.normal(k, (cout, cin, ksz, ksz), jnp.float32)

    return {
        "w1": conv_w(keys[0], 64, 3, 4),
        "w2": conv_w(keys[1], 128, 64, 4),
        "g2": jnp.ones((128,), jnp.float32), "b2": jnp.zeros((128,), jnp.float32),
        "w3": conv_w(keys[2], 256, 128, 4),
        "g3": jnp.ones((256,), jnp.float32), "b3": jnp.zeros((256,), jnp.float32),
        "w4": conv_w(keys[3], 512, 256, 4),
        "g4": jnp.ones((512,), jnp.float32), "b4": jnp.zeros((512,), jnp.float32),
        "w5": conv_w(keys[4], 1, 512, 4),
    }


def color_discriminator(img_nchw, pp, *, bn_resident_budget=24 << 20):
    B = img_nchw.shape[0]
    # NCHW -> NHWC, bf16 activations end-to-end.
    x = jnp.transpose(img_nchw, (0, 2, 3, 1)).astype(jnp.bfloat16)

    # Layer 1: Conv(3->64, 4, 2, 1, bias=False) + LeakyReLU(0.2), fused.
    patches, Ho, Wo = im2col(x, 4, 2, 1)
    M = B * Ho * Wo
    y = conv_gemm_act(patches, pp["w1"], "leaky")[:M, :64]
    x = y.reshape(B, Ho, Wo, 64)

    # Layers 2-4: Conv(4, 2, 1, bias=False) + BatchNorm(batch stats) +
    # LeakyReLU, fused into one GEMM-epilogue kernel per layer.
    for wk, gk, bk, cout in (("w2", "g2", "b2", 128),
                             ("w3", "g3", "b3", 256),
                             ("w4", "g4", "b4", 512)):
        patches, Ho, Wo = im2col(x, 4, 2, 1)
        M = B * Ho * Wo
        y = conv_gemm_bn_lrelu(patches, pp[wk], pp[gk], pp[bk],
                               resident_budget=bn_resident_budget)[:M, :cout]
        x = y.reshape(B, Ho, Wo, cout)

    # Layer 5: Conv(512->1, 4, 1, 0, bias=False) + Sigmoid (VPU reduce kernel).
    assert x.shape[1:] == (4, 4, 512), x.shape   # 64x64 input -> 4x4x512 here
    out = final_conv_sigmoid(x.reshape(B, 16, 512), pp["w5"])   # (B, 1) f32
    return out.reshape(B, 1, 1, 1)                              # NCHW (B,1,1,1)


if __name__ == "__main__":
    # The architecture (4 stride-2 convs + final 4x4 valid conv) requires a
    # 64x64 spatial input to produce a (B, 1, 1, 1) output.
    img = jax.random.normal(jax.random.PRNGKey(0), (2, 3, 64, 64), jnp.float32)
    params = init_params(jax.random.PRNGKey(1))
    prepared = prepare_params(params)               # one-time weight prep

    fwd = jax.jit(color_discriminator)
    out = jax.block_until_ready(fwd(img, prepared))
    assert out.shape == (2, 1, 1, 1), out.shape
    assert bool(jnp.all(jnp.isfinite(out)))
    assert bool(jnp.all((out >= 0.0) & (out <= 1.0)))   # sigmoid output range

    # Also exercise the large-batch fallback path (M-tiled conv + two-pass BN).
    fwd_fb = jax.jit(functools.partial(color_discriminator, bn_resident_budget=0))
    out_fb = jax.block_until_ready(fwd_fb(img, prepared))
    assert out_fb.shape == (2, 1, 1, 1), out_fb.shape
    assert bool(jnp.all(jnp.isfinite(out_fb)))
    assert bool(jnp.all((out_fb >= 0.0) & (out_fb <= 1.0)))

    print("KERNEL_OK")
</pallas_src>

<mosaic_0001>
module attributes {stable_mosaic.version = 11 : i64} {
  func.func @_gemm_act_kernel(%arg0: i32, %arg1: i32, %arg2: memref<1024x128xbf16, #tpu.memory_space<vmem>>, %arg3: memref<128x128xbf16, #tpu.memory_space<vmem>>, %arg4: memref<1024x128xbf16, #tpu.memory_space<vmem>>, %arg5: memref<1024x128xf32, #tpu.memory_space<vmem>>) attributes {dimension_semantics = [#tpu.dimension_semantics<parallel>, #tpu.dimension_semantics<arbitrary>], iteration_bounds = array<i64: 2, 1>, scalar_prefetch = 0 : i64, scratch_operands = 1 : i64, tpu.core_type = #tpu.core_type<tc>, window_params = [{transform_indices = @transform_0, window_bounds = array<i64: 1024, 128>}, {transform_indices = @transform_1, window_bounds = array<i64: 128, 128>}, {transform_indices = @transform_2, window_bounds = array<i64: 1024, 128>}]} {
    %c0 = arith.constant 0 : index
    %c0_0 = arith.constant 0 : index
    %0 = vector.load %arg2[%c0, %c0_0] : memref<1024x128xbf16, #tpu.memory_space<vmem>>, vector<1024x128xbf16>
    %c0_1 = arith.constant 0 : index
    %c0_2 = arith.constant 0 : index
    %1 = vector.load %arg3[%c0_1, %c0_2] : memref<128x128xbf16, #tpu.memory_space<vmem>>, vector<128x128xbf16>
    %cst = arith.constant dense<0.000000e+00> : vector<1024x128xf32>
    %2 = tpu.matmul %0, %1, %cst {dimension_numbers = #tpu.dot_dimension_numbers<[1], [0], [0], [1], [0, 0, 1, 1], [], []>} : vector<1024x128xbf16>, vector<128x128xbf16>, vector<1024x128xf32> -> vector<1024x128xf32>
    %c0_i32 = arith.constant 0 : i32
    %3 = arith.cmpi eq, %arg1, %c0_i32 : i32
    %4 = arith.extui %3 : i1 to i32
    %c0_i32_3 = arith.constant 0 : i32
    %5 = arith.cmpi ne, %4, %c0_i32_3 : i32
    scf.if %5 {
      %c0_8 = arith.constant 0 : index
      %c0_9 = arith.constant 0 : index
      %12 = vector.load %arg5[%c0_8, %c0_9] : memref<1024x128xf32, #tpu.memory_space<vmem>>, vector<1024x128xf32>
      tpu.vector_store %arg5[%c0_8, %c0_9], %2 {strides = array<i32>} : memref<1024x128xf32, #tpu.memory_space<vmem>>, vector<1024x128xf32>,
    } else {
    }
    %c0_i32_4 = arith.constant 0 : i32
    %6 = arith.cmpi sgt, %arg1, %c0_i32_4 : i32
    %7 = arith.extui %6 : i1 to i32
    %c0_i32_5 = arith.constant 0 : i32
    %8 = arith.cmpi ne, %7, %c0_i32_5 : i32
    scf.if %8 {
      %c0_8 = arith.constant 0 : index
      %c0_9 = arith.constant 0 : index
      %12 = vector.load %arg5[%c0_8, %c0_9] : memref<1024x128xf32, #tpu.memory_space<vmem>>, vector<1024x128xf32>
      %13 = arith.addf %12, %2 : vector<1024x128xf32>
      %c0_10 = arith.constant 0 : index
      %c0_11 = arith.constant 0 : index
      %14 = vector.load %arg5[%c0_10, %c0_11] : memref<1024x128xf32, #tpu.memory_space<vmem>>, vector<1024x128xf32>
      tpu.vector_store %arg5[%c0_10, %c0_11], %13 {strides = array<i32>} : memref<1024x128xf32, #tpu.memory_space<vmem>>, vector<1024x128xf32>,
    } else {
    }
    %c0_i32_6 = arith.constant 0 : i32
    %9 = arith.cmpi eq, %arg1, %c0_i32_6 : i32
    %10 = arith.extui %9 : i1 to i32
    %c0_i32_7 = arith.constant 0 : i32
    %11 = arith.cmpi ne, %10, %c0_i32_7 : i32
    scf.if %11 {
      %c0_8 = arith.constant 0 : index
      %c0_9 = arith.constant 0 : index
      %12 = vector.load %arg5[%c0_8, %c0_9] : memref<1024x128xf32, #tpu.memory_space<vmem>>, vector<1024x128xf32>
      %cst_10 = arith.constant 0.000000e+00 : f32
      %13 = vector.broadcast %cst_10 : f32 to vector<1024x128xf32>
      %14 = arith.cmpf ogt, %12, %13 : vector<1024x128xf32>
      %cst_11 = arith.constant 2.000000e-01 : f32
      %15 = vector.broadcast %cst_11 : f32 to vector<1024x128xf32>
      %16 = arith.mulf %15, %12 : vector<1024x128xf32>
      %17 = arith.select %14, %12, %16 : vector<1024x128xi1>, vector<1024x128xf32>
      %18 = arith.truncf %17 : vector<1024x128xf32> to vector<1024x128xbf16>
      %c0_12 = arith.constant 0 : index
      %c0_13 = arith.constant 0 : index
      %19 = vector.load %arg4[%c0_12, %c0_13] : memref<1024x128xbf16, #tpu.memory_space<vmem>>, vector<1024x128xbf16>
      tpu.vector_store %arg4[%c0_12, %c0_13], %18 {strides = array<i32>} : memref<1024x128xbf16, #tpu.memory_space<vmem>>, vector<1024x128xbf16>,
    } else {
    }
    return
  }
  func.func @transform_0(%arg0: i32, %arg1: i32) -> (i32, i32) {
    %c0_i32 = arith.constant 0 : i32
    return %arg0, %arg1 : i32, i32
  }
  func.func @transform_1(%arg0: i32, %arg1: i32) -> (i32, i32) {
    %c0_i32 = arith.constant 0 : i32
    %c0_i32_0 = arith.constant 0 : i32
    return %arg1, %c0_i32 : i32, i32
  }
  func.func @transform_2(%arg0: i32, %arg1: i32) -> (i32, i32) {
    %c0_i32 = arith.constant 0 : i32
    %c0_i32_0 = arith.constant 0 : i32
    return %arg0, %c0_i32 : i32, i32
  }
}

module attributes {stable_mosaic.version = 11 : i64} {
  func.func @_gemm_bn_lrelu_kernel(%arg0: i32, %arg1: i32, %arg2: memref<512x512xbf16, #tpu.memory_space<vmem>>, %arg3: memref<512x128xbf16, #tpu.memory_space<vmem>>, %arg4: memref<1x128xf32, #tpu.memory_space<vmem>>, %arg5: memref<1x128xf32, #tpu.memory_space<vmem>>, %arg6: memref<512x128xbf16, #tpu.memory_space<vmem>>, %arg7: memref<512x128xf32, #tpu.memory_space<vmem>>) attributes {dimension_semantics = [#tpu.dimension_semantics<parallel>, #tpu.dimension_semantics<arbitrary>], iteration_bounds = array<i64: 1, 2>, scalar_prefetch = 0 : i64, scratch_operands = 1 : i64, tpu.core_type = #tpu.core_type<tc>, window_params = [{transform_indices = @transform_0, window_bounds = array<i64: 512, 512>}, {transform_indices = @transform_1, window_bounds = array<i64: 512, 128>}, {transform_indices = @transform_2, window_bounds = array<i64: 1, 128>}, {transform_indices = @transform_3, window_bounds = array<i64: 1, 128>}, {transform_indices = @transform_4, window_bounds = array<i64: 512, 128>}]} {
    %c0 = arith.constant 0 : index
    %c0_0 = arith.constant 0 : index
    %0 = vector.load %arg2[%c0, %c0_0] : memref<512x512xbf16, #tpu.memory_space<vmem>>, vector<512x512xbf16>
    %c0_1 = arith.constant 0 : index
    %c0_2 = arith.constant 0 : index
    %1 = vector.load %arg3[%c0_1, %c0_2] : memref<512x128xbf16, #tpu.memory_space<vmem>>, vector<512x128xbf16>
    %cst = arith.constant dense<0.000000e+00> : vector<512x128xf32>
    %2 = tpu.matmul %0, %1, %cst {dimension_numbers = #tpu.dot_dimension_numbers<[1], [0], [0], [1], [0, 0, 1, 1], [], []>} : vector<512x512xbf16>, vector<512x128xbf16>, vector<512x128xf32> -> vector<512x128xf32>
    %c0_i32 = arith.constant 0 : i32
    %3 = arith.cmpi eq, %arg1, %c0_i32 : i32
    %4 = arith.extui %3 : i1 to i32
    %c0_i32_3 = arith.constant 0 : i32
    %5 = arith.cmpi ne, %4, %c0_i32_3 : i32
    scf.if %5 {
      %c0_7 = arith.constant 0 : index
      %c0_8 = arith.constant 0 : index
      %12 = vector.load %arg7[%c0_7, %c0_8] : memref<512x128xf32, #tpu.memory_space<vmem>>, vector<512x128xf32>
      tpu.vector_store %arg7[%c0_7, %c0_8], %2 {strides = array<i32>} : memref<512x128xf32, #tpu.memory_space<vmem>>, vector<512x128xf32>,
    } else {
    }
    %c0_i32_4 = arith.constant 0 : i32
    %6 = arith.cmpi sgt, %arg1, %c0_i32_4 : i32
    %7 = arith.extui %6 : i1 to i32
    %c0_i32_5 = arith.constant 0 : i32
    %8 = arith.cmpi ne, %7, %c0_i32_5 : i32
    scf.if %8 {
      %c0_7 = arith.constant 0 : index
      %c0_8 = arith.constant 0 : index
      %12 = vector.load %arg7[%c0_7, %c0_8] : memref<512x128xf32, #tpu.memory_space<vmem>>, vector<512x128xf32>
      %13 = arith.addf %12, %2 : vector<512x128xf32>
      %c0_9 = arith.constant 0 : index
      %c0_10 = arith.constant 0 : index
      %14 = vector.load %arg7[%c0_9, %c0_10] : memref<512x128xf32, #tpu.memory_space<vmem>>, vector<512x128xf32>
      tpu.vector_store %arg7[%c0_9, %c0_10], %13 {strides = array<i32>} : memref<512x128xf32, #tpu.memory_space<vmem>>, vector<512x128xf32>,
    } else {
    }
    %c1_i32 = arith.constant 1 : i32
    %9 = arith.cmpi eq, %arg1, %c1_i32 : i32
    %10 = arith.extui %9 : i1 to i32
    %c0_i32_6 = arith.constant 0 : i32
    %11 = arith.cmpi ne, %10, %c0_i32_6 : i32
    scf.if %11 {
      %c0_7 = arith.constant 0 : index
      %c0_8 = arith.constant 0 : index
      %12 = vector.load %arg7[%c0_7, %c0_8] : memref<512x128xf32, #tpu.memory_space<vmem>>, vector<512x128xf32>
      %cst_9 = arith.constant dense<0.000000e+00> : vector<128xf32>
      %13 = vector.multi_reduction <add>, %12, %cst_9 [0] : vector<512x128xf32> to vector<128xf32>
      %14 = vector.shape_cast %13 : vector<128xf32> to vector<1x128xf32>
      %cst_10 = arith.constant 0.001953125 : f32
      %15 = vector.broadcast %cst_10 : f32 to vector<1x128xf32>
      %16 = arith.mulf %14, %15 : vector<1x128xf32>
      %17 = vector.broadcast %16 : vector<1x128xf32> to vector<512x128xf32>
      %18 = arith.subf %12, %17 : vector<512x128xf32>
      %19 = arith.mulf %18, %18 : vector<512x128xf32>
      %cst_11 = arith.constant dense<0.000000e+00> : vector<128xf32>
      %20 = vector.multi_reduction <add>, %19, %cst_11 [0] : vector<512x128xf32> to vector<128xf32>
      %21 = vector.shape_cast %20 : vector<128xf32> to vector<1x128xf32>
      %cst_12 = arith.constant 0.000000e+00 : f32
      %22 = vector.broadcast %cst_12 : f32 to vector<1x128xf32>
      %23 = arith.mulf %22, %16 : vector<1x128xf32>
      %24 = arith.mulf %23, %16 : vector<1x128xf32>
      %25 = arith.subf %21, %24 : vector<1x128xf32>
      %cst_13 = arith.constant 0.001953125 : f32
      %26 = vector.broadcast %cst_13 : f32 to vector<1x128xf32>
      %27 = arith.mulf %25, %26 : vector<1x128xf32>
      %cst_14 = arith.constant 9.99999974E-6 : f32
      %28 = vector.broadcast %cst_14 : f32 to vector<1x128xf32>
      %29 = arith.addf %27, %28 : vector<1x128xf32>
      %30 = math.rsqrt %29 : vector<1x128xf32>
      %c0_15 = arith.constant 0 : index
      %c0_16 = arith.constant 0 : index
      %31 = vector.load %arg4[%c0_15, %c0_16] : memref<1x128xf32, #tpu.memory_space<vmem>>, vector<1x128xf32>
      %32 = arith.mulf %30, %31 : vector<1x128xf32>
      %33 = vector.broadcast %32 : vector<1x128xf32> to vector<512x128xf32>
      %34 = arith.mulf %18, %33 : vector<512x128xf32>
      %c0_17 = arith.constant 0 : index
      %c0_18 = arith.constant 0 : index
      %35 = vector.load %arg5[%c0_17, %c0_18] : memref<1x128xf32, #tpu.memory_space<vmem>>, vector<1x128xf32>
      %36 = vector.broadcast %35 : vector<1x128xf32> to vector<512x128xf32>
      %37 = arith.addf %34, %36 : vector<512x128xf32>
      %cst_19 = arith.constant 0.000000e+00 : f32
      %38 = vector.broadcast %cst_19 : f32 to vector<512x128xf32>
      %39 = arith.cmpf ogt, %37, %38 : vector<512x128xf32>
      %cst_20 = arith.constant 2.000000e-01 : f32
      %40 = vector.broadcast %cst_20 : f32 to vector<512x128xf32>
      %41 = arith.mulf %40, %37 : vector<512x128xf32>
      %42 = arith.select %39, %37, %41 : vector<512x128xi1>, vector<512x128xf32>
      %43 = arith.truncf %42 : vector<512x128xf32> to vector<512x128xbf16>
      %c0_21 = arith.constant 0 : index
      %c0_22 = arith.constant 0 : index
      %44 = vector.load %arg6[%c0_21, %c0_22] : memref<512x128xbf16, #tpu.memory_space<vmem>>, vector<512x128xbf16>
      tpu.vector_store %arg6[%c0_21, %c0_22], %43 {strides = array<i32>} : memref<512x128xbf16, #tpu.memory_space<vmem>>, vector<512x128xbf16>,
    } else {
    }
    return
  }
  func.func @transform_0(%arg0: i32, %arg1: i32) -> (i32, i32) {
    %c0_i32 = arith.constant 0 : i32
    %c0_i32_0 = arith.constant 0 : i32
    return %c0_i32, %arg1 : i32, i32
  }
  func.func @transform_1(%arg0: i32, %arg1: i32) -> (i32, i32) {
    %c0_i32 = arith.constant 0 : i32
    return %arg1, %arg0 : i32, i32
  }
  func.func @transform_2(%arg0: i32, %arg1: i32) -> (i32, i32) {
    %c0_i32 = arith.constant 0 : i32
    %c0_i32_0 = arith.constant 0 : i32
    return %c0_i32, %arg0 : i32, i32
  }
  func.func @transform_3(%arg0: i32, %arg1: i32) -> (i32, i32) {
    %c0_i32 = arith.constant 0 : i32
    %c0_i32_0 = arith.constant 0 : i32
    return %c0_i32, %arg0 : i32, i32
  }
  func.func @transform_4(%arg0: i32, %arg1: i32) -> (i32, i32) {
    %c0_i32 = arith.constant 0 : i32
    %c0_i32_0 = arith.constant 0 : i32
    return %c0_i32, %arg0 : i32, i32
  }
}

module attributes {stable_mosaic.version = 11 : i64} {
  func.func @_gemm_bn_lrelu_kernel(%arg0: i32, %arg1: i32, %arg2: memref<128x512xbf16, #tpu.memory_space<vmem>>, %arg3: memref<512x128xbf16, #tpu.memory_space<vmem>>, %arg4: memref<1x128xf32, #tpu.memory_space<vmem>>, %arg5: memref<1x128xf32, #tpu.memory_space<vmem>>, %arg6: memref<128x128xbf16, #tpu.memory_space<vmem>>, %arg7: memref<128x128xf32, #tpu.memory_space<vmem>>) attributes {dimension_semantics = [#tpu.dimension_semantics<parallel>, #tpu.dimension_semantics<arbitrary>], iteration_bounds = array<i64: 2, 4>, scalar_prefetch = 0 : i64, scratch_operands = 1 : i64, tpu.core_type = #tpu.core_type<tc>, window_params = [{transform_indices = @transform_0, window_bounds = array<i64: 128, 512>}, {transform_indices = @transform_1, window_bounds = array<i64: 512, 128>}, {transform_indices = @transform_2, window_bounds = array<i64: 1, 128>}, {transform_indices = @transform_3, window_bounds = array<i64: 1, 128>}, {transform_indices = @transform_4, window_bounds = array<i64: 128, 128>}]} {
    %c0 = arith.constant 0 : index
    %c0_0 = arith.constant 0 : index
    %0 = vector.load %arg2[%c0, %c0_0] : memref<128x512xbf16, #tpu.memory_space<vmem>>, vector<128x512xbf16>
    %c0_1 = arith.constant 0 : index
    %c0_2 = arith.constant 0 : index
    %1 = vector.load %arg3[%c0_1, %c0_2] : memref<512x128xbf16, #tpu.memory_space<vmem>>, vector<512x128xbf16>
    %cst = arith.constant dense<0.000000e+00> : vector<128x128xf32>
    %2 = tpu.matmul %0, %1, %cst {dimension_numbers = #tpu.dot_dimension_numbers<[1], [0], [0], [1], [0, 0, 1, 1], [], []>} : vector<128x512xbf16>, vector<512x128xbf16>, vector<128x128xf32> -> vector<128x128xf32>
    %c0_i32 = arith.constant 0 : i32
    %3 = arith.cmpi eq, %arg1, %c0_i32 : i32
    %4 = arith.extui %3 : i1 to i32
    %c0_i32_3 = arith.constant 0 : i32
    %5 = arith.cmpi ne, %4, %c0_i32_3 : i32
    scf.if %5 {
      %c0_7 = arith.constant 0 : index
      %c0_8 = arith.constant 0 : index
      %12 = vector.load %arg7[%c0_7, %c0_8] : memref<128x128xf32, #tpu.memory_space<vmem>>, vector<128x128xf32>
      tpu.vector_store %arg7[%c0_7, %c0_8], %2 {strides = array<i32>} : memref<128x128xf32, #tpu.memory_space<vmem>>, vector<128x128xf32>,
    } else {
    }
    %c0_i32_4 = arith.constant 0 : i32
    %6 = arith.cmpi sgt, %arg1, %c0_i32_4 : i32
    %7 = arith.extui %6 : i1 to i32
    %c0_i32_5 = arith.constant 0 : i32
    %8 = arith.cmpi ne, %7, %c0_i32_5 : i32
    scf.if %8 {
      %c0_7 = arith.constant 0 : index
      %c0_8 = arith.constant 0 : index
      %12 = vector.load %arg7[%c0_7, %c0_8] : memref<128x128xf32, #tpu.memory_space<vmem>>, vector<128x128xf32>
      %13 = arith.addf %12, %2 : vector<128x128xf32>
      %c0_9 = arith.constant 0 : index
      %c0_10 = arith.constant 0 : index
      %14 = vector.load %arg7[%c0_9, %c0_10] : memref<128x128xf32, #tpu.memory_space<vmem>>, vector<128x128xf32>
      tpu.vector_store %arg7[%c0_9, %c0_10], %13 {strides = array<i32>} : memref<128x128xf32, #tpu.memory_space<vmem>>, vector<128x128xf32>,
    } else {
    }
    %c3_i32 = arith.constant 3 : i32
    %9 = arith.cmpi eq, %arg1, %c3_i32 : i32
    %10 = arith.extui %9 : i1 to i32
    %c0_i32_6 = arith.constant 0 : i32
    %11 = arith.cmpi ne, %10, %c0_i32_6 : i32
    scf.if %11 {
      %c0_7 = arith.constant 0 : index
      %c0_8 = arith.constant 0 : index
      %12 = vector.load %arg7[%c0_7, %c0_8] : memref<128x128xf32, #tpu.memory_space<vmem>>, vector<128x128xf32>
      %cst_9 = arith.constant dense<0.000000e+00> : vector<128xf32>
      %13 = vector.multi_reduction <add>, %12, %cst_9 [0] : vector<128x128xf32> to vector<128xf32>
      %14 = vector.shape_cast %13 : vector<128xf32> to vector<1x128xf32>
      %cst_10 = arith.constant 7.812500e-03 : f32
      %15 = vector.broadcast %cst_10 : f32 to vector<1x128xf32>
      %16 = arith.mulf %14, %15 : vector<1x128xf32>
      %17 = vector.broadcast %16 : vector<1x128xf32> to vector<128x128xf32>
      %18 = arith.subf %12, %17 : vector<128x128xf32>
      %19 = arith.mulf %18, %18 : vector<128x128xf32>
      %cst_11 = arith.constant dense<0.000000e+00> : vector<128xf32>
      %20 = vector.multi_reduction <add>, %19, %cst_11 [0] : vector<128x128xf32> to vector<128xf32>
      %21 = vector.shape_cast %20 : vector<128xf32> to vector<1x128xf32>
      %cst_12 = arith.constant 0.000000e+00 : f32
      %22 = vector.broadcast %cst_12 : f32 to vector<1x128xf32>
      %23 = arith.mulf %22, %16 : vector<1x128xf32>
      %24 = arith.mulf %23, %16 : vector<1x128xf32>
      %25 = arith.subf %21, %24 : vector<1x128xf32>
      %cst_13 = arith.constant 7.812500e-03 : f32
      %26 = vector.broadcast %cst_13 : f32 to vector<1x128xf32>
      %27 = arith.mulf %25, %26 : vector<1x128xf32>
      %cst_14 = arith.constant 9.99999974E-6 : f32
      %28 = vector.broadcast %cst_14 : f32 to vector<1x128xf32>
      %29 = arith.addf %27, %28 : vector<1x128xf32>
      %30 = math.rsqrt %29 : vector<1x128xf32>
      %c0_15 = arith.constant 0 : index
      %c0_16 = arith.constant 0 : index
      %31 = vector.load %arg4[%c0_15, %c0_16] : memref<1x128xf32, #tpu.memory_space<vmem>>, vector<1x128xf32>
      %32 = arith.mulf %30, %31 : vector<1x128xf32>
      %33 = vector.broadcast %32 : vector<1x128xf32> to vector<128x128xf32>
      %34 = arith.mulf %18, %33 : vector<128x128xf32>
      %c0_17 = arith.constant 0 : index
      %c0_18 = arith.constant 0 : index
      %35 = vector.load %arg5[%c0_17, %c0_18] : memref<1x128xf32, #tpu.memory_space<vmem>>, vector<1x128xf32>
      %36 = vector.broadcast %35 : vector<1x128xf32> to vector<128x128xf32>
      %37 = arith.addf %34, %36 : vector<128x128xf32>
      %cst_19 = arith.constant 0.000000e+00 : f32
      %38 = vector.broadcast %cst_19 : f32 to vector<128x128xf32>
      %39 = arith.cmpf ogt, %37, %38 : vector<128x128xf32>
      %cst_20 = arith.constant 2.000000e-01 : f32
      %40 = vector.broadcast %cst_20 : f32 to vector<128x128xf32>
      %41 = arith.mulf %40, %37 : vector<128x128xf32>
      %42 = arith.select %39, %37, %41 : vector<128x128xi1>, vector<128x128xf32>
      %43 = arith.truncf %42 : vector<128x128xf32> to vector<128x128xbf16>
      %c0_21 = arith.constant 0 : index
      %c0_22 = arith.constant 0 : index
      %44 = vector.load %arg6[%c0_21, %c0_22] : memref<128x128xbf16, #tpu.memory_space<vmem>>, vector<128x128xbf16>
      tpu.vector_store %arg6[%c0_21, %c0_22], %43 {strides = array<i32>} : memref<128x128xbf16, #tpu.memory_space<vmem>>, vector<128x128xbf16>,
    } else {
    }
    return
  }
  func.func @transform_0(%arg0: i32, %arg1: i32) -> (i32, i32) {
    %c0_i32 = arith.constant 0 : i32
    %c0_i32_0 = arith.constant 0 : i32
    return %c0_i32, %arg1 : i32, i32
  }
  func.func @transform_1(%arg0: i32, %arg1: i32) -> (i32, i32) {
    %c0_i32 = arith.constant 0 : i32
    return %arg1, %arg0 : i32, i32
  }
  func.func @transform_2(%arg0: i32, %arg1: i32) -> (i32, i32) {
    %c0_i32 = arith.constant 0 : i32
    %c0_i32_0 = arith.constant 0 : i32
    return %c0_i32, %arg0 : i32, i32
  }
  func.func @transform_3(%arg0: i32, %arg1: i32) -> (i32, i32) {
    %c0_i32 = arith.constant 0 : i32
    %c0_i32_0 = arith.constant 0 : i32
    return %c0_i32, %arg0 : i32, i32
  }
  func.func @transform_4(%arg0: i32, %arg1: i32) -> (i32, i32) {
    %c0_i32 = arith.constant 0 : i32
    %c0_i32_0 = arith.constant 0 : i32
    return %c0_i32, %arg0 : i32, i32
  }
}

module attributes {stable_mosaic.version = 11 : i64} {
  func.func @_gemm_bn_lrelu_kernel(%arg0: i32, %arg1: i32, %arg2: memref<32x512xbf16, #tpu.memory_space<vmem>>, %arg3: memref<512x256xbf16, #tpu.memory_space<vmem>>, %arg4: memref<1x256xf32, #tpu.memory_space<vmem>>, %arg5: memref<1x256xf32, #tpu.memory_space<vmem>>, %arg6: memref<32x256xbf16, #tpu.memory_space<vmem>>, %arg7: memref<32x256xf32, #tpu.memory_space<vmem>>) attributes {dimension_semantics = [#tpu.dimension_semantics<parallel>, #tpu.dimension_semantics<arbitrary>], iteration_bounds = array<i64: 2, 8>, scalar_prefetch = 0 : i64, scratch_operands = 1 : i64, tpu.core_type = #tpu.core_type<tc>, window_params = [{transform_indices = @transform_0, window_bounds = array<i64: 32, 512>}, {transform_indices = @transform_1, window_bounds = array<i64: 512, 256>}, {transform_indices = @transform_2, window_bounds = array<i64: 1, 256>}, {transform_indices = @transform_3, window_bounds = array<i64: 1, 256>}, {transform_indices = @transform_4, window_bounds = array<i64: 32, 256>}]} {
    %c0 = arith.constant 0 : index
    %c0_0 = arith.constant 0 : index
    %0 = vector.load %arg2[%c0, %c0_0] : memref<32x512xbf16, #tpu.memory_space<vmem>>, vector<32x512xbf16>
    %c0_1 = arith.constant 0 : index
    %c0_2 = arith.constant 0 : index
    %1 = vector.load %arg3[%c0_1, %c0_2] : memref<512x256xbf16, #tpu.memory_space<vmem>>, vector<512x256xbf16>
    %cst = arith.constant dense<0.000000e+00> : vector<32x256xf32>
    %2 = tpu.matmul %0, %1, %cst {dimension_numbers = #tpu.dot_dimension_numbers<[1], [0], [0], [1], [0, 0, 1, 1], [], []>} : vector<32x512xbf16>, vector<512x256xbf16>, vector<32x256xf32> -> vector<32x256xf32>
    %c0_i32 = arith.constant 0 : i32
    %3 = arith.cmpi eq, %arg1, %c0_i32 : i32
    %4 = arith.extui %3 : i1 to i32
    %c0_i32_3 = arith.constant 0 : i32
    %5 = arith.cmpi ne, %4, %c0_i32_3 : i32
    scf.if %5 {
      %c0_7 = arith.constant 0 : index
      %c0_8 = arith.constant 0 : index
      %12 = vector.load %arg7[%c0_7, %c0_8] : memref<32x256xf32, #tpu.memory_space<vmem>>, vector<32x256xf32>
      tpu.vector_store %arg7[%c0_7, %c0_8], %2 {strides = array<i32>} : memref<32x256xf32, #tpu.memory_space<vmem>>, vector<32x256xf32>,
    } else {
    }
    %c0_i32_4 = arith.constant 0 : i32
    %6 = arith.cmpi sgt, %arg1, %c0_i32_4 : i32
    %7 = arith.extui %6 : i1 to i32
    %c0_i32_5 = arith.constant 0 : i32
    %8 = arith.cmpi ne, %7, %c0_i32_5 : i32
    scf.if %8 {
      %c0_7 = arith.constant 0 : index
      %c0_8 = arith.constant 0 : index
      %12 = vector.load %arg7[%c0_7, %c0_8] : memref<32x256xf32, #tpu.memory_space<vmem>>, vector<32x256xf32>
      %13 = arith.addf %12, %2 : vector<32x256xf32>
      %c0_9 = arith.constant 0 : index
      %c0_10 = arith.constant 0 : index
      %14 = vector.load %arg7[%c0_9, %c0_10] : memref<32x256xf32, #tpu.memory_space<vmem>>, vector<32x256xf32>
      tpu.vector_store %arg7[%c0_9, %c0_10], %13 {strides = array<i32>} : memref<32x256xf32, #tpu.memory_space<vmem>>, vector<32x256xf32>,
    } else {
    }
    %c7_i32 = arith.constant 7 : i32
    %9 = arith.cmpi eq, %arg1, %c7_i32 : i32
    %10 = arith.extui %9 : i1 to i32
    %c0_i32_6 = arith.constant 0 : i32
    %11 = arith.cmpi ne, %10, %c0_i32_6 : i32
    scf.if %11 {
      %c0_7 = arith.constant 0 : index
      %c0_8 = arith.constant 0 : index
      %12 = vector.load %arg7[%c0_7, %c0_8] : memref<32x256xf32, #tpu.memory_space<vmem>>, vector<32x256xf32>
      %cst_9 = arith.constant dense<0.000000e+00> : vector<256xf32>
      %13 = vector.multi_reduction <add>, %12, %cst_9 [0] : vector<32x256xf32> to vector<256xf32>
      %14 = vector.shape_cast %13 : vector<256xf32> to vector<1x256xf32>
      %cst_10 = arith.constant 3.125000e-02 : f32
      %15 = vector.broadcast %cst_10 : f32 to vector<1x256xf32>
      %16 = arith.mulf %14, %15 : vector<1x256xf32>
      %17 = vector.broadcast %16 : vector<1x256xf32> to vector<32x256xf32>
      %18 = arith.subf %12, %17 : vector<32x256xf32>
      %19 = arith.mulf %18, %18 : vector<32x256xf32>
      %cst_11 = arith.constant dense<0.000000e+00> : vector<256xf32>
      %20 = vector.multi_reduction <add>, %19, %cst_11 [0] : vector<32x256xf32> to vector<256xf32>
      %21 = vector.shape_cast %20 : vector<256xf32> to vector<1x256xf32>
      %cst_12 = arith.constant 0.000000e+00 : f32
      %22 = vector.broadcast %cst_12 : f32 to vector<1x256xf32>
      %23 = arith.mulf %22, %16 : vector<1x256xf32>
      %24 = arith.mulf %23, %16 : vector<1x256xf32>
      %25 = arith.subf %21, %24 : vector<1x256xf32>
      %cst_13 = arith.constant 3.125000e-02 : f32
      %26 = vector.broadcast %cst_13 : f32 to vector<1x256xf32>
      %27 = arith.mulf %25, %26 : vector<1x256xf32>
      %cst_14 = arith.constant 9.99999974E-6 : f32
      %28 = vector.broadcast %cst_14 : f32 to vector<1x256xf32>
      %29 = arith.addf %27, %28 : vector<1x256xf32>
      %30 = math.rsqrt %29 : vector<1x256xf32>
      %c0_15 = arith.constant 0 : index
      %c0_16 = arith.constant 0 : index
      %31 = vector.load %arg4[%c0_15, %c0_16] : memref<1x256xf32, #tpu.memory_space<vmem>>, vector<1x256xf32>
      %32 = arith.mulf %30, %31 : vector<1x256xf32>
      %33 = vector.broadcast %32 : vector<1x256xf32> to vector<32x256xf32>
      %34 = arith.mulf %18, %33 : vector<32x256xf32>
      %c0_17 = arith.constant 0 : index
      %c0_18 = arith.constant 0 : index
      %35 = vector.load %arg5[%c0_17, %c0_18] : memref<1x256xf32, #tpu.memory_space<vmem>>, vector<1x256xf32>
      %36 = vector.broadcast %35 : vector<1x256xf32> to vector<32x256xf32>
      %37 = arith.addf %34, %36 : vector<32x256xf32>
      %cst_19 = arith.constant 0.000000e+00 : f32
      %38 = vector.broadcast %cst_19 : f32 to vector<32x256xf32>
      %39 = arith.cmpf ogt, %37, %38 : vector<32x256xf32>
      %cst_20 = arith.constant 2.000000e-01 : f32
      %40 = vector.broadcast %cst_20 : f32 to vector<32x256xf32>
      %41 = arith.mulf %40, %37 : vector<32x256xf32>
      %42 = arith.select %39, %37, %41 : vector<32x256xi1>, vector<32x256xf32>
      %43 = arith.truncf %42 : vector<32x256xf32> to vector<32x256xbf16>
      %c0_21 = arith.constant 0 : index
      %c0_22 = arith.constant 0 : index
      %44 = vector.load %arg6[%c0_21, %c0_22] : memref<32x256xbf16, #tpu.memory_space<vmem>>, vector<32x256xbf16>
      tpu.vector_store %arg6[%c0_21, %c0_22], %43 {strides = array<i32>} : memref<32x256xbf16, #tpu.memory_space<vmem>>, vector<32x256xbf16>,
    } else {
    }
    return
  }
  func.func @transform_0(%arg0: i32, %arg1: i32) -> (i32, i32) {
    %c0_i32 = arith.constant 0 : i32
    %c0_i32_0 = arith.constant 0 : i32
    return %c0_i32, %arg1 : i32, i32
  }
  func.func @transform_1(%arg0: i32, %arg1: i32) -> (i32, i32) {
    %c0_i32 = arith.constant 0 : i32
    return %arg1, %arg0 : i32, i32
  }
  func.func @transform_2(%arg0: i32, %arg1: i32) -> (i32, i32) {
    %c0_i32 = arith.constant 0 : i32
    %c0_i32_0 = arith.constant 0 : i32
    return %c0_i32, %arg0 : i32, i32
  }
  func.func @transform_3(%arg0: i32, %arg1: i32) -> (i32, i32) {
    %c0_i32 = arith.constant 0 : i32
    %c0_i32_0 = arith.constant 0 : i32
    return %c0_i32, %arg0 : i32, i32
  }
  func.func @transform_4(%arg0: i32, %arg1: i32) -> (i32, i32) {
    %c0_i32 = arith.constant 0 : i32
    %c0_i32_0 = arith.constant 0 : i32
    return %c0_i32, %arg0 : i32, i32
  }
}

module attributes {stable_mosaic.version = 11 : i64} {
  func.func @_head_kernel(%arg0: i32, %arg1: memref<2x16x512xbf16, #tpu.memory_space<vmem>>, %arg2: memref<16x512xbf16, #tpu.memory_space<vmem>>, %arg3: memref<2x128xf32, #tpu.memory_space<vmem>>) attributes {dimension_semantics = [#tpu.dimension_semantics<arbitrary>], iteration_bounds = array<i64: 1>, scalar_prefetch = 0 : i64, scratch_operands = 0 : i64, tpu.core_type = #tpu.core_type<tc>, window_params = [{pipeline_mode = #tpu.pipeline_mode<synchronous>, transform_indices = @transform_0, window_bounds = array<i64: 2, 16, 512>}, {pipeline_mode = #tpu.pipeline_mode<synchronous>, transform_indices = @transform_1, window_bounds = array<i64: 16, 512>}, {pipeline_mode = #tpu.pipeline_mode<synchronous>, transform_indices = @transform_2, window_bounds = array<i64: 2, 128>}]} {
    %c0 = arith.constant 0 : index
    %c0_0 = arith.constant 0 : index
    %c0_1 = arith.constant 0 : index
    %0 = vector.load %arg1[%c0, %c0_0, %c0_1] : memref<2x16x512xbf16, #tpu.memory_space<vmem>>, vector<2x16x512xbf16>
    %1 = arith.extf %0 : vector<2x16x512xbf16> to vector<2x16x512xf32>
    %c0_2 = arith.constant 0 : index
    %c0_3 = arith.constant 0 : index
    %2 = vector.load %arg2[%c0_2, %c0_3] : memref<16x512xbf16, #tpu.memory_space<vmem>>, vector<16x512xbf16>
    %3 = vector.shape_cast %2 : vector<16x512xbf16> to vector<1x16x512xbf16>
    %4 = arith.extf %3 : vector<1x16x512xbf16> to vector<1x16x512xf32>
    %5 = vector.broadcast %4 : vector<1x16x512xf32> to vector<2x16x512xf32>
    %6 = arith.mulf %1, %5 : vector<2x16x512xf32>
    %cst = arith.constant dense<0.000000e+00> : vector<2x512xf32>
    %7 = vector.multi_reduction <add>, %6, %cst [1] : vector<2x16x512xf32> to vector<2x512xf32>
    %cst_4 = arith.constant dense<0.000000e+00> : vector<2xf32>
    %8 = vector.multi_reduction <add>, %7, %cst_4 [1] : vector<2x512xf32> to vector<2xf32>
    %9 = vector.shape_cast %8 : vector<2xf32> to vector<2x1xf32>
    %10 = arith.negf %9 : vector<2x1xf32>
    %11 = math.exp %10 : vector<2x1xf32>
    %cst_5 = arith.constant 1.000000e+00 : f32
    %12 = vector.broadcast %cst_5 : f32 to vector<2x1xf32>
    %13 = arith.addf %12, %11 : vector<2x1xf32>
    %14 = arith.divf %12, %13 : vector<2x1xf32>
    %15 = vector.shape_cast %14 : vector<2x1xf32> to vector<2x1xf32>
    %16 = vector.broadcast %15 : vector<2x1xf32> to vector<2x128xf32>
    %c0_6 = arith.constant 0 : index
    %c0_7 = arith.constant 0 : index
    %17 = vector.load %arg3[%c0_6, %c0_7] : memref<2x128xf32, #tpu.memory_space<vmem>>, vector<2x128xf32>
    tpu.vector_store %arg3[%c0_6, %c0_7], %16 {strides = array<i32>} : memref<2x128xf32, #tpu.memory_space<vmem>>, vector<2x128xf32>,
    return
  }
  func.func @transform_0(%arg0: i32) -> (i32, i32, i32) {
    %c0_i32 = arith.constant 0 : i32
    %c0_i32_0 = arith.constant 0 : i32
    %c0_i32_1 = arith.constant 0 : i32
    %c0_i32_2 = arith.constant 0 : i32
    return %c0_i32, %c0_i32_0, %c0_i32_1 : i32, i32, i32
  }
  func.func @transform_1(%arg0: i32) -> (i32, i32) {
    %c0_i32 = arith.constant 0 : i32
    %c0_i32_0 = arith.constant 0 : i32
    %c0_i32_1 = arith.constant 0 : i32
    return %c0_i32, %c0_i32_0 : i32, i32
  }
  func.func @transform_2(%arg0: i32) -> (i32, i32) {
    %c0_i32 = arith.constant 0 : i32
    %c0_i32_0 = arith.constant 0 : i32
    %c0_i32_1 = arith.constant 0 : i32
    return %c0_i32, %c0_i32_0 : i32, i32
  }
}

</mosaic_0001>

<bundles_post_ra>
// kernel: color_discriminator.5
= control target key start
LH: loop header
LB: loop body
LE: loop exit
PB: predicated region body
PF: predicated region fallthrough
CT: control target
= control target key end

     0   :  { %s3313_s9 = smov 0   ;;  %s3315_s10 = smov 0   ;;  %s3512_s0 = inlined_call_operand.vmem [shape: bf16[2048,128], index: 0, kind: input, shape index: {}]   ;;  %s3513_s1 = inlined_call_operand.vmem [shape: bf16[128,128], index: 1, kind: input, shape index: {}]   ;;  %s3514_s2 = inlined_call_operand.vmem [shape: bf16[2048,128], index: 2, kind: output, shape index: {}]  }
   0x1   :  { %s3317_s11 = smov 0  }
   0x2 LB: > { %s24_s12 = sadd.s32 1, %s3292_s10  ;;  %p2476_p0 = scmp.ge.s32.totalorder %s3296_s11, 1  ;;  %s3296_s11 = sphi %s3317_s11, %s12_s11   ;;  %s3292_s10 = sphi %s3315_s10, %s3516_s10   ;;  %s3288_s9 = sphi %s3313_s9, %s3515_s9  }
   0x3   : > { %p26_p1 = scmp.ge.s32.totalorder %s24_s12, 2  ;;  %p141_p2 = scmp.lt.s32.totalorder %s3296_s11, 3 }
   0x5   : > { %s3518_s12 = smov (%p26_p1, %s24_s12), 0  ;;  %p142_p3 = pnand %p2476_p0, %p141_p2 }
   0x6   : > { %s2477_s21 = sshll.u32 (!%p142_p3), %s3288_s9, 7 }
   0x7   : > { %145 = sbr.rel (%p142_p3) target bundleno = 432 (0x1b0), region = 28  ;;  %p172_p4 = scmp.lt.s32.totalorder (!%p142_p3), %s2477_s21, 255 }
   0xc   : > { %v2842_v0 = vld [vmem:[%s3513_s1 + $0x38] sm:$0xff]  ;;  %v2841_v1 = vld [vmem:[%s3513_s1 + $0x30] sm:$0xff]  ;;  %v2840_v2 = vld [vmem:[%s3513_s1 + $0x28] sm:$0xff]  ;;  %s3520_s21 = smov (!%p172_p4, %s2477_s21), 255 }
   0xd   : > { %768 = vmatpush.bf16.msra.mxu0 %v2842_v0  ;;  %3226 = vmatpush.bf16.msra.mxu1 %v2842_v0  ;;  %v2839_v3 = vld [vmem:[%s3513_s1 + $0x20] sm:$0xff]  ;;  %v2838_v4 = vld [vmem:[%s3513_s1 + $0x18] sm:$0xff]  ;;  %v2837_v5 = vld [vmem:[%s3513_s1 + $0x10] sm:$0xff]  ;;  %s2478_s28 = sshll.u32 %s3520_s21, 2 }
   0xe   : > { %3227 = vmatpush.bf16.msra.mxu2 %v2842_v0  ;;  %3228 = vmatpush.bf16.msra.mxu3 %v2842_v0  ;;  %v2836_v6 = vld [vmem:[%s3513_s1 + $0x8] sm:$0xff]  ;;  %v2835_v7 = vld [vmem:[%s3513_s1] sm:$0xff]  ;;  %s3366_s5 = scalar_lea.vmem %s3512_s0, %s2478_s28  ;;  %s3409_s8 = scalar_lea.vmem %s3514_s2, %s2478_s28 }
   0xf   : > { %v2771_v8 = vld [vmem:[%s3366_s5] sm:$0xff]  ;;  %v2772_v12 = vld [vmem:[%s3366_s5 + $0x8] sm:$0xff]  ;;  %v2773_v16 = vld [vmem:[%s3366_s5 + $0x10] sm:$0xff] }
  0x10   : > { %v2787_v9 = vld [vmem:[%s3366_s5 + $0x80] sm:$0xff]  ;;  %v2788_v13 = vld [vmem:[%s3366_s5 + $0x88] sm:$0xff]  ;;  %v2789_v17 = vld [vmem:[%s3366_s5 + $0x90] sm:$0xff] }
  0x11   : > { %769 = vmatpush.bf16.msra.mxu0 %v2841_v1  ;;  %3229 = vmatpush.bf16.msra.mxu1 %v2841_v1  ;;  %v2803_v10 = vld [vmem:[%s3366_s5 + $0x100] sm:$0xff]  ;;  %v2804_v14 = vld [vmem:[%s3366_s5 + $0x108] sm:$0xff]  ;;  %v2805_v18 = vld [vmem:[%s3366_s5 + $0x110] sm:$0xff] }
  0x12   : > { %3230 = vmatpush.bf16.msra.mxu2 %v2841_v1  ;;  %3231 = vmatpush.bf16.msra.mxu3 %v2841_v1  ;;  %v2819_v11 = vld [vmem:[%s3366_s5 + $0x180] sm:$0xff]  ;;  %v2820_v15 = vld [vmem:[%s3366_s5 + $0x188] sm:$0xff]  ;;  %v2821_v19 = vld [vmem:[%s3366_s5 + $0x190] sm:$0xff] }
  0x13   : > { %v2774_v20 = vld [vmem:[%s3366_s5 + $0x18] sm:$0xff]  ;;  %v2775_v24 = vld [vmem:[%s3366_s5 + $0x20] sm:$0xff]  ;;  %v2776_v28 = vld [vmem:[%s3366_s5 + $0x28] sm:$0xff] }
  0x14   : > { %v2790_v21 = vld [vmem:[%s3366_s5 + $0x98] sm:$0xff]  ;;  %v2791_v25 = vld [vmem:[%s3366_s5 + $0xa0] sm:$0xff]  ;;  %v2792_v29 = vld [vmem:[%s3366_s5 + $0xa8] sm:$0xff] }
  0x15   : > { %770 = vmatpush.bf16.msra.mxu0 %v2840_v2  ;;  %3232 = vmatpush.bf16.msra.mxu1 %v2840_v2  ;;  %v2806_v22 = vld [vmem:[%s3366_s5 + $0x118] sm:$0xff]  ;;  %v2807_v26 = vld [vmem:[%s3366_s5 + $0x120] sm:$0xff]  ;;  %v2808_v30 = vld [vmem:[%s3366_s5 + $0x128] sm:$0xff] }
  0x16   : > { %3233 = vmatpush.bf16.msra.mxu2 %v2840_v2  ;;  %3234 = vmatpush.bf16.msra.mxu3 %v2840_v2  ;;  %v2822_v23 = vld [vmem:[%s3366_s5 + $0x198] sm:$0xff]  ;;  %v2823_v27 = vld [vmem:[%s3366_s5 + $0x1a0] sm:$0xff]  ;;  %v2824_v31 = vld [vmem:[%s3366_s5 + $0x1a8] sm:$0xff] }
  0x17   : > { %v2777_v32 = vld [vmem:[%s3366_s5 + $0x30] sm:$0xff]  ;;  %v2778_v36 = vld [vmem:[%s3366_s5 + $0x38] sm:$0xff]  ;;  %v2779_v40 = vld [vmem:[%s3366_s5 + $0x40] sm:$0xff] }
  0x18   : > { %v2793_v33 = vld [vmem:[%s3366_s5 + $0xb0] sm:$0xff]  ;;  %v2794_v37 = vld [vmem:[%s3366_s5 + $0xb8] sm:$0xff]  ;;  %v2795_v41 = vld [vmem:[%s3366_s5 + $0xc0] sm:$0xff] }
  0x19   : > { %771 = vmatpush.bf16.msra.mxu0 %v2839_v3  ;;  %3235 = vmatpush.bf16.msra.mxu1 %v2839_v3  ;;  %v2809_v34 = vld [vmem:[%s3366_s5 + $0x130] sm:$0xff]  ;;  %v2810_v38 = vld [vmem:[%s3366_s5 + $0x138] sm:$0xff]  ;;  %v2811_v44 = vld [vmem:[%s3366_s5 + $0x140] sm:$0xff] }
  0x1a   : > { %3236 = vmatpush.bf16.msra.mxu2 %v2839_v3  ;;  %3237 = vmatpush.bf16.msra.mxu3 %v2839_v3  ;;  %v2825_v35 = vld [vmem:[%s3366_s5 + $0x1b0] sm:$0xff]  ;;  %v2826_v39 = vld [vmem:[%s3366_s5 + $0x1b8] sm:$0xff]  ;;  %v2827_v45 = vld [vmem:[%s3366_s5 + $0x1c0] sm:$0xff] }
  0x1b   : > { %v2780_v0 = vld [vmem:[%s3366_s5 + $0x48] sm:$0xff] }
  0x1c   : > { %v2796_v1 = vld [vmem:[%s3366_s5 + $0xc8] sm:$0xff] }
  0x1d   : > { %772 = vmatpush.bf16.msra.mxu0 %v2838_v4  ;;  %3238 = vmatpush.bf16.msra.mxu1 %v2838_v4  ;;  %v2812_v2 = vld [vmem:[%s3366_s5 + $0x148] sm:$0xff] }
  0x1e   : > { %3239 = vmatpush.bf16.msra.mxu2 %v2838_v4  ;;  %3240 = vmatpush.bf16.msra.mxu3 %v2838_v4 }
  0x21   : > { %773 = vmatpush.bf16.msra.mxu0 %v2837_v5  ;;  %3241 = vmatpush.bf16.msra.mxu1 %v2837_v5 }
  0x22   : > { %3242 = vmatpush.bf16.msra.mxu2 %v2837_v5  ;;  %3243 = vmatpush.bf16.msra.mxu3 %v2837_v5 }
  0x25   : > { %774 = vmatpush.bf16.msra.mxu0 %v2836_v6  ;;  %3244 = vmatpush.bf16.msra.mxu1 %v2836_v6 }
  0x26   : > { %3245 = vmatpush.bf16.msra.mxu2 %v2836_v6  ;;  %3246 = vmatpush.bf16.msra.mxu3 %v2836_v6 }
  0x29   : > { %775 = vmatpush.bf16.msra.mxu0 %v2835_v7  ;;  %3247 = vmatpush.bf16.msra.mxu1 %v2835_v7 }
  0x2a   : > { %3248 = vmatpush.bf16.msra.mxu2 %v2835_v7  ;;  %3249 = vmatpush.bf16.msra.mxu3 %v2835_v7  ;;  %v2828_v7 = vld [vmem:[%s3366_s5 + $0x1c8] sm:$0xff] }
  0x2c   : > { %776 = vmatmul.bf16.vlgmr.msra.gmra.mxu0 %v2771_v8  ;;  %856 = vmatmul.bf16.vlgmr.msra.gmra.mxu1 %v2787_v9 }
  0x2d   : > { %936 = vmatmul.bf16.vlgmr.msra.gmra.mxu2 %v2803_v10  ;;  %1016 = vmatmul.bf16.vlgmr.msra.gmra.mxu3 %v2819_v11 }
  0x3c   : > { %781 = vmatmul.bf16.gmra.mxu0 %v2772_v12  ;;  %861 = vmatmul.bf16.gmra.mxu1 %v2788_v13 }
  0x3d   : > { %941 = vmatmul.bf16.gmra.mxu2 %v2804_v14  ;;  %1021 = vmatmul.bf16.gmra.mxu3 %v2820_v15 }
  0x4c   : > { %786 = vmatmul.bf16.gmra.mxu0 %v2773_v16  ;;  %866 = vmatmul.bf16.gmra.mxu1 %v2789_v17 }
  0x4d   : > { %946 = vmatmul.bf16.gmra.mxu2 %v2805_v18  ;;  %1026 = vmatmul.bf16.gmra.mxu3 %v2821_v19 }
  0x5c   : > { %791 = vmatmul.bf16.gmra.mxu0 %v2774_v20  ;;  %871 = vmatmul.bf16.gmra.mxu1 %v2790_v21 }
  0x5d   : > { %951 = vmatmul.bf16.gmra.mxu2 %v2806_v22  ;;  %1031 = vmatmul.bf16.gmra.mxu3 %v2822_v23 }
  0x6c   : > { %796 = vmatmul.bf16.gmra.mxu0 %v2775_v24  ;;  %876 = vmatmul.bf16.gmra.mxu1 %v2791_v25 }
  0x6d   : > { %956 = vmatmul.bf16.gmra.mxu2 %v2807_v26  ;;  %1036 = vmatmul.bf16.gmra.mxu3 %v2823_v27 }
  0x7c   : > { %801 = vmatmul.bf16.gmra.mxu0 %v2776_v28  ;;  %881 = vmatmul.bf16.gmra.mxu1 %v2792_v29 }
  0x7d   : > { %961 = vmatmul.bf16.gmra.mxu2 %v2808_v30  ;;  %1041 = vmatmul.bf16.gmra.mxu3 %v2824_v31 }
  0x8c   : > { %806 = vmatmul.bf16.gmra.mxu0 %v2777_v32  ;;  %886 = vmatmul.bf16.gmra.mxu1 %v2793_v33  ;;  %v2781_v32 = vld [vmem:[%s3366_s5 + $0x50] sm:$0xff] }
  0x8d   : > { %966 = vmatmul.bf16.gmra.mxu2 %v2809_v34  ;;  %1046 = vmatmul.bf16.gmra.mxu3 %v2825_v35  ;;  %v2797_v33 = vld [vmem:[%s3366_s5 + $0xd0] sm:$0xff] }
  0x8e   : > { %v2813_v34 = vld [vmem:[%s3366_s5 + $0x150] sm:$0xff] }
  0x9c   : > { %811 = vmatmul.bf16.gmra.mxu0 %v2778_v36  ;;  %891 = vmatmul.bf16.gmra.mxu1 %v2794_v37 }
  0x9d   : > { %971 = vmatmul.bf16.gmra.mxu2 %v2810_v38  ;;  %1051 = vmatmul.bf16.gmra.mxu3 %v2826_v39  ;;  %v2829_v39 = vld [vmem:[%s3366_s5 + $0x1d0] sm:$0xff] }
  0xa9   : > { %v777_v42 = vpop.f32.mrf.mxu0  ;;  %v857_v43 = vpop.f32.mrf.mxu1 }
  0xaa   : > { %v1876_v46 = vmul.f32 0.2, %v777_v42  ;;  %v1908_v47 = vmul.f32 0.2, %v857_v43  ;;  %vm1748_vm0 = vcmp.gt.f32.partialorder %v777_v42, 0.0  ;;  %vm1780_vm1 = vcmp.gt.f32.partialorder %v857_v43, 0.0 }
  0xac   : > { %816 = vmatmul.bf16.gmra.mxu0 %v2779_v40  ;;  %896 = vmatmul.bf16.gmra.mxu1 %v2795_v41  ;;  %v2004_v54 = vsel %vm1748_vm0, %v777_v42, %v1876_v46  ;;  %v2036_v55 = vsel %vm1780_vm1, %v857_v43, %v1908_v47 }
  0xad   : > { %976 = vmatmul.bf16.gmra.mxu2 %v2811_v44  ;;  %1056 = vmatmul.bf16.gmra.mxu3 %v2827_v45 }
  0xb0   : > { %v937_v48 = vpop.f32.mrf.mxu2  ;;  %v1017_v49 = vpop.f32.mrf.mxu3 }
  0xb1   : > { %v779_v50 = vpop.f32.mrf.mxu0  ;;  %v859_v51 = vpop.f32.mrf.mxu1  ;;  %v1940_v60 = vmul.f32 0.2, %v937_v48  ;;  %v1972_v61 = vmul.f32 0.2, %v1017_v49  ;;  %vm1812_vm4 = vcmp.gt.f32.partialorder %v937_v48, 0.0  ;;  %vm1844_vm5 = vcmp.gt.f32.partialorder %v1017_v49, 0.0 }
  0xb2   : > { %vm1749_vm2 = vcmp.gt.f32.partialorder %v779_v50, 0.0  ;;  %v1877_v52 = vmul.f32 0.2, %v779_v50  ;;  %vm1781_vm3 = vcmp.gt.f32.partialorder %v859_v51, 0.0  ;;  %v1909_v53 = vmul.f32 0.2, %v859_v51 }
  0xb3   : > { %v2068_v8 = vsel %vm1812_vm4, %v937_v48, %v1940_v60  ;;  %v2100_v9 = vsel %vm1844_vm5, %v1017_v49, %v1972_v61 }
  0xb4   : > { %v2005_v56 = vsel %vm1749_vm2, %v779_v50, %v1877_v52  ;;  %v2037_v57 = vsel %vm1781_vm3, %v859_v51, %v1909_v53 }
  0xb5   : > { %v2846_v58 = vpack.c.bf16 %v2005_v56, %v2004_v54  ;;  %v2926_v59 = vpack.c.bf16 %v2037_v57, %v2036_v55 }
  0xb7   : > { %2847 = vst [vmem:[%s3409_s8] sm:$0xff] %v2846_v58  }
  0xb8   : > { %3178 = vst [vmem:[%s3409_s8 + $0x80] sm:$0xff] %v2926_v59   ;;  %v939_v62 = vpop.f32.mrf.mxu2  ;;  %v1019_v63 = vpop.f32.mrf.mxu3 }
  0xb9   : > { %vm1813_vm6 = vcmp.gt.f32.partialorder %v939_v62, 0.0  ;;  %v1941_v3 = vmul.f32 0.2, %v939_v62  ;;  %vm1845_vm7 = vcmp.gt.f32.partialorder %v1019_v63, 0.0  ;;  %v1973_v4 = vmul.f32 0.2, %v1019_v63  ;;  %v782_v5 = vpop.f32.mrf.mxu0  ;;  %v862_v6 = vpop.f32.mrf.mxu1 }
  0xba   : > { %v1878_v14 = vmul.f32 0.2, %v782_v5  ;;  %v1910_v15 = vmul.f32 0.2, %v862_v6  ;;  %vm1750_vm8 = vcmp.gt.f32.partialorder %v782_v5, 0.0  ;;  %vm1782_vm9 = vcmp.gt.f32.partialorder %v862_v6, 0.0 }
  0xbb   : > { %v2069_v10 = vsel %vm1813_vm6, %v939_v62, %v1941_v3  ;;  %v2101_v11 = vsel %vm1845_vm7, %v1019_v63, %v1973_v4 }
  0xbc   : > { %v3006_v12 = vpack.c.bf16 %v2069_v10, %v2068_v8  ;;  %v3086_v13 = vpack.c.bf16 %v2101_v11, %v2100_v9  ;;  %821 = vmatmul.bf16.gmra.mxu0 %v2780_v0  ;;  %901 = vmatmul.bf16.gmra.mxu1 %v2796_v1  ;;  %v2006_v22 = vsel %vm1750_vm8, %v782_v5, %v1878_v14  ;;  %v2782_v0 = vld [vmem:[%s3366_s5 + $0x58] sm:$0xff] }
  0xbd   : > { %981 = vmatmul.bf16.gmra.mxu2 %v2812_v2  ;;  %1061 = vmatmul.bf16.gmra.mxu3 %v2828_v7  ;;  %v2038_v23 = vsel %vm1782_vm9, %v862_v6, %v1910_v15  ;;  %v2798_v1 = vld [vmem:[%s3366_s5 + $0xd8] sm:$0xff] }
  0xbe   : > { %3194 = vst [vmem:[%s3409_s8 + $0x100] sm:$0xff] %v3006_v12   ;;  %v2814_v2 = vld [vmem:[%s3366_s5 + $0x158] sm:$0xff] }
  0xbf   : > { %3210 = vst [vmem:[%s3409_s8 + $0x180] sm:$0xff] %v3086_v13   ;;  %v2830_v7 = vld [vmem:[%s3366_s5 + $0x1d8] sm:$0xff] }
  0xc0   : > { %v942_v16 = vpop.f32.mrf.mxu2  ;;  %v1022_v17 = vpop.f32.mrf.mxu3 }
  0xc1   : > { %v784_v18 = vpop.f32.mrf.mxu0  ;;  %v864_v19 = vpop.f32.mrf.mxu1  ;;  %v1942_v28 = vmul.f32 0.2, %v942_v16  ;;  %v1974_v29 = vmul.f32 0.2, %v1022_v17  ;;  %vm1814_vm12 = vcmp.gt.f32.partialorder %v942_v16, 0.0  ;;  %vm1846_vm13 = vcmp.gt.f32.partialorder %v1022_v17, 0.0 }
  0xc2   : > { %vm1751_vm10 = vcmp.gt.f32.partialorder %v784_v18, 0.0  ;;  %v1879_v20 = vmul.f32 0.2, %v784_v18  ;;  %vm1783_vm11 = vcmp.gt.f32.partialorder %v864_v19, 0.0  ;;  %v1911_v21 = vmul.f32 0.2, %v864_v19 }
  0xc3   : > { %v2070_v40 = vsel %vm1814_vm12, %v942_v16, %v1942_v28  ;;  %v2102_v41 = vsel %vm1846_vm13, %v1022_v17, %v1974_v29 }
  0xc4   : > { %v2007_v24 = vsel %vm1751_vm10, %v784_v18, %v1879_v20  ;;  %v2039_v25 = vsel %vm1783_vm11, %v864_v19, %v1911_v21 }
  0xc5   : > { %v2851_v26 = vpack.c.bf16 %v2007_v24, %v2006_v22  ;;  %v2931_v27 = vpack.c.bf16 %v2039_v25, %v2038_v23 }
  0xc7   : > { %3163 = vst [vmem:[%s3409_s8 + $0x8] sm:$0xff] %v2851_v26  }
  0xc8   : > { %3179 = vst [vmem:[%s3409_s8 + $0x88] sm:$0xff] %v2931_v27   ;;  %v944_v30 = vpop.f32.mrf.mxu2  ;;  %v1024_v31 = vpop.f32.mrf.mxu3 }
  0xc9   : > { %vm1815_vm14 = vcmp.gt.f32.partialorder %v944_v30, 0.0  ;;  %v1943_v35 = vmul.f32 0.2, %v944_v30  ;;  %vm1847_vm15 = vcmp.gt.f32.partialorder %v1024_v31, 0.0  ;;  %v1975_v36 = vmul.f32 0.2, %v1024_v31  ;;  %v787_v37 = vpop.f32.mrf.mxu0  ;;  %v867_v38 = vpop.f32.mrf.mxu1 }
  0xca   : > { %v1880_v46 = vmul.f32 0.2, %v787_v37  ;;  %v1912_v47 = vmul.f32 0.2, %v867_v38  ;;  %vm1752_vm0 = vcmp.gt.f32.partialorder %v787_v37, 0.0  ;;  %vm1784_vm1 = vcmp.gt.f32.partialorder %v867_v38, 0.0 }
  0xcb   : > { %v2071_v42 = vsel %vm1815_vm14, %v944_v30, %v1943_v35  ;;  %v2103_v43 = vsel %vm1847_vm15, %v1024_v31, %v1975_v36 }
  0xcc   : > { %v3011_v44 = vpack.c.bf16 %v2071_v42, %v2070_v40  ;;  %v3091_v45 = vpack.c.bf16 %v2103_v43, %v2102_v41  ;;  %826 = vmatmul.bf16.gmra.mxu0 %v2781_v32  ;;  %906 = vmatmul.bf16.gmra.mxu1 %v2797_v33  ;;  %v2008_v54 = vsel %vm1752_vm0, %v787_v37, %v1880_v46  ;;  %v2783_v32 = vld [vmem:[%s3366_s5 + $0x60] sm:$0xff] }
  0xcd   : > { %986 = vmatmul.bf16.gmra.mxu2 %v2813_v34  ;;  %1066 = vmatmul.bf16.gmra.mxu3 %v2829_v39  ;;  %v2040_v55 = vsel %vm1784_vm1, %v867_v38, %v1912_v47  ;;  %v2799_v33 = vld [vmem:[%s3366_s5 + $0xe0] sm:$0xff] }
  0xce   : > { %3195 = vst [vmem:[%s3409_s8 + $0x108] sm:$0xff] %v3011_v44   ;;  %v2815_v34 = vld [vmem:[%s3366_s5 + $0x160] sm:$0xff] }
  0xcf   : > { %3211 = vst [vmem:[%s3409_s8 + $0x188] sm:$0xff] %v3091_v45   ;;  %v2831_v39 = vld [vmem:[%s3366_s5 + $0x1e0] sm:$0xff] }
  0xd0   : > { %v947_v48 = vpop.f32.mrf.mxu2  ;;  %v1027_v49 = vpop.f32.mrf.mxu3 }
  0xd1   : > { %v789_v50 = vpop.f32.mrf.mxu0  ;;  %v869_v51 = vpop.f32.mrf.mxu1  ;;  %v1944_v60 = vmul.f32 0.2, %v947_v48  ;;  %v1976_v61 = vmul.f32 0.2, %v1027_v49  ;;  %vm1816_vm4 = vcmp.gt.f32.partialorder %v947_v48, 0.0  ;;  %vm1848_vm5 = vcmp.gt.f32.partialorder %v1027_v49, 0.0 }
  0xd2   : > { %vm1753_vm2 = vcmp.gt.f32.partialorder %v789_v50, 0.0  ;;  %v1881_v52 = vmul.f32 0.2, %v789_v50  ;;  %vm1785_vm3 = vcmp.gt.f32.partialorder %v869_v51, 0.0  ;;  %v1913_v53 = vmul.f32 0.2, %v869_v51 }
  0xd3   : > { %v2072_v8 = vsel %vm1816_vm4, %v947_v48, %v1944_v60  ;;  %v2104_v9 = vsel %vm1848_vm5, %v1027_v49, %v1976_v61 }
  0xd4   : > { %v2009_v56 = vsel %vm1753_vm2, %v789_v50, %v1881_v52  ;;  %v2041_v57 = vsel %vm1785_vm3, %v869_v51, %v1913_v53 }
  0xd5   : > { %v2856_v58 = vpack.c.bf16 %v2009_v56, %v2008_v54  ;;  %v2936_v59 = vpack.c.bf16 %v2041_v57, %v2040_v55 }
  0xd7   : > { %3164 = vst [vmem:[%s3409_s8 + $0x10] sm:$0xff] %v2856_v58  }
  0xd8   : > { %3180 = vst [vmem:[%s3409_s8 + $0x90] sm:$0xff] %v2936_v59   ;;  %v949_v62 = vpop.f32.mrf.mxu2  ;;  %v1029_v63 = vpop.f32.mrf.mxu3 }
  0xd9   : > { %vm1817_vm6 = vcmp.gt.f32.partialorder %v949_v62, 0.0  ;;  %v1945_v3 = vmul.f32 0.2, %v949_v62  ;;  %vm1849_vm7 = vcmp.gt.f32.partialorder %v1029_v63, 0.0  ;;  %v1977_v4 = vmul.f32 0.2, %v1029_v63  ;;  %v792_v5 = vpop.f32.mrf.mxu0  ;;  %v872_v6 = vpop.f32.mrf.mxu1 }
  0xda   : > { %v1882_v14 = vmul.f32 0.2, %v792_v5  ;;  %v1914_v15 = vmul.f32 0.2, %v872_v6  ;;  %vm1754_vm8 = vcmp.gt.f32.partialorder %v792_v5, 0.0  ;;  %vm1786_vm9 = vcmp.gt.f32.partialorder %v872_v6, 0.0 }
  0xdb   : > { %v2073_v10 = vsel %vm1817_vm6, %v949_v62, %v1945_v3  ;;  %v2105_v11 = vsel %vm1849_vm7, %v1029_v63, %v1977_v4 }
  0xdc   : > { %v3016_v12 = vpack.c.bf16 %v2073_v10, %v2072_v8  ;;  %v3096_v13 = vpack.c.bf16 %v2105_v11, %v2104_v9  ;;  %831 = vmatmul.bf16.gmra.mxu0 %v2782_v0  ;;  %911 = vmatmul.bf16.gmra.mxu1 %v2798_v1  ;;  %v2010_v22 = vsel %vm1754_vm8, %v792_v5, %v1882_v14  ;;  %v2784_v0 = vld [vmem:[%s3366_s5 + $0x68] sm:$0xff] }
  0xdd   : > { %991 = vmatmul.bf16.gmra.mxu2 %v2814_v2  ;;  %1071 = vmatmul.bf16.gmra.mxu3 %v2830_v7  ;;  %v2042_v23 = vsel %vm1786_vm9, %v872_v6, %v1914_v15  ;;  %v2800_v1 = vld [vmem:[%s3366_s5 + $0xe8] sm:$0xff] }
  0xde   : > { %3196 = vst [vmem:[%s3409_s8 + $0x110] sm:$0xff] %v3016_v12   ;;  %v2816_v2 = vld [vmem:[%s3366_s5 + $0x168] sm:$0xff] }
  0xdf   : > { %3212 = vst [vmem:[%s3409_s8 + $0x190] sm:$0xff] %v3096_v13   ;;  %v2832_v7 = vld [vmem:[%s3366_s5 + $0x1e8] sm:$0xff] }
  0xe0   : > { %v952_v16 = vpop.f32.mrf.mxu2  ;;  %v1032_v17 = vpop.f32.mrf.mxu3 }
  0xe1   : > { %v794_v18 = vpop.f32.mrf.mxu0  ;;  %v874_v19 = vpop.f32.mrf.mxu1  ;;  %v1946_v28 = vmul.f32 0.2, %v952_v16  ;;  %v1978_v29 = vmul.f32 0.2, %v1032_v17  ;;  %vm1818_vm12 = vcmp.gt.f32.partialorder %v952_v16, 0.0  ;;  %vm1850_vm13 = vcmp.gt.f32.partialorder %v1032_v17, 0.0 }
  0xe2   : > { %vm1755_vm10 = vcmp.gt.f32.partialorder %v794_v18, 0.0  ;;  %v1883_v20 = vmul.f32 0.2, %v794_v18  ;;  %vm1787_vm11 = vcmp.gt.f32.partialorder %v874_v19, 0.0  ;;  %v1915_v21 = vmul.f32 0.2, %v874_v19 }
  0xe3   : > { %v2074_v40 = vsel %vm1818_vm12, %v952_v16, %v1946_v28  ;;  %v2106_v41 = vsel %vm1850_vm13, %v1032_v17, %v1978_v29 }
  0xe4   : > { %v2011_v24 = vsel %vm1755_vm10, %v794_v18, %v1883_v20  ;;  %v2043_v25 = vsel %vm1787_vm11, %v874_v19, %v1915_v21 }
  0xe5   : > { %v2861_v26 = vpack.c.bf16 %v2011_v24, %v2010_v22  ;;  %v2941_v27 = vpack.c.bf16 %v2043_v25, %v2042_v23 }
  0xe7   : > { %3165 = vst [vmem:[%s3409_s8 + $0x18] sm:$0xff] %v2861_v26  }
  0xe8   : > { %3181 = vst [vmem:[%s3409_s8 + $0x98] sm:$0xff] %v2941_v27   ;;  %v954_v30 = vpop.f32.mrf.mxu2  ;;  %v1034_v31 = vpop.f32.mrf.mxu3 }
  0xe9   : > { %vm1819_vm14 = vcmp.gt.f32.partialorder %v954_v30, 0.0  ;;  %v1947_v35 = vmul.f32 0.2, %v954_v30  ;;  %vm1851_vm15 = vcmp.gt.f32.partialorder %v1034_v31, 0.0  ;;  %v1979_v36 = vmul.f32 0.2, %v1034_v31  ;;  %v797_v37 = vpop.f32.mrf.mxu0  ;;  %v877_v38 = vpop.f32.mrf.mxu1 }
  0xea   : > { %v1884_v46 = vmul.f32 0.2, %v797_v37  ;;  %v1916_v47 = vmul.f32 0.2, %v877_v38  ;;  %vm1756_vm0 = vcmp.gt.f32.partialorder %v797_v37, 0.0  ;;  %vm1788_vm1 = vcmp.gt.f32.partialorder %v877_v38, 0.0 }
  0xeb   : > { %v2075_v42 = vsel %vm1819_vm14, %v954_v30, %v1947_v35  ;;  %v2107_v43 = vsel %vm1851_vm15, %v1034_v31, %v1979_v36 }
  0xec   : > { %v3021_v44 = vpack.c.bf16 %v2075_v42, %v2074_v40  ;;  %v3101_v45 = vpack.c.bf16 %v2107_v43, %v2106_v41  ;;  %836 = vmatmul.bf16.gmra.mxu0 %v2783_v32  ;;  %916 = vmatmul.bf16.gmra.mxu1 %v2799_v33  ;;  %v2012_v54 = vsel %vm1756_vm0, %v797_v37, %v1884_v46  ;;  %v2785_v32 = vld [vmem:[%s3366_s5 + $0x70] sm:$0xff] }
  0xed   : > { %996 = vmatmul.bf16.gmra.mxu2 %v2815_v34  ;;  %1076 = vmatmul.bf16.gmra.mxu3 %v2831_v39  ;;  %v2044_v55 = vsel %vm1788_vm1, %v877_v38, %v1916_v47  ;;  %v2801_v33 = vld [vmem:[%s3366_s5 + $0xf0] sm:$0xff] }
  0xee   : > { %3197 = vst [vmem:[%s3409_s8 + $0x118] sm:$0xff] %v3021_v44   ;;  %v2817_v34 = vld [vmem:[%s3366_s5 + $0x170] sm:$0xff] }
  0xef   : > { %3213 = vst [vmem:[%s3409_s8 + $0x198] sm:$0xff] %v3101_v45   ;;  %v2833_v39 = vld [vmem:[%s3366_s5 + $0x1f0] sm:$0xff] }
  0xf0   : > { %v957_v48 = vpop.f32.mrf.mxu2  ;;  %v1037_v49 = vpop.f32.mrf.mxu3 }
  0xf1   : > { %v799_v50 = vpop.f32.mrf.mxu0  ;;  %v879_v51 = vpop.f32.mrf.mxu1  ;;  %v1948_v60 = vmul.f32 0.2, %v957_v48  ;;  %v1980_v61 = vmul.f32 0.2, %v1037_v49  ;;  %vm1820_vm4 = vcmp.gt.f32.partialorder %v957_v48, 0.0  ;;  %vm1852_vm5 = vcmp.gt.f32.partialorder %v1037_v49, 0.0 }
  0xf2   : > { %vm1757_vm2 = vcmp.gt.f32.partialorder %v799_v50, 0.0  ;;  %v1885_v52 = vmul.f32 0.2, %v799_v50  ;;  %vm1789_vm3 = vcmp.gt.f32.partialorder %v879_v51, 0.0  ;;  %v1917_v53 = vmul.f32 0.2, %v879_v51 }
  0xf3   : > { %v2076_v8 = vsel %vm1820_vm4, %v957_v48, %v1948_v60  ;;  %v2108_v9 = vsel %vm1852_vm5, %v1037_v49, %v1980_v61 }
  0xf4   : > { %v2013_v56 = vsel %vm1757_vm2, %v799_v50, %v1885_v52  ;;  %v2045_v57 = vsel %vm1789_vm3, %v879_v51, %v1917_v53 }
  0xf5   : > { %v2866_v58 = vpack.c.bf16 %v2013_v56, %v2012_v54  ;;  %v2946_v59 = vpack.c.bf16 %v2045_v57, %v2044_v55 }
  0xf7   : > { %3166 = vst [vmem:[%s3409_s8 + $0x20] sm:$0xff] %v2866_v58  }
  0xf8   : > { %3182 = vst [vmem:[%s3409_s8 + $0xa0] sm:$0xff] %v2946_v59   ;;  %v959_v62 = vpop.f32.mrf.mxu2  ;;  %v1039_v63 = vpop.f32.mrf.mxu3 }
  0xf9   : > { %vm1821_vm6 = vcmp.gt.f32.partialorder %v959_v62, 0.0  ;;  %v1949_v3 = vmul.f32 0.2, %v959_v62  ;;  %vm1853_vm7 = vcmp.gt.f32.partialorder %v1039_v63, 0.0  ;;  %v1981_v4 = vmul.f32 0.2, %v1039_v63  ;;  %v802_v5 = vpop.f32.mrf.mxu0  ;;  %v882_v6 = vpop.f32.mrf.mxu1 }
  0xfa   : > { %v1886_v14 = vmul.f32 0.2, %v802_v5  ;;  %v1918_v15 = vmul.f32 0.2, %v882_v6  ;;  %vm1758_vm8 = vcmp.gt.f32.partialorder %v802_v5, 0.0  ;;  %vm1790_vm9 = vcmp.gt.f32.partialorder %v882_v6, 0.0 }
  0xfb   : > { %v2077_v10 = vsel %vm1821_vm6, %v959_v62, %v1949_v3  ;;  %v2109_v11 = vsel %vm1853_vm7, %v1039_v63, %v1981_v4 }
  0xfc   : > { %v3026_v12 = vpack.c.bf16 %v2077_v10, %v2076_v8  ;;  %v3106_v13 = vpack.c.bf16 %v2109_v11, %v2108_v9  ;;  %841 = vmatmul.bf16.gmra.mxu0 %v2784_v0  ;;  %921 = vmatmul.bf16.gmra.mxu1 %v2800_v1  ;;  %v2014_v22 = vsel %vm1758_vm8, %v802_v5, %v1886_v14  ;;  %v2786_v0 = vld [vmem:[%s3366_s5 + $0x78] sm:$0xff] }
  0xfd   : > { %1001 = vmatmul.bf16.gmra.mxu2 %v2816_v2  ;;  %1081 = vmatmul.bf16.gmra.mxu3 %v2832_v7  ;;  %v2046_v23 = vsel %vm1790_vm9, %v882_v6, %v1918_v15  ;;  %v2802_v1 = vld [vmem:[%s3366_s5 + $0xf8] sm:$0xff] }
  0xfe   : > { %3198 = vst [vmem:[%s3409_s8 + $0x120] sm:$0xff] %v3026_v12   ;;  %v2818_v2 = vld [vmem:[%s3366_s5 + $0x178] sm:$0xff] }
  0xff   : > { %3214 = vst [vmem:[%s3409_s8 + $0x1a0] sm:$0xff] %v3106_v13   ;;  %v2834_v7 = vld [vmem:[%s3366_s5 + $0x1f8] sm:$0xff] }
 0x100   : > { %v962_v16 = vpop.f32.mrf.mxu2  ;;  %v1042_v17 = vpop.f32.mrf.mxu3 }
 0x101   : > { %v804_v18 = vpop.f32.mrf.mxu0  ;;  %v884_v19 = vpop.f32.mrf.mxu1  ;;  %v1950_v28 = vmul.f32 0.2, %v962_v16  ;;  %v1982_v29 = vmul.f32 0.2, %v1042_v17  ;;  %vm1822_vm12 = vcmp.gt.f32.partialorder %v962_v16, 0.0  ;;  %vm1854_vm13 = vcmp.gt.f32.partialorder %v1042_v17, 0.0 }
 0x102   : > { %vm1759_vm10 = vcmp.gt.f32.partialorder %v804_v18, 0.0  ;;  %v1887_v20 = vmul.f32 0.2, %v804_v18  ;;  %vm1791_vm11 = vcmp.gt.f32.partialorder %v884_v19, 0.0  ;;  %v1919_v21 = vmul.f32 0.2, %v884_v19 }
 0x103   : > { %v2078_v40 = vsel %vm1822_vm12, %v962_v16, %v1950_v28  ;;  %v2110_v41 = vsel %vm1854_vm13, %v1042_v17, %v1982_v29 }
 0x104   : > { %v2015_v24 = vsel %vm1759_vm10, %v804_v18, %v1887_v20  ;;  %v2047_v25 = vsel %vm1791_vm11, %v884_v19, %v1919_v21 }
 0x105   : > { %v2871_v26 = vpack.c.bf16 %v2015_v24, %v2014_v22  ;;  %v2951_v27 = vpack.c.bf16 %v2047_v25, %v2046_v23 }
 0x107   : > { %3167 = vst [vmem:[%s3409_s8 + $0x28] sm:$0xff] %v2871_v26  }
 0x108   : > { %3183 = vst [vmem:[%s3409_s8 + $0xa8] sm:$0xff] %v2951_v27   ;;  %v964_v30 = vpop.f32.mrf.mxu2  ;;  %v1044_v31 = vpop.f32.mrf.mxu3 }
 0x109   : > { %vm1823_vm14 = vcmp.gt.f32.partialorder %v964_v30, 0.0  ;;  %v1951_v35 = vmul.f32 0.2, %v964_v30  ;;  %vm1855_vm15 = vcmp.gt.f32.partialorder %v1044_v31, 0.0  ;;  %v1983_v36 = vmul.f32 0.2, %v1044_v31  ;;  %v807_v37 = vpop.f32.mrf.mxu0  ;;  %v887_v38 = vpop.f32.mrf.mxu1 }
 0x10a   : > { %v1888_v46 = vmul.f32 0.2, %v807_v37  ;;  %v1920_v47 = vmul.f32 0.2, %v887_v38  ;;  %vm1760_vm0 = vcmp.gt.f32.partialorder %v807_v37, 0.0  ;;  %vm1792_vm1 = vcmp.gt.f32.partialorder %v887_v38, 0.0 }
 0x10b   : > { %v2079_v42 = vsel %vm1823_vm14, %v964_v30, %v1951_v35  ;;  %v2111_v43 = vsel %vm1855_vm15, %v1044_v31, %v1983_v36 }
 0x10c   : > { %v3031_v44 = vpack.c.bf16 %v2079_v42, %v2078_v40  ;;  %v3111_v45 = vpack.c.bf16 %v2111_v43, %v2110_v41  ;;  %846 = vmatmul.bf16.gmra.mxu0 %v2785_v32  ;;  %926 = vmatmul.bf16.gmra.mxu1 %v2801_v33  ;;  %v2016_v54 = vsel %vm1760_vm0, %v807_v37, %v1888_v46 }
 0x10d   : > { %1006 = vmatmul.bf16.gmra.mxu2 %v2817_v34  ;;  %1086 = vmatmul.bf16.gmra.mxu3 %v2833_v39  ;;  %v2048_v55 = vsel %vm1792_vm1, %v887_v38, %v1920_v47 }
 0x10e   : > { %3199 = vst [vmem:[%s3409_s8 + $0x128] sm:$0xff] %v3031_v44  }
 0x10f   : > { %3215 = vst [vmem:[%s3409_s8 + $0x1a8] sm:$0xff] %v3111_v45  }
 0x110   : > { %v967_v48 = vpop.f32.mrf.mxu2  ;;  %v1047_v49 = vpop.f32.mrf.mxu3 }
 0x111   : > { %v809_v50 = vpop.f32.mrf.mxu0  ;;  %v889_v51 = vpop.f32.mrf.mxu1  ;;  %v1952_v60 = vmul.f32 0.2, %v967_v48  ;;  %v1984_v61 = vmul.f32 0.2, %v1047_v49  ;;  %vm1824_vm4 = vcmp.gt.f32.partialorder %v967_v48, 0.0  ;;  %vm1856_vm5 = vcmp.gt.f32.partialorder %v1047_v49, 0.0 }
 0x112   : > { %vm1761_vm2 = vcmp.gt.f32.partialorder %v809_v50, 0.0  ;;  %v1889_v52 = vmul.f32 0.2, %v809_v50  ;;  %vm1793_vm3 = vcmp.gt.f32.partialorder %v889_v51, 0.0  ;;  %v1921_v53 = vmul.f32 0.2, %v889_v51 }
 0x113   : > { %v2080_v8 = vsel %vm1824_vm4, %v967_v48, %v1952_v60  ;;  %v2112_v9 = vsel %vm1856_vm5, %v1047_v49, %v1984_v61 }
 0x114   : > { %v2017_v56 = vsel %vm1761_vm2, %v809_v50, %v1889_v52  ;;  %v2049_v57 = vsel %vm1793_vm3, %v889_v51, %v1921_v53 }
 0x115   : > { %v2876_v58 = vpack.c.bf16 %v2017_v56, %v2016_v54  ;;  %v2956_v59 = vpack.c.bf16 %v2049_v57, %v2048_v55 }
 0x117   : > { %3168 = vst [vmem:[%s3409_s8 + $0x30] sm:$0xff] %v2876_v58  }
 0x118   : > { %3184 = vst [vmem:[%s3409_s8 + $0xb0] sm:$0xff] %v2956_v59   ;;  %v969_v62 = vpop.f32.mrf.mxu2  ;;  %v1049_v63 = vpop.f32.mrf.mxu3 }
 0x119   : > { %vm1825_vm6 = vcmp.gt.f32.partialorder %v969_v62, 0.0  ;;  %v1953_v3 = vmul.f32 0.2, %v969_v62  ;;  %vm1857_vm7 = vcmp.gt.f32.partialorder %v1049_v63, 0.0  ;;  %v1985_v4 = vmul.f32 0.2, %v1049_v63  ;;  %v812_v5 = vpop.f32.mrf.mxu0  ;;  %v892_v6 = vpop.f32.mrf.mxu1 }
 0x11a   : > { %v1890_v14 = vmul.f32 0.2, %v812_v5  ;;  %v1922_v15 = vmul.f32 0.2, %v892_v6  ;;  %vm1762_vm8 = vcmp.gt.f32.partialorder %v812_v5, 0.0  ;;  %vm1794_vm9 = vcmp.gt.f32.partialorder %v892_v6, 0.0 }
 0x11b   : > { %v2081_v10 = vsel %vm1825_vm6, %v969_v62, %v1953_v3  ;;  %v2113_v11 = vsel %vm1857_vm7, %v1049_v63, %v1985_v4 }
 0x11c   : > { %v3036_v12 = vpack.c.bf16 %v2081_v10, %v2080_v8  ;;  %v3116_v13 = vpack.c.bf16 %v2113_v11, %v2112_v9  ;;  %851 = vmatmul.bf16.gmra.mxu0 %v2786_v0  ;;  %931 = vmatmul.bf16.gmra.mxu1 %v2802_v1  ;;  %v2018_v22 = vsel %vm1762_vm8, %v812_v5, %v1890_v14 }
 0x11d   : > { %1011 = vmatmul.bf16.gmra.mxu2 %v2818_v2  ;;  %1091 = vmatmul.bf16.gmra.mxu3 %v2834_v7  ;;  %v2050_v23 = vsel %vm1794_vm9, %v892_v6, %v1922_v15 }
 0x11e   : > { %3200 = vst [vmem:[%s3409_s8 + $0x130] sm:$0xff] %v3036_v12  }
 0x11f   : > { %3216 = vst [vmem:[%s3409_s8 + $0x1b0] sm:$0xff] %v3116_v13  }
 0x120   : > { %v972_v16 = vpop.f32.mrf.mxu2  ;;  %v1052_v17 = vpop.f32.mrf.mxu3 }
 0x121   : > { %v814_v18 = vpop.f32.mrf.mxu0  ;;  %v894_v19 = vpop.f32.mrf.mxu1  ;;  %v1954_v28 = vmul.f32 0.2, %v972_v16  ;;  %v1986_v29 = vmul.f32 0.2, %v1052_v17  ;;  %vm1826_vm12 = vcmp.gt.f32.partialorder %v972_v16, 0.0  ;;  %vm1858_vm13 = vcmp.gt.f32.partialorder %v1052_v17, 0.0 }
 0x122   : > { %vm1763_vm10 = vcmp.gt.f32.partialorder %v814_v18, 0.0  ;;  %v1891_v20 = vmul.f32 0.2, %v814_v18  ;;  %vm1795_vm11 = vcmp.gt.f32.partialorder %v894_v19, 0.0  ;;  %v1923_v21 = vmul.f32 0.2, %v894_v19 }
 0x123   : > { %v2082_v36 = vsel %vm1826_vm12, %v972_v16, %v1954_v28  ;;  %v2114_v37 = vsel %vm1858_vm13, %v1052_v17, %v1986_v29 }
 0x124   : > { %v2019_v24 = vsel %vm1763_vm10, %v814_v18, %v1891_v20  ;;  %v2051_v25 = vsel %vm1795_vm11, %v894_v19, %v1923_v21 }
 0x125   : > { %v2881_v26 = vpack.c.bf16 %v2019_v24, %v2018_v22  ;;  %v2961_v27 = vpack.c.bf16 %v2051_v25, %v2050_v23 }
 0x127   : > { %3169 = vst [vmem:[%s3409_s8 + $0x38] sm:$0xff] %v2881_v26  }
 0x128   : > { %3185 = vst [vmem:[%s3409_s8 + $0xb8] sm:$0xff] %v2961_v27   ;;  %v974_v30 = vpop.f32.mrf.mxu2  ;;  %v1054_v31 = vpop.f32.mrf.mxu3 }
 0x129   : > { %vm1827_vm14 = vcmp.gt.f32.partialorder %v974_v30, 0.0  ;;  %v1955_v32 = vmul.f32 0.2, %v974_v30  ;;  %vm1859_vm15 = vcmp.gt.f32.partialorder %v1054_v31, 0.0  ;;  %v1987_v33 = vmul.f32 0.2, %v1054_v31  ;;  %v817_v34 = vpop.f32.mrf.mxu0  ;;  %v897_v35 = vpop.f32.mrf.mxu1 }
 0x12a   : > { %v1892_v42 = vmul.f32 0.2, %v817_v34  ;;  %v1924_v43 = vmul.f32 0.2, %v897_v35  ;;  %vm1764_vm0 = vcmp.gt.f32.partialorder %v817_v34, 0.0  ;;  %vm1796_vm1 = vcmp.gt.f32.partialorder %v897_v35, 0.0 }
 0x12b   : > { %v2083_v38 = vsel %vm1827_vm14, %v974_v30, %v1955_v32  ;;  %v2115_v39 = vsel %vm1859_vm15, %v1054_v31, %v1987_v33 }
 0x12c   : > { %v3041_v40 = vpack.c.bf16 %v2083_v38, %v2082_v36  ;;  %v3121_v41 = vpack.c.bf16 %v2115_v39, %v2114_v37  ;;  %v2020_v50 = vsel %vm1764_vm0, %v817_v34, %v1892_v42  ;;  %v2052_v51 = vsel %vm1796_vm1, %v897_v35, %v1924_v43 }
 0x12e   : > { %3201 = vst [vmem:[%s3409_s8 + $0x138] sm:$0xff] %v3041_v40  }
 0x12f   : > { %3217 = vst [vmem:[%s3409_s8 + $0x1b8] sm:$0xff] %v3121_v41  }
 0x130   : > { %v977_v44 = vpop.f32.mrf.mxu2  ;;  %v1057_v45 = vpop.f32.mrf.mxu3 }
 0x131   : > { %v819_v46 = vpop.f32.mrf.mxu0  ;;  %v899_v47 = vpop.f32.mrf.mxu1  ;;  %v1956_v56 = vmul.f32 0.2, %v977_v44  ;;  %v1988_v57 = vmul.f32 0.2, %v1057_v45  ;;  %vm1828_vm4 = vcmp.gt.f32.partialorder %v977_v44, 0.0  ;;  %vm1860_vm5 = vcmp.gt.f32.partialorder %v1057_v45, 0.0 }
 0x132   : > { %vm1765_vm2 = vcmp.gt.f32.partialorder %v819_v46, 0.0  ;;  %v1893_v48 = vmul.f32 0.2, %v819_v46  ;;  %vm1797_vm3 = vcmp.gt.f32.partialorder %v899_v47, 0.0  ;;  %v1925_v49 = vmul.f32 0.2, %v899_v47 }
 0x133   : > { %v2084_v0 = vsel %vm1828_vm4, %v977_v44, %v1956_v56  ;;  %v2116_v1 = vsel %vm1860_vm5, %v1057_v45, %v1988_v57 }
 0x134   : > { %v2021_v52 = vsel %vm1765_vm2, %v819_v46, %v1893_v48  ;;  %v2053_v53 = vsel %vm1797_vm3, %v899_v47, %v1925_v49 }
 0x135   : > { %v2886_v54 = vpack.c.bf16 %v2021_v52, %v2020_v50  ;;  %v2966_v55 = vpack.c.bf16 %v2053_v53, %v2052_v51 }
 0x137   : > { %3170 = vst [vmem:[%s3409_s8 + $0x40] sm:$0xff] %v2886_v54  }
 0x138   : > { %3186 = vst [vmem:[%s3409_s8 + $0xc0] sm:$0xff] %v2966_v55   ;;  %v979_v58 = vpop.f32.mrf.mxu2  ;;  %v1059_v59 = vpop.f32.mrf.mxu3 }
 0x139   : > { %vm1829_vm6 = vcmp.gt.f32.partialorder %v979_v58, 0.0  ;;  %v1957_v60 = vmul.f32 0.2, %v979_v58  ;;  %vm1861_vm7 = vcmp.gt.f32.partialorder %v1059_v59, 0.0  ;;  %v1989_v61 = vmul.f32 0.2, %v1059_v59  ;;  %v822_v62 = vpop.f32.mrf.mxu0  ;;  %v902_v63 = vpop.f32.mrf.mxu1 }
 0x13a   : > { %v1894_v6 = vmul.f32 0.2, %v822_v62  ;;  %vm1766_vm8 = vcmp.gt.f32.partialorder %v822_v62, 0.0  ;;  %v1926_v8 = vmul.f32 0.2, %v902_v63  ;;  %vm1798_vm9 = vcmp.gt.f32.partialorder %v902_v63, 0.0 }
 0x13b   : > { %v2085_v2 = vsel %vm1829_vm6, %v979_v58, %v1957_v60  ;;  %v2117_v3 = vsel %vm1861_vm7, %v1059_v59, %v1989_v61 }
 0x13c   : > { %v3046_v4 = vpack.c.bf16 %v2085_v2, %v2084_v0  ;;  %v3126_v5 = vpack.c.bf16 %v2117_v3, %v2116_v1  ;;  %v2022_v14 = vsel %vm1766_vm8, %v822_v62, %v1894_v6  ;;  %v2054_v16 = vsel %vm1798_vm9, %v902_v63, %v1926_v8 }
 0x13e   : > { %3202 = vst [vmem:[%s3409_s8 + $0x140] sm:$0xff] %v3046_v4  }
 0x13f   : > { %3218 = vst [vmem:[%s3409_s8 + $0x1c0] sm:$0xff] %v3126_v5  }
 0x140   : > { %v982_v7 = vpop.f32.mrf.mxu2  ;;  %v1062_v9 = vpop.f32.mrf.mxu3 }
 0x141   : > { %v824_v10 = vpop.f32.mrf.mxu0  ;;  %v904_v12 = vpop.f32.mrf.mxu1  ;;  %v1958_v20 = vmul.f32 0.2, %v982_v7  ;;  %vm1830_vm12 = vcmp.gt.f32.partialorder %v982_v7, 0.0  ;;  %v1990_v21 = vmul.f32 0.2, %v1062_v9  ;;  %vm1862_vm13 = vcmp.gt.f32.partialorder %v1062_v9, 0.0 }
 0x142   : > { %vm1767_vm10 = vcmp.gt.f32.partialorder %v824_v10, 0.0  ;;  %v1895_v11 = vmul.f32 0.2, %v824_v10  ;;  %vm1799_vm11 = vcmp.gt.f32.partialorder %v904_v12, 0.0  ;;  %v1927_v13 = vmul.f32 0.2, %v904_v12 }
 0x143   : > { %v2086_v28 = vsel %vm1830_vm12, %v982_v7, %v1958_v20  ;;  %v2118_v30 = vsel %vm1862_vm13, %v1062_v9, %v1990_v21 }
 0x144   : > { %v2023_v15 = vsel %vm1767_vm10, %v824_v10, %v1895_v11  ;;  %v2055_v18 = vsel %vm1799_vm11, %v904_v12, %v1927_v13 }
 0x145   : > { %v2891_v17 = vpack.c.bf16 %v2023_v15, %v2022_v14  ;;  %v2971_v19 = vpack.c.bf16 %v2055_v18, %v2054_v16 }
 0x147   : > { %3171 = vst [vmem:[%s3409_s8 + $0x48] sm:$0xff] %v2891_v17  }
 0x148   : > { %3187 = vst [vmem:[%s3409_s8 + $0xc8] sm:$0xff] %v2971_v19   ;;  %v984_v22 = vpop.f32.mrf.mxu2  ;;  %v1064_v24 = vpop.f32.mrf.mxu3 }
 0x149   : > { %vm1831_vm14 = vcmp.gt.f32.partialorder %v984_v22, 0.0  ;;  %v1959_v23 = vmul.f32 0.2, %v984_v22  ;;  %v827_v25 = vpop.f32.mrf.mxu0  ;;  %vm1863_vm15 = vcmp.gt.f32.partialorder %v1064_v24, 0.0  ;;  %v1991_v26 = vmul.f32 0.2, %v1064_v24  ;;  %v907_v27 = vpop.f32.mrf.mxu1 }
 0x14a   : > { %v1896_v34 = vmul.f32 0.2, %v827_v25  ;;  %vm1768_vm0 = vcmp.gt.f32.partialorder %v827_v25, 0.0  ;;  %v1928_v36 = vmul.f32 0.2, %v907_v27  ;;  %vm1800_vm1 = vcmp.gt.f32.partialorder %v907_v27, 0.0 }
 0x14b   : > { %v2087_v29 = vsel %vm1831_vm14, %v984_v22, %v1959_v23  ;;  %v2119_v32 = vsel %vm1863_vm15, %v1064_v24, %v1991_v26 }
 0x14c   : > { %v3051_v31 = vpack.c.bf16 %v2087_v29, %v2086_v28  ;;  %v3131_v33 = vpack.c.bf16 %v2119_v32, %v2118_v30  ;;  %v2024_v42 = vsel %vm1768_vm0, %v827_v25, %v1896_v34  ;;  %v2056_v44 = vsel %vm1800_vm1, %v907_v27, %v1928_v36 }
 0x14e   : > { %3203 = vst [vmem:[%s3409_s8 + $0x148] sm:$0xff] %v3051_v31  }
 0x14f   : > { %3219 = vst [vmem:[%s3409_s8 + $0x1c8] sm:$0xff] %v3131_v33  }
 0x150   : > { %v987_v35 = vpop.f32.mrf.mxu2  ;;  %v1067_v37 = vpop.f32.mrf.mxu3 }
 0x151   : > { %v829_v38 = vpop.f32.mrf.mxu0  ;;  %v909_v40 = vpop.f32.mrf.mxu1  ;;  %v1960_v48 = vmul.f32 0.2, %v987_v35  ;;  %vm1832_vm4 = vcmp.gt.f32.partialorder %v987_v35, 0.0  ;;  %v1992_v49 = vmul.f32 0.2, %v1067_v37  ;;  %vm1864_vm5 = vcmp.gt.f32.partialorder %v1067_v37, 0.0 }
 0x152   : > { %vm1769_vm2 = vcmp.gt.f32.partialorder %v829_v38, 0.0  ;;  %v1897_v39 = vmul.f32 0.2, %v829_v38  ;;  %vm1801_vm3 = vcmp.gt.f32.partialorder %v909_v40, 0.0  ;;  %v1929_v41 = vmul.f32 0.2, %v909_v40 }
 0x153   : > { %v2088_v56 = vsel %vm1832_vm4, %v987_v35, %v1960_v48  ;;  %v2120_v58 = vsel %vm1864_vm5, %v1067_v37, %v1992_v49 }
 0x154   : > { %v2025_v43 = vsel %vm1769_vm2, %v829_v38, %v1897_v39  ;;  %v2057_v46 = vsel %vm1801_vm3, %v909_v40, %v1929_v41 }
 0x155   : > { %v2896_v45 = vpack.c.bf16 %v2025_v43, %v2024_v42  ;;  %v2976_v47 = vpack.c.bf16 %v2057_v46, %v2056_v44 }
 0x157   : > { %3172 = vst [vmem:[%s3409_s8 + $0x50] sm:$0xff] %v2896_v45  }
 0x158   : > { %3188 = vst [vmem:[%s3409_s8 + $0xd0] sm:$0xff] %v2976_v47   ;;  %v989_v50 = vpop.f32.mrf.mxu2  ;;  %v1069_v52 = vpop.f32.mrf.mxu3 }
 0x159   : > { %vm1833_vm6 = vcmp.gt.f32.partialorder %v989_v50, 0.0  ;;  %v1961_v51 = vmul.f32 0.2, %v989_v50  ;;  %v832_v53 = vpop.f32.mrf.mxu0  ;;  %vm1865_vm7 = vcmp.gt.f32.partialorder %v1069_v52, 0.0  ;;  %v1993_v54 = vmul.f32 0.2, %v1069_v52  ;;  %v912_v55 = vpop.f32.mrf.mxu1 }
 0x15a   : > { %v1898_v62 = vmul.f32 0.2, %v832_v53  ;;  %vm1770_vm8 = vcmp.gt.f32.partialorder %v832_v53, 0.0  ;;  %v1930_v0 = vmul.f32 0.2, %v912_v55  ;;  %vm1802_vm9 = vcmp.gt.f32.partialorder %v912_v55, 0.0 }
 0x15b   : > { %v2089_v57 = vsel %vm1833_vm6, %v989_v50, %v1961_v51  ;;  %v2121_v60 = vsel %vm1865_vm7, %v1069_v52, %v1993_v54 }
 0x15c   : > { %v3056_v59 = vpack.c.bf16 %v2089_v57, %v2088_v56  ;;  %v3136_v61 = vpack.c.bf16 %v2121_v60, %v2120_v58  ;;  %v2026_v6 = vsel %vm1770_vm8, %v832_v53, %v1898_v62  ;;  %v2058_v8 = vsel %vm1802_vm9, %v912_v55, %v1930_v0 }
 0x15e   : > { %3204 = vst [vmem:[%s3409_s8 + $0x150] sm:$0xff] %v3056_v59  }
 0x15f   : > { %3220 = vst [vmem:[%s3409_s8 + $0x1d0] sm:$0xff] %v3136_v61  }
 0x160   : > { %v992_v63 = vpop.f32.mrf.mxu2  ;;  %v1072_v1 = vpop.f32.mrf.mxu3 }
 0x161   : > { %v834_v2 = vpop.f32.mrf.mxu0  ;;  %v914_v4 = vpop.f32.mrf.mxu1  ;;  %v1962_v12 = vmul.f32 0.2, %v992_v63  ;;  %vm1834_vm12 = vcmp.gt.f32.partialorder %v992_v63, 0.0  ;;  %v1994_v13 = vmul.f32 0.2, %v1072_v1  ;;  %vm1866_vm13 = vcmp.gt.f32.partialorder %v1072_v1, 0.0 }
 0x162   : > { %vm1771_vm10 = vcmp.gt.f32.partialorder %v834_v2, 0.0  ;;  %v1899_v3 = vmul.f32 0.2, %v834_v2  ;;  %vm1803_vm11 = vcmp.gt.f32.partialorder %v914_v4, 0.0  ;;  %v1931_v5 = vmul.f32 0.2, %v914_v4 }
 0x163   : > { %v2090_v20 = vsel %vm1834_vm12, %v992_v63, %v1962_v12  ;;  %v2122_v22 = vsel %vm1866_vm13, %v1072_v1, %v1994_v13 }
 0x164   : > { %v2027_v7 = vsel %vm1771_vm10, %v834_v2, %v1899_v3  ;;  %v2059_v10 = vsel %vm1803_vm11, %v914_v4, %v1931_v5 }
 0x165   : > { %v2901_v9 = vpack.c.bf16 %v2027_v7, %v2026_v6  ;;  %v2981_v11 = vpack.c.bf16 %v2059_v10, %v2058_v8 }
 0x167   : > { %3173 = vst [vmem:[%s3409_s8 + $0x58] sm:$0xff] %v2901_v9  }
 0x168   : > { %3189 = vst [vmem:[%s3409_s8 + $0xd8] sm:$0xff] %v2981_v11   ;;  %v994_v14 = vpop.f32.mrf.mxu2  ;;  %v1074_v16 = vpop.f32.mrf.mxu3 }
 0x169   : > { %vm1835_vm14 = vcmp.gt.f32.partialorder %v994_v14, 0.0  ;;  %v1963_v15 = vmul.f32 0.2, %v994_v14  ;;  %v837_v17 = vpop.f32.mrf.mxu0  ;;  %vm1867_vm15 = vcmp.gt.f32.partialorder %v1074_v16, 0.0  ;;  %v1995_v18 = vmul.f32 0.2, %v1074_v16  ;;  %v917_v19 = vpop.f32.mrf.mxu1 }
 0x16a   : > { %v1900_v26 = vmul.f32 0.2, %v837_v17  ;;  %vm1772_vm0 = vcmp.gt.f32.partialorder %v837_v17, 0.0  ;;  %v1932_v28 = vmul.f32 0.2, %v917_v19  ;;  %vm1804_vm1 = vcmp.gt.f32.partialorder %v917_v19, 0.0 }
 0x16b   : > { %v2091_v21 = vsel %vm1835_vm14, %v994_v14, %v1963_v15  ;;  %v2123_v24 = vsel %vm1867_vm15, %v1074_v16, %v1995_v18 }
 0x16c   : > { %v3061_v23 = vpack.c.bf16 %v2091_v21, %v2090_v20  ;;  %v3141_v25 = vpack.c.bf16 %v2123_v24, %v2122_v22  ;;  %v2028_v34 = vsel %vm1772_vm0, %v837_v17, %v1900_v26  ;;  %v2060_v36 = vsel %vm1804_vm1, %v917_v19, %v1932_v28 }
 0x16e   : > { %3205 = vst [vmem:[%s3409_s8 + $0x158] sm:$0xff] %v3061_v23  }
 0x16f   : > { %3221 = vst [vmem:[%s3409_s8 + $0x1d8] sm:$0xff] %v3141_v25  }
 0x170   : > { %v997_v27 = vpop.f32.mrf.mxu2  ;;  %v1077_v29 = vpop.f32.mrf.mxu3 }
 0x171   : > { %v839_v30 = vpop.f32.mrf.mxu0  ;;  %v919_v32 = vpop.f32.mrf.mxu1  ;;  %v1964_v40 = vmul.f32 0.2, %v997_v27  ;;  %vm1836_vm4 = vcmp.gt.f32.partialorder %v997_v27, 0.0  ;;  %v1996_v41 = vmul.f32 0.2, %v1077_v29  ;;  %vm1868_vm5 = vcmp.gt.f32.partialorder %v1077_v29, 0.0 }
 0x172   : > { %vm1773_vm2 = vcmp.gt.f32.partialorder %v839_v30, 0.0  ;;  %v1901_v31 = vmul.f32 0.2, %v839_v30  ;;  %vm1805_vm3 = vcmp.gt.f32.partialorder %v919_v32, 0.0  ;;  %v1933_v33 = vmul.f32 0.2, %v919_v32 }
 0x173   : > { %v2092_v48 = vsel %vm1836_vm4, %v997_v27, %v1964_v40  ;;  %v2124_v50 = vsel %vm1868_vm5, %v1077_v29, %v1996_v41 }
 0x174   : > { %v2029_v35 = vsel %vm1773_vm2, %v839_v30, %v1901_v31  ;;  %v2061_v38 = vsel %vm1805_vm3, %v919_v32, %v1933_v33 }
 0x175   : > { %v2906_v37 = vpack.c.bf16 %v2029_v35, %v2028_v34  ;;  %v2986_v39 = vpack.c.bf16 %v2061_v38, %v2060_v36 }
 0x177   : > { %3174 = vst [vmem:[%s3409_s8 + $0x60] sm:$0xff] %v2906_v37  }
 0x178   : > { %3190 = vst [vmem:[%s3409_s8 + $0xe0] sm:$0xff] %v2986_v39   ;;  %v999_v42 = vpop.f32.mrf.mxu2  ;;  %v1079_v44 = vpop.f32.mrf.mxu3 }
 0x179   : > { %vm1837_vm6 = vcmp.gt.f32.partialorder %v999_v42, 0.0  ;;  %v1965_v43 = vmul.f32 0.2, %v999_v42  ;;  %v842_v45 = vpop.f32.mrf.mxu0  ;;  %vm1869_vm7 = vcmp.gt.f32.partialorder %v1079_v44, 0.0  ;;  %v1997_v46 = vmul.f32 0.2, %v1079_v44  ;;  %v922_v47 = vpop.f32.mrf.mxu1 }
 0x17a   : > { %v1902_v54 = vmul.f32 0.2, %v842_v45  ;;  %vm1774_vm8 = vcmp.gt.f32.partialorder %v842_v45, 0.0  ;;  %v1934_v56 = vmul.f32 0.2, %v922_v47  ;;  %vm1806_vm9 = vcmp.gt.f32.partialorder %v922_v47, 0.0 }
 0x17b   : > { %v2093_v49 = vsel %vm1837_vm6, %v999_v42, %v1965_v43  ;;  %v2125_v52 = vsel %vm1869_vm7, %v1079_v44, %v1997_v46 }
 0x17c   : > { %v3066_v51 = vpack.c.bf16 %v2093_v49, %v2092_v48  ;;  %v3146_v53 = vpack.c.bf16 %v2125_v52, %v2124_v50  ;;  %v2030_v62 = vsel %vm1774_vm8, %v842_v45, %v1902_v54  ;;  %v2062_v0 = vsel %vm1806_vm9, %v922_v47, %v1934_v56 }
 0x17e   : > { %3206 = vst [vmem:[%s3409_s8 + $0x160] sm:$0xff] %v3066_v51  }
 0x17f   : > { %3222 = vst [vmem:[%s3409_s8 + $0x1e0] sm:$0xff] %v3146_v53  }
 0x180   : > { %v1002_v55 = vpop.f32.mrf.mxu2  ;;  %v1082_v57 = vpop.f32.mrf.mxu3 }
 0x181   : > { %v844_v58 = vpop.f32.mrf.mxu0  ;;  %v924_v60 = vpop.f32.mrf.mxu1  ;;  %v1966_v4 = vmul.f32 0.2, %v1002_v55  ;;  %vm1838_vm12 = vcmp.gt.f32.partialorder %v1002_v55, 0.0  ;;  %v1998_v5 = vmul.f32 0.2, %v1082_v57  ;;  %vm1870_vm13 = vcmp.gt.f32.partialorder %v1082_v57, 0.0 }
 0x182   : > { %vm1775_vm10 = vcmp.gt.f32.partialorder %v844_v58, 0.0  ;;  %v1903_v59 = vmul.f32 0.2, %v844_v58  ;;  %vm1807_vm11 = vcmp.gt.f32.partialorder %v924_v60, 0.0  ;;  %v1935_v61 = vmul.f32 0.2, %v924_v60 }
 0x183   : > { %v2094_v12 = vsel %vm1838_vm12, %v1002_v55, %v1966_v4  ;;  %v2126_v14 = vsel %vm1870_vm13, %v1082_v57, %v1998_v5 }
 0x184   : > { %v2031_v63 = vsel %vm1775_vm10, %v844_v58, %v1903_v59  ;;  %v2063_v2 = vsel %vm1807_vm11, %v924_v60, %v1935_v61 }
 0x185   : > { %v2911_v1 = vpack.c.bf16 %v2031_v63, %v2030_v62  ;;  %v2991_v3 = vpack.c.bf16 %v2063_v2, %v2062_v0 }
 0x187   : > { %3175 = vst [vmem:[%s3409_s8 + $0x68] sm:$0xff] %v2911_v1  }
 0x188   : > { %3191 = vst [vmem:[%s3409_s8 + $0xe8] sm:$0xff] %v2991_v3   ;;  %v1004_v6 = vpop.f32.mrf.mxu2  ;;  %v1084_v8 = vpop.f32.mrf.mxu3 }
 0x189   : > { %vm1839_vm14 = vcmp.gt.f32.partialorder %v1004_v6, 0.0  ;;  %v1967_v7 = vmul.f32 0.2, %v1004_v6  ;;  %v847_v9 = vpop.f32.mrf.mxu0  ;;  %vm1871_vm15 = vcmp.gt.f32.partialorder %v1084_v8, 0.0  ;;  %v1999_v10 = vmul.f32 0.2, %v1084_v8  ;;  %v927_v11 = vpop.f32.mrf.mxu1 }
 0x18a   : > { %v1904_v18 = vmul.f32 0.2, %v847_v9  ;;  %vm1776_vm0 = vcmp.gt.f32.partialorder %v847_v9, 0.0  ;;  %v1936_v20 = vmul.f32 0.2, %v927_v11  ;;  %vm1808_vm1 = vcmp.gt.f32.partialorder %v927_v11, 0.0 }
 0x18b   : > { %v2095_v13 = vsel %vm1839_vm14, %v1004_v6, %v1967_v7  ;;  %v2127_v16 = vsel %vm1871_vm15, %v1084_v8, %v1999_v10 }
 0x18c   : > { %v3071_v15 = vpack.c.bf16 %v2095_v13, %v2094_v12  ;;  %v3151_v17 = vpack.c.bf16 %v2127_v16, %v2126_v14  ;;  %v2032_v26 = vsel %vm1776_vm0, %v847_v9, %v1904_v18  ;;  %v2064_v28 = vsel %vm1808_vm1, %v927_v11, %v1936_v20 }
 0x18e   : > { %3207 = vst [vmem:[%s3409_s8 + $0x168] sm:$0xff] %v3071_v15  }
 0x18f   : > { %3223 = vst [vmem:[%s3409_s8 + $0x1e8] sm:$0xff] %v3151_v17  }
 0x190   : > { %v1007_v19 = vpop.f32.mrf.mxu2  ;;  %v1087_v21 = vpop.f32.mrf.mxu3 }
 0x191   : > { %v849_v22 = vpop.f32.mrf.mxu0  ;;  %v929_v24 = vpop.f32.mrf.mxu1  ;;  %v1968_v32 = vmul.f32 0.2, %v1007_v19  ;;  %vm1840_vm4 = vcmp.gt.f32.partialorder %v1007_v19, 0.0  ;;  %v2000_v33 = vmul.f32 0.2, %v1087_v21  ;;  %vm1872_vm5 = vcmp.gt.f32.partialorder %v1087_v21, 0.0 }
 0x192   : > { %vm1777_vm2 = vcmp.gt.f32.partialorder %v849_v22, 0.0  ;;  %v1905_v23 = vmul.f32 0.2, %v849_v22  ;;  %vm1809_vm3 = vcmp.gt.f32.partialorder %v929_v24, 0.0  ;;  %v1937_v25 = vmul.f32 0.2, %v929_v24 }
 0x193   : > { %v2096_v40 = vsel %vm1840_vm4, %v1007_v19, %v1968_v32  ;;  %v2128_v42 = vsel %vm1872_vm5, %v1087_v21, %v2000_v33 }
 0x194   : > { %v2033_v27 = vsel %vm1777_vm2, %v849_v22, %v1905_v23  ;;  %v2065_v30 = vsel %vm1809_vm3, %v929_v24, %v1937_v25 }
 0x195   : > { %v2916_v29 = vpack.c.bf16 %v2033_v27, %v2032_v26  ;;  %v2996_v31 = vpack.c.bf16 %v2065_v30, %v2064_v28 }
 0x197   : > { %3176 = vst [vmem:[%s3409_s8 + $0x70] sm:$0xff] %v2916_v29  }
 0x198   : > { %3192 = vst [vmem:[%s3409_s8 + $0xf0] sm:$0xff] %v2996_v31   ;;  %v1009_v34 = vpop.f32.mrf.mxu2  ;;  %v1089_v36 = vpop.f32.mrf.mxu3 }
 0x199   : > { %vm1841_vm6 = vcmp.gt.f32.partialorder %v1009_v34, 0.0  ;;  %v1969_v35 = vmul.f32 0.2, %v1009_v34  ;;  %v852_v37 = vpop.f32.mrf.mxu0  ;;  %vm1873_vm7 = vcmp.gt.f32.partialorder %v1089_v36, 0.0  ;;  %v2001_v38 = vmul.f32 0.2, %v1089_v36  ;;  %v932_v39 = vpop.f32.mrf.mxu1 }
 0x19a   : > { %v1906_v46 = vmul.f32 0.2, %v852_v37  ;;  %vm1778_vm8 = vcmp.gt.f32.partialorder %v852_v37, 0.0  ;;  %v1938_v48 = vmul.f32 0.2, %v932_v39  ;;  %vm1810_vm9 = vcmp.gt.f32.partialorder %v932_v39, 0.0 }
 0x19b   : > { %v2097_v41 = vsel %vm1841_vm6, %v1009_v34, %v1969_v35  ;;  %v2129_v44 = vsel %vm1873_vm7, %v1089_v36, %v2001_v38 }
 0x19c   : > { %v3076_v43 = vpack.c.bf16 %v2097_v41, %v2096_v40  ;;  %v3156_v45 = vpack.c.bf16 %v2129_v44, %v2128_v42  ;;  %v2034_v54 = vsel %vm1778_vm8, %v852_v37, %v1906_v46  ;;  %v2066_v56 = vsel %vm1810_vm9, %v932_v39, %v1938_v48 }
 0x19e   : > { %3208 = vst [vmem:[%s3409_s8 + $0x170] sm:$0xff] %v3076_v43  }
 0x19f   : > { %3224 = vst [vmem:[%s3409_s8 + $0x1f0] sm:$0xff] %v3156_v45  }
 0x1a0   : > { %v1012_v47 = vpop.f32.mrf.mxu2  ;;  %v1092_v49 = vpop.f32.mrf.mxu3 }
 0x1a1   : > { %v854_v50 = vpop.f32.mrf.mxu0  ;;  %v934_v52 = vpop.f32.mrf.mxu1  ;;  %v1970_v60 = vmul.f32 0.2, %v1012_v47  ;;  %vm1842_vm12 = vcmp.gt.f32.partialorder %v1012_v47, 0.0  ;;  %v2002_v61 = vmul.f32 0.2, %v1092_v49  ;;  %vm1874_vm13 = vcmp.gt.f32.partialorder %v1092_v49, 0.0 }
 0x1a2   : > { %vm1779_vm10 = vcmp.gt.f32.partialorder %v854_v50, 0.0  ;;  %v1907_v51 = vmul.f32 0.2, %v854_v50  ;;  %vm1811_vm11 = vcmp.gt.f32.partialorder %v934_v52, 0.0  ;;  %v1939_v53 = vmul.f32 0.2, %v934_v52 }
 0x1a3   : > { %v2098_v2 = vsel %vm1842_vm12, %v1012_v47, %v1970_v60  ;;  %v2130_v4 = vsel %vm1874_vm13, %v1092_v49, %v2002_v61 }
 0x1a4   : > { %v2035_v55 = vsel %vm1779_vm10, %v854_v50, %v1907_v51  ;;  %v2067_v58 = vsel %vm1811_vm11, %v934_v52, %v1939_v53 }
 0x1a5   : > { %v2921_v57 = vpack.c.bf16 %v2035_v55, %v2034_v54  ;;  %v3001_v59 = vpack.c.bf16 %v2067_v58, %v2066_v56 }
 0x1a7   : > { %3177 = vst [vmem:[%s3409_s8 + $0x78] sm:$0xff] %v2921_v57  }
 0x1a8   : > { %3193 = vst [vmem:[%s3409_s8 + $0xf8] sm:$0xff] %v3001_v59   ;;  %v1014_v62 = vpop.f32.mrf.mxu2  ;;  %v1094_v0 = vpop.f32.mrf.mxu3 }
 0x1a9   : > { %vm1843_vm14 = vcmp.gt.f32.partialorder %v1014_v62, 0.0  ;;  %v1971_v63 = vmul.f32 0.2, %v1014_v62  ;;  %vm1875_vm15 = vcmp.gt.f32.partialorder %v1094_v0, 0.0  ;;  %v2003_v1 = vmul.f32 0.2, %v1094_v0 }
 0x1ab   : > { %v2099_v3 = vsel %vm1843_vm14, %v1014_v62, %v1971_v63  ;;  %v2131_v6 = vsel %vm1875_vm15, %v1094_v0, %v2003_v1 }
 0x1ac   : > { %v3081_v5 = vpack.c.bf16 %v2099_v3, %v2098_v2  ;;  %v3161_v7 = vpack.c.bf16 %v2131_v6, %v2130_v4 }
 0x1ae   : > { %3209 = vst [vmem:[%s3409_s8 + $0x178] sm:$0xff] %v3081_v5  }
 0x1af   : > { %3225 = vst [vmem:[%s3409_s8 + $0x1f8] sm:$0xff] %v3161_v7  }
 0x1b0 PF: > { %s12_s11 = sadd.s32 1, %s3296_s11   ;;  %s3515_s9 = smov %s3292_s10 }
 0x1b1   : > { %p9_p5 = scmp.ge.s32.totalorder %s12_s11, 4   ;;  %s3516_s10 = smov %s3518_s12 }
 0x1b3   :  { %11 = sbr.rel (!%p9_p5) target bundleno = 2 (0x2), region = 73 }

// kernel: color_discriminator.6
= control target key start
LH: loop header
LB: loop body
LE: loop exit
PB: predicated region body
PF: predicated region fallthrough
CT: control target
= control target key end

     0   :  { %s4535_s15 = smov 0   ;;  %s4537_s16 = smov 0   ;;  %s6289_s0 = inlined_call_operand.vmem [shape: bf16[512,1024], index: 0, kind: input, shape index: {}]   ;;  %s6290_s1 = inlined_call_operand.vmem [shape: bf16[1024,128], index: 1, kind: input, shape index: {}]   ;;  %s6291_s2 = inlined_call_operand.vmem [shape: f32[1,128], index: 2, kind: input, shape index: {}]   ;;  %s6292_s3 = inlined_call_operand.vmem [shape: f32[1,128], index: 3, kind: input, shape index: {}]   ;;  %s6293_s4 = inlined_call_operand.vmem [shape: bf16[512,128], index: 4, kind: output, shape index: {}]  }
   0x1   :  { %s4539_s17 = smov 0   ;;  %s4541_s18 = smov 0  }
   0x2   :  { %s4543_s19 = smov 0  }
   0x3 LB: > { %s23_s20 = sadd.s32 1, %s4504_s18  ;;  %p40_p1 = scmp.ne.s32.totalorder %s4496_s16, %s4492_s15  ;;  %s4508_s19 = sphi %s4543_s19, %s14_s19   ;;  %s4504_s18 = sphi %s4541_s18, %s6450_s18   ;;  %s4500_s17 = sphi %s4539_s17, %s6449_s17   ;;  %s4496_s16 = sphi %s4537_s16, %s6448_s16   ;;  %s4492_s15 = sphi %s4535_s15, %s6447_s15  }
   0x4   : > { %p24_p0 = scmp.ge.s32.totalorder %s23_s20, 2  ;;  %p41_p2 = scmp.eq.s32.totalorder %s4508_s19, 0 }
   0x5   : > { %s33_s22 = sadd.s32 1, %s4496_s16  ;;  %p3421_p5 = scmp.ge.s32.totalorder %s4508_s19, 2 }
   0x6   : > { %s6452_s20 = smov (%p24_p0, %s23_s20), 0  ;;  %p42_p3 = por %p41_p2, %p40_p1 }
   0x7   : > { %s30_s21 = ssub.s32 %s4504_s18, %s6452_s20  ;;  %184 = sbr.rel (%p3421_p5) target bundleno = 144 (0x90), region = 24 }
   0x8   : > { %p31_p4 = scmp.eq.s32.totalorder %s30_s21, 0 }
   0xa   : > { %s4570_s23 = scalar_select %p31_p4, %s4496_s16, %s33_s22  }
   0xc   : > { %187 = sbr.rel (!%p42_p3) target bundleno = 144 (0x90), region = 28  ;;  %s189_s24 = sand.u32 (%p42_p3), 1, %s4496_s16  }
   0xd   : > { %s4075_s25 = sshll.u32 (%p42_p3), %s4504_s18, 4  ;;  %s3422_s26 = sshll.u32 (%p42_p3), %s189_s24, 10 }
   0xe   : > { %s4578_s29 = scalar_lea.vmem (%p42_p3), %s6289_s0, %s4075_s25  ;;  %s4583_s30 = scalar_lea.vmem (%p42_p3), [#allocation3], %s3422_s26 }
   0xf   : > { %v207_v0 = vld [vmem:[%s4578_s29] sm:$0xff] (%p42_p3)  ;;  %v209_v1 = vld [vmem:[%s4578_s29 + $0x8] sm:$0xff] (%p42_p3) }
  0x10   : > { %v211_v2 = vld [vmem:[%s4578_s29 + $0x20] sm:$0xff] (%p42_p3)  ;;  %208 = vst [vmem:[%s4583_s30] sm:$0xff] (%p42_p3), %v207_v0  ;;  %v213_v3 = vld [vmem:[%s4578_s29 + $0x28] sm:$0xff] (%p42_p3) }
  0x11   : > { %210 = vst [vmem:[%s4583_s30 + $0x8] sm:$0xff] %v209_v1  ;;  %v215_v4 = vld [vmem:[%s4578_s29 + $0x40] sm:$0xff]  ;;  %v217_v5 = vld [vmem:[%s4578_s29 + $0x48] sm:$0xff] }
  0x12   : > { %212 = vst [vmem:[%s4583_s30 + $0x10] sm:$0xff] %v211_v2  ;;  %v219_v6 = vld [vmem:[%s4578_s29 + $0x60] sm:$0xff]  ;;  %v221_v7 = vld [vmem:[%s4578_s29 + $0x68] sm:$0xff] }
  0x13   : > { %214 = vst [vmem:[%s4583_s30 + $0x18] sm:$0xff] %v213_v3  ;;  %v223_v8 = vld [vmem:[%s4578_s29 + $0x80] sm:$0xff]  ;;  %v225_v9 = vld [vmem:[%s4578_s29 + $0x88] sm:$0xff] }
  0x14   : > { %216 = vst [vmem:[%s4583_s30 + $0x20] sm:$0xff] %v215_v4  ;;  %v227_v10 = vld [vmem:[%s4578_s29 + $0xa0] sm:$0xff]  ;;  %v229_v11 = vld [vmem:[%s4578_s29 + $0xa8] sm:$0xff] }
  0x15   : > { %218 = vst [vmem:[%s4583_s30 + $0x28] sm:$0xff] %v217_v5  ;;  %v231_v12 = vld [vmem:[%s4578_s29 + $0xc0] sm:$0xff]  ;;  %v233_v13 = vld [vmem:[%s4578_s29 + $0xc8] sm:$0xff] }
  0x16   : > { %220 = vst [vmem:[%s4583_s30 + $0x30] sm:$0xff] %v219_v6  ;;  %v235_v14 = vld [vmem:[%s4578_s29 + $0xe0] sm:$0xff]  ;;  %v237_v15 = vld [vmem:[%s4578_s29 + $0xe8] sm:$0xff] }
  0x17   : > { %222 = vst [vmem:[%s4583_s30 + $0x38] sm:$0xff] %v221_v7  ;;  %v239_v16 = vld [vmem:[%s4578_s29 + $0x100] sm:$0xff]  ;;  %v241_v17 = vld [vmem:[%s4578_s29 + $0x108] sm:$0xff] }
  0x18   : > { %224 = vst [vmem:[%s4583_s30 + $0x40] sm:$0xff] %v223_v8  ;;  %v243_v18 = vld [vmem:[%s4578_s29 + $0x120] sm:$0xff]  ;;  %v245_v19 = vld [vmem:[%s4578_s29 + $0x128] sm:$0xff] }
  0x19   : > { %226 = vst [vmem:[%s4583_s30 + $0x48] sm:$0xff] %v225_v9  ;;  %v247_v20 = vld [vmem:[%s4578_s29 + $0x140] sm:$0xff]  ;;  %v249_v21 = vld [vmem:[%s4578_s29 + $0x148] sm:$0xff] }
  0x1a   : > { %228 = vst [vmem:[%s4583_s30 + $0x50] sm:$0xff] %v227_v10  ;;  %v251_v22 = vld [vmem:[%s4578_s29 + $0x160] sm:$0xff]  ;;  %v253_v23 = vld [vmem:[%s4578_s29 + $0x168] sm:$0xff] }
  0x1b   : > { %230 = vst [vmem:[%s4583_s30 + $0x58] sm:$0xff] %v229_v11  ;;  %v255_v24 = vld [vmem:[%s4578_s29 + $0x180] sm:$0xff]  ;;  %v257_v25 = vld [vmem:[%s4578_s29 + $0x188] sm:$0xff] }
  0x1c   : > { %232 = vst [vmem:[%s4583_s30 + $0x60] sm:$0xff] %v231_v12  ;;  %v259_v26 = vld [vmem:[%s4578_s29 + $0x1a0] sm:$0xff]  ;;  %v261_v27 = vld [vmem:[%s4578_s29 + $0x1a8] sm:$0xff] }
  0x1d   : > { %234 = vst [vmem:[%s4583_s30 + $0x68] sm:$0xff] %v233_v13  ;;  %v263_v28 = vld [vmem:[%s4578_s29 + $0x1c0] sm:$0xff]  ;;  %v265_v29 = vld [vmem:[%s4578_s29 + $0x1c8] sm:$0xff] }
  0x1e   : > { %236 = vst [vmem:[%s4583_s30 + $0x70] sm:$0xff] %v235_v14  ;;  %v267_v30 = vld [vmem:[%s4578_s29 + $0x1e0] sm:$0xff]  ;;  %v269_v31 = vld [vmem:[%s4578_s29 + $0x1e8] sm:$0xff] }
  0x1f   : > { %238 = vst [vmem:[%s4583_s30 + $0x78] sm:$0xff] %v237_v15  ;;  %v271_v32 = vld [vmem:[%s4578_s29 + $0x200] sm:$0xff]  ;;  %v273_v33 = vld [vmem:[%s4578_s29 + $0x208] sm:$0xff] }
  0x20   : > { %240 = vst [vmem:[%s4583_s30 + $0x80] sm:$0xff] %v239_v16  ;;  %v275_v34 = vld [vmem:[%s4578_s29 + $0x220] sm:$0xff]  ;;  %v277_v35 = vld [vmem:[%s4578_s29 + $0x228] sm:$0xff] }
  0x21   : > { %242 = vst [vmem:[%s4583_s30 + $0x88] sm:$0xff] %v241_v17  ;;  %v279_v36 = vld [vmem:[%s4578_s29 + $0x240] sm:$0xff]  ;;  %v281_v37 = vld [vmem:[%s4578_s29 + $0x248] sm:$0xff] }
  0x22   : > { %244 = vst [vmem:[%s4583_s30 + $0x90] sm:$0xff] %v243_v18  ;;  %v283_v38 = vld [vmem:[%s4578_s29 + $0x260] sm:$0xff]  ;;  %v285_v39 = vld [vmem:[%s4578_s29 + $0x268] sm:$0xff] }
  0x23   : > { %246 = vst [vmem:[%s4583_s30 + $0x98] sm:$0xff] %v245_v19  ;;  %v287_v40 = vld [vmem:[%s4578_s29 + $0x280] sm:$0xff]  ;;  %v289_v41 = vld [vmem:[%s4578_s29 + $0x288] sm:$0xff] }
  0x24   : > { %248 = vst [vmem:[%s4583_s30 + $0xa0] sm:$0xff] %v247_v20  ;;  %v291_v42 = vld [vmem:[%s4578_s29 + $0x2a0] sm:$0xff]  ;;  %v293_v43 = vld [vmem:[%s4578_s29 + $0x2a8] sm:$0xff] }
  0x25   : > { %250 = vst [vmem:[%s4583_s30 + $0xa8] sm:$0xff] %v249_v21  ;;  %v295_v44 = vld [vmem:[%s4578_s29 + $0x2c0] sm:$0xff]  ;;  %v297_v45 = vld [vmem:[%s4578_s29 + $0x2c8] sm:$0xff] }
  0x26   : > { %252 = vst [vmem:[%s4583_s30 + $0xb0] sm:$0xff] %v251_v22  ;;  %v299_v46 = vld [vmem:[%s4578_s29 + $0x2e0] sm:$0xff]  ;;  %v301_v47 = vld [vmem:[%s4578_s29 + $0x2e8] sm:$0xff] }
  0x27   : > { %254 = vst [vmem:[%s4583_s30 + $0xb8] sm:$0xff] %v253_v23  ;;  %v303_v48 = vld [vmem:[%s4578_s29 + $0x300] sm:$0xff]  ;;  %v305_v49 = vld [vmem:[%s4578_s29 + $0x308] sm:$0xff] }
  0x28   : > { %256 = vst [vmem:[%s4583_s30 + $0xc0] sm:$0xff] %v255_v24  ;;  %v307_v50 = vld [vmem:[%s4578_s29 + $0x320] sm:$0xff]  ;;  %v309_v51 = vld [vmem:[%s4578_s29 + $0x328] sm:$0xff] }
  0x29   : > { %258 = vst [vmem:[%s4583_s30 + $0xc8] sm:$0xff] %v257_v25  ;;  %v311_v52 = vld [vmem:[%s4578_s29 + $0x340] sm:$0xff]  ;;  %v313_v53 = vld [vmem:[%s4578_s29 + $0x348] sm:$0xff] }
  0x2a   : > { %260 = vst [vmem:[%s4583_s30 + $0xd0] sm:$0xff] %v259_v26  ;;  %v315_v54 = vld [vmem:[%s4578_s29 + $0x360] sm:$0xff]  ;;  %v317_v55 = vld [vmem:[%s4578_s29 + $0x368] sm:$0xff] }
  0x2b   : > { %262 = vst [vmem:[%s4583_s30 + $0xd8] sm:$0xff] %v261_v27  ;;  %v319_v56 = vld [vmem:[%s4578_s29 + $0x380] sm:$0xff]  ;;  %v321_v57 = vld [vmem:[%s4578_s29 + $0x388] sm:$0xff] }
  0x2c   : > { %264 = vst [vmem:[%s4583_s30 + $0xe0] sm:$0xff] %v263_v28  ;;  %v323_v58 = vld [vmem:[%s4578_s29 + $0x3a0] sm:$0xff]  ;;  %v325_v59 = vld [vmem:[%s4578_s29 + $0x3a8] sm:$0xff] }
  0x2d   : > { %266 = vst [vmem:[%s4583_s30 + $0xe8] sm:$0xff] %v265_v29  ;;  %v327_v60 = vld [vmem:[%s4578_s29 + $0x3c0] sm:$0xff]  ;;  %v329_v61 = vld [vmem:[%s4578_s29 + $0x3c8] sm:$0xff] }
  0x2e   : > { %268 = vst [vmem:[%s4583_s30 + $0xf0] sm:$0xff] %v267_v30  ;;  %v331_v62 = vld [vmem:[%s4578_s29 + $0x3e0] sm:$0xff]  ;;  %v333_v63 = vld [vmem:[%s4578_s29 + $0x3e8] sm:$0xff] }
  0x2f   : > { %270 = vst [vmem:[%s4583_s30 + $0xf8] sm:$0xff] %v269_v31  ;;  %v335_v0 = vld [vmem:[%s4578_s29 + $0x400] sm:$0xff]  ;;  %v337_v1 = vld [vmem:[%s4578_s29 + $0x408] sm:$0xff] }
  0x30   : > { %272 = vst [vmem:[%s4583_s30 + $0x100] sm:$0xff] %v271_v32  ;;  %v339_v2 = vld [vmem:[%s4578_s29 + $0x420] sm:$0xff]  ;;  %v341_v3 = vld [vmem:[%s4578_s29 + $0x428] sm:$0xff] }
  0x31   : > { %274 = vst [vmem:[%s4583_s30 + $0x108] sm:$0xff] %v273_v33  ;;  %v343_v4 = vld [vmem:[%s4578_s29 + $0x440] sm:$0xff]  ;;  %v345_v5 = vld [vmem:[%s4578_s29 + $0x448] sm:$0xff] }
  0x32   : > { %276 = vst [vmem:[%s4583_s30 + $0x110] sm:$0xff] %v275_v34  ;;  %v347_v6 = vld [vmem:[%s4578_s29 + $0x460] sm:$0xff]  ;;  %v349_v7 = vld [vmem:[%s4578_s29 + $0x468] sm:$0xff] }
  0x33   : > { %278 = vst [vmem:[%s4583_s30 + $0x118] sm:$0xff] %v277_v35  ;;  %v351_v8 = vld [vmem:[%s4578_s29 + $0x480] sm:$0xff]  ;;  %v353_v9 = vld [vmem:[%s4578_s29 + $0x488] sm:$0xff] }
  0x34   : > { %280 = vst [vmem:[%s4583_s30 + $0x120] sm:$0xff] %v279_v36  ;;  %v355_v10 = vld [vmem:[%s4578_s29 + $0x4a0] sm:$0xff]  ;;  %v357_v11 = vld [vmem:[%s4578_s29 + $0x4a8] sm:$0xff] }
  0x35   : > { %282 = vst [vmem:[%s4583_s30 + $0x128] sm:$0xff] %v281_v37  ;;  %v359_v12 = vld [vmem:[%s4578_s29 + $0x4c0] sm:$0xff]  ;;  %v361_v13 = vld [vmem:[%s4578_s29 + $0x4c8] sm:$0xff] }
  0x36   : > { %284 = vst [vmem:[%s4583_s30 + $0x130] sm:$0xff] %v283_v38  ;;  %v363_v14 = vld [vmem:[%s4578_s29 + $0x4e0] sm:$0xff]  ;;  %v365_v15 = vld [vmem:[%s4578_s29 + $0x4e8] sm:$0xff] }
  0x37   : > { %286 = vst [vmem:[%s4583_s30 + $0x138] sm:$0xff] %v285_v39  ;;  %v367_v16 = vld [vmem:[%s4578_s29 + $0x500] sm:$0xff]  ;;  %v369_v17 = vld [vmem:[%s4578_s29 + $0x508] sm:$0xff] }
  0x38   : > { %288 = vst [vmem:[%s4583_s30 + $0x140] sm:$0xff] %v287_v40  ;;  %v371_v18 = vld [vmem:[%s4578_s29 + $0x520] sm:$0xff]  ;;  %v373_v19 = vld [vmem:[%s4578_s29 + $0x528] sm:$0xff] }
  0x39   : > { %290 = vst [vmem:[%s4583_s30 + $0x148] sm:$0xff] %v289_v41  ;;  %v375_v20 = vld [vmem:[%s4578_s29 + $0x540] sm:$0xff]  ;;  %v377_v21 = vld [vmem:[%s4578_s29 + $0x548] sm:$0xff] }
  0x3a   : > { %292 = vst [vmem:[%s4583_s30 + $0x150] sm:$0xff] %v291_v42  ;;  %v379_v22 = vld [vmem:[%s4578_s29 + $0x560] sm:$0xff]  ;;  %v381_v23 = vld [vmem:[%s4578_s29 + $0x568] sm:$0xff] }
  0x3b   : > { %294 = vst [vmem:[%s4583_s30 + $0x158] sm:$0xff] %v293_v43  ;;  %v383_v24 = vld [vmem:[%s4578_s29 + $0x580] sm:$0xff]  ;;  %v385_v25 = vld [vmem:[%s4578_s29 + $0x588] sm:$0xff] }
  0x3c   : > { %296 = vst [vmem:[%s4583_s30 + $0x160] sm:$0xff] %v295_v44  ;;  %v387_v26 = vld [vmem:[%s4578_s29 + $0x5a0] sm:$0xff]  ;;  %v389_v27 = vld [vmem:[%s4578_s29 + $0x5a8] sm:$0xff] }
  0x3d   : > { %298 = vst [vmem:[%s4583_s30 + $0x168] sm:$0xff] %v297_v45  ;;  %v391_v28 = vld [vmem:[%s4578_s29 + $0x5c0] sm:$0xff]  ;;  %v393_v29 = vld [vmem:[%s4578_s29 + $0x5c8] sm:$0xff] }
  0x3e   : > { %300 = vst [vmem:[%s4583_s30 + $0x170] sm:$0xff] %v299_v46  ;;  %v395_v30 = vld [vmem:[%s4578_s29 + $0x5e0] sm:$0xff]  ;;  %v397_v31 = vld [vmem:[%s4578_s29 + $0x5e8] sm:$0xff] }
  0x3f   : > { %302 = vst [vmem:[%s4583_s30 + $0x178] sm:$0xff] %v301_v47  ;;  %v399_v32 = vld [vmem:[%s4578_s29 + $0x600] sm:$0xff]  ;;  %v401_v33 = vld [vmem:[%s4578_s29 + $0x608] sm:$0xff] }
  0x40   : > { %304 = vst [vmem:[%s4583_s30 + $0x180] sm:$0xff] %v303_v48  ;;  %v403_v34 = vld [vmem:[%s4578_s29 + $0x620] sm:$0xff]  ;;  %v405_v35 = vld [vmem:[%s4578_s29 + $0x628] sm:$0xff] }
  0x41   : > { %306 = vst [vmem:[%s4583_s30 + $0x188] sm:$0xff] %v305_v49  ;;  %v407_v36 = vld [vmem:[%s4578_s29 + $0x640] sm:$0xff]  ;;  %v409_v37 = vld [vmem:[%s4578_s29 + $0x648] sm:$0xff] }
  0x42   : > { %308 = vst [vmem:[%s4583_s30 + $0x190] sm:$0xff] %v307_v50  ;;  %v411_v38 = vld [vmem:[%s4578_s29 + $0x660] sm:$0xff]  ;;  %v413_v39 = vld [vmem:[%s4578_s29 + $0x668] sm:$0xff] }
  0x43   : > { %310 = vst [vmem:[%s4583_s30 + $0x198] sm:$0xff] %v309_v51  ;;  %v415_v40 = vld [vmem:[%s4578_s29 + $0x680] sm:$0xff]  ;;  %v417_v41 = vld [vmem:[%s4578_s29 + $0x688] sm:$0xff] }
  0x44   : > { %312 = vst [vmem:[%s4583_s30 + $0x1a0] sm:$0xff] %v311_v52  ;;  %v419_v42 = vld [vmem:[%s4578_s29 + $0x6a0] sm:$0xff]  ;;  %v421_v43 = vld [vmem:[%s4578_s29 + $0x6a8] sm:$0xff] }
  0x45   : > { %314 = vst [vmem:[%s4583_s30 + $0x1a8] sm:$0xff] %v313_v53  ;;  %v423_v44 = vld [vmem:[%s4578_s29 + $0x6c0] sm:$0xff]  ;;  %v425_v45 = vld [vmem:[%s4578_s29 + $0x6c8] sm:$0xff] }
  0x46   : > { %316 = vst [vmem:[%s4583_s30 + $0x1b0] sm:$0xff] %v315_v54  ;;  %v427_v46 = vld [vmem:[%s4578_s29 + $0x6e0] sm:$0xff]  ;;  %v429_v47 = vld [vmem:[%s4578_s29 + $0x6e8] sm:$0xff] }
  0x47   : > { %318 = vst [vmem:[%s4583_s30 + $0x1b8] sm:$0xff] %v317_v55  ;;  %v431_v48 = vld [vmem:[%s4578_s29 + $0x700] sm:$0xff]  ;;  %v433_v49 = vld [vmem:[%s4578_s29 + $0x708] sm:$0xff] }
  0x48   : > { %320 = vst [vmem:[%s4583_s30 + $0x1c0] sm:$0xff] %v319_v56  ;;  %v435_v50 = vld [vmem:[%s4578_s29 + $0x720] sm:$0xff]  ;;  %v437_v51 = vld [vmem:[%s4578_s29 + $0x728] sm:$0xff] }
  0x49   : > { %322 = vst [vmem:[%s4583_s30 + $0x1c8] sm:$0xff] %v321_v57  ;;  %v439_v52 = vld [vmem:[%s4578_s29 + $0x740] sm:$0xff]  ;;  %v441_v53 = vld [vmem:[%s4578_s29 + $0x748] sm:$0xff] }
  0x4a   : > { %324 = vst [vmem:[%s4583_s30 + $0x1d0] sm:$0xff] %v323_v58  ;;  %v443_v54 = vld [vmem:[%s4578_s29 + $0x760] sm:$0xff]  ;;  %v445_v55 = vld [vmem:[%s4578_s29 + $0x768] sm:$0xff] }
  0x4b   : > { %326 = vst [vmem:[%s4583_s30 + $0x1d8] sm:$0xff] %v325_v59  ;;  %v447_v56 = vld [vmem:[%s4578_s29 + $0x780] sm:$0xff]  ;;  %v449_v57 = vld [vmem:[%s4578_s29 + $0x788] sm:$0xff] }
  0x4c   : > { %328 = vst [vmem:[%s4583_s30 + $0x1e0] sm:$0xff] %v327_v60  ;;  %v451_v58 = vld [vmem:[%s4578_s29 + $0x7a0] sm:$0xff]  ;;  %v453_v59 = vld [vmem:[%s4578_s29 + $0x7a8] sm:$0xff] }
  0x4d   : > { %330 = vst [vmem:[%s4583_s30 + $0x1e8] sm:$0xff] %v329_v61  ;;  %v455_v60 = vld [vmem:[%s4578_s29 + $0x7c0] sm:$0xff]  ;;  %v457_v61 = vld [vmem:[%s4578_s29 + $0x7c8] sm:$0xff] }
  0x4e   : > { %332 = vst [vmem:[%s4583_s30 + $0x1f0] sm:$0xff] %v331_v62  ;;  %v459_v62 = vld [vmem:[%s4578_s29 + $0x7e0] sm:$0xff] }
  0x4f   : > { %334 = vst [vmem:[%s4583_s30 + $0x1f8] sm:$0xff] %v333_v63  ;;  %v461_v63 = vld [vmem:[%s4578_s29 + $0x7e8] sm:$0xff] }
  0x50   : > { %336 = vst [vmem:[%s4583_s30 + $0x200] sm:$0xff] %v335_v0 }
  0x51   : > { %338 = vst [vmem:[%s4583_s30 + $0x208] sm:$0xff] %v337_v1 }
  0x52   : > { %340 = vst [vmem:[%s4583_s30 + $0x210] sm:$0xff] %v339_v2 }
  0x53   : > { %342 = vst [vmem:[%s4583_s30 + $0x218] sm:$0xff] %v341_v3 }
  0x54   : > { %344 = vst [vmem:[%s4583_s30 + $0x220] sm:$0xff] %v343_v4 }
  0x55   : > { %346 = vst [vmem:[%s4583_s30 + $0x228] sm:$0xff] %v345_v5 }
  0x56   : > { %348 = vst [vmem:[%s4583_s30 + $0x230] sm:$0xff] %v347_v6 }
  0x57   : > { %350 = vst [vmem:[%s4583_s30 + $0x238] sm:$0xff] %v349_v7 }
  0x58   : > { %352 = vst [vmem:[%s4583_s30 + $0x240] sm:$0xff] %v351_v8 }
  0x59   : > { %354 = vst [vmem:[%s4583_s30 + $0x248] sm:$0xff] %v353_v9 }
  0x5a   : > { %356 = vst [vmem:[%s4583_s30 + $0x250] sm:$0xff] %v355_v10 }
  0x5b   : > { %358 = vst [vmem:[%s4583_s30 + $0x258] sm:$0xff] %v357_v11 }
  0x5c   : > { %360 = vst [vmem:[%s4583_s30 + $0x260] sm:$0xff] %v359_v12 }
  0x5d   : > { %362 = vst [vmem:[%s4583_s30 + $0x268] sm:$0xff] %v361_v13 }
  0x5e   : > { %364 = vst [vmem:[%s4583_s30 + $0x270] sm:$0xff] %v363_v14 }
  0x5f   : > { %366 = vst [vmem:[%s4583_s30 + $0x278] sm:$0xff] %v365_v15 }
  0x60   : > { %368 = vst [vmem:[%s4583_s30 + $0x280] sm:$0xff] %v367_v16 }
  0x61   : > { %370 = vst [vmem:[%s4583_s30 + $0x288] sm:$0xff] %v369_v17 }
  0x62   : > { %372 = vst [vmem:[%s4583_s30 + $0x290] sm:$0xff] %v371_v18 }
  0x63   : > { %374 = vst [vmem:[%s4583_s30 + $0x298] sm:$0xff] %v373_v19 }
  0x64   : > { %376 = vst [vmem:[%s4583_s30 + $0x2a0] sm:$0xff] %v375_v20 }
  0x65   : > { %378 = vst [vmem:[%s4583_s30 + $0x2a8] sm:$0xff] %v377_v21 }
  0x66   : > { %380 = vst [vmem:[%s4583_s30 + $0x2b0] sm:$0xff] %v379_v22 }
  0x67   : > { %382 = vst [vmem:[%s4583_s30 + $0x2b8] sm:$0xff] %v381_v23 }
  0x68   : > { %384 = vst [vmem:[%s4583_s30 + $0x2c0] sm:$0xff] %v383_v24 }
  0x69   : > { %386 = vst [vmem:[%s4583_s30 + $0x2c8] sm:$0xff] %v385_v25 }
  0x6a   : > { %388 = vst [vmem:[%s4583_s30 + $0x2d0] sm:$0xff] %v387_v26 }
  0x6b   : > { %390 = vst [vmem:[%s4583_s30 + $0x2d8] sm:$0xff] %v389_v27 }
  0x6c   : > { %392 = vst [vmem:[%s4583_s30 + $0x2e0] sm:$0xff] %v391_v28 }
  0x6d   : > { %394 = vst [vmem:[%s4583_s30 + $0x2e8] sm:$0xff] %v393_v29 }
  0x6e   : > { %396 = vst [vmem:[%s4583_s30 + $0x2f0] sm:$0xff] %v395_v30 }
  0x6f   : > { %398 = vst [vmem:[%s4583_s30 + $0x2f8] sm:$0xff] %v397_v31 }
  0x70   : > { %400 = vst [vmem:[%s4583_s30 + $0x300] sm:$0xff] %v399_v32 }
  0x71   : > { %402 = vst [vmem:[%s4583_s30 + $0x308] sm:$0xff] %v401_v33 }
  0x72   : > { %404 = vst [vmem:[%s4583_s30 + $0x310] sm:$0xff] %v403_v34 }
  0x73   : > { %406 = vst [vmem:[%s4583_s30 + $0x318] sm:$0xff] %v405_v35 }
  0x74   : > { %408 = vst [vmem:[%s4583_s30 + $0x320] sm:$0xff] %v407_v36 }
  0x75   : > { %410 = vst [vmem:[%s4583_s30 + $0x328] sm:$0xff] %v409_v37 }
  0x76   : > { %412 = vst [vmem:[%s4583_s30 + $0x330] sm:$0xff] %v411_v38 }
  0x77   : > { %414 = vst [vmem:[%s4583_s30 + $0x338] sm:$0xff] %v413_v39 }
  0x78   : > { %416 = vst [vmem:[%s4583_s30 + $0x340] sm:$0xff] %v415_v40 }
  0x79   : > { %418 = vst [vmem:[%s4583_s30 + $0x348] sm:$0xff] %v417_v41 }
  0x7a   : > { %420 = vst [vmem:[%s4583_s30 + $0x350] sm:$0xff] %v419_v42 }
  0x7b   : > { %422 = vst [vmem:[%s4583_s30 + $0x358] sm:$0xff] %v421_v43 }
  0x7c   : > { %424 = vst [vmem:[%s4583_s30 + $0x360] sm:$0xff] %v423_v44 }
  0x7d   : > { %426 = vst [vmem:[%s4583_s30 + $0x368] sm:$0xff] %v425_v45 }
  0x7e   : > { %428 = vst [vmem:[%s4583_s30 + $0x370] sm:$0xff] %v427_v46 }
  0x7f   : > { %430 = vst [vmem:[%s4583_s30 + $0x378] sm:$0xff] %v429_v47 }
  0x80   : > { %432 = vst [vmem:[%s4583_s30 + $0x380] sm:$0xff] %v431_v48 }
  0x81   : > { %434 = vst [vmem:[%s4583_s30 + $0x388] sm:$0xff] %v433_v49 }
  0x82   : > { %436 = vst [vmem:[%s4583_s30 + $0x390] sm:$0xff] %v435_v50 }
  0x83   : > { %438 = vst [vmem:[%s4583_s30 + $0x398] sm:$0xff] %v437_v51 }
  0x84   : > { %440 = vst [vmem:[%s4583_s30 + $0x3a0] sm:$0xff] %v439_v52 }
  0x85   : > { %442 = vst [vmem:[%s4583_s30 + $0x3a8] sm:$0xff] %v441_v53 }
  0x86   : > { %444 = vst [vmem:[%s4583_s30 + $0x3b0] sm:$0xff] %v443_v54 }
  0x87   : > { %446 = vst [vmem:[%s4583_s30 + $0x3b8] sm:$0xff] %v445_v55 }
  0x88   : > { %448 = vst [vmem:[%s4583_s30 + $0x3c0] sm:$0xff] %v447_v56 }
  0x89   : > { %450 = vst [vmem:[%s4583_s30 + $0x3c8] sm:$0xff] %v449_v57 }
  0x8a   : > { %452 = vst [vmem:[%s4583_s30 + $0x3d0] sm:$0xff] %v451_v58 }
  0x8b   : > { %454 = vst [vmem:[%s4583_s30 + $0x3d8] sm:$0xff] %v453_v59 }
  0x8c   : > { %456 = vst [vmem:[%s4583_s30 + $0x3e0] sm:$0xff] %v455_v60 }
  0x8d   : > { %458 = vst [vmem:[%s4583_s30 + $0x3e8] sm:$0xff] %v457_v61 }
  0x8e   : > { %460 = vst [vmem:[%s4583_s30 + $0x3f0] sm:$0xff] %v459_v62 }
  0x8f   : > { %462 = vst [vmem:[%s4583_s30 + $0x3f8] sm:$0xff] %v461_v63 }
  0x90 PF: > { %p3425_p6 = scmp.ge.s32.totalorder %s4508_s19, 1  ;;  %p479_p7 = scmp.lt.s32.totalorder %s4508_s19, 3 }
  0x92   : > { %p480_p8 = pnand %p3425_p6, %p479_p7 }
  0x94   : > { %483 = sbr.rel (%p480_p8) target bundleno = 1383 (0x567), region = 55 }
  0x99   : > { %s3427_s5 = sshll.u32 %s4500_s17, 6  ;;  %s486_s10 = sand.u32 1, %s4492_s15  }
  0x9a   : > { %p526_p9 = scmp.lt.s32.totalorder %s3427_s5, 127  ;;  %s3426_s11 = sshll.u32 %s486_s10, 10 }
  0x9b   : > { %s4875_s12 = scalar_lea.vmem [#allocation3], %s3426_s11  ;;  %p4069_p10 = scmp.ne.s32.totalorder %s4500_s17, 0 }
  0x9c   : > { %s6454_s5 = smov (!%p526_p9, %s3427_s5), 127  ;;  %v3431_v28 = vld [vmem:[%s4875_s12] sm:$0xf]  ;;  %v4078_v29 = vld [vmem:[%s4875_s12 + $0xc] sm:$0xf0] }
  0x9d   : > { %s3428_s6 = sshll.u32 %s6454_s5, 2  ;;  %v4076_v30 = vld [vmem:[%s4875_s12 + $0x4] sm:$0xf]  ;;  %v3433_v35 = vld [vmem:[%s4875_s12 + $0x10] sm:$0xf0]  ;;  %v3432_v40 = vor.u32 %v4078_v29, %v3431_v28 }
  0x9e   : > { %s4844_s9 = scalar_lea.vmem %s6290_s1, %s3428_s6  ;;  %v3439_v36 = vld [vmem:[%s4875_s12 + $0x8] sm:$0xf]  ;;  %v4079_v37 = vld [vmem:[%s4875_s12 + $0x14] sm:$0xf0]  ;;  %v4077_v38 = vld [vmem:[%s4875_s12 + $0xc] sm:$0xf]  ;;  %v3436_v41 = vor.u32 %v4076_v30, %v3433_v35 }
  0x9f   : > { %v4211_v0 = vld [vmem:[%s4844_s9 + $0x38] sm:$0xff]  ;;  %v4210_v4 = vld [vmem:[%s4844_s9 + $0x30] sm:$0xff]  ;;  %v4209_v8 = vld [vmem:[%s4844_s9 + $0x28] sm:$0xff]  ;;  %v3440_v42 = vor.u32 %v4079_v37, %v3439_v36 }
  0xa0   : > { %v4219_v1 = vld [vmem:[%s4844_s9 + $0x78] sm:$0xff]  ;;  %1568 = vmatpush.bf16.msra.mxu0 %v4211_v0  ;;  %v4218_v5 = vld [vmem:[%s4844_s9 + $0x70] sm:$0xff]  ;;  %v4217_v9 = vld [vmem:[%s4844_s9 + $0x68] sm:$0xff] }
  0xa1   : > { %v4227_v2 = vld [vmem:[%s4844_s9 + $0xb8] sm:$0xff]  ;;  %1737 = vmatpush.bf16.msra.mxu1 %v4219_v1  ;;  %v4226_v6 = vld [vmem:[%s4844_s9 + $0xb0] sm:$0xff]  ;;  %v4225_v10 = vld [vmem:[%s4844_s9 + $0xa8] sm:$0xff] }
  0xa2   : > { %v4235_v3 = vld [vmem:[%s4844_s9 + $0xf8] sm:$0xff]  ;;  %1906 = vmatpush.bf16.msra.mxu2 %v4227_v2  ;;  %v4234_v7 = vld [vmem:[%s4844_s9 + $0xf0] sm:$0xff]  ;;  %v4233_v11 = vld [vmem:[%s4844_s9 + $0xe8] sm:$0xff] }
  0xa3   : > { %2075 = vmatpush.bf16.msra.mxu3 %v4235_v3  ;;  %v4208_v12 = vld [vmem:[%s4844_s9 + $0x20] sm:$0xff]  ;;  %v4207_v16 = vld [vmem:[%s4844_s9 + $0x18] sm:$0xff]  ;;  %v4206_v20 = vld [vmem:[%s4844_s9 + $0x10] sm:$0xff] }
  0xa4   : > { %1569 = vmatpush.bf16.msra.mxu0 %v4210_v4  ;;  %v4216_v13 = vld [vmem:[%s4844_s9 + $0x60] sm:$0xff]  ;;  %v4215_v17 = vld [vmem:[%s4844_s9 + $0x58] sm:$0xff]  ;;  %v4214_v21 = vld [vmem:[%s4844_s9 + $0x50] sm:$0xff] }
  0xa5   : > { %1738 = vmatpush.bf16.msra.mxu1 %v4218_v5  ;;  %v4224_v14 = vld [vmem:[%s4844_s9 + $0xa0] sm:$0xff]  ;;  %v4223_v18 = vld [vmem:[%s4844_s9 + $0x98] sm:$0xff]  ;;  %v4222_v22 = vld [vmem:[%s4844_s9 + $0x90] sm:$0xff] }
  0xa6   : > { %1907 = vmatpush.bf16.msra.mxu2 %v4226_v6  ;;  %v4232_v15 = vld [vmem:[%s4844_s9 + $0xe0] sm:$0xff]  ;;  %v4231_v19 = vld [vmem:[%s4844_s9 + $0xd8] sm:$0xff]  ;;  %v4230_v23 = vld [vmem:[%s4844_s9 + $0xd0] sm:$0xff] }
  0xa7   : > { %2076 = vmatpush.bf16.msra.mxu3 %v4234_v7  ;;  %v4205_v24 = vld [vmem:[%s4844_s9 + $0x8] sm:$0xff]  ;;  %v4204_v31 = vld [vmem:[%s4844_s9] sm:$0xff]  ;;  %v3441_v39 = vld [vmem:[%s4875_s12 + $0x18] sm:$0xf0] }
  0xa8   : > { %1570 = vmatpush.bf16.msra.mxu0 %v4209_v8  ;;  %v4213_v25 = vld [vmem:[%s4844_s9 + $0x48] sm:$0xff]  ;;  %v4212_v32 = vld [vmem:[%s4844_s9 + $0x40] sm:$0xff]  ;;  %v3444_v43 = vor.u32 %v4077_v38, %v3441_v39  ;;  %v4082_v45 = vld [vmem:[%s4875_s12 + $0x2c] sm:$0xf0] }
  0xa9   : > { %1739 = vmatpush.bf16.msra.mxu1 %v4217_v9  ;;  %v4221_v26 = vld [vmem:[%s4844_s9 + $0x88] sm:$0xff]  ;;  %v4220_v33 = vld [vmem:[%s4844_s9 + $0x80] sm:$0xff]  ;;  %v3449_v47 = vld [vmem:[%s4875_s12 + $0x30] sm:$0xf0] }
  0xaa   : > { %1908 = vmatpush.bf16.msra.mxu2 %v4225_v10  ;;  %v4229_v27 = vld [vmem:[%s4844_s9 + $0xc8] sm:$0xff]  ;;  %v4228_v34 = vld [vmem:[%s4844_s9 + $0xc0] sm:$0xff]  ;;  %v4083_v49 = vld [vmem:[%s4875_s12 + $0x34] sm:$0xf0] }
  0xab   : > { %2077 = vmatpush.bf16.msra.mxu3 %v4233_v11  ;;  %v3447_v44 = vld [vmem:[%s4875_s12 + $0x20] sm:$0xf]  ;;  %v4080_v46 = vld [vmem:[%s4875_s12 + $0x24] sm:$0xf]  ;;  %v3455_v48 = vld [vmem:[%s4875_s12 + $0x28] sm:$0xf] }
  0xac   : > { %1571 = vmatpush.bf16.msra.mxu0 %v4208_v12  ;;  %v4081_v50 = vld [vmem:[%s4875_s12 + $0x2c] sm:$0xf]  ;;  %v3457_v51 = vld [vmem:[%s4875_s12 + $0x38] sm:$0xf0]  ;;  %v3448_v52 = vor.u32 %v4082_v45, %v3447_v44  ;;  %v3452_v53 = vor.u32 %v4080_v46, %v3449_v47  ;;  %v3456_v54 = vor.u32 %v4083_v49, %v3455_v48  ;;  %v3463_v56 = vld [vmem:[%s4875_s12 + $0x40] sm:$0xf] }
  0xad   : > { %1740 = vmatpush.bf16.msra.mxu1 %v4216_v13  ;;  %v3460_v55 = vor.u32 %v4081_v50, %v3457_v51  ;;  %v4086_v57 = vld [vmem:[%s4875_s12 + $0x4c] sm:$0xf0]  ;;  %v4084_v58 = vld [vmem:[%s4875_s12 + $0x44] sm:$0xf]  ;;  %v3465_v59 = vld [vmem:[%s4875_s12 + $0x50] sm:$0xf0] }
  0xae   : > { %1909 = vmatpush.bf16.msra.mxu2 %v4224_v14  ;;  %v3471_v60 = vld [vmem:[%s4875_s12 + $0x48] sm:$0xf]  ;;  %v4087_v61 = vld [vmem:[%s4875_s12 + $0x54] sm:$0xf0]  ;;  %v4085_v62 = vld [vmem:[%s4875_s12 + $0x4c] sm:$0xf]  ;;  %v3464_v0 = vor.u32 %v4086_v57, %v3463_v56  ;;  %v3468_v1 = vor.u32 %v4084_v58, %v3465_v59 }
  0xaf   : > { %2078 = vmatpush.bf16.msra.mxu3 %v4232_v15  ;;  %v3473_v63 = vld [vmem:[%s4875_s12 + $0x58] sm:$0xf0]  ;;  %v3472_v2 = vor.u32 %v4087_v61, %v3471_v60  ;;  %v3479_v4 = vld [vmem:[%s4875_s12 + $0x60] sm:$0xf]  ;;  %v4090_v5 = vld [vmem:[%s4875_s12 + $0x6c] sm:$0xf0] }
  0xb0   : > { %1572 = vmatpush.bf16.msra.mxu0 %v4207_v16  ;;  %v3476_v3 = vor.u32 %v4085_v62, %v3473_v63  ;;  %v4088_v6 = vld [vmem:[%s4875_s12 + $0x64] sm:$0xf]  ;;  %v3481_v7 = vld [vmem:[%s4875_s12 + $0x70] sm:$0xf0]  ;;  %v3487_v8 = vld [vmem:[%s4875_s12 + $0x68] sm:$0xf]  ;;  %v3480_v12 = vor.u32 %v4090_v5, %v3479_v4 }
  0xb1   : > { %1741 = vmatpush.bf16.msra.mxu1 %v4215_v17  ;;  %v4091_v9 = vld [vmem:[%s4875_s12 + $0x74] sm:$0xf0]  ;;  %v4089_v10 = vld [vmem:[%s4875_s12 + $0x6c] sm:$0xf]  ;;  %v3489_v11 = vld [vmem:[%s4875_s12 + $0x78] sm:$0xf0]  ;;  %v3484_v13 = vor.u32 %v4088_v6, %v3481_v7 }
  0xb2   : > { %1910 = vmatpush.bf16.msra.mxu2 %v4223_v18  ;;  %v3488_v14 = vor.u32 %v4091_v9, %v3487_v8  ;;  %v3492_v15 = vor.u32 %v4089_v10, %v3489_v11  ;;  %v3495_v16 = vld [vmem:[%s4875_s12 + $0x80] sm:$0xf]  ;;  %v4094_v17 = vld [vmem:[%s4875_s12 + $0x8c] sm:$0xf0]  ;;  %v4092_v18 = vld [vmem:[%s4875_s12 + $0x84] sm:$0xf] }
  0xb3   : > { %2079 = vmatpush.bf16.msra.mxu3 %v4231_v19  ;;  %v3497_v19 = vld [vmem:[%s4875_s12 + $0x90] sm:$0xf0]  ;;  %v3511_v28 = vld [vmem:[%s4875_s12 + $0xa0] sm:$0xf]  ;;  %v4098_v29 = vld [vmem:[%s4875_s12 + $0xac] sm:$0xf0] }
  0xb4   : > { %1573 = vmatpush.bf16.msra.mxu0 %v4206_v20  ;;  %v3503_v20 = vld [vmem:[%s4875_s12 + $0x88] sm:$0xf]  ;;  %v4096_v30 = vld [vmem:[%s4875_s12 + $0xa4] sm:$0xf]  ;;  %v3521_v35 = vld [vmem:[%s4875_s12 + $0xb8] sm:$0xf0]  ;;  %v3512_v36 = vor.u32 %v4098_v29, %v3511_v28 }
  0xb5   : > { %1742 = vmatpush.bf16.msra.mxu1 %v4214_v21  ;;  %v4095_v21 = vld [vmem:[%s4875_s12 + $0x94] sm:$0xf0]  ;;  %v3535_v44 = vld [vmem:[%s4875_s12 + $0xc8] sm:$0xf]  ;;  %v4101_v46 = vld [vmem:[%s4875_s12 + $0xcc] sm:$0xf] }
  0xb6   : > { %1911 = vmatpush.bf16.msra.mxu2 %v4222_v22  ;;  %v4093_v22 = vld [vmem:[%s4875_s12 + $0x8c] sm:$0xf]  ;;  %v4103_v45 = vld [vmem:[%s4875_s12 + $0xd4] sm:$0xf0]  ;;  %v3537_v47 = vld [vmem:[%s4875_s12 + $0xd8] sm:$0xf0] }
  0xb7   : > { %2080 = vmatpush.bf16.msra.mxu3 %v4230_v23  ;;  %v3505_v23 = vld [vmem:[%s4875_s12 + $0x98] sm:$0xf0]  ;;  %v3536_v50 = vor.u32 %v4103_v45, %v3535_v44  ;;  %v3540_v51 = vor.u32 %v4101_v46, %v3537_v47  ;;  %v3551_v56 = vld [vmem:[%s4875_s12 + $0xe8] sm:$0xf]  ;;  %v4107_v57 = vld [vmem:[%s4875_s12 + $0xf4] sm:$0xf0] }
  0xb8   : > { %1574 = vmatpush.bf16.msra.mxu0 %v4205_v24  ;;  %v3496_v24 = vor.u32 %v4094_v17, %v3495_v16  ;;  %v4105_v58 = vld [vmem:[%s4875_s12 + $0xec] sm:$0xf]  ;;  %v3553_v59 = vld [vmem:[%s4875_s12 + $0xf8] sm:$0xf0]  ;;  %v3552_v62 = vor.u32 %v4107_v57, %v3551_v56  ;;  %v3567_v4 = vld [vmem:[%s4875_s12 + $0x108] sm:$0xf] }
  0xb9   : > { %1743 = vmatpush.bf16.msra.mxu1 %v4213_v25  ;;  %v3500_v25 = vor.u32 %v4092_v18, %v3497_v19  ;;  %v3556_v63 = vor.u32 %v4105_v58, %v3553_v59  ;;  %v4111_v5 = vld [vmem:[%s4875_s12 + $0x114] sm:$0xf0]  ;;  %v4109_v6 = vld [vmem:[%s4875_s12 + $0x10c] sm:$0xf]  ;;  %v3569_v7 = vld [vmem:[%s4875_s12 + $0x118] sm:$0xf0] }
  0xba   : > { %1912 = vmatpush.bf16.msra.mxu2 %v4221_v26  ;;  %v3504_v26 = vor.u32 %v4095_v21, %v3503_v20  ;;  %v4113_v28 = vld [vmem:[%s4875_s12 + $0x12c] sm:$0xf]  ;;  %v3585_v29 = vld [vmem:[%s4875_s12 + $0x138] sm:$0xf0] }
  0xbb   : > { %2081 = vmatpush.bf16.msra.mxu3 %v4229_v27  ;;  %v3508_v27 = vor.u32 %v4093_v22, %v3505_v23  ;;  %v3575_v22 = vld [vmem:[%s4875_s12 + $0x120] sm:$0xf]  ;;  %v4114_v23 = vld [vmem:[%s4875_s12 + $0x12c] sm:$0xf0] }
  0xbc   : > { %1575 = vmatpush.bf16.msra.mxu0 %v4204_v31  ;;  %v3513_v31 = vld [vmem:[%s4875_s12 + $0xb0] sm:$0xf0] }
  0xbd   : > { %1744 = vmatpush.bf16.msra.mxu1 %v4212_v32  ;;  %v3519_v32 = vld [vmem:[%s4875_s12 + $0xa8] sm:$0xf]  ;;  %v3516_v37 = vor.u32 %v4096_v30, %v3513_v31 }
  0xbe   : > { %1913 = vmatpush.bf16.msra.mxu2 %v4220_v33  ;;  %v4099_v33 = vld [vmem:[%s4875_s12 + $0xb4] sm:$0xf0] }
  0xbf   : > { %2082 = vmatpush.bf16.msra.mxu3 %v4228_v34  ;;  %1576 = vmatmul.bf16.vlgmr.msra.gmra.mxu0 %v3432_v40  ;;  %v4097_v34 = vld [vmem:[%s4875_s12 + $0xac] sm:$0xf]  ;;  %v3520_v38 = vor.u32 %v4099_v33, %v3519_v32  ;;  %v3527_v40 = vld [vmem:[%s4875_s12 + $0xc0] sm:$0xf]  ;;  %v3576_v32 = vor.u32 %v4114_v23, %v3575_v22 }
  0xc0   : > { %1745 = vmatmul.bf16.vlgmr.msra.gmra.mxu1 %v3436_v41  ;;  %v3524_v39 = vor.u32 %v4097_v34, %v3521_v35  ;;  %v4102_v41 = vld [vmem:[%s4875_s12 + $0xcc] sm:$0xf0] }
  0xc1   : > { %1914 = vmatmul.bf16.vlgmr.msra.gmra.mxu2 %v3440_v42  ;;  %v4100_v42 = vld [vmem:[%s4875_s12 + $0xc4] sm:$0xf]  ;;  %v3528_v48 = vor.u32 %v4102_v41, %v3527_v40 }
  0xc2   : > { %2083 = vmatmul.bf16.vlgmr.msra.gmra.mxu3 %v3444_v43  ;;  %v3529_v43 = vld [vmem:[%s4875_s12 + $0xd0] sm:$0xf0] }
  0xc3   : > { %v3532_v49 = vor.u32 %v4100_v42, %v3529_v43 }
  0xcf   : > { %1581 = vmatmul.bf16.gmra.mxu0 %v3448_v52  ;;  %v3543_v52 = vld [vmem:[%s4875_s12 + $0xe0] sm:$0xf] }
  0xd0   : > { %1750 = vmatmul.bf16.gmra.mxu1 %v3452_v53  ;;  %v4106_v53 = vld [vmem:[%s4875_s12 + $0xec] sm:$0xf0] }
  0xd1   : > { %1919 = vmatmul.bf16.gmra.mxu2 %v3456_v54  ;;  %v4104_v54 = vld [vmem:[%s4875_s12 + $0xe4] sm:$0xf]  ;;  %v3544_v60 = vor.u32 %v4106_v53, %v3543_v52  ;;  %v3599_v52 = vld [vmem:[%s4875_s12 + $0x148] sm:$0xf]  ;;  %v4119_v53 = vld [vmem:[%s4875_s12 + $0x154] sm:$0xf0] }
  0xd2   : > { %2088 = vmatmul.bf16.gmra.mxu3 %v3460_v55  ;;  %v3545_v55 = vld [vmem:[%s4875_s12 + $0xf0] sm:$0xf0] }
  0xd3   : > { %v3548_v61 = vor.u32 %v4104_v54, %v3545_v55  ;;  %v4117_v54 = vld [vmem:[%s4875_s12 + $0x14c] sm:$0xf]  ;;  %v3601_v55 = vld [vmem:[%s4875_s12 + $0x158] sm:$0xf0] }
  0xdf   : > { %1586 = vmatmul.bf16.gmra.mxu0 %v3464_v0  ;;  %v3559_v0 = vld [vmem:[%s4875_s12 + $0x100] sm:$0xf] }
  0xe0   : > { %1755 = vmatmul.bf16.gmra.mxu1 %v3468_v1  ;;  %v4110_v1 = vld [vmem:[%s4875_s12 + $0x10c] sm:$0xf0] }
  0xe1   : > { %1924 = vmatmul.bf16.gmra.mxu2 %v3472_v2  ;;  %v4108_v2 = vld [vmem:[%s4875_s12 + $0x104] sm:$0xf]  ;;  %v3560_v8 = vor.u32 %v4110_v1, %v3559_v0  ;;  %v3604_v0 = vor.u32 %v4117_v54, %v3601_v55 }
  0xe2   : > { %2093 = vmatmul.bf16.gmra.mxu3 %v3476_v3  ;;  %v3561_v3 = vld [vmem:[%s4875_s12 + $0x110] sm:$0xf0] }
  0xe3   : > { %v3564_v9 = vor.u32 %v4108_v2, %v3561_v3 }
  0xef   : > { %1591 = vmatmul.bf16.gmra.mxu0 %v3480_v12  ;;  %v3568_v12 = vor.u32 %v4111_v5, %v3567_v4 }
  0xf0   : > { %1760 = vmatmul.bf16.gmra.mxu1 %v3484_v13  ;;  %v3572_v13 = vor.u32 %v4109_v6, %v3569_v7 }
  0xf1   : > { %1929 = vmatmul.bf16.gmra.mxu2 %v3488_v14 }
  0xf2   : > { %2098 = vmatmul.bf16.gmra.mxu3 %v3492_v15 }
  0xff   : > { %1596 = vmatmul.bf16.gmra.mxu0 %v3496_v24  ;;  %v4112_v24 = vld [vmem:[%s4875_s12 + $0x124] sm:$0xf] }
 0x100   : > { %1765 = vmatmul.bf16.gmra.mxu1 %v3500_v25  ;;  %v3577_v25 = vld [vmem:[%s4875_s12 + $0x130] sm:$0xf0] }
 0x101   : > { %1934 = vmatmul.bf16.gmra.mxu2 %v3504_v26  ;;  %v3583_v26 = vld [vmem:[%s4875_s12 + $0x128] sm:$0xf]  ;;  %v3580_v33 = vor.u32 %v4112_v24, %v3577_v25 }
 0x102   : > { %2103 = vmatmul.bf16.gmra.mxu3 %v3508_v27  ;;  %v4115_v27 = vld [vmem:[%s4875_s12 + $0x134] sm:$0xf0] }
 0x10f   : > { %1601 = vmatmul.bf16.gmra.mxu0 %v3512_v36 }
 0x110   : > { %1770 = vmatmul.bf16.gmra.mxu1 %v3516_v37  ;;  %v3584_v37 = vor.u32 %v4115_v27, %v3583_v26 }
 0x111   : > { %1939 = vmatmul.bf16.gmra.mxu2 %v3520_v38  ;;  %v3588_v38 = vor.u32 %v4113_v28, %v3585_v29 }
 0x112   : > { %2108 = vmatmul.bf16.gmra.mxu3 %v3524_v39 }
 0x11f   : > { %1606 = vmatmul.bf16.gmra.mxu0 %v3528_v48  ;;  %v3591_v48 = vld [vmem:[%s4875_s12 + $0x140] sm:$0xf] }
 0x120   : > { %1775 = vmatmul.bf16.gmra.mxu1 %v3532_v49  ;;  %v4118_v49 = vld [vmem:[%s4875_s12 + $0x14c] sm:$0xf0] }
 0x121   : > { %1944 = vmatmul.bf16.gmra.mxu2 %v3536_v50  ;;  %v4116_v50 = vld [vmem:[%s4875_s12 + $0x144] sm:$0xf]  ;;  %v3592_v58 = vor.u32 %v4118_v49, %v3591_v48 }
 0x122   : > { %2113 = vmatmul.bf16.gmra.mxu3 %v3540_v51  ;;  %v3593_v51 = vld [vmem:[%s4875_s12 + $0x150] sm:$0xf0] }
 0x123   : > { %v3596_v59 = vor.u32 %v4116_v50, %v3593_v51 }
 0x12f   : > { %1611 = vmatmul.bf16.gmra.mxu0 %v3544_v60 }
 0x130   : > { %1780 = vmatmul.bf16.gmra.mxu1 %v3548_v61 }
 0x131   : > { %1949 = vmatmul.bf16.gmra.mxu2 %v3552_v62 }
 0x132   : > { %2118 = vmatmul.bf16.gmra.mxu3 %v3556_v63  ;;  %v3600_v63 = vor.u32 %v4119_v53, %v3599_v52 }
 0x13c   : > { %v1577_v10 = vpop.f32.mrf.mxu0 }
 0x13d   : > { %v1746_v11 = vpop.f32.mrf.mxu1 }
 0x13e   : > { %v1747_v14 = vadd.f32 %v1746_v11, %v1577_v10  ;;  %v3607_v10 = vld [vmem:[%s4875_s12 + $0x160] sm:$0xf]  ;;  %v4122_v11 = vld [vmem:[%s4875_s12 + $0x16c] sm:$0xf0] }
 0x13f   : > { %1616 = vmatmul.bf16.gmra.mxu0 %v3560_v8 }
 0x140   : > { %1785 = vmatmul.bf16.gmra.mxu1 %v3564_v9 }
 0x141   : > { %1954 = vmatmul.bf16.gmra.mxu2 %v3568_v12  ;;  %v4120_v12 = vld [vmem:[%s4875_s12 + $0x164] sm:$0xf] }
 0x142   : > { %2123 = vmatmul.bf16.gmra.mxu3 %v3572_v13  ;;  %v3609_v13 = vld [vmem:[%s4875_s12 + $0x170] sm:$0xf0] }
 0x143   : > { %v3612_v22 = vor.u32 %v4120_v12, %v3609_v13 }
 0x144   : > { %v1915_v15 = vpop.f32.mrf.mxu2  ;;  %v1579_v18 = vpop.f32.mrf.mxu0 }
 0x145   : > { %v2084_v16 = vpop.f32.mrf.mxu3  ;;  %v1916_v17 = vadd.f32 %v1915_v15, %v1747_v14  ;;  %v1748_v19 = vpop.f32.mrf.mxu1  ;;  %v3615_v14 = vld [vmem:[%s4875_s12 + $0x168] sm:$0xf]  ;;  %v4123_v15 = vld [vmem:[%s4875_s12 + $0x174] sm:$0xf0] }
 0x146   : > { %v1749_v20 = vadd.f32 %v1748_v19, %v1579_v18  ;;  %v3616_v26 = vor.u32 %v4123_v15, %v3615_v14 }
 0x147   : > { %v4953_v21 = vadd.f32 %v2084_v16, %v1916_v17  ;;  %v4121_v16 = vld [vmem:[%s4875_s12 + $0x16c] sm:$0xf]  ;;  %v3617_v17 = vld [vmem:[%s4875_s12 + $0x178] sm:$0xf0] }
 0x148   : > { %v3620_v27 = vor.u32 %v4121_v16, %v3617_v17 }
 0x14c   : > { %v1917_v30 = vpop.f32.mrf.mxu2  ;;  %v1582_v35 = vpop.f32.mrf.mxu0 }
 0x14d   : > { %v2086_v31 = vpop.f32.mrf.mxu3  ;;  %v1918_v34 = vadd.f32 %v1917_v30, %v1749_v20  ;;  %v1751_v36 = vpop.f32.mrf.mxu1  ;;  %v3608_v20 = vor.u32 %v4122_v11, %v3607_v10  ;;  %v3649_v10 = vld [vmem:[%s4875_s12 + $0x1b8] sm:$0xf0] }
 0x14e   : > { %v1752_v39 = vadd.f32 %v1751_v36, %v1582_v35 }
 0x14f   : > { %v4963_v40 = vadd.f32 %v2086_v31, %v1918_v34  ;;  %1621 = vmatmul.bf16.gmra.mxu0 %v3576_v32 }
 0x150   : > { %1790 = vmatmul.bf16.gmra.mxu1 %v3580_v33 }
 0x151   : > { %1959 = vmatmul.bf16.gmra.mxu2 %v3584_v37  ;;  %v3623_v37 = vld [vmem:[%s4875_s12 + $0x180] sm:$0xf] }
 0x152   : > { %2128 = vmatmul.bf16.gmra.mxu3 %v3588_v38  ;;  %v4126_v38 = vld [vmem:[%s4875_s12 + $0x18c] sm:$0xf0] }
 0x153   : > { %v3624_v49 = vor.u32 %v4126_v38, %v3623_v37  ;;  %v4135_v37 = vld [vmem:[%s4875_s12 + $0x1d4] sm:$0xf0]  ;;  %v4133_v38 = vld [vmem:[%s4875_s12 + $0x1cc] sm:$0xf] }
 0x154   : > { %v1920_v41 = vpop.f32.mrf.mxu2  ;;  %v1584_v44 = vpop.f32.mrf.mxu0 }
 0x155   : > { %v2089_v42 = vpop.f32.mrf.mxu3  ;;  %v1921_v43 = vadd.f32 %v1920_v41, %v1752_v39  ;;  %v1753_v45 = vpop.f32.mrf.mxu1  ;;  %v4124_v39 = vld [vmem:[%s4875_s12 + $0x184] sm:$0xf]  ;;  %v3625_v41 = vld [vmem:[%s4875_s12 + $0x190] sm:$0xf0] }
 0x156   : > { %v1754_v46 = vadd.f32 %v1753_v45, %v1584_v44  ;;  %v4125_v44 = vld [vmem:[%s4875_s12 + $0x18c] sm:$0xf]  ;;  %v3633_v45 = vld [vmem:[%s4875_s12 + $0x198] sm:$0xf0]  ;;  %v3628_v50 = vor.u32 %v4124_v39, %v3625_v41 }
 0x157   : > { %v4965_v47 = vadd.f32 %v2089_v42, %v1921_v43  ;;  %v3631_v42 = vld [vmem:[%s4875_s12 + $0x188] sm:$0xf]  ;;  %v4127_v43 = vld [vmem:[%s4875_s12 + $0x194] sm:$0xf0]  ;;  %v3636_v55 = vor.u32 %v4125_v44, %v3633_v45  ;;  %v3665_v39 = vld [vmem:[%s4875_s12 + $0x1d8] sm:$0xf0] }
 0x158   : > { %v3632_v54 = vor.u32 %v4127_v43, %v3631_v42 }
 0x15c   : > { %v1922_v56 = vpop.f32.mrf.mxu2  ;;  %v1587_v61 = vpop.f32.mrf.mxu0 }
 0x15d   : > { %v2091_v57 = vpop.f32.mrf.mxu3  ;;  %v1923_v60 = vadd.f32 %v1922_v56, %v1754_v46  ;;  %v1756_v62 = vpop.f32.mrf.mxu1 }
 0x15e   : > { %v1757_v1 = vadd.f32 %v1756_v62, %v1587_v61 }
 0x15f   : > { %v4975_v2 = vadd.f32 %v2091_v57, %v1923_v60  ;;  %1626 = vmatmul.bf16.gmra.mxu0 %v3592_v58 }
 0x160   : > { %1795 = vmatmul.bf16.gmra.mxu1 %v3596_v59 }
 0x161   : > { %1964 = vmatmul.bf16.gmra.mxu2 %v3600_v63 }
 0x162   : > { %2133 = vmatmul.bf16.gmra.mxu3 %v3604_v0 }
 0x164   : > { %v1925_v3 = vpop.f32.mrf.mxu2  ;;  %v1589_v6 = vpop.f32.mrf.mxu0 }
 0x165   : > { %v2094_v4 = vpop.f32.mrf.mxu3  ;;  %v1926_v5 = vadd.f32 %v1925_v3, %v1757_v1  ;;  %v1758_v7 = vpop.f32.mrf.mxu1  ;;  %v3639_v1 = vld [vmem:[%s4875_s12 + $0x1a0] sm:$0xf]  ;;  %v4130_v3 = vld [vmem:[%s4875_s12 + $0x1ac] sm:$0xf0] }
 0x166   : > { %v1759_v8 = vadd.f32 %v1758_v7, %v1589_v6  ;;  %v3647_v6 = vld [vmem:[%s4875_s12 + $0x1a8] sm:$0xf]  ;;  %v4131_v7 = vld [vmem:[%s4875_s12 + $0x1b4] sm:$0xf0]  ;;  %v3640_v13 = vor.u32 %v4130_v3, %v3639_v1  ;;  %v3673_v1 = vld [vmem:[%s4875_s12 + $0x1f0] sm:$0xf0] }
 0x167   : > { %v4977_v9 = vadd.f32 %v2094_v4, %v1926_v5  ;;  %v4128_v4 = vld [vmem:[%s4875_s12 + $0x1a4] sm:$0xf]  ;;  %v3641_v5 = vld [vmem:[%s4875_s12 + $0x1b0] sm:$0xf0]  ;;  %v3679_v3 = vld [vmem:[%s4875_s12 + $0x1e8] sm:$0xf] }
 0x168   : > { %v3644_v14 = vor.u32 %v4128_v4, %v3641_v5  ;;  %v4139_v4 = vld [vmem:[%s4875_s12 + $0x1f4] sm:$0xf0]  ;;  %v4137_v5 = vld [vmem:[%s4875_s12 + $0x1ec] sm:$0xf] }
 0x16c   : > { %v1927_v18 = vpop.f32.mrf.mxu2  ;;  %v1592_v24 = vpop.f32.mrf.mxu0 }
 0x16d   : > { %v2096_v19 = vpop.f32.mrf.mxu3  ;;  %v1928_v23 = vadd.f32 %v1927_v18, %v1759_v8  ;;  %v1761_v25 = vpop.f32.mrf.mxu1  ;;  %v4129_v8 = vld [vmem:[%s4875_s12 + $0x1ac] sm:$0xf]  ;;  %v3648_v18 = vor.u32 %v4131_v7, %v3647_v6  ;;  %v3681_v6 = vld [vmem:[%s4875_s12 + $0x1f8] sm:$0xf0] }
 0x16e   : > { %v1762_v28 = vadd.f32 %v1761_v25, %v1592_v24 }
 0x16f   : > { %v4987_v29 = vadd.f32 %v2096_v19, %v1928_v23  ;;  %1631 = vmatmul.bf16.gmra.mxu0 %v3608_v20  ;;  %v3652_v19 = vor.u32 %v4129_v8, %v3649_v10 }
 0x170   : > { %1800 = vmatmul.bf16.gmra.mxu1 %v3612_v22 }
 0x171   : > { %1969 = vmatmul.bf16.gmra.mxu2 %v3616_v26 }
 0x172   : > { %2138 = vmatmul.bf16.gmra.mxu3 %v3620_v27 }
 0x174   : > { %v1930_v30 = vpop.f32.mrf.mxu2  ;;  %v1594_v33 = vpop.f32.mrf.mxu0 }
 0x175   : > { %v2099_v31 = vpop.f32.mrf.mxu3  ;;  %v1931_v32 = vadd.f32 %v1930_v30, %v1762_v28  ;;  %v1763_v34 = vpop.f32.mrf.mxu1 }
 0x176   : > { %v1764_v35 = vadd.f32 %v1763_v34, %v1594_v33  ;;  %v4132_v33 = vld [vmem:[%s4875_s12 + $0x1c4] sm:$0xf]  ;;  %v3657_v34 = vld [vmem:[%s4875_s12 + $0x1d0] sm:$0xf0] }
 0x177   : > { %v4989_v36 = vadd.f32 %v2099_v31, %v1931_v32  ;;  %v3655_v31 = vld [vmem:[%s4875_s12 + $0x1c0] sm:$0xf]  ;;  %v4134_v32 = vld [vmem:[%s4875_s12 + $0x1cc] sm:$0xf0]  ;;  %v3660_v44 = vor.u32 %v4132_v33, %v3657_v34  ;;  %v3689_v33 = vld [vmem:[%s4875_s12 + $0x210] sm:$0xf0] }
 0x178   : > { %v3656_v43 = vor.u32 %v4134_v32, %v3655_v31  ;;  %v4142_v31 = vld [vmem:[%s4875_s12 + $0x20c] sm:$0xf0]  ;;  %v4140_v32 = vld [vmem:[%s4875_s12 + $0x204] sm:$0xf]  ;;  %v3695_v34 = vld [vmem:[%s4875_s12 + $0x208] sm:$0xf] }
 0x17c   : > { %v1932_v46 = vpop.f32.mrf.mxu2  ;;  %v1597_v52 = vpop.f32.mrf.mxu0 }
 0x17d   : > { %v2101_v48 = vpop.f32.mrf.mxu3  ;;  %v1933_v51 = vadd.f32 %v1932_v46, %v1764_v35  ;;  %v1766_v53 = vpop.f32.mrf.mxu1  ;;  %v3663_v35 = vld [vmem:[%s4875_s12 + $0x1c8] sm:$0xf] }
 0x17e   : > { %v1767_v56 = vadd.f32 %v1766_v53, %v1597_v52 }
 0x17f   : > { %v4999_v57 = vadd.f32 %v2101_v48, %v1933_v51  ;;  %1636 = vmatmul.bf16.gmra.mxu0 %v3624_v49  ;;  %v3664_v49 = vor.u32 %v4135_v37, %v3663_v35  ;;  %v4143_v35 = vld [vmem:[%s4875_s12 + $0x214] sm:$0xf0]  ;;  %v4141_v37 = vld [vmem:[%s4875_s12 + $0x20c] sm:$0xf] }
 0x180   : > { %1805 = vmatmul.bf16.gmra.mxu1 %v3628_v50  ;;  %v3668_v50 = vor.u32 %v4133_v38, %v3665_v39  ;;  %v3697_v38 = vld [vmem:[%s4875_s12 + $0x218] sm:$0xf0] }
 0x181   : > { %1974 = vmatmul.bf16.gmra.mxu2 %v3632_v54 }
 0x182   : > { %2143 = vmatmul.bf16.gmra.mxu3 %v3636_v55 }
 0x184   : > { %v1935_v58 = vpop.f32.mrf.mxu2  ;;  %v1599_v61 = vpop.f32.mrf.mxu0 }
 0x185   : > { %v2104_v59 = vpop.f32.mrf.mxu3  ;;  %v1936_v60 = vadd.f32 %v1935_v58, %v1767_v56  ;;  %v1768_v62 = vpop.f32.mrf.mxu1 }
 0x186   : > { %v1769_v63 = vadd.f32 %v1768_v62, %v1599_v61  ;;  %v3671_v61 = vld [vmem:[%s4875_s12 + $0x1e0] sm:$0xf]  ;;  %v4138_v62 = vld [vmem:[%s4875_s12 + $0x1ec] sm:$0xf0] }
 0x187   : > { %v5001_v0 = vadd.f32 %v2104_v59, %v1936_v60  ;;  %v3672_v10 = vor.u32 %v4138_v62, %v3671_v61  ;;  %v3703_v62 = vld [vmem:[%s4875_s12 + $0x220] sm:$0xf] }
 0x18c   : > { %v1937_v11 = vpop.f32.mrf.mxu2  ;;  %v1602_v16 = vpop.f32.mrf.mxu0 }
 0x18d   : > { %v2106_v12 = vpop.f32.mrf.mxu3  ;;  %v1938_v15 = vadd.f32 %v1937_v11, %v1769_v63  ;;  %v1771_v17 = vpop.f32.mrf.mxu1  ;;  %v4136_v63 = vld [vmem:[%s4875_s12 + $0x1e4] sm:$0xf] }
 0x18e   : > { %v1772_v20 = vadd.f32 %v1771_v17, %v1602_v16  ;;  %v3676_v11 = vor.u32 %v4136_v63, %v3673_v1  ;;  %v3684_v16 = vor.u32 %v4137_v5, %v3681_v6  ;;  %v4146_v63 = vld [vmem:[%s4875_s12 + $0x22c] sm:$0xf0]  ;;  %v4144_v1 = vld [vmem:[%s4875_s12 + $0x224] sm:$0xf]  ;;  %v4147_v5 = vld [vmem:[%s4875_s12 + $0x234] sm:$0xf0] }
 0x18f   : > { %v5011_v22 = vadd.f32 %v2106_v12, %v1938_v15  ;;  %1641 = vmatmul.bf16.gmra.mxu0 %v3640_v13  ;;  %v3680_v15 = vor.u32 %v4139_v4, %v3679_v3  ;;  %v3705_v3 = vld [vmem:[%s4875_s12 + $0x230] sm:$0xf0]  ;;  %v3711_v4 = vld [vmem:[%s4875_s12 + $0x228] sm:$0xf]  ;;  %v4145_v6 = vld [vmem:[%s4875_s12 + $0x22c] sm:$0xf] }
 0x190   : > { %1810 = vmatmul.bf16.gmra.mxu1 %v3644_v14 }
 0x191   : > { %1979 = vmatmul.bf16.gmra.mxu2 %v3648_v18 }
 0x192   : > { %2148 = vmatmul.bf16.gmra.mxu3 %v3652_v19 }
 0x194   : > { %v1940_v23 = vpop.f32.mrf.mxu2  ;;  %v1604_v26 = vpop.f32.mrf.mxu0 }
 0x195   : > { %v2109_v24 = vpop.f32.mrf.mxu3  ;;  %v1941_v25 = vadd.f32 %v1940_v23, %v1772_v20  ;;  %v1773_v27 = vpop.f32.mrf.mxu1 }
 0x196   : > { %v1774_v28 = vadd.f32 %v1773_v27, %v1604_v26 }
 0x197   : > { %v5013_v30 = vadd.f32 %v2109_v24, %v1941_v25 }
 0x19c   : > { %v1942_v41 = vpop.f32.mrf.mxu2  ;;  %v1607_v46 = vpop.f32.mrf.mxu0 }
 0x19d   : > { %v2111_v42 = vpop.f32.mrf.mxu3  ;;  %v1943_v45 = vadd.f32 %v1942_v41, %v1774_v28  ;;  %v1776_v48 = vpop.f32.mrf.mxu1  ;;  %v3687_v28 = vld [vmem:[%s4875_s12 + $0x200] sm:$0xf] }
 0x19e   : > { %v1777_v51 = vadd.f32 %v1776_v48, %v1607_v46  ;;  %v3696_v48 = vor.u32 %v4143_v35, %v3695_v34  ;;  %v4150_v34 = vld [vmem:[%s4875_s12 + $0x24c] sm:$0xf0]  ;;  %v4148_v35 = vld [vmem:[%s4875_s12 + $0x244] sm:$0xf] }
 0x19f   : > { %v5023_v52 = vadd.f32 %v2111_v42, %v1943_v45  ;;  %1646 = vmatmul.bf16.gmra.mxu0 %v3656_v43  ;;  %v3688_v42 = vor.u32 %v4142_v31, %v3687_v28  ;;  %v3692_v43 = vor.u32 %v4140_v32, %v3689_v33  ;;  %v3719_v33 = vld [vmem:[%s4875_s12 + $0x240] sm:$0xf] }
 0x1a0   : > { %1815 = vmatmul.bf16.gmra.mxu1 %v3660_v44 }
 0x1a1   : > { %1984 = vmatmul.bf16.gmra.mxu2 %v3664_v49  ;;  %v3700_v49 = vor.u32 %v4141_v37, %v3697_v38  ;;  %v3721_v37 = vld [vmem:[%s4875_s12 + $0x250] sm:$0xf0]  ;;  %v3727_v38 = vld [vmem:[%s4875_s12 + $0x248] sm:$0xf] }
 0x1a2   : > { %2153 = vmatmul.bf16.gmra.mxu3 %v3668_v50 }
 0x1a4   : > { %v1945_v53 = vpop.f32.mrf.mxu2  ;;  %v1609_v56 = vpop.f32.mrf.mxu0 }
 0x1a5   : > { %v2114_v54 = vpop.f32.mrf.mxu3  ;;  %v1946_v55 = vadd.f32 %v1945_v53, %v1777_v51  ;;  %v1778_v58 = vpop.f32.mrf.mxu1 }
 0x1a6   : > { %v1779_v59 = vadd.f32 %v1778_v58, %v1609_v56 }
 0x1a7   : > { %v5025_v60 = vadd.f32 %v2114_v54, %v1946_v55 }
 0x1ac   : > { %v1947_v7 = vpop.f32.mrf.mxu2  ;;  %v1612_v13 = vpop.f32.mrf.mxu0 }
 0x1ad   : > { %v2116_v8 = vpop.f32.mrf.mxu3  ;;  %v1948_v12 = vadd.f32 %v1947_v7, %v1779_v59  ;;  %v1781_v14 = vpop.f32.mrf.mxu1  ;;  %v3713_v7 = vld [vmem:[%s4875_s12 + $0x238] sm:$0xf0] }
 0x1ae   : > { %v1782_v17 = vadd.f32 %v1781_v14, %v1612_v13 }
 0x1af   : > { %v5035_v18 = vadd.f32 %v2116_v8, %v1948_v12  ;;  %1651 = vmatmul.bf16.gmra.mxu0 %v3672_v10  ;;  %v3708_v12 = vor.u32 %v4144_v1, %v3705_v3 }
 0x1b0   : > { %1820 = vmatmul.bf16.gmra.mxu1 %v3676_v11  ;;  %v3704_v11 = vor.u32 %v4146_v63, %v3703_v62 }
 0x1b1   : > { %1989 = vmatmul.bf16.gmra.mxu2 %v3680_v15 }
 0x1b2   : > { %2158 = vmatmul.bf16.gmra.mxu3 %v3684_v16  ;;  %v3712_v16 = vor.u32 %v4147_v5, %v3711_v4  ;;  %v3735_v5 = vld [vmem:[%s4875_s12 + $0x260] sm:$0xf] }
 0x1b4   : > { %v1950_v19 = vpop.f32.mrf.mxu2  ;;  %v1614_v24 = vpop.f32.mrf.mxu0 }
 0x1b5   : > { %v2119_v20 = vpop.f32.mrf.mxu3  ;;  %v1951_v23 = vadd.f32 %v1950_v19, %v1782_v17  ;;  %v1783_v25 = vpop.f32.mrf.mxu1  ;;  %v3716_v17 = vor.u32 %v4145_v6, %v3713_v7  ;;  %v4154_v6 = vld [vmem:[%s4875_s12 + $0x26c] sm:$0xf0]  ;;  %v4152_v7 = vld [vmem:[%s4875_s12 + $0x264] sm:$0xf] }
 0x1b6   : > { %v1784_v26 = vadd.f32 %v1783_v25, %v1614_v24 }
 0x1b7   : > { %v5037_v27 = vadd.f32 %v2119_v20, %v1951_v23 }
 0x1bc   : > { %v1952_v39 = vpop.f32.mrf.mxu2  ;;  %v1617_v45 = vpop.f32.mrf.mxu0 }
 0x1bd   : > { %v2121_v41 = vpop.f32.mrf.mxu3  ;;  %v1953_v44 = vadd.f32 %v1952_v39, %v1784_v26  ;;  %v1786_v46 = vpop.f32.mrf.mxu1  ;;  %v4151_v39 = vld [vmem:[%s4875_s12 + $0x254] sm:$0xf0] }
 0x1be   : > { %v1787_v50 = vadd.f32 %v1786_v46, %v1617_v45  ;;  %v3720_v45 = vor.u32 %v4150_v34, %v3719_v33  ;;  %v3724_v46 = vor.u32 %v4148_v35, %v3721_v37 }
 0x1bf   : > { %v5047_v51 = vadd.f32 %v2121_v41, %v1953_v44  ;;  %1656 = vmatmul.bf16.gmra.mxu0 %v3688_v42  ;;  %v4149_v41 = vld [vmem:[%s4875_s12 + $0x24c] sm:$0xf]  ;;  %v3729_v42 = vld [vmem:[%s4875_s12 + $0x258] sm:$0xf0] }
 0x1c0   : > { %1825 = vmatmul.bf16.gmra.mxu1 %v3692_v43 }
 0x1c1   : > { %1994 = vmatmul.bf16.gmra.mxu2 %v3696_v48 }
 0x1c2   : > { %2163 = vmatmul.bf16.gmra.mxu3 %v3700_v49 }
 0x1c4   : > { %v1955_v53 = vpop.f32.mrf.mxu2  ;;  %v1619_v56 = vpop.f32.mrf.mxu0 }
 0x1c5   : > { %v2124_v54 = vpop.f32.mrf.mxu3  ;;  %v1956_v55 = vadd.f32 %v1955_v53, %v1787_v50  ;;  %v1788_v58 = vpop.f32.mrf.mxu1  ;;  %v3728_v53 = vor.u32 %v4151_v39, %v3727_v38 }
 0x1c6   : > { %v1789_v59 = vadd.f32 %v1788_v58, %v1619_v56 }
 0x1c7   : > { %v5049_v61 = vadd.f32 %v2124_v54, %v1956_v55  ;;  %v3732_v54 = vor.u32 %v4149_v41, %v3729_v42  ;;  %v3751_v42 = vld [vmem:[%s4875_s12 + $0x280] sm:$0xf] }
 0x1cc   : > { %v1957_v8 = vpop.f32.mrf.mxu2  ;;  %v1622_v14 = vpop.f32.mrf.mxu0 }
 0x1cd   : > { %v2126_v10 = vpop.f32.mrf.mxu3  ;;  %v1958_v13 = vadd.f32 %v1957_v8, %v1789_v59  ;;  %v1791_v15 = vpop.f32.mrf.mxu1  ;;  %v3737_v8 = vld [vmem:[%s4875_s12 + $0x270] sm:$0xf0] }
 0x1ce   : > { %v1792_v19 = vadd.f32 %v1791_v15, %v1622_v14 }
 0x1cf   : > { %v5059_v20 = vadd.f32 %v2126_v10, %v1958_v13  ;;  %1661 = vmatmul.bf16.gmra.mxu0 %v3704_v11  ;;  %v3743_v10 = vld [vmem:[%s4875_s12 + $0x268] sm:$0xf]  ;;  %v4155_v11 = vld [vmem:[%s4875_s12 + $0x274] sm:$0xf0]  ;;  %v3745_v13 = vld [vmem:[%s4875_s12 + $0x278] sm:$0xf0] }
 0x1d0   : > { %1830 = vmatmul.bf16.gmra.mxu1 %v3708_v12  ;;  %v4153_v12 = vld [vmem:[%s4875_s12 + $0x26c] sm:$0xf] }
 0x1d1   : > { %1999 = vmatmul.bf16.gmra.mxu2 %v3712_v16  ;;  %v3736_v16 = vor.u32 %v4154_v6, %v3735_v5 }
 0x1d2   : > { %2168 = vmatmul.bf16.gmra.mxu3 %v3716_v17  ;;  %v3740_v17 = vor.u32 %v4152_v7, %v3737_v8 }
 0x1d4   : > { %v1960_v23 = vpop.f32.mrf.mxu2  ;;  %v1624_v26 = vpop.f32.mrf.mxu0 }
 0x1d5   : > { %v2129_v24 = vpop.f32.mrf.mxu3  ;;  %v1961_v25 = vadd.f32 %v1960_v23, %v1792_v19  ;;  %v1793_v28 = vpop.f32.mrf.mxu1 }
 0x1d6   : > { %v1794_v31 = vadd.f32 %v1793_v28, %v1624_v26  ;;  %v3748_v26 = vor.u32 %v4153_v12, %v3745_v13 }
 0x1d7   : > { %v5061_v32 = vadd.f32 %v2129_v24, %v1961_v25  ;;  %v3744_v25 = vor.u32 %v4155_v11, %v3743_v10 }
 0x1dc   : > { %v1962_v43 = vpop.f32.mrf.mxu2  ;;  %v1627_v49 = vpop.f32.mrf.mxu0 }
 0x1dd   : > { %v2131_v44 = vpop.f32.mrf.mxu3  ;;  %v1963_v48 = vadd.f32 %v1962_v43, %v1794_v31  ;;  %v1796_v50 = vpop.f32.mrf.mxu1  ;;  %v4158_v43 = vld [vmem:[%s4875_s12 + $0x28c] sm:$0xf0] }
 0x1de   : > { %v1797_v55 = vadd.f32 %v1796_v50, %v1627_v49  ;;  %v4157_v49 = vld [vmem:[%s4875_s12 + $0x28c] sm:$0xf]  ;;  %v3761_v50 = vld [vmem:[%s4875_s12 + $0x298] sm:$0xf0] }
 0x1df   : > { %v5071_v56 = vadd.f32 %v2131_v44, %v1963_v48  ;;  %1666 = vmatmul.bf16.gmra.mxu0 %v3720_v45  ;;  %v4156_v44 = vld [vmem:[%s4875_s12 + $0x284] sm:$0xf]  ;;  %v3753_v45 = vld [vmem:[%s4875_s12 + $0x290] sm:$0xf0]  ;;  %v4159_v48 = vld [vmem:[%s4875_s12 + $0x294] sm:$0xf0] }
 0x1e0   : > { %1835 = vmatmul.bf16.gmra.mxu1 %v3724_v46  ;;  %v3759_v46 = vld [vmem:[%s4875_s12 + $0x288] sm:$0xf] }
 0x1e1   : > { %2004 = vmatmul.bf16.gmra.mxu2 %v3728_v53 }
 0x1e2   : > { %2173 = vmatmul.bf16.gmra.mxu3 %v3732_v54 }
 0x1e4   : > { %v1965_v58 = vpop.f32.mrf.mxu2  ;;  %v1629_v63 = vpop.f32.mrf.mxu0 }
 0x1e5   : > { %v2134_v59 = vpop.f32.mrf.mxu3  ;;  %v1966_v62 = vadd.f32 %v1965_v58, %v1797_v55  ;;  %v1798_v1 = vpop.f32.mrf.mxu1  ;;  %v3752_v55 = vor.u32 %v4158_v43, %v3751_v42  ;;  %v3756_v58 = vor.u32 %v4156_v44, %v3753_v45 }
 0x1e6   : > { %v1799_v3 = vadd.f32 %v1798_v1, %v1629_v63  ;;  %v3760_v1 = vor.u32 %v4159_v48, %v3759_v46 }
 0x1e7   : > { %v5073_v4 = vadd.f32 %v2134_v59, %v1966_v62 }
 0x1ec   : > { %v1967_v14 = vpop.f32.mrf.mxu2  ;;  %v1632_v23 = vpop.f32.mrf.mxu0 }
 0x1ed   : > { %v2136_v15 = vpop.f32.mrf.mxu3  ;;  %v1968_v19 = vadd.f32 %v1967_v14, %v1799_v3  ;;  %v1801_v24 = vpop.f32.mrf.mxu1  ;;  %v3764_v3 = vor.u32 %v4157_v49, %v3761_v50 }
 0x1ee   : > { %v1802_v28 = vadd.f32 %v1801_v24, %v1632_v23  ;;  %v3775_v23 = vld [vmem:[%s4875_s12 + $0x2a8] sm:$0xf]  ;;  %v4163_v24 = vld [vmem:[%s4875_s12 + $0x2b4] sm:$0xf0] }
 0x1ef   : > { %v5083_v31 = vadd.f32 %v2136_v15, %v1968_v19  ;;  %1671 = vmatmul.bf16.gmra.mxu0 %v3736_v16  ;;  %v3767_v15 = vld [vmem:[%s4875_s12 + $0x2a0] sm:$0xf]  ;;  %v4162_v16 = vld [vmem:[%s4875_s12 + $0x2ac] sm:$0xf0]  ;;  %v3769_v19 = vld [vmem:[%s4875_s12 + $0x2b0] sm:$0xf0]  ;;  %v3776_v42 = vor.u32 %v4163_v24, %v3775_v23 }
 0x1f0   : > { %1840 = vmatmul.bf16.gmra.mxu1 %v3740_v17  ;;  %v4160_v17 = vld [vmem:[%s4875_s12 + $0x2a4] sm:$0xf] }
 0x1f1   : > { %2009 = vmatmul.bf16.gmra.mxu2 %v3744_v25  ;;  %v4161_v25 = vld [vmem:[%s4875_s12 + $0x2ac] sm:$0xf] }
 0x1f2   : > { %2178 = vmatmul.bf16.gmra.mxu3 %v3748_v26  ;;  %v3777_v26 = vld [vmem:[%s4875_s12 + $0x2b8] sm:$0xf0] }
 0x1f3   : > { %v3780_v43 = vor.u32 %v4161_v25, %v3777_v26 }
 0x1f4   : > { %v1970_v33 = vpop.f32.mrf.mxu2  ;;  %v1634_v37 = vpop.f32.mrf.mxu0 }
 0x1f5   : > { %v2139_v34 = vpop.f32.mrf.mxu3  ;;  %v1971_v35 = vadd.f32 %v1970_v33, %v1802_v28  ;;  %v1803_v38 = vpop.f32.mrf.mxu1 }
 0x1f6   : > { %v1804_v39 = vadd.f32 %v1803_v38, %v1634_v37 }
 0x1f7   : > { %v5085_v41 = vadd.f32 %v2139_v34, %v1971_v35  ;;  %v3768_v34 = vor.u32 %v4162_v16, %v3767_v15  ;;  %v3772_v35 = vor.u32 %v4160_v17, %v3769_v19 }
 0x1fc   : > { %v1972_v53 = vpop.f32.mrf.mxu2  ;;  %v1637_v62 = vpop.f32.mrf.mxu0 }
 0x1fd   : > { %v2141_v54 = vpop.f32.mrf.mxu3  ;;  %v1973_v59 = vadd.f32 %v1972_v53, %v1804_v39  ;;  %v1806_v63 = vpop.f32.mrf.mxu1 }
 0x1fe   : > { %v1807_v5 = vadd.f32 %v1806_v63, %v1637_v62  ;;  %v4164_v62 = vld [vmem:[%s4875_s12 + $0x2c4] sm:$0xf]  ;;  %v3785_v63 = vld [vmem:[%s4875_s12 + $0x2d0] sm:$0xf0] }
 0x1ff   : > { %v5095_v6 = vadd.f32 %v2141_v54, %v1973_v59  ;;  %1676 = vmatmul.bf16.gmra.mxu0 %v3752_v55  ;;  %v4166_v59 = vld [vmem:[%s4875_s12 + $0x2cc] sm:$0xf0] }
 0x200   : > { %1845 = vmatmul.bf16.gmra.mxu1 %v3756_v58  ;;  %v3783_v58 = vld [vmem:[%s4875_s12 + $0x2c0] sm:$0xf] }
 0x201   : > { %2014 = vmatmul.bf16.gmra.mxu2 %v3760_v1  ;;  %v3791_v1 = vld [vmem:[%s4875_s12 + $0x2c8] sm:$0xf] }
 0x202   : > { %2183 = vmatmul.bf16.gmra.mxu3 %v3764_v3  ;;  %v4167_v3 = vld [vmem:[%s4875_s12 + $0x2d4] sm:$0xf0] }
 0x203   : > { %v3792_v17 = vor.u32 %v4167_v3, %v3791_v1 }
 0x204   : > { %v1975_v7 = vpop.f32.mrf.mxu2  ;;  %v1639_v11 = vpop.f32.mrf.mxu0 }
 0x205   : > { %v2144_v8 = vpop.f32.mrf.mxu3  ;;  %v1976_v10 = vadd.f32 %v1975_v7, %v1807_v5  ;;  %v1808_v12 = vpop.f32.mrf.mxu1  ;;  %v4165_v5 = vld [vmem:[%s4875_s12 + $0x2cc] sm:$0xf]  ;;  %v3793_v7 = vld [vmem:[%s4875_s12 + $0x2d8] sm:$0xf0] }
 0x206   : > { %v1809_v13 = vadd.f32 %v1808_v12, %v1639_v11  ;;  %v3784_v11 = vor.u32 %v4166_v59, %v3783_v58  ;;  %v3788_v12 = vor.u32 %v4164_v62, %v3785_v63  ;;  %v3796_v19 = vor.u32 %v4165_v5, %v3793_v7 }
 0x207   : > { %v5097_v14 = vadd.f32 %v2144_v8, %v1976_v10 }
 0x20c   : > { %v1977_v28 = vpop.f32.mrf.mxu2  ;;  %v1642_v38 = vpop.f32.mrf.mxu0 }
 0x20d   : > { %v2146_v33 = vpop.f32.mrf.mxu3  ;;  %v1978_v37 = vadd.f32 %v1977_v28, %v1809_v13  ;;  %v1811_v39 = vpop.f32.mrf.mxu1 }
 0x20e   : > { %v1812_v44 = vadd.f32 %v1811_v39, %v1642_v38  ;;  %v3799_v38 = vld [vmem:[%s4875_s12 + $0x2e0] sm:$0xf]  ;;  %v4170_v39 = vld [vmem:[%s4875_s12 + $0x2ec] sm:$0xf0] }
 0x20f   : > { %v5107_v45 = vadd.f32 %v2146_v33, %v1978_v37  ;;  %1681 = vmatmul.bf16.gmra.mxu0 %v3768_v34 }
 0x210   : > { %1850 = vmatmul.bf16.gmra.mxu1 %v3772_v35 }
 0x211   : > { %2019 = vmatmul.bf16.gmra.mxu2 %v3776_v42  ;;  %v4168_v42 = vld [vmem:[%s4875_s12 + $0x2e4] sm:$0xf] }
 0x212   : > { %2188 = vmatmul.bf16.gmra.mxu3 %v3780_v43  ;;  %v3801_v43 = vld [vmem:[%s4875_s12 + $0x2f0] sm:$0xf0] }
 0x213   : > { %v3804_v58 = vor.u32 %v4168_v42, %v3801_v43 }
 0x214   : > { %v1980_v46 = vpop.f32.mrf.mxu2  ;;  %v1644_v50 = vpop.f32.mrf.mxu0 }
 0x215   : > { %v2149_v48 = vpop.f32.mrf.mxu3  ;;  %v1981_v49 = vadd.f32 %v1980_v46, %v1812_v44  ;;  %v1813_v53 = vpop.f32.mrf.mxu1  ;;  %v3807_v44 = vld [vmem:[%s4875_s12 + $0x2e8] sm:$0xf]  ;;  %v4171_v46 = vld [vmem:[%s4875_s12 + $0x2f4] sm:$0xf0] }
 0x216   : > { %v1814_v54 = vadd.f32 %v1813_v53, %v1644_v50  ;;  %v3808_v1 = vor.u32 %v4171_v46, %v3807_v44 }
 0x217   : > { %v5109_v55 = vadd.f32 %v2149_v48, %v1981_v49  ;;  %v4169_v48 = vld [vmem:[%s4875_s12 + $0x2ec] sm:$0xf]  ;;  %v3809_v49 = vld [vmem:[%s4875_s12 + $0x2f8] sm:$0xf0] }
 0x218   : > { %v3812_v3 = vor.u32 %v4169_v48, %v3809_v49 }
 0x21c   : > { %v1982_v8 = vpop.f32.mrf.mxu2  ;;  %v1647_v15 = vpop.f32.mrf.mxu0 }
 0x21d   : > { %v2151_v10 = vpop.f32.mrf.mxu3  ;;  %v1983_v13 = vadd.f32 %v1982_v8, %v1814_v54  ;;  %v1816_v16 = vpop.f32.mrf.mxu1  ;;  %v3800_v54 = vor.u32 %v4170_v39, %v3799_v38 }
 0x21e   : > { %v1817_v23 = vadd.f32 %v1816_v16, %v1647_v15 }
 0x21f   : > { %v5119_v24 = vadd.f32 %v2151_v10, %v1983_v13  ;;  %1686 = vmatmul.bf16.gmra.mxu0 %v3784_v11 }
 0x220   : > { %1855 = vmatmul.bf16.gmra.mxu1 %v3788_v12 }
 0x221   : > { %2024 = vmatmul.bf16.gmra.mxu2 %v3792_v17  ;;  %v3815_v17 = vld [vmem:[%s4875_s12 + $0x300] sm:$0xf] }
 0x222   : > { %2193 = vmatmul.bf16.gmra.mxu3 %v3796_v19  ;;  %v4174_v19 = vld [vmem:[%s4875_s12 + $0x30c] sm:$0xf0] }
 0x223   : > { %v3816_v39 = vor.u32 %v4174_v19, %v3815_v17  ;;  %v3841_v17 = vld [vmem:[%s4875_s12 + $0x338] sm:$0xf0] }
 0x224   : > { %v1985_v25 = vpop.f32.mrf.mxu2  ;;  %v1649_v33 = vpop.f32.mrf.mxu0 }
 0x225   : > { %v2154_v26 = vpop.f32.mrf.mxu3  ;;  %v1986_v28 = vadd.f32 %v1985_v25, %v1817_v23  ;;  %v1818_v34 = vpop.f32.mrf.mxu1  ;;  %v4172_v23 = vld [vmem:[%s4875_s12 + $0x304] sm:$0xf]  ;;  %v3817_v25 = vld [vmem:[%s4875_s12 + $0x310] sm:$0xf0] }
 0x226   : > { %v1819_v35 = vadd.f32 %v1818_v34, %v1649_v33  ;;  %v4173_v33 = vld [vmem:[%s4875_s12 + $0x30c] sm:$0xf]  ;;  %v3825_v34 = vld [vmem:[%s4875_s12 + $0x318] sm:$0xf0]  ;;  %v3820_v42 = vor.u32 %v4172_v23, %v3817_v25 }
 0x227   : > { %v5121_v37 = vadd.f32 %v2154_v26, %v1986_v28  ;;  %v3823_v26 = vld [vmem:[%s4875_s12 + $0x308] sm:$0xf]  ;;  %v4175_v28 = vld [vmem:[%s4875_s12 + $0x314] sm:$0xf0]  ;;  %v3828_v49 = vor.u32 %v4173_v33, %v3825_v34 }
 0x228   : > { %v3824_v48 = vor.u32 %v4175_v28, %v3823_v26 }
 0x22c   : > { %v1987_v50 = vpop.f32.mrf.mxu2  ;;  %v1652_v62 = vpop.f32.mrf.mxu0 }
 0x22d   : > { %v2156_v53 = vpop.f32.mrf.mxu3  ;;  %v1988_v59 = vadd.f32 %v1987_v50, %v1819_v35  ;;  %v1821_v63 = vpop.f32.mrf.mxu1 }
 0x22e   : > { %v1822_v5 = vadd.f32 %v1821_v63, %v1652_v62 }
 0x22f   : > { %v5131_v7 = vadd.f32 %v2156_v53, %v1988_v59  ;;  %1691 = vmatmul.bf16.gmra.mxu0 %v3800_v54 }
 0x230   : > { %1860 = vmatmul.bf16.gmra.mxu1 %v3804_v58 }
 0x231   : > { %2029 = vmatmul.bf16.gmra.mxu2 %v3808_v1 }
 0x232   : > { %2198 = vmatmul.bf16.gmra.mxu3 %v3812_v3 }
 0x234   : > { %v1990_v8 = vpop.f32.mrf.mxu2  ;;  %v1654_v12 = vpop.f32.mrf.mxu0 }
 0x235   : > { %v2159_v10 = vpop.f32.mrf.mxu3  ;;  %v1991_v11 = vadd.f32 %v1990_v8, %v1822_v5  ;;  %v1823_v13 = vpop.f32.mrf.mxu1  ;;  %v3831_v5 = vld [vmem:[%s4875_s12 + $0x320] sm:$0xf]  ;;  %v4178_v8 = vld [vmem:[%s4875_s12 + $0x32c] sm:$0xf0] }
 0x236   : > { %v1824_v15 = vadd.f32 %v1823_v13, %v1654_v12  ;;  %v3839_v12 = vld [vmem:[%s4875_s12 + $0x328] sm:$0xf]  ;;  %v4179_v13 = vld [vmem:[%s4875_s12 + $0x334] sm:$0xf0]  ;;  %v3832_v25 = vor.u32 %v4178_v8, %v3831_v5  ;;  %v4181_v8 = vld [vmem:[%s4875_s12 + $0x34c] sm:$0xf] }
 0x237   : > { %v5133_v16 = vadd.f32 %v2159_v10, %v1991_v11  ;;  %v4176_v10 = vld [vmem:[%s4875_s12 + $0x324] sm:$0xf]  ;;  %v3833_v11 = vld [vmem:[%s4875_s12 + $0x330] sm:$0xf0]  ;;  %v4183_v5 = vld [vmem:[%s4875_s12 + $0x354] sm:$0xf0] }
 0x238   : > { %v3836_v26 = vor.u32 %v4176_v10, %v3833_v11  ;;  %v3857_v10 = vld [vmem:[%s4875_s12 + $0x358] sm:$0xf0] }
 0x23c   : > { %v1992_v35 = vpop.f32.mrf.mxu2  ;;  %v1657_v44 = vpop.f32.mrf.mxu0 }
 0x23d   : > { %v2161_v38 = vpop.f32.mrf.mxu3  ;;  %v1993_v43 = vadd.f32 %v1992_v35, %v1824_v15  ;;  %v1826_v46 = vpop.f32.mrf.mxu1  ;;  %v4177_v15 = vld [vmem:[%s4875_s12 + $0x32c] sm:$0xf]  ;;  %v3840_v35 = vor.u32 %v4179_v13, %v3839_v12 }
 0x23e   : > { %v1827_v50 = vadd.f32 %v1826_v46, %v1657_v44 }
 0x23f   : > { %v5143_v53 = vadd.f32 %v2161_v38, %v1993_v43  ;;  %1696 = vmatmul.bf16.gmra.mxu0 %v3816_v39  ;;  %v3844_v38 = vor.u32 %v4177_v15, %v3841_v17 }
 0x240   : > { %1865 = vmatmul.bf16.gmra.mxu1 %v3820_v42 }
 0x241   : > { %2034 = vmatmul.bf16.gmra.mxu2 %v3824_v48 }
 0x242   : > { %2203 = vmatmul.bf16.gmra.mxu3 %v3828_v49 }
 0x244   : > { %v1995_v54 = vpop.f32.mrf.mxu2  ;;  %v1659_v62 = vpop.f32.mrf.mxu0 }
 0x245   : > { %v2164_v58 = vpop.f32.mrf.mxu3  ;;  %v1996_v59 = vadd.f32 %v1995_v54, %v1827_v50  ;;  %v1828_v63 = vpop.f32.mrf.mxu1 }
 0x246   : > { %v1829_v1 = vadd.f32 %v1828_v63, %v1659_v62  ;;  %v4180_v62 = vld [vmem:[%s4875_s12 + $0x344] sm:$0xf]  ;;  %v3849_v63 = vld [vmem:[%s4875_s12 + $0x350] sm:$0xf0] }
 0x247   : > { %v5145_v3 = vadd.f32 %v2164_v58, %v1996_v59  ;;  %v3847_v58 = vld [vmem:[%s4875_s12 + $0x340] sm:$0xf]  ;;  %v4182_v59 = vld [vmem:[%s4875_s12 + $0x34c] sm:$0xf0]  ;;  %v3852_v15 = vor.u32 %v4180_v62, %v3849_v63  ;;  %v4187_v62 = vld [vmem:[%s4875_s12 + $0x374] sm:$0xf0] }
 0x248   : > { %v3848_v13 = vor.u32 %v4182_v59, %v3847_v58  ;;  %v3865_v58 = vld [vmem:[%s4875_s12 + $0x370] sm:$0xf0]  ;;  %v3871_v59 = vld [vmem:[%s4875_s12 + $0x368] sm:$0xf]  ;;  %v4185_v63 = vld [vmem:[%s4875_s12 + $0x36c] sm:$0xf] }
 0x24c   : > { %v1997_v19 = vpop.f32.mrf.mxu2  ;;  %v1662_v33 = vpop.f32.mrf.mxu0 }
 0x24d   : > { %v2166_v23 = vpop.f32.mrf.mxu3  ;;  %v1998_v28 = vadd.f32 %v1997_v19, %v1829_v1  ;;  %v1831_v34 = vpop.f32.mrf.mxu1  ;;  %v3855_v1 = vld [vmem:[%s4875_s12 + $0x348] sm:$0xf] }
 0x24e   : > { %v1832_v39 = vadd.f32 %v1831_v34, %v1662_v33 }
 0x24f   : > { %v5155_v42 = vadd.f32 %v2166_v23, %v1998_v28  ;;  %1701 = vmatmul.bf16.gmra.mxu0 %v3832_v25  ;;  %v3856_v25 = vor.u32 %v4183_v5, %v3855_v1  ;;  %v3873_v1 = vld [vmem:[%s4875_s12 + $0x378] sm:$0xf0] }
 0x250   : > { %1870 = vmatmul.bf16.gmra.mxu1 %v3836_v26  ;;  %v3860_v26 = vor.u32 %v4181_v8, %v3857_v10 }
 0x251   : > { %2039 = vmatmul.bf16.gmra.mxu2 %v3840_v35 }
 0x252   : > { %2208 = vmatmul.bf16.gmra.mxu3 %v3844_v38 }
 0x254   : > { %v2000_v43 = vpop.f32.mrf.mxu2  ;;  %v1664_v48 = vpop.f32.mrf.mxu0 }
 0x255   : > { %v2169_v44 = vpop.f32.mrf.mxu3  ;;  %v2001_v46 = vadd.f32 %v2000_v43, %v1832_v39  ;;  %v1833_v49 = vpop.f32.mrf.mxu1 }
 0x256   : > { %v1834_v50 = vadd.f32 %v1833_v49, %v1664_v48  ;;  %v3863_v48 = vld [vmem:[%s4875_s12 + $0x360] sm:$0xf]  ;;  %v4186_v49 = vld [vmem:[%s4875_s12 + $0x36c] sm:$0xf0] }
 0x257   : > { %v5157_v54 = vadd.f32 %v2169_v44, %v2001_v46  ;;  %v3864_v10 = vor.u32 %v4186_v49, %v3863_v48  ;;  %v4190_v48 = vld [vmem:[%s4875_s12 + $0x38c] sm:$0xf0]  ;;  %v4188_v49 = vld [vmem:[%s4875_s12 + $0x384] sm:$0xf] }
 0x25c   : > { %v2002_v11 = vpop.f32.mrf.mxu2  ;;  %v1667_v19 = vpop.f32.mrf.mxu0 }
 0x25d   : > { %v2171_v12 = vpop.f32.mrf.mxu3  ;;  %v2003_v17 = vadd.f32 %v2002_v11, %v1834_v50  ;;  %v1836_v23 = vpop.f32.mrf.mxu1  ;;  %v4184_v50 = vld [vmem:[%s4875_s12 + $0x364] sm:$0xf] }
 0x25e   : > { %v1837_v28 = vadd.f32 %v1836_v23, %v1667_v19  ;;  %v3868_v11 = vor.u32 %v4184_v50, %v3865_v58  ;;  %v3876_v19 = vor.u32 %v4185_v63, %v3873_v1  ;;  %v3881_v50 = vld [vmem:[%s4875_s12 + $0x390] sm:$0xf0]  ;;  %v3887_v58 = vld [vmem:[%s4875_s12 + $0x388] sm:$0xf]  ;;  %v3889_v63 = vld [vmem:[%s4875_s12 + $0x398] sm:$0xf0] }
 0x25f   : > { %v5167_v33 = vadd.f32 %v2171_v12, %v2003_v17  ;;  %1706 = vmatmul.bf16.gmra.mxu0 %v3848_v13  ;;  %v3872_v17 = vor.u32 %v4187_v62, %v3871_v59  ;;  %v4191_v59 = vld [vmem:[%s4875_s12 + $0x394] sm:$0xf0]  ;;  %v4189_v62 = vld [vmem:[%s4875_s12 + $0x38c] sm:$0xf] }
 0x260   : > { %1875 = vmatmul.bf16.gmra.mxu1 %v3852_v15 }
 0x261   : > { %2044 = vmatmul.bf16.gmra.mxu2 %v3856_v25 }
 0x262   : > { %2213 = vmatmul.bf16.gmra.mxu3 %v3860_v26 }
 0x264   : > { %v2005_v34 = vpop.f32.mrf.mxu2  ;;  %v1669_v39 = vpop.f32.mrf.mxu0 }
 0x265   : > { %v2174_v35 = vpop.f32.mrf.mxu3  ;;  %v2006_v38 = vadd.f32 %v2005_v34, %v1837_v28  ;;  %v1838_v43 = vpop.f32.mrf.mxu1 }
 0x266   : > { %v1839_v44 = vadd.f32 %v1838_v43, %v1669_v39 }
 0x267   : > { %v5169_v46 = vadd.f32 %v2174_v35, %v2006_v38 }
 0x26c   : > { %v2007_v5 = vpop.f32.mrf.mxu2  ;;  %v1672_v13 = vpop.f32.mrf.mxu0 }
 0x26d   : > { %v2176_v8 = vpop.f32.mrf.mxu3  ;;  %v2008_v12 = vadd.f32 %v2007_v5, %v1839_v44  ;;  %v1841_v15 = vpop.f32.mrf.mxu1  ;;  %v3879_v44 = vld [vmem:[%s4875_s12 + $0x380] sm:$0xf] }
 0x26e   : > { %v1842_v23 = vadd.f32 %v1841_v15, %v1672_v13  ;;  %v3888_v15 = vor.u32 %v4191_v59, %v3887_v58  ;;  %v3897_v58 = vld [vmem:[%s4875_s12 + $0x3b0] sm:$0xf0]  ;;  %v3903_v59 = vld [vmem:[%s4875_s12 + $0x3a8] sm:$0xf] }
 0x26f   : > { %v5179_v25 = vadd.f32 %v2176_v8, %v2008_v12  ;;  %1711 = vmatmul.bf16.gmra.mxu0 %v3864_v10  ;;  %v3880_v8 = vor.u32 %v4190_v48, %v3879_v44  ;;  %v3884_v10 = vor.u32 %v4188_v49, %v3881_v50  ;;  %v3895_v48 = vld [vmem:[%s4875_s12 + $0x3a0] sm:$0xf]  ;;  %v4194_v49 = vld [vmem:[%s4875_s12 + $0x3ac] sm:$0xf0]  ;;  %v4192_v50 = vld [vmem:[%s4875_s12 + $0x3a4] sm:$0xf] }
 0x270   : > { %1880 = vmatmul.bf16.gmra.mxu1 %v3868_v11 }
 0x271   : > { %2049 = vmatmul.bf16.gmra.mxu2 %v3872_v17  ;;  %v3892_v17 = vor.u32 %v4189_v62, %v3889_v63  ;;  %v4195_v62 = vld [vmem:[%s4875_s12 + $0x3b4] sm:$0xf0]  ;;  %v4193_v63 = vld [vmem:[%s4875_s12 + $0x3ac] sm:$0xf] }
 0x272   : > { %2218 = vmatmul.bf16.gmra.mxu3 %v3876_v19 }
 0x274   : > { %v2010_v26 = vpop.f32.mrf.mxu2  ;;  %v1674_v35 = vpop.f32.mrf.mxu0 }
 0x275   : > { %v2179_v28 = vpop.f32.mrf.mxu3  ;;  %v2011_v34 = vadd.f32 %v2010_v26, %v1842_v23  ;;  %v1843_v38 = vpop.f32.mrf.mxu1 }
 0x276   : > { %v1844_v39 = vadd.f32 %v1843_v38, %v1674_v35 }
 0x277   : > { %v5181_v43 = vadd.f32 %v2179_v28, %v2011_v34 }
 0x279   : > { %6328 = vst [vmem:[#allocation4_spill] sm:$0xff] %v5181_v43 }
 0x27c   : > { %v2012_v1 = vpop.f32.mrf.mxu2  ;;  %v1677_v12 = vpop.f32.mrf.mxu0 }
 0x27d   : > { %v2181_v5 = vpop.f32.mrf.mxu3  ;;  %v2013_v11 = vadd.f32 %v2012_v1, %v1844_v39  ;;  %v1846_v13 = vpop.f32.mrf.mxu1  ;;  %v3905_v1 = vld [vmem:[%s4875_s12 + $0x3b8] sm:$0xf0] }
 0x27e   : > { %v1847_v19 = vadd.f32 %v1846_v13, %v1677_v12 }
 0x27f   : > { %v5191_v23 = vadd.f32 %v2181_v5, %v2013_v11  ;;  %1716 = vmatmul.bf16.gmra.mxu0 %v3880_v8  ;;  %v3900_v11 = vor.u32 %v4192_v50, %v3897_v58  ;;  %v3911_v58 = vld [vmem:[%s4875_s12 + $0x3c0] sm:$0xf] }
 0x280   : > { %1885 = vmatmul.bf16.gmra.mxu1 %v3884_v10  ;;  %v3896_v10 = vor.u32 %v4194_v49, %v3895_v48 }
 0x281   : > { %6329 = vst [vmem:[#allocation5_spill] sm:$0xff] %v5191_v23  ;;  %2054 = vmatmul.bf16.gmra.mxu2 %v3888_v15 }
 0x282   : > { %2223 = vmatmul.bf16.gmra.mxu3 %v3892_v17  ;;  %v3904_v17 = vor.u32 %v4195_v62, %v3903_v59  ;;  %v4198_v59 = vld [vmem:[%s4875_s12 + $0x3cc] sm:$0xf0]  ;;  %v4196_v62 = vld [vmem:[%s4875_s12 + $0x3c4] sm:$0xf] }
 0x284   : > { %v2015_v26 = vpop.f32.mrf.mxu2  ;;  %v1679_v35 = vpop.f32.mrf.mxu0 }
 0x285   : > { %v2184_v28 = vpop.f32.mrf.mxu3  ;;  %v2016_v34 = vadd.f32 %v2015_v26, %v1847_v19  ;;  %v1848_v38 = vpop.f32.mrf.mxu1  ;;  %v3908_v19 = vor.u32 %v4193_v63, %v3905_v1  ;;  %v3913_v63 = vld [vmem:[%s4875_s12 + $0x3d0] sm:$0xf0]  ;;  %v3919_v1 = vld [vmem:[%s4875_s12 + $0x3c8] sm:$0xf] }
 0x286   : > { %v1849_v39 = vadd.f32 %v1848_v38, %v1679_v35 }
 0x287   : > { %v5193_v44 = vadd.f32 %v2184_v28, %v2016_v34 }
 0x289   : > { %6330 = vst [vmem:[#allocation6_spill] sm:$0xff] %v5193_v44 }
 0x28c   : > { %v2017_v5 = vpop.f32.mrf.mxu2  ;;  %v1682_v13 = vpop.f32.mrf.mxu0 }
 0x28d   : > { %v2186_v8 = vpop.f32.mrf.mxu3  ;;  %v2018_v12 = vadd.f32 %v2017_v5, %v1849_v39  ;;  %v1851_v15 = vpop.f32.mrf.mxu1  ;;  %v4199_v5 = vld [vmem:[%s4875_s12 + $0x3d4] sm:$0xf0] }
 0x28e   : > { %v1852_v26 = vadd.f32 %v1851_v15, %v1682_v13  ;;  %v3912_v13 = vor.u32 %v4198_v59, %v3911_v58  ;;  %v3916_v15 = vor.u32 %v4196_v62, %v3913_v63 }
 0x28f   : > { %v5203_v28 = vadd.f32 %v2186_v8, %v2018_v12  ;;  %1721 = vmatmul.bf16.gmra.mxu0 %v3896_v10  ;;  %v4197_v8 = vld [vmem:[%s4875_s12 + $0x3cc] sm:$0xf]  ;;  %v3921_v10 = vld [vmem:[%s4875_s12 + $0x3d8] sm:$0xf0] }
 0x290   : > { %1890 = vmatmul.bf16.gmra.mxu1 %v3900_v11 }
 0x291   : > { %6331 = vst [vmem:[#allocation7_spill] sm:$0xff] %v5203_v28  ;;  %2059 = vmatmul.bf16.gmra.mxu2 %v3904_v17 }
 0x292   : > { %2228 = vmatmul.bf16.gmra.mxu3 %v3908_v19 }
 0x294   : > { %v2020_v34 = vpop.f32.mrf.mxu2  ;;  %v1684_v39 = vpop.f32.mrf.mxu0 }
 0x295   : > { %v2189_v35 = vpop.f32.mrf.mxu3  ;;  %v2021_v38 = vadd.f32 %v2020_v34, %v1852_v26  ;;  %v1853_v48 = vpop.f32.mrf.mxu1  ;;  %v3920_v34 = vor.u32 %v4199_v5, %v3919_v1  ;;  %v3927_v5 = vld [vmem:[%s4875_s12 + $0x3e0] sm:$0xf] }
 0x296   : > { %v1854_v49 = vadd.f32 %v1853_v48, %v1684_v39 }
 0x297   : > { %v5205_v50 = vadd.f32 %v2189_v35, %v2021_v38  ;;  %v3924_v35 = vor.u32 %v4197_v8, %v3921_v10  ;;  %v4202_v8 = vld [vmem:[%s4875_s12 + $0x3ec] sm:$0xf0]  ;;  %v4200_v10 = vld [vmem:[%s4875_s12 + $0x3e4] sm:$0xf] }
 0x299   : > { %6332 = vst [vmem:[#allocation8_spill] sm:$0xff] %v5205_v50 }
 0x29c   : > { %v2022_v11 = vpop.f32.mrf.mxu2  ;;  %v1687_v19 = vpop.f32.mrf.mxu0 }
 0x29d   : > { %v2191_v12 = vpop.f32.mrf.mxu3  ;;  %v2023_v17 = vadd.f32 %v2022_v11, %v1854_v49  ;;  %v1856_v26 = vpop.f32.mrf.mxu1  ;;  %v3929_v11 = vld [vmem:[%s4875_s12 + $0x3f0] sm:$0xf0] }
 0x29e   : > { %v1857_v38 = vadd.f32 %v1856_v26, %v1687_v19 }
 0x29f   : > { %v5215_v39 = vadd.f32 %v2191_v12, %v2023_v17  ;;  %1726 = vmatmul.bf16.gmra.mxu0 %v3912_v13  ;;  %v3935_v12 = vld [vmem:[%s4875_s12 + $0x3e8] sm:$0xf]  ;;  %v4203_v13 = vld [vmem:[%s4875_s12 + $0x3f4] sm:$0xf0]  ;;  %v4201_v17 = vld [vmem:[%s4875_s12 + $0x3ec] sm:$0xf] }
 0x2a0   : > { %1895 = vmatmul.bf16.gmra.mxu1 %v3916_v15  ;;  %v3937_v15 = vld [vmem:[%s4875_s12 + $0x3f8] sm:$0xf0] }
 0x2a1   : > { %6333 = vst [vmem:[#allocation9_spill] sm:$0xff] %v5215_v39  ;;  %2064 = vmatmul.bf16.gmra.mxu2 %v3920_v34  ;;  %v3928_v34 = vor.u32 %v4202_v8, %v3927_v5  ;;  %v3940_v28 = vor.u32 %v4201_v17, %v3937_v15 }
 0x2a2   : > { %2233 = vmatmul.bf16.gmra.mxu3 %v3924_v35  ;;  %v3932_v35 = vor.u32 %v4200_v10, %v3929_v11 }
 0x2a4   : > { %v2025_v48 = vpop.f32.mrf.mxu2  ;;  %v1689_v59 = vpop.f32.mrf.mxu0 }
 0x2a5   : > { %v2194_v49 = vpop.f32.mrf.mxu3  ;;  %v2026_v58 = vadd.f32 %v2025_v48, %v1857_v38  ;;  %v1858_v62 = vpop.f32.mrf.mxu1  ;;  %v3936_v48 = vor.u32 %v4203_v13, %v3935_v12 }
 0x2a6   : > { %v1859_v63 = vadd.f32 %v1858_v62, %v1689_v59 }
 0x2a7   : > { %v5217_v1 = vadd.f32 %v2194_v49, %v2026_v58 }
 0x2a9   : > { %6334 = vst [vmem:[#allocation10_spill] sm:$0xff] %v5217_v1 }
 0x2ac   : > { %v2027_v19 = vpop.f32.mrf.mxu2  ;;  %v1692_v50 = vpop.f32.mrf.mxu0 }
 0x2ad   : > { %v2196_v26 = vpop.f32.mrf.mxu3  ;;  %v2028_v39 = vadd.f32 %v2027_v19, %v1859_v63  ;;  %v1861_v38 = vpop.f32.mrf.mxu1 }
 0x2ae   : > { %v1862_v59 = vadd.f32 %v1861_v38, %v1692_v50 }
 0x2af   : > { %v5227_v49 = vadd.f32 %v2196_v26, %v2028_v39  ;;  %1731 = vmatmul.bf16.gmra.mxu0 %v3928_v34 }
 0x2b0   : > { %1900 = vmatmul.bf16.gmra.mxu1 %v3932_v35 }
 0x2b1   : > { %2069 = vmatmul.bf16.gmra.mxu2 %v3936_v48 }
 0x2b2   : > { %2238 = vmatmul.bf16.gmra.mxu3 %v3940_v28 }
 0x2b4   : > { %v2030_v58 = vpop.f32.mrf.mxu2  ;;  %v1694_v44 = vpop.f32.mrf.mxu0 }
 0x2b5   : > { %v2199_v62 = vpop.f32.mrf.mxu3  ;;  %v2031_v1 = vadd.f32 %v2030_v58, %v1862_v59  ;;  %v1863_v23 = vpop.f32.mrf.mxu1 }
 0x2b6   : > { %v1864_v43 = vadd.f32 %v1863_v23, %v1694_v44 }
 0x2b7   : > { %v5229_v5 = vadd.f32 %v2199_v62, %v2031_v1 }
 0x2bc   : > { %v2032_v63 = vpop.f32.mrf.mxu2  ;;  %v1697_v11 = vpop.f32.mrf.mxu0 }
 0x2bd   : > { %v2201_v8 = vpop.f32.mrf.mxu3  ;;  %v2033_v10 = vadd.f32 %v2032_v63, %v1864_v43  ;;  %v1866_v12 = vpop.f32.mrf.mxu1 }
 0x2be   : > { %v1867_v50 = vadd.f32 %v1866_v12, %v1697_v11 }
 0x2bf   : > { %v5231_v39 = vadd.f32 %v2201_v8, %v2033_v10 }
 0x2c4   : > { %v2035_v13 = vpop.f32.mrf.mxu2  ;;  %v1699_v28 = vpop.f32.mrf.mxu0 }
 0x2c5   : > { %v2204_v17 = vpop.f32.mrf.mxu3  ;;  %v2036_v15 = vadd.f32 %v2035_v13, %v1867_v50  ;;  %v1868_v19 = vpop.f32.mrf.mxu1 }
 0x2c6   : > { %v1869_v26 = vadd.f32 %v1868_v19, %v1699_v28 }
 0x2c7   : > { %v5233_v34 = vadd.f32 %v2204_v17, %v2036_v15 }
 0x2cc   : > { %v2037_v35 = vpop.f32.mrf.mxu2  ;;  %v1702_v1 = vpop.f32.mrf.mxu0 }
 0x2cd   : > { %v2206_v23 = vpop.f32.mrf.mxu3  ;;  %v2038_v44 = vadd.f32 %v2037_v35, %v1869_v26  ;;  %v1871_v38 = vpop.f32.mrf.mxu1 }
 0x2ce   : > { %v1872_v48 = vadd.f32 %v1871_v38, %v1702_v1 }
 0x2cf   : > { %v5235_v43 = vadd.f32 %v2206_v23, %v2038_v44 }
 0x2d4   : > { %v2040_v59 = vpop.f32.mrf.mxu2  ;;  %v1704_v63 = vpop.f32.mrf.mxu0 }
 0x2d5   : > { %v2209_v58 = vpop.f32.mrf.mxu3  ;;  %v2041_v62 = vadd.f32 %v2040_v59, %v1872_v48  ;;  %v1873_v8 = vpop.f32.mrf.mxu1 }
 0x2d6   : > { %v1874_v10 = vadd.f32 %v1873_v8, %v1704_v63 }
 0x2d7   : > { %v5237_v11 = vadd.f32 %v2209_v58, %v2041_v62 }
 0x2d9   : > { %6335 = vst [vmem:[#allocation11_spill] sm:$0xff] %v5237_v11 }
 0x2dc   : > { %v2042_v12 = vpop.f32.mrf.mxu2  ;;  %v1707_v17 = vpop.f32.mrf.mxu0 }
 0x2dd   : > { %v2211_v50 = vpop.f32.mrf.mxu3  ;;  %v2043_v13 = vadd.f32 %v2042_v12, %v1874_v10  ;;  %v1876_v15 = vpop.f32.mrf.mxu1 }
 0x2de   : > { %v1877_v28 = vadd.f32 %v1876_v15, %v1707_v17 }
 0x2df   : > { %v5239_v19 = vadd.f32 %v2211_v50, %v2043_v13 }
 0x2e1   : > { %6336 = vst [vmem:[#allocation12_spill] sm:$0xff] %v5239_v19 }
 0x2e4   : > { %v2045_v26 = vpop.f32.mrf.mxu2  ;;  %v1709_v44 = vpop.f32.mrf.mxu0 }
 0x2e5   : > { %v2214_v35 = vpop.f32.mrf.mxu3  ;;  %v2046_v23 = vadd.f32 %v2045_v26, %v1877_v28  ;;  %v1878_v1 = vpop.f32.mrf.mxu1 }
 0x2e6   : > { %v1879_v38 = vadd.f32 %v1878_v1, %v1709_v44 }
 0x2e7   : > { %v5241_v48 = vadd.f32 %v2214_v35, %v2046_v23 }
 0x2e9   : > { %6337 = vst [vmem:[#allocation13_spill] sm:$0xff] %v5241_v48 }
 0x2ec   : > { %v2047_v59 = vpop.f32.mrf.mxu2  ;;  %v1712_v62 = vpop.f32.mrf.mxu0 }
 0x2ed   : > { %v2216_v63 = vpop.f32.mrf.mxu3  ;;  %v2048_v58 = vadd.f32 %v2047_v59, %v1879_v38  ;;  %v1881_v8 = vpop.f32.mrf.mxu1 }
 0x2ee   : > { %v1882_v11 = vadd.f32 %v1881_v8, %v1712_v62 }
 0x2ef   : > { %v5243_v10 = vadd.f32 %v2216_v63, %v2048_v58 }
 0x2f1   : > { %6338 = vst [vmem:[#allocation14_spill] sm:$0xff] %v5243_v10 }
 0x2f4   : > { %v2050_v12 = vpop.f32.mrf.mxu2  ;;  %v1714_v13 = vpop.f32.mrf.mxu0 }
 0x2f5   : > { %v2219_v17 = vpop.f32.mrf.mxu3  ;;  %v2051_v50 = vadd.f32 %v2050_v12, %v1882_v11  ;;  %v1883_v15 = vpop.f32.mrf.mxu1 }
 0x2f6   : > { %v1884_v19 = vadd.f32 %v1883_v15, %v1714_v13 }
 0x2f7   : > { %v5245_v28 = vadd.f32 %v2219_v17, %v2051_v50 }
 0x2f9   : > { %6339 = vst [vmem:[#allocation15_spill] sm:$0xff] %v5245_v28 }
 0x2fc   : > { %v2052_v26 = vpop.f32.mrf.mxu2  ;;  %v1717_v23 = vpop.f32.mrf.mxu0 }
 0x2fd   : > { %v2221_v44 = vpop.f32.mrf.mxu3  ;;  %v2053_v35 = vadd.f32 %v2052_v26, %v1884_v19  ;;  %v1886_v1 = vpop.f32.mrf.mxu1 }
 0x2fe   : > { %v1887_v38 = vadd.f32 %v1886_v1, %v1717_v23 }
 0x2ff   : > { %v5247_v48 = vadd.f32 %v2221_v44, %v2053_v35 }
 0x301   : > { %6340 = vst [vmem:[#allocation16_spill] sm:$0xff] %v5247_v48 }
 0x304   : > { %v2055_v59 = vpop.f32.mrf.mxu2  ;;  %v1719_v58 = vpop.f32.mrf.mxu0 }
 0x305   : > { %v2224_v62 = vpop.f32.mrf.mxu3  ;;  %v2056_v63 = vadd.f32 %v2055_v59, %v1887_v38  ;;  %v1888_v8 = vpop.f32.mrf.mxu1 }
 0x306   : > { %v1889_v11 = vadd.f32 %v1888_v8, %v1719_v58 }
 0x307   : > { %v5249_v10 = vadd.f32 %v2224_v62, %v2056_v63 }
 0x309   : > { %6341 = vst [vmem:[#allocation17_spill] sm:$0xff] %v5249_v10 }
 0x30c   : > { %v2057_v12 = vpop.f32.mrf.mxu2  ;;  %v1722_v50 = vpop.f32.mrf.mxu0 }
 0x30d   : > { %v2226_v13 = vpop.f32.mrf.mxu3  ;;  %v2058_v17 = vadd.f32 %v2057_v12, %v1889_v11  ;;  %v1891_v15 = vpop.f32.mrf.mxu1 }
 0x30e   : > { %v1892_v19 = vadd.f32 %v1891_v15, %v1722_v50 }
 0x30f   : > { %v5251_v28 = vadd.f32 %v2226_v13, %v2058_v17 }
 0x311   : > { %6342 = vst [vmem:[#allocation18_spill] sm:$0xff] %v5251_v28 }
 0x314   : > { %v2060_v26 = vpop.f32.mrf.mxu2  ;;  %v1724_v23 = vpop.f32.mrf.mxu0 }
 0x315   : > { %v2229_v44 = vpop.f32.mrf.mxu3  ;;  %v2061_v35 = vadd.f32 %v2060_v26, %v1892_v19  ;;  %v1893_v1 = vpop.f32.mrf.mxu1 }
 0x316   : > { %v1894_v38 = vadd.f32 %v1893_v1, %v1724_v23 }
 0x317   : > { %v5253_v48 = vadd.f32 %v2229_v44, %v2061_v35 }
 0x319   : > { %6343 = vst [vmem:[#allocation19_spill] sm:$0xff] %v5253_v48 }
 0x31c   : > { %v2062_v59 = vpop.f32.mrf.mxu2  ;;  %v1727_v58 = vpop.f32.mrf.mxu0 }
 0x31d   : > { %v2231_v62 = vpop.f32.mrf.mxu3  ;;  %v2063_v63 = vadd.f32 %v2062_v59, %v1894_v38  ;;  %v1896_v8 = vpop.f32.mrf.mxu1 }
 0x31e   : > { %v1897_v11 = vadd.f32 %v1896_v8, %v1727_v58 }
 0x31f   : > { %v5255_v10 = vadd.f32 %v2231_v62, %v2063_v63 }
 0x321   : > { %6344 = vst [vmem:[#allocation20_spill] sm:$0xff] %v5255_v10 }
 0x324   : > { %v2065_v12 = vpop.f32.mrf.mxu2  ;;  %v1729_v50 = vpop.f32.mrf.mxu0 }
 0x325   : > { %v2234_v13 = vpop.f32.mrf.mxu3  ;;  %v2066_v17 = vadd.f32 %v2065_v12, %v1897_v11  ;;  %v1898_v15 = vpop.f32.mrf.mxu1 }
 0x326   : > { %v1899_v19 = vadd.f32 %v1898_v15, %v1729_v50 }
 0x327   : > { %v5257_v28 = vadd.f32 %v2234_v13, %v2066_v17 }
 0x32c   : > { %v2067_v26 = vpop.f32.mrf.mxu2  ;;  %v1732_v23 = vpop.f32.mrf.mxu0 }
 0x32d   : > { %v2236_v44 = vpop.f32.mrf.mxu3  ;;  %v2068_v35 = vadd.f32 %v2067_v26, %v1899_v19  ;;  %v1901_v1 = vpop.f32.mrf.mxu1 }
 0x32e   : > { %v1902_v38 = vadd.f32 %v1901_v1, %v1732_v23 }
 0x32f   : > { %v5259_v48 = vadd.f32 %v2236_v44, %v2068_v35 }
 0x334   : > { %v2070_v59 = vpop.f32.mrf.mxu2  ;;  %v1734_v8 = vpop.f32.mrf.mxu0 }
 0x335   : > { %v2239_v62 = vpop.f32.mrf.mxu3  ;;  %v2071_v63 = vadd.f32 %v2070_v59, %v1902_v38  ;;  %v1903_v11 = vpop.f32.mrf.mxu1 }
 0x336   : > { %v1904_v12 = vadd.f32 %v1903_v11, %v1734_v8 }
 0x337   : > { %v5261_v58 = vadd.f32 %v2239_v62, %v2071_v63 }
 0x33b   : > { %2247 = sbr.rel (%p4069_p10) target bundleno = 896 (0x380), region = 63 }
 0x33c   : > { %v2072_v10 = vpop.f32.mrf.mxu2 }
 0x33d   : > { %v2073_v13 = vadd.f32 %v2072_v10, %v1904_v12  ;;  %v2241_v17 = vpop.f32.mrf.mxu3 }
 0x33f   : > { %v5263_v50 = vadd.f32 %v2241_v17, %v2073_v13 }
 0x340   : > { %2248 = vst [vmem:[#allocation2 + $0xb0] sm:$0xff] %v4953_v21  ;;  %v6345_v10 = vld [vmem:[#allocation4_spill] sm:$0xff]  ;;  %v6346_v15 = vld [vmem:[#allocation5_spill] sm:$0xff]  ;;  %v6347_v19 = vld [vmem:[#allocation6_spill] sm:$0xff] }
 0x341   : > { %2249 = vst [vmem:[#allocation2 + $0x1b0] sm:$0xff] %v4963_v40  ;;  %v6348_v26 = vld [vmem:[#allocation7_spill] sm:$0xff]  ;;  %v6349_v44 = vld [vmem:[#allocation8_spill] sm:$0xff]  ;;  %v6350_v35 = vld [vmem:[#allocation9_spill] sm:$0xff] }
 0x342   : > { %2250 = vst [vmem:[#allocation2 + $0xd8] sm:$0xff] %v4965_v47  ;;  %v6351_v23 = vld [vmem:[#allocation10_spill] sm:$0xff]  ;;  %v6352_v1 = vld [vmem:[#allocation11_spill] sm:$0xff]  ;;  %v6353_v38 = vld [vmem:[#allocation12_spill] sm:$0xff] }
 0x343   : > { %2251 = vst [vmem:[#allocation2 + $0x18] sm:$0xff] %v4975_v2  ;;  %v6354_v59 = vld [vmem:[#allocation13_spill] sm:$0xff]  ;;  %v6355_v62 = vld [vmem:[#allocation14_spill] sm:$0xff]  ;;  %v6356_v63 = vld [vmem:[#allocation15_spill] sm:$0xff] }
 0x344   : > { %2252 = vst [vmem:[#allocation2 + $0x50] sm:$0xff] %v4977_v9  ;;  %v6357_v8 = vld [vmem:[#allocation16_spill] sm:$0xff]  ;;  %v6358_v11 = vld [vmem:[#allocation17_spill] sm:$0xff]  ;;  %v6359_v12 = vld [vmem:[#allocation18_spill] sm:$0xff] }
 0x345   : > { %2253 = vst [vmem:[#allocation2 + $0x168] sm:$0xff] %v4987_v29  ;;  %v6360_v13 = vld [vmem:[#allocation19_spill] sm:$0xff]  ;;  %v6361_v17 = vld [vmem:[#allocation20_spill] sm:$0xff] }
 0x346   : > { %2254 = vst [vmem:[#allocation2 + $0x130] sm:$0xff] %v4989_v36 }
 0x347   : > { %2255 = vst [vmem:[#allocation2 + $0x48] sm:$0xff] %v4999_v57 }
 0x348   : > { %2256 = vst [vmem:[#allocation2 + $0x180] sm:$0xff] %v5001_v0 }
 0x349   : > { %2257 = vst [vmem:[#allocation2 + $0x110] sm:$0xff] %v5011_v22 }
 0x34a   : > { %2258 = vst [vmem:[#allocation2 + $0x118] sm:$0xff] %v5013_v30 }
 0x34b   : > { %2259 = vst [vmem:[#allocation2 + $0x98] sm:$0xff] %v5023_v52 }
 0x34c   : > { %2260 = vst [vmem:[#allocation2 + $0x120] sm:$0xff] %v5025_v60 }
 0x34d   : > { %2261 = vst [vmem:[#allocation2 + $0x150] sm:$0xff] %v5035_v18 }
 0x34e   : > { %2262 = vst [vmem:[#allocation2 + $0x108] sm:$0xff] %v5037_v27 }
 0x34f   : > { %2263 = vst [vmem:[#allocation2 + $0x60] sm:$0xff] %v5047_v51 }
 0x350   : > { %2264 = vst [vmem:[#allocation2 + $0xe0] sm:$0xff] %v5049_v61 }
 0x351   : > { %2265 = vst [vmem:[#allocation2 + $0x188] sm:$0xff] %v5059_v20 }
 0x352   : > { %2266 = vst [vmem:[#allocation2 + $0x138] sm:$0xff] %v5061_v32 }
 0x353   : > { %2267 = vst [vmem:[#allocation2 + $0x140] sm:$0xff] %v5071_v56 }
 0x354   : > { %2268 = vst [vmem:[#allocation2 + $0x80] sm:$0xff] %v5073_v4 }
 0x355   : > { %2269 = vst [vmem:[#allocation2 + $0x1a8] sm:$0xff] %v5083_v31 }
 0x356   : > { %2270 = vst [vmem:[#allocation2 + $0x1b8] sm:$0xff] %v5085_v41 }
 0x357   : > { %2271 = vst [vmem:[#allocation2 + $0x28] sm:$0xff] %v5095_v6 }
 0x358   : > { %2272 = vst [vmem:[#allocation2 + $0x1e8] sm:$0xff] %v5097_v14 }
 0x359   : > { %2273 = vst [vmem:[#allocation2 + $0xf8] sm:$0xff] %v5107_v45 }
 0x35a   : > { %2274 = vst [vmem:[#allocation2 + $0x160] sm:$0xff] %v5109_v55 }
 0x35b   : > { %2275 = vst [vmem:[#allocation2 + $0x30] sm:$0xff] %v5119_v24 }
 0x35c   : > { %2276 = vst [vmem:[#allocation2 + $0x1e0] sm:$0xff] %v5121_v37 }
 0x35d   : > { %2277 = vst [vmem:[#allocation2] sm:$0xff] %v5131_v7 }
 0x35e   : > { %2278 = vst [vmem:[#allocation2 + $0xf0] sm:$0xff] %v5133_v16 }
 0x35f   : > { %2279 = vst [vmem:[#allocation2 + $0x8] sm:$0xff] %v5143_v53 }
 0x360   : > { %2280 = vst [vmem:[#allocation2 + $0x148] sm:$0xff] %v5145_v3 }
 0x361   : > { %2281 = vst [vmem:[#allocation2 + $0x1d0] sm:$0xff] %v5155_v42 }
 0x362   : > { %2282 = vst [vmem:[#allocation2 + $0x100] sm:$0xff] %v5157_v54 }
 0x363   : > { %2283 = vst [vmem:[#allocation2 + $0xc8] sm:$0xff] %v5167_v33 }
 0x364   : > { %2284 = vst [vmem:[#allocation2 + $0x40] sm:$0xff] %v5169_v46 }
 0x365   : > { %2285 = vst [vmem:[#allocation2 + $0x1f8] sm:$0xff] %v5179_v25 }
 0x366   : > { %2286 = vst [vmem:[#allocation2 + $0x20] sm:$0xff] %v6345_v10 }
 0x367   : > { %2287 = vst [vmem:[#allocation2 + $0x128] sm:$0xff] %v6346_v15 }
 0x368   : > { %2288 = vst [vmem:[#allocation2 + $0x1a0] sm:$0xff] %v6347_v19 }
 0x369   : > { %2289 = vst [vmem:[#allocation2 + $0x1f0] sm:$0xff] %v6348_v26 }
 0x36a   : > { %2290 = vst [vmem:[#allocation2 + $0xe8] sm:$0xff] %v6349_v44 }
 0x36b   : > { %2291 = vst [vmem:[#allocation2 + $0x78] sm:$0xff] %v6350_v35 }
 0x36c   : > { %2292 = vst [vmem:[#allocation2 + $0x70] sm:$0xff] %v6351_v23 }
 0x36d   : > { %2293 = vst [vmem:[#allocation2 + $0x90] sm:$0xff] %v5227_v49 }
 0x36e   : > { %2294 = vst [vmem:[#allocation2 + $0x1d8] sm:$0xff] %v5229_v5 }
 0x36f   : > { %2295 = vst [vmem:[#allocation2 + $0xd0] sm:$0xff] %v5231_v39 }
 0x370   : > { %2296 = vst [vmem:[#allocation2 + $0xb8] sm:$0xff] %v5233_v34 }
 0x371   : > { %2297 = vst [vmem:[#allocation2 + $0x88] sm:$0xff] %v5235_v43 }
 0x372   : > { %2298 = vst [vmem:[#allocation2 + $0xa8] sm:$0xff] %v6352_v1 }
 0x373   : > { %2299 = vst [vmem:[#allocation2 + $0x1c8] sm:$0xff] %v6353_v38 }
 0x374   : > { %2300 = vst [vmem:[#allocation2 + $0x170] sm:$0xff] %v6354_v59 }
 0x375   : > { %2301 = vst [vmem:[#allocation2 + $0x178] sm:$0xff] %v6355_v62 }
 0x376   : > { %2302 = vst [vmem:[#allocation2 + $0x68] sm:$0xff] %v6356_v63 }
 0x377   : > { %2303 = vst [vmem:[#allocation2 + $0x190] sm:$0xff] %v6357_v8 }
 0x378   : > { %2304 = vst [vmem:[#allocation2 + $0x198] sm:$0xff] %v6358_v11 }
 0x379   : > { %2305 = vst [vmem:[#allocation2 + $0x38] sm:$0xff] %v6359_v12 }
 0x37a   : > { %2306 = vst [vmem:[#allocation2 + $0xc0] sm:$0xff] %v6360_v13 }
 0x37b   : > { %2307 = vst [vmem:[#allocation2 + $0x1c0] sm:$0xff] %v6361_v17 }
 0x37c   : > { %2308 = vst [vmem:[#allocation2 + $0x158] sm:$0xff] %v5257_v28 }
 0x37d   : > { %2309 = vst [vmem:[#allocation2 + $0x10] sm:$0xff] %v5259_v48 }
 0x37e   : > { %2310 = vst [vmem:[#allocation2 + $0x58] sm:$0xff] %v5261_v58 }
 0x37f   : > { %2311 = vst [vmem:[#allocation2 + $0xa0] sm:$0xff] %v5263_v50 }
 0x380 PF: > { %p4070_p11 = scmp.le.s32.totalorder %s4500_s17, 0 }
 0x382   : > { %2315 = sbr.rel (%p4070_p11) target bundleno = 970 (0x3ca), region = 67 }
 0x387   : > { %v2316_v10 = vld [vmem:[#allocation2 + $0xb0] sm:$0xff]  ;;  %v2318_v19 = vld [vmem:[#allocation2 + $0xd8] sm:$0xff]  ;;  %v2321_v38 = vld [vmem:[#allocation2 + $0x168] sm:$0xff] }
 0x388   : > { %v2317_v15 = vld [vmem:[#allocation2 + $0x1b0] sm:$0xff]  ;;  %v2380_v26 = vadd.f32 %v2316_v10, %v4953_v21  ;;  %v2382_v35 = vadd.f32 %v2318_v19, %v4965_v47  ;;  %v2319_v23 = vld [vmem:[#allocation2 + $0x18] sm:$0xff]  ;;  %v2323_v8 = vld [vmem:[#allocation2 + $0x48] sm:$0xff]  ;;  %v2385_v11 = vadd.f32 %v2321_v38, %v4987_v29 }
 0x389   : > { %v2381_v44 = vadd.f32 %v2317_v15, %v4963_v40  ;;  %v2320_v1 = vld [vmem:[#allocation2 + $0x50] sm:$0xff]  ;;  %v2383_v59 = vadd.f32 %v2319_v23, %v4975_v2  ;;  %v2324_v12 = vld [vmem:[#allocation2 + $0x180] sm:$0xff]  ;;  %v2387_v47 = vadd.f32 %v2323_v8, %v4999_v57  ;;  %v2326_v13 = vld [vmem:[#allocation2 + $0x118] sm:$0xff] }
 0x38a   : > { %v2322_v62 = vld [vmem:[#allocation2 + $0x130] sm:$0xff]  ;;  %2444 = vst [vmem:[#allocation2 + $0xb0] sm:$0xff] %v2380_v26  ;;  %v2384_v63 = vadd.f32 %v2320_v1, %v4977_v9  ;;  %v2388_v2 = vadd.f32 %v2324_v12, %v5001_v0  ;;  %v2327_v17 = vld [vmem:[#allocation2 + $0x98] sm:$0xff]  ;;  %v2328_v10 = vld [vmem:[#allocation2 + $0x120] sm:$0xff]  ;;  %v2390_v29 = vadd.f32 %v2326_v13, %v5013_v30 }
 0x38b   : > { %2445 = vst [vmem:[#allocation2 + $0x1b0] sm:$0xff] %v2381_v44  ;;  %v2386_v21 = vadd.f32 %v2322_v62, %v4989_v36  ;;  %v2325_v40 = vld [vmem:[#allocation2 + $0x110] sm:$0xff]  ;;  %v2391_v36 = vadd.f32 %v2327_v17, %v5023_v52  ;;  %v2330_v19 = vld [vmem:[#allocation2 + $0x108] sm:$0xff]  ;;  %v2392_v57 = vadd.f32 %v2328_v10, %v5025_v60  ;;  %v2331_v26 = vld [vmem:[#allocation2 + $0x60] sm:$0xff] }
 0x38c   : > { %2446 = vst [vmem:[#allocation2 + $0xd8] sm:$0xff] %v2382_v35  ;;  %v2389_v9 = vadd.f32 %v2325_v40, %v5011_v22  ;;  %v2329_v15 = vld [vmem:[#allocation2 + $0x150] sm:$0xff]  ;;  %v2332_v44 = vld [vmem:[#allocation2 + $0xe0] sm:$0xff]  ;;  %v2394_v22 = vadd.f32 %v2330_v19, %v5037_v27  ;;  %v2333_v35 = vld [vmem:[#allocation2 + $0x188] sm:$0xff]  ;;  %v2395_v30 = vadd.f32 %v2331_v26, %v5047_v51 }
 0x38d   : > { %2447 = vst [vmem:[#allocation2 + $0x18] sm:$0xff] %v2383_v59  ;;  %v2393_v0 = vadd.f32 %v2329_v15, %v5035_v18  ;;  %v2334_v23 = vld [vmem:[#allocation2 + $0x138] sm:$0xff]  ;;  %v2396_v52 = vadd.f32 %v2332_v44, %v5049_v61  ;;  %v2335_v1 = vld [vmem:[#allocation2 + $0x140] sm:$0xff]  ;;  %v2397_v60 = vadd.f32 %v2333_v35, %v5059_v20  ;;  %v2337_v59 = vld [vmem:[#allocation2 + $0x1a8] sm:$0xff] }
 0x38e   : > { %2448 = vst [vmem:[#allocation2 + $0x50] sm:$0xff] %v2384_v63  ;;  %v2336_v38 = vld [vmem:[#allocation2 + $0x80] sm:$0xff]  ;;  %v2398_v18 = vadd.f32 %v2334_v23, %v5061_v32  ;;  %v2399_v27 = vadd.f32 %v2335_v1, %v5071_v56  ;;  %v2338_v62 = vld [vmem:[#allocation2 + $0x1b8] sm:$0xff]  ;;  %v2339_v63 = vld [vmem:[#allocation2 + $0x28] sm:$0xff]  ;;  %v2401_v61 = vadd.f32 %v2337_v59, %v5083_v31 }
 0x38f   : > { %2449 = vst [vmem:[#allocation2 + $0x168] sm:$0xff] %v2385_v11  ;;  %v2400_v51 = vadd.f32 %v2336_v38, %v5073_v4  ;;  %v2340_v8 = vld [vmem:[#allocation2 + $0x1e8] sm:$0xff]  ;;  %v2402_v20 = vadd.f32 %v2338_v62, %v5085_v41  ;;  %v2341_v11 = vld [vmem:[#allocation2 + $0xf8] sm:$0xff]  ;;  %v2403_v32 = vadd.f32 %v2339_v63, %v5095_v6  ;;  %v2342_v12 = vld [vmem:[#allocation2 + $0x160] sm:$0xff] }
 0x390   : > { %2450 = vst [vmem:[#allocation2 + $0x130] sm:$0xff] %v2386_v21  ;;  %v2404_v56 = vadd.f32 %v2340_v8, %v5097_v14  ;;  %v2343_v21 = vld [vmem:[#allocation2 + $0x30] sm:$0xff]  ;;  %v2405_v4 = vadd.f32 %v2341_v11, %v5107_v45  ;;  %v2344_v40 = vld [vmem:[#allocation2 + $0x1e0] sm:$0xff]  ;;  %v2406_v31 = vadd.f32 %v2342_v12, %v5109_v55  ;;  %v2348_v17 = vld [vmem:[#allocation2 + $0x148] sm:$0xff] }
 0x391   : > { %2451 = vst [vmem:[#allocation2 + $0x48] sm:$0xff] %v2387_v47  ;;  %v2345_v47 = vld [vmem:[#allocation2] sm:$0xff]  ;;  %v2407_v41 = vadd.f32 %v2343_v21, %v5119_v24  ;;  %v2346_v13 = vld [vmem:[#allocation2 + $0xf0] sm:$0xff]  ;;  %v2408_v6 = vadd.f32 %v2344_v40, %v5121_v37  ;;  %v2412_v24 = vadd.f32 %v2348_v17, %v5145_v3  ;;  %v2358_v35 = vld [vmem:[#allocation2 + $0xe8] sm:$0xff] }
 0x392   : > { %2452 = vst [vmem:[#allocation2 + $0x180] sm:$0xff] %v2388_v2  ;;  %v2347_v2 = vld [vmem:[#allocation2 + $0x8] sm:$0xff]  ;;  %v2409_v14 = vadd.f32 %v2345_v47, %v5131_v7  ;;  %v2410_v45 = vadd.f32 %v2346_v13, %v5133_v16  ;;  %v2350_v10 = vld [vmem:[#allocation2 + $0x100] sm:$0xff]  ;;  %v2357_v44 = vld [vmem:[#allocation2 + $0x1f0] sm:$0xff] }
 0x393   : > { %2453 = vst [vmem:[#allocation2 + $0x110] sm:$0xff] %v2389_v9  ;;  %v2349_v9 = vld [vmem:[#allocation2 + $0x1d0] sm:$0xff]  ;;  %v2411_v55 = vadd.f32 %v2347_v2, %v5143_v53  ;;  %v2352_v15 = vld [vmem:[#allocation2 + $0x40] sm:$0xff]  ;;  %v2414_v7 = vadd.f32 %v2350_v10, %v5157_v54  ;;  %v2359_v23 = vld [vmem:[#allocation2 + $0x78] sm:$0xff] }
 0x394   : > { %2454 = vst [vmem:[#allocation2 + $0x118] sm:$0xff] %v2390_v29  ;;  %v2351_v29 = vld [vmem:[#allocation2 + $0xc8] sm:$0xff]  ;;  %v2413_v37 = vadd.f32 %v2349_v9, %v5155_v42  ;;  %v2354_v19 = vld [vmem:[#allocation2 + $0x20] sm:$0xff]  ;;  %v2416_v53 = vadd.f32 %v2352_v15, %v5169_v46  ;;  %v2360_v1 = vld [vmem:[#allocation2 + $0x70] sm:$0xff] }
 0x395   : > { %2455 = vst [vmem:[#allocation2 + $0x98] sm:$0xff] %v2391_v36  ;;  %v2353_v36 = vld [vmem:[#allocation2 + $0x1f8] sm:$0xff]  ;;  %v2415_v16 = vadd.f32 %v2351_v29, %v5167_v33  ;;  %v2356_v26 = vld [vmem:[#allocation2 + $0x1a0] sm:$0xff]  ;;  %v2361_v38 = vld [vmem:[#allocation2 + $0x90] sm:$0xff] }
 0x396   : > { %2456 = vst [vmem:[#allocation2 + $0x120] sm:$0xff] %v2392_v57  ;;  %v2355_v57 = vld [vmem:[#allocation2 + $0x128] sm:$0xff]  ;;  %v2417_v3 = vadd.f32 %v2353_v36, %v5179_v25  ;;  %v6368_v62 = vld [vmem:[#allocation10_spill] sm:$0xff]  ;;  %v2364_v8 = vld [vmem:[#allocation2 + $0xb8] sm:$0xff] }
 0x397   : > { %2457 = vst [vmem:[#allocation2 + $0x150] sm:$0xff] %v2393_v0  ;;  %v6362_v0 = vld [vmem:[#allocation4_spill] sm:$0xff]  ;;  %v2363_v63 = vld [vmem:[#allocation2 + $0xd0] sm:$0xff]  ;;  %v2365_v11 = vld [vmem:[#allocation2 + $0x88] sm:$0xff] }
 0x398   : > { %2458 = vst [vmem:[#allocation2 + $0x108] sm:$0xff] %v2394_v22  ;;  %v2418_v42 = vadd.f32 %v2354_v19, %v6362_v0  ;;  %v6363_v22 = vld [vmem:[#allocation5_spill] sm:$0xff]  ;;  %v2368_v40 = vld [vmem:[#allocation2 + $0x170] sm:$0xff]  ;;  %v2369_v47 = vld [vmem:[#allocation2 + $0x178] sm:$0xff] }
 0x399   : > { %2459 = vst [vmem:[#allocation2 + $0x60] sm:$0xff] %v2395_v30  ;;  %v2419_v54 = vadd.f32 %v2355_v57, %v6363_v22  ;;  %v6364_v30 = vld [vmem:[#allocation6_spill] sm:$0xff]  ;;  %v2366_v12 = vld [vmem:[#allocation2 + $0xa8] sm:$0xff]  ;;  %v2372_v17 = vld [vmem:[#allocation2 + $0x198] sm:$0xff] }
 0x39a   : > { %2460 = vst [vmem:[#allocation2 + $0xe0] sm:$0xff] %v2396_v52  ;;  %v2420_v33 = vadd.f32 %v2356_v26, %v6364_v30  ;;  %v6365_v52 = vld [vmem:[#allocation7_spill] sm:$0xff]  ;;  %v2367_v21 = vld [vmem:[#allocation2 + $0x1c8] sm:$0xff]  ;;  %v2371_v2 = vld [vmem:[#allocation2 + $0x190] sm:$0xff] }
 0x39b   : > { %2461 = vst [vmem:[#allocation2 + $0x188] sm:$0xff] %v2397_v60  ;;  %v2421_v46 = vadd.f32 %v2357_v44, %v6365_v52  ;;  %v6366_v60 = vld [vmem:[#allocation8_spill] sm:$0xff]  ;;  %v2370_v13 = vld [vmem:[#allocation2 + $0x68] sm:$0xff]  ;;  %v2373_v9 = vld [vmem:[#allocation2 + $0x38] sm:$0xff] }
 0x39c   : > { %2462 = vst [vmem:[#allocation2 + $0x138] sm:$0xff] %v2398_v18  ;;  %v2422_v25 = vadd.f32 %v2358_v35, %v6366_v60  ;;  %v6367_v18 = vld [vmem:[#allocation9_spill] sm:$0xff]  ;;  %v2375_v15 = vld [vmem:[#allocation2 + $0x1c0] sm:$0xff]  ;;  %v6377_v19 = vld [vmem:[#allocation19_spill] sm:$0xff] }
 0x39d   : > { %2463 = vst [vmem:[#allocation2 + $0x140] sm:$0xff] %v2399_v27  ;;  %v2423_v59 = vadd.f32 %v2359_v23, %v6367_v18  ;;  %v2362_v27 = vld [vmem:[#allocation2 + $0x1d8] sm:$0xff]  ;;  %v6375_v29 = vld [vmem:[#allocation17_spill] sm:$0xff]  ;;  %v2377_v57 = vld [vmem:[#allocation2 + $0x10] sm:$0xff] }
 0x39e   : > { %2464 = vst [vmem:[#allocation2 + $0x80] sm:$0xff] %v2400_v51  ;;  %v2424_v51 = vadd.f32 %v2360_v1, %v6368_v62  ;;  %v2378_v0 = vld [vmem:[#allocation2 + $0x58] sm:$0xff]  ;;  %v2379_v44 = vld [vmem:[#allocation2 + $0xa0] sm:$0xff]  ;;  %v2441_v22 = vadd.f32 %v2377_v57, %v5259_v48 }
 0x39f   : > { %2465 = vst [vmem:[#allocation2 + $0x1a8] sm:$0xff] %v2401_v61  ;;  %v2425_v61 = vadd.f32 %v2361_v38, %v5227_v49  ;;  %v2443_v35 = vadd.f32 %v2379_v44, %v5263_v50 }
 0x3a0   : > { %2466 = vst [vmem:[#allocation2 + $0x1b8] sm:$0xff] %v2402_v20  ;;  %v2426_v20 = vadd.f32 %v2362_v27, %v5229_v5 }
 0x3a1   : > { %2467 = vst [vmem:[#allocation2 + $0x28] sm:$0xff] %v2403_v32  ;;  %v2427_v32 = vadd.f32 %v2363_v63, %v5231_v39 }
 0x3a2   : > { %2468 = vst [vmem:[#allocation2 + $0x1e8] sm:$0xff] %v2404_v56  ;;  %v2428_v56 = vadd.f32 %v2364_v8, %v5233_v34 }
 0x3a3   : > { %2469 = vst [vmem:[#allocation2 + $0xf8] sm:$0xff] %v2405_v4  ;;  %v2429_v4 = vadd.f32 %v2365_v11, %v5235_v43 }
 0x3a4   : > { %2470 = vst [vmem:[#allocation2 + $0x160] sm:$0xff] %v2406_v31  ;;  %v6369_v31 = vld [vmem:[#allocation11_spill] sm:$0xff] }
 0x3a5   : > { %2471 = vst [vmem:[#allocation2 + $0x30] sm:$0xff] %v2407_v41  ;;  %v2430_v49 = vadd.f32 %v2366_v12, %v6369_v31  ;;  %v6370_v41 = vld [vmem:[#allocation12_spill] sm:$0xff] }
 0x3a6   : > { %2472 = vst [vmem:[#allocation2 + $0x1e0] sm:$0xff] %v2408_v6  ;;  %v2431_v5 = vadd.f32 %v2367_v21, %v6370_v41  ;;  %v6371_v6 = vld [vmem:[#allocation13_spill] sm:$0xff] }
 0x3a7   : > { %2473 = vst [vmem:[#allocation2] sm:$0xff] %v2409_v14  ;;  %v2432_v39 = vadd.f32 %v2368_v40, %v6371_v6  ;;  %v6372_v14 = vld [vmem:[#allocation14_spill] sm:$0xff] }
 0x3a8   : > { %2474 = vst [vmem:[#allocation2 + $0xf0] sm:$0xff] %v2410_v45  ;;  %v2433_v34 = vadd.f32 %v2369_v47, %v6372_v14  ;;  %v6373_v45 = vld [vmem:[#allocation15_spill] sm:$0xff] }
 0x3a9   : > { %2475 = vst [vmem:[#allocation2 + $0x8] sm:$0xff] %v2411_v55  ;;  %v2434_v43 = vadd.f32 %v2370_v13, %v6373_v45  ;;  %v6374_v55 = vld [vmem:[#allocation16_spill] sm:$0xff] }
 0x3aa   : > { %2476 = vst [vmem:[#allocation2 + $0x148] sm:$0xff] %v2412_v24  ;;  %v2435_v10 = vadd.f32 %v2371_v2, %v6374_v55  ;;  %v2374_v24 = vld [vmem:[#allocation2 + $0xc0] sm:$0xff] }
 0x3ab   : > { %2477 = vst [vmem:[#allocation2 + $0x1d0] sm:$0xff] %v2413_v37  ;;  %v2436_v37 = vadd.f32 %v2372_v17, %v6375_v29 }
 0x3ac   : > { %2478 = vst [vmem:[#allocation2 + $0x100] sm:$0xff] %v2414_v7  ;;  %v6376_v7 = vld [vmem:[#allocation18_spill] sm:$0xff] }
 0x3ad   : > { %2479 = vst [vmem:[#allocation2 + $0xc8] sm:$0xff] %v2415_v16  ;;  %v2437_v36 = vadd.f32 %v2373_v9, %v6376_v7  ;;  %v2376_v16 = vld [vmem:[#allocation2 + $0x158] sm:$0xff] }
 0x3ae   : > { %2480 = vst [vmem:[#allocation2 + $0x40] sm:$0xff] %v2416_v53  ;;  %v2438_v53 = vadd.f32 %v2374_v24, %v6377_v19 }
 0x3af   : > { %2481 = vst [vmem:[#allocation2 + $0x1f8] sm:$0xff] %v2417_v3  ;;  %v6378_v3 = vld [vmem:[#allocation20_spill] sm:$0xff] }
 0x3b0   : > { %2482 = vst [vmem:[#allocation2 + $0x20] sm:$0xff] %v2418_v42  ;;  %v2439_v26 = vadd.f32 %v2375_v15, %v6378_v3  ;;  %v2440_v42 = vadd.f32 %v2376_v16, %v5257_v28 }
 0x3b1   : > { %2483 = vst [vmem:[#allocation2 + $0x128] sm:$0xff] %v2419_v54  ;;  %v2442_v54 = vadd.f32 %v2378_v0, %v5261_v58 }
 0x3b2   : > { %2484 = vst [vmem:[#allocation2 + $0x1a0] sm:$0xff] %v2420_v33 }
 0x3b3   : > { %2485 = vst [vmem:[#allocation2 + $0x1f0] sm:$0xff] %v2421_v46 }
 0x3b4   : > { %2486 = vst [vmem:[#allocation2 + $0xe8] sm:$0xff] %v2422_v25 }
 0x3b5   : > { %2487 = vst [vmem:[#allocation2 + $0x78] sm:$0xff] %v2423_v59 }
 0x3b6   : > { %2488 = vst [vmem:[#allocation2 + $0x70] sm:$0xff] %v2424_v51 }
 0x3b7   : > { %2489 = vst [vmem:[#allocation2 + $0x90] sm:$0xff] %v2425_v61 }
 0x3b8   : > { %2490 = vst [vmem:[#allocation2 + $0x1d8] sm:$0xff] %v2426_v20 }
 0x3b9   : > { %2491 = vst [vmem:[#allocation2 + $0xd0] sm:$0xff] %v2427_v32 }
 0x3ba   : > { %2492 = vst [vmem:[#allocation2 + $0xb8] sm:$0xff] %v2428_v56 }
 0x3bb   : > { %2493 = vst [vmem:[#allocation2 + $0x88] sm:$0xff] %v2429_v4 }
 0x3bc   : > { %2494 = vst [vmem:[#allocation2 + $0xa8] sm:$0xff] %v2430_v49 }
 0x3bd   : > { %2495 = vst [vmem:[#allocation2 + $0x1c8] sm:$0xff] %v2431_v5 }
 0x3be   : > { %2496 = vst [vmem:[#allocation2 + $0x170] sm:$0xff] %v2432_v39 }
 0x3bf   : > { %2497 = vst [vmem:[#allocation2 + $0x178] sm:$0xff] %v2433_v34 }
 0x3c0   : > { %2498 = vst [vmem:[#allocation2 + $0x68] sm:$0xff] %v2434_v43 }
 0x3c1   : > { %2499 = vst [vmem:[#allocation2 + $0x190] sm:$0xff] %v2435_v10 }
 0x3c2   : > { %2500 = vst [vmem:[#allocation2 + $0x198] sm:$0xff] %v2436_v37 }
 0x3c3   : > { %2501 = vst [vmem:[#allocation2 + $0x38] sm:$0xff] %v2437_v36 }
 0x3c4   : > { %2502 = vst [vmem:[#allocation2 + $0xc0] sm:$0xff] %v2438_v53 }
 0x3c5   : > { %2503 = vst [vmem:[#allocation2 + $0x1c0] sm:$0xff] %v2439_v26 }
 0x3c6   : > { %2504 = vst [vmem:[#allocation2 + $0x158] sm:$0xff] %v2440_v42 }
 0x3c7   : > { %2505 = vst [vmem:[#allocation2 + $0x10] sm:$0xff] %v2441_v22 }
 0x3c8   : > { %2506 = vst [vmem:[#allocation2 + $0x58] sm:$0xff] %v2442_v54 }
 0x3c9   : > { %2507 = vst [vmem:[#allocation2 + $0xa0] sm:$0xff] %v2443_v35 }
 0x3ca PF: > { %p4071_p12 = scmp.ne.s32.totalorder %s4500_s17, 1 }
 0x3cc   : > { %2511 = sbr.rel (%p4071_p12) target bundleno = 1383 (0x567), region = 71 }
 0x3d1   : > { %v5396_v30 = vld [vmem:[#allocation2 + $0xb0] sm:$0xff]  ;;  %v5400_v33 = vld [vmem:[#allocation2 + $0xd8] sm:$0xff]  ;;  %v5410_v46 = vld [vmem:[#allocation2 + $0x168] sm:$0xff] }
 0x3d2   : > { %v5398_v28 = vld [vmem:[#allocation2 + $0x1b0] sm:$0xff]  ;;  %v5404_v58 = vld [vmem:[#allocation2 + $0x18] sm:$0xff]  ;;  %v5416_v38 = vld [vmem:[#allocation2 + $0x48] sm:$0xff] }
 0x3d3   : > { %v2576_v48 = vadd.f32 %v5398_v28, %v5396_v30  ;;  %v5407_v23 = vld [vmem:[#allocation2 + $0x50] sm:$0xff]  ;;  %v5419_v59 = vld [vmem:[#allocation2 + $0x180] sm:$0xff]  ;;  %v5425_v63 = vld [vmem:[#allocation2 + $0x118] sm:$0xff] }
 0x3d4   : > { %v5413_v60 = vld [vmem:[#allocation2 + $0x130] sm:$0xff]  ;;  %v5428_v8 = vld [vmem:[#allocation2 + $0x98] sm:$0xff]  ;;  %v5431_v11 = vld [vmem:[#allocation2 + $0x120] sm:$0xff] }
 0x3d5   : > { %v2577_v50 = vadd.f32 %v2576_v48, %v5400_v33  ;;  %v5422_v62 = vld [vmem:[#allocation2 + $0x110] sm:$0xff]  ;;  %v5437_v21 = vld [vmem:[#allocation2 + $0x108] sm:$0xff]  ;;  %v5440_v40 = vld [vmem:[#allocation2 + $0x60] sm:$0xff] }
 0x3d6   : > { %v5434_v12 = vld [vmem:[#allocation2 + $0x150] sm:$0xff]  ;;  %v5443_v49 = vld [vmem:[#allocation2 + $0xe0] sm:$0xff]  ;;  %v5446_v41 = vld [vmem:[#allocation2 + $0x188] sm:$0xff] }
 0x3d7   : > { %v2578_v52 = vadd.f32 %v2577_v50, %v5404_v58  ;;  %v5449_v13 = vld [vmem:[#allocation2 + $0x138] sm:$0xff]  ;;  %v5452_v39 = vld [vmem:[#allocation2 + $0x140] sm:$0xff]  ;;  %v5458_v17 = vld [vmem:[#allocation2 + $0x1a8] sm:$0xff] }
 0x3d8   : > { %v5455_v14 = vld [vmem:[#allocation2 + $0x80] sm:$0xff]  ;;  %v5461_v43 = vld [vmem:[#allocation2 + $0x1b8] sm:$0xff]  ;;  %v5464_v55 = vld [vmem:[#allocation2 + $0x28] sm:$0xff] }
 0x3d9   : > { %v2579_v1 = vadd.f32 %v2578_v52, %v5407_v23  ;;  %v5467_v24 = vld [vmem:[#allocation2 + $0x1e8] sm:$0xff]  ;;  %v5470_v37 = vld [vmem:[#allocation2 + $0xf8] sm:$0xff]  ;;  %v5473_v7 = vld [vmem:[#allocation2 + $0x160] sm:$0xff] }
 0x3da   : > { %v5476_v16 = vld [vmem:[#allocation2 + $0x30] sm:$0xff]  ;;  %v5479_v53 = vld [vmem:[#allocation2 + $0x1e0] sm:$0xff]  ;;  %v5488_v44 = vld [vmem:[#allocation2 + $0x8] sm:$0xff] }
 0x3db   : > { %v2580_v25 = vadd.f32 %v2579_v1, %v5410_v46  ;;  %v5482_v3 = vld [vmem:[#allocation2] sm:$0xff]  ;;  %v5485_v0 = vld [vmem:[#allocation2 + $0xf0] sm:$0xff]  ;;  %v5491_v54 = vld [vmem:[#allocation2 + $0x148] sm:$0xff] }
 0x3dc   : > { %v5494_v48 = vld [vmem:[#allocation2 + $0x1d0] sm:$0xff]  ;;  %v5497_v52 = vld [vmem:[#allocation2 + $0x100] sm:$0xff] }
 0x3dd   : > { %v2581_v18 = vadd.f32 %v2580_v25, %v5413_v60  ;;  %v5500_v25 = vld [vmem:[#allocation2 + $0xc8] sm:$0xff] }
 0x3df   : > { %v2582_v27 = vadd.f32 %v2581_v18, %v5416_v38 }
 0x3e1   : > { %v2583_v51 = vadd.f32 %v2582_v27, %v5419_v59  ;;  %v5503_v27 = vld [vmem:[#allocation2 + $0x40] sm:$0xff] }
 0x3e3   : > { %v2584_v61 = vadd.f32 %v2583_v51, %v5422_v62 }
 0x3e5   : > { %v2585_v20 = vadd.f32 %v2584_v61, %v5425_v63  ;;  %v5506_v61 = vld [vmem:[#allocation2 + $0x1f8] sm:$0xff] }
 0x3e7   : > { %v2586_v32 = vadd.f32 %v2585_v20, %v5428_v8 }
 0x3e9   : > { %v2587_v56 = vadd.f32 %v2586_v32, %v5431_v11  ;;  %v5509_v32 = vld [vmem:[#allocation2 + $0x20] sm:$0xff] }
 0x3eb   : > { %v2588_v4 = vadd.f32 %v2587_v56, %v5434_v12 }
 0x3ed   : > { %v2589_v31 = vadd.f32 %v2588_v4, %v5437_v21  ;;  %v5512_v4 = vld [vmem:[#allocation2 + $0x128] sm:$0xff] }
 0x3ef   : > { %v2590_v47 = vadd.f32 %v2589_v31, %v5440_v40 }
 0x3f1   : > { %v2591_v5 = vadd.f32 %v2590_v47, %v5443_v49  ;;  %v5515_v47 = vld [vmem:[#allocation2 + $0x1a0] sm:$0xff] }
 0x3f3   : > { %v2592_v6 = vadd.f32 %v2591_v5, %v5446_v41 }
 0x3f5   : > { %v2593_v2 = vadd.f32 %v2592_v6, %v5449_v13  ;;  %v5518_v6 = vld [vmem:[#allocation2 + $0x1f0] sm:$0xff] }
 0x3f7   : > { %v2594_v34 = vadd.f32 %v2593_v2, %v5452_v39 }
 0x3f9   : > { %v2595_v45 = vadd.f32 %v2594_v34, %v5455_v14  ;;  %v5521_v34 = vld [vmem:[#allocation2 + $0xe8] sm:$0xff] }
 0x3fb   : > { %v2596_v9 = vadd.f32 %v2595_v45, %v5458_v17 }
 0x3fd   : > { %v2597_v10 = vadd.f32 %v2596_v9, %v5461_v43  ;;  %v5524_v9 = vld [vmem:[#allocation2 + $0x78] sm:$0xff] }
 0x3ff   : > { %v2598_v29 = vadd.f32 %v2597_v10, %v5464_v55 }
 0x401   : > { %v2599_v15 = vadd.f32 %v2598_v29, %v5467_v24  ;;  %v5527_v29 = vld [vmem:[#allocation2 + $0x70] sm:$0xff] }
 0x403   : > { %v2600_v36 = vadd.f32 %v2599_v15, %v5470_v37 }
 0x405   : > { %v2601_v19 = vadd.f32 %v2600_v36, %v5473_v7  ;;  %v5530_v36 = vld [vmem:[#allocation2 + $0x90] sm:$0xff] }
 0x407   : > { %v2602_v57 = vadd.f32 %v2601_v19, %v5476_v16 }
 0x409   : > { %v2603_v26 = vadd.f32 %v2602_v57, %v5479_v53  ;;  %v5533_v57 = vld [vmem:[#allocation2 + $0x1d8] sm:$0xff] }
 0x40b   : > { %v2604_v42 = vadd.f32 %v2603_v26, %v5482_v3 }
 0x40d   : > { %v2605_v22 = vadd.f32 %v2604_v42, %v5485_v0  ;;  %v5536_v42 = vld [vmem:[#allocation2 + $0xd0] sm:$0xff] }
 0x40f   : > { %v2606_v35 = vadd.f32 %v2605_v22, %v5488_v44 }
 0x411   : > { %v2607_v50 = vadd.f32 %v2606_v35, %v5491_v54  ;;  %v5539_v35 = vld [vmem:[#allocation2 + $0xb8] sm:$0xff] }
 0x412   : > { %6379 = vst [vmem:[#allocation21_spill] sm:$0xff] %v5539_v35 }
 0x413   : > { %v2608_v1 = vadd.f32 %v2607_v50, %v5494_v48 }
 0x415   : > { %v2609_v18 = vadd.f32 %v2608_v1, %v5497_v52  ;;  %v5542_v1 = vld [vmem:[#allocation2 + $0x88] sm:$0xff] }
 0x416   : > { %6380 = vst [vmem:[#allocation22_spill] sm:$0xff] %v5542_v1 }
 0x417   : > { %v2610_v51 = vadd.f32 %v2609_v18, %v5500_v25 }
 0x419   : > { %v2611_v20 = vadd.f32 %v2610_v51, %v5503_v27  ;;  %v5545_v51 = vld [vmem:[#allocation2 + $0xa8] sm:$0xff] }
 0x41a   : > { %6381 = vst [vmem:[#allocation23_spill] sm:$0xff] %v5545_v51 }
 0x41b   : > { %v2612_v56 = vadd.f32 %v2611_v20, %v5506_v61 }
 0x41d   : > { %v2613_v31 = vadd.f32 %v2612_v56, %v5509_v32  ;;  %v5548_v56 = vld [vmem:[#allocation2 + $0x1c8] sm:$0xff] }
 0x41e   : > { %6382 = vst [vmem:[#allocation24_spill] sm:$0xff] %v5548_v56 }
 0x41f   : > { %v2614_v5 = vadd.f32 %v2613_v31, %v5512_v4 }
 0x421   : > { %v2615_v2 = vadd.f32 %v2614_v5, %v5515_v47  ;;  %v5551_v5 = vld [vmem:[#allocation2 + $0x170] sm:$0xff] }
 0x422   : > { %6383 = vst [vmem:[#allocation25_spill] sm:$0xff] %v5551_v5 }
 0x423   : > { %v2616_v45 = vadd.f32 %v2615_v2, %v5518_v6 }
 0x425   : > { %v2617_v10 = vadd.f32 %v2616_v45, %v5521_v34  ;;  %v5554_v45 = vld [vmem:[#allocation2 + $0x178] sm:$0xff] }
 0x426   : > { %6384 = vst [vmem:[#allocation26_spill] sm:$0xff] %v5554_v45 }
 0x427   : > { %v2618_v15 = vadd.f32 %v2617_v10, %v5524_v9 }
 0x429   : > { %v2619_v19 = vadd.f32 %v2618_v15, %v5527_v29  ;;  %v5557_v15 = vld [vmem:[#allocation2 + $0x68] sm:$0xff] }
 0x42a   : > { %6385 = vst [vmem:[#allocation27_spill] sm:$0xff] %v5557_v15 }
 0x42b   : > { %v2620_v26 = vadd.f32 %v2619_v19, %v5530_v36 }
 0x42d   : > { %v2621_v22 = vadd.f32 %v2620_v26, %v5533_v57  ;;  %v5560_v26 = vld [vmem:[#allocation2 + $0x190] sm:$0xff] }
 0x42e   : > { %6386 = vst [vmem:[#allocation28_spill] sm:$0xff] %v5560_v26 }
 0x42f   : > { %v2622_v50 = vadd.f32 %v2621_v22, %v5536_v42 }
 0x431   : > { %v2623_v18 = vadd.f32 %v2622_v50, %v5539_v35  ;;  %v5563_v50 = vld [vmem:[#allocation2 + $0x198] sm:$0xff] }
 0x432   : > { %6387 = vst [vmem:[#allocation29_spill] sm:$0xff] %v5563_v50 }
 0x433   : > { %v2624_v20 = vadd.f32 %v2623_v18, %v5542_v1 }
 0x435   : > { %v2625_v31 = vadd.f32 %v2624_v20, %v5545_v51  ;;  %v5566_v20 = vld [vmem:[#allocation2 + $0x38] sm:$0xff] }
 0x436   : > { %6388 = vst [vmem:[#allocation30_spill] sm:$0xff] %v5566_v20  ;;  %v5576_v51 = vld [vmem:[#allocation2 + $0x158] sm:$0xff] }
 0x437   : > { %v2626_v2 = vadd.f32 %v2625_v31, %v5548_v56  ;;  %v5569_v56 = vld [vmem:[#allocation2 + $0xc0] sm:$0xff] }
 0x438   : > { %6389 = vst [vmem:[#allocation31_spill] sm:$0xff] %v5569_v56 }
 0x439   : > { %v2627_v10 = vadd.f32 %v2626_v2, %v5551_v5  ;;  %v5572_v5 = vld [vmem:[#allocation2 + $0x1c0] sm:$0xff] }
 0x43a   : > { %6390 = vst [vmem:[#allocation32_spill] sm:$0xff] %v5572_v5 }
 0x43b   : > { %v2628_v19 = vadd.f32 %v2627_v10, %v5554_v45 }
 0x43d   : > { %v2629_v22 = vadd.f32 %v2628_v19, %v5557_v15  ;;  %v5579_v15 = vld [vmem:[#allocation2 + $0x10] sm:$0xff] }
 0x43f   : > { %v2630_v18 = vadd.f32 %v2629_v22, %v5560_v26  ;;  %v5582_v26 = vld [vmem:[#allocation2 + $0x58] sm:$0xff] }
 0x441   : > { %v2631_v31 = vadd.f32 %v2630_v18, %v5563_v50  ;;  %v5585_v50 = vld [vmem:[#allocation2 + $0xa0] sm:$0xff] }
 0x443   : > { %v2632_v2 = vadd.f32 %v2631_v31, %v5566_v20 }
 0x445   : > { %v2633_v10 = vadd.f32 %v2632_v2, %v5569_v56 }
 0x447   : > { %v2634_v45 = vadd.f32 %v2633_v10, %v5572_v5 }
 0x449   : > { %v2635_v19 = vadd.f32 %v2634_v45, %v5576_v51 }
 0x44b   : > { %v2636_v22 = vadd.f32 %v2635_v19, %v5579_v15 }
 0x44d   : > { %v2637_v18 = vadd.f32 %v2636_v22, %v5582_v26 }
 0x44f   : > { %v2638_v31 = vadd.f32 %v2637_v18, %v5585_v50 }
 0x451   : > { %v2639_v20 = vrot.slane %v2638_v31, 4 }
 0x453   : > { %v2640_v2 = vadd.f32 %v2639_v20, %v2638_v31 }
 0x455   : > { %v2641_v56 = vrot.slane %v2640_v2, 2 }
 0x457   : > { %v2642_v10 = vadd.f32 %v2641_v56, %v2640_v2 }
 0x459   : > { %v2643_v5 = vrot.slane %v2642_v10, 1 }
 0x45b   : > { %v2644_v1 = vadd.f32 %v2643_v5, %v2642_v10 }
 0x45d   : > { %v5588_v35 = vmul.f32 0.001953125, %v2644_v1 }
 0x45f   : > { %v5592_v45 = vsub.f32 %v5396_v30, %v5588_v35  ;;  %v5596_v19 = vsub.f32 %v5398_v28, %v5588_v35  ;;  %v5600_v22 = vsub.f32 %v5400_v33, %v5588_v35  ;;  %v5604_v20 = vsub.f32 %v5404_v58, %v5588_v35 }
 0x460   : > { %v5612_v30 = vsub.f32 %v5407_v23, %v5588_v35  ;;  %v5618_v33 = vsub.f32 %v5410_v46, %v5588_v35  ;;  %v5624_v18 = vsub.f32 %v5413_v60, %v5588_v35  ;;  %v5630_v2 = vsub.f32 %v5416_v38, %v5588_v35 }
 0x461   : > { %6391 = vst [vmem:[#allocation33_spill] sm:$0xff] %v5604_v20  ;;  %v2710_v1 = vmul.f32 %v5592_v45, %v5592_v45  ;;  %v2711_v56 = vmul.f32 %v5596_v19, %v5596_v19  ;;  %v2712_v28 = vmul.f32 %v5600_v22, %v5600_v22  ;;  %v2713_v58 = vmul.f32 %v5604_v20, %v5604_v20 }
 0x462   : > { %v2714_v31 = vmul.f32 %v5612_v30, %v5612_v30  ;;  %v2715_v46 = vmul.f32 %v5618_v33, %v5618_v33  ;;  %v5636_v20 = vsub.f32 %v5419_v59, %v5588_v35  ;;  %v2716_v60 = vmul.f32 %v5624_v18, %v5624_v18 }
 0x463   : > { %v2774_v5 = vadd.f32 %v2711_v56, %v2710_v1  ;;  %v5642_v56 = vsub.f32 %v5422_v62, %v5588_v35  ;;  %v2717_v38 = vmul.f32 %v5630_v2, %v5630_v2 }
 0x464   : > { %v2718_v59 = vmul.f32 %v5636_v20, %v5636_v20 }
 0x465   : > { %v2775_v23 = vadd.f32 %v2774_v5, %v2712_v28  ;;  %v5648_v5 = vsub.f32 %v5425_v63, %v5588_v35  ;;  %v2719_v62 = vmul.f32 %v5642_v56, %v5642_v56 }
 0x467   : > { %v2776_v10 = vadd.f32 %v2775_v23, %v2713_v58  ;;  %v5654_v23 = vsub.f32 %v5428_v8, %v5588_v35  ;;  %v2720_v63 = vmul.f32 %v5648_v5, %v5648_v5 }
 0x469   : > { %v2777_v1 = vadd.f32 %v2776_v10, %v2714_v31  ;;  %v5660_v10 = vsub.f32 %v5431_v11, %v5588_v35  ;;  %v2721_v8 = vmul.f32 %v5654_v23, %v5654_v23 }
 0x46b   : > { %v2778_v28 = vadd.f32 %v2777_v1, %v2715_v46  ;;  %v5666_v1 = vsub.f32 %v5434_v12, %v5588_v35  ;;  %v2722_v11 = vmul.f32 %v5660_v10, %v5660_v10 }
 0x46d   : > { %v2779_v58 = vadd.f32 %v2778_v28, %v2716_v60  ;;  %v5672_v28 = vsub.f32 %v5437_v21, %v5588_v35  ;;  %v2723_v12 = vmul.f32 %v5666_v1, %v5666_v1 }
 0x46f   : > { %v2780_v31 = vadd.f32 %v2779_v58, %v2717_v38  ;;  %v5678_v58 = vsub.f32 %v5440_v40, %v5588_v35  ;;  %v2724_v21 = vmul.f32 %v5672_v28, %v5672_v28 }
 0x471   : > { %v2781_v46 = vadd.f32 %v2780_v31, %v2718_v59  ;;  %v5684_v31 = vsub.f32 %v5443_v49, %v5588_v35  ;;  %v2725_v40 = vmul.f32 %v5678_v58, %v5678_v58 }
 0x473   : > { %v2782_v60 = vadd.f32 %v2781_v46, %v2719_v62  ;;  %v5690_v46 = vsub.f32 %v5446_v41, %v5588_v35  ;;  %v2726_v49 = vmul.f32 %v5684_v31, %v5684_v31 }
 0x475   : > { %v2783_v38 = vadd.f32 %v2782_v60, %v2720_v63  ;;  %v5696_v60 = vsub.f32 %v5449_v13, %v5588_v35  ;;  %v2727_v41 = vmul.f32 %v5690_v46, %v5690_v46 }
 0x477   : > { %v2784_v59 = vadd.f32 %v2783_v38, %v2721_v8  ;;  %v5702_v38 = vsub.f32 %v5452_v39, %v5588_v35  ;;  %v2728_v13 = vmul.f32 %v5696_v60, %v5696_v60 }
 0x479   : > { %v2785_v62 = vadd.f32 %v2784_v59, %v2722_v11  ;;  %v5708_v59 = vsub.f32 %v5455_v14, %v5588_v35  ;;  %v2729_v39 = vmul.f32 %v5702_v38, %v5702_v38 }
 0x47b   : > { %v2786_v63 = vadd.f32 %v2785_v62, %v2723_v12  ;;  %v5714_v62 = vsub.f32 %v5458_v17, %v5588_v35  ;;  %v2730_v14 = vmul.f32 %v5708_v59, %v5708_v59 }
 0x47d   : > { %v2787_v8 = vadd.f32 %v2786_v63, %v2724_v21  ;;  %v5720_v63 = vsub.f32 %v5461_v43, %v5588_v35  ;;  %v2731_v17 = vmul.f32 %v5714_v62, %v5714_v62 }
 0x47f   : > { %v2788_v11 = vadd.f32 %v2787_v8, %v2725_v40  ;;  %v5726_v8 = vsub.f32 %v5464_v55, %v5588_v35  ;;  %v2732_v43 = vmul.f32 %v5720_v63, %v5720_v63 }
 0x481   : > { %v2789_v12 = vadd.f32 %v2788_v11, %v2726_v49  ;;  %v5732_v11 = vsub.f32 %v5467_v24, %v5588_v35  ;;  %v2733_v55 = vmul.f32 %v5726_v8, %v5726_v8 }
 0x483   : > { %v2790_v21 = vadd.f32 %v2789_v12, %v2727_v41  ;;  %v5738_v12 = vsub.f32 %v5470_v37, %v5588_v35  ;;  %v2734_v24 = vmul.f32 %v5732_v11, %v5732_v11 }
 0x485   : > { %v2791_v40 = vadd.f32 %v2790_v21, %v2728_v13  ;;  %v5744_v21 = vsub.f32 %v5473_v7, %v5588_v35  ;;  %v2735_v37 = vmul.f32 %v5738_v12, %v5738_v12 }
 0x487   : > { %v2792_v49 = vadd.f32 %v2791_v40, %v2729_v39  ;;  %v5750_v40 = vsub.f32 %v5476_v16, %v5588_v35  ;;  %v2736_v7 = vmul.f32 %v5744_v21, %v5744_v21 }
 0x489   : > { %v2793_v41 = vadd.f32 %v2792_v49, %v2730_v14  ;;  %v5756_v49 = vsub.f32 %v5479_v53, %v5588_v35  ;;  %v2737_v16 = vmul.f32 %v5750_v40, %v5750_v40 }
 0x48b   : > { %v2794_v13 = vadd.f32 %v2793_v41, %v2731_v17  ;;  %v5762_v41 = vsub.f32 %v5482_v3, %v5588_v35  ;;  %v2738_v53 = vmul.f32 %v5756_v49, %v5756_v49 }
 0x48d   : > { %v2795_v39 = vadd.f32 %v2794_v13, %v2732_v43  ;;  %v5768_v13 = vsub.f32 %v5485_v0, %v5588_v35  ;;  %v2739_v3 = vmul.f32 %v5762_v41, %v5762_v41 }
 0x48f   : > { %v2796_v14 = vadd.f32 %v2795_v39, %v2733_v55  ;;  %v5774_v39 = vsub.f32 %v5488_v44, %v5588_v35  ;;  %v2740_v0 = vmul.f32 %v5768_v13, %v5768_v13 }
 0x491   : > { %v2797_v17 = vadd.f32 %v2796_v14, %v2734_v24  ;;  %v5780_v14 = vsub.f32 %v5491_v54, %v5588_v35  ;;  %v2741_v44 = vmul.f32 %v5774_v39, %v5774_v39 }
 0x493   : > { %v2798_v43 = vadd.f32 %v2797_v17, %v2735_v37  ;;  %v5786_v17 = vsub.f32 %v5494_v48, %v5588_v35  ;;  %v2742_v54 = vmul.f32 %v5780_v14, %v5780_v14 }
 0x495   : > { %v2799_v55 = vadd.f32 %v2798_v43, %v2736_v7  ;;  %v5792_v43 = vsub.f32 %v5497_v52, %v5588_v35  ;;  %v2743_v48 = vmul.f32 %v5786_v17, %v5786_v17 }
 0x497   : > { %v2800_v24 = vadd.f32 %v2799_v55, %v2737_v16  ;;  %v5798_v55 = vsub.f32 %v5500_v25, %v5588_v35  ;;  %v2744_v52 = vmul.f32 %v5792_v43, %v5792_v43 }
 0x499   : > { %v2801_v37 = vadd.f32 %v2800_v24, %v2738_v53  ;;  %v5804_v24 = vsub.f32 %v5503_v27, %v5588_v35  ;;  %v2745_v25 = vmul.f32 %v5798_v55, %v5798_v55 }
 0x49b   : > { %v2802_v7 = vadd.f32 %v2801_v37, %v2739_v3  ;;  %v5810_v37 = vsub.f32 %v5506_v61, %v5588_v35  ;;  %v2746_v27 = vmul.f32 %v5804_v24, %v5804_v24 }
 0x49d   : > { %v2803_v16 = vadd.f32 %v2802_v7, %v2740_v0  ;;  %v5816_v7 = vsub.f32 %v5509_v32, %v5588_v35  ;;  %v2747_v61 = vmul.f32 %v5810_v37, %v5810_v37 }
 0x49f   : > { %v2804_v53 = vadd.f32 %v2803_v16, %v2741_v44  ;;  %v5822_v16 = vsub.f32 %v5512_v4, %v5588_v35  ;;  %v2748_v32 = vmul.f32 %v5816_v7, %v5816_v7 }
 0x4a1   : > { %v2805_v3 = vadd.f32 %v2804_v53, %v2742_v54  ;;  %v5828_v53 = vsub.f32 %v5515_v47, %v5588_v35  ;;  %v2749_v4 = vmul.f32 %v5822_v16, %v5822_v16 }
 0x4a3   : > { %v2806_v0 = vadd.f32 %v2805_v3, %v2743_v48  ;;  %v5834_v3 = vsub.f32 %v5518_v6, %v5588_v35  ;;  %v2750_v47 = vmul.f32 %v5828_v53, %v5828_v53 }
 0x4a5   : > { %v2807_v44 = vadd.f32 %v2806_v0, %v2744_v52  ;;  %v5840_v0 = vsub.f32 %v5521_v34, %v5588_v35  ;;  %v2751_v6 = vmul.f32 %v5834_v3, %v5834_v3 }
 0x4a7   : > { %v2808_v54 = vadd.f32 %v2807_v44, %v2745_v25  ;;  %v5846_v44 = vsub.f32 %v5524_v9, %v5588_v35  ;;  %v2752_v34 = vmul.f32 %v5840_v0, %v5840_v0 }
 0x4a9   : > { %v2809_v48 = vadd.f32 %v2808_v54, %v2746_v27  ;;  %6392 = vst [vmem:[#allocation34_spill] sm:$0xff] %v5846_v44  ;;  %v5852_v54 = vsub.f32 %v5527_v29, %v5588_v35  ;;  %v2753_v9 = vmul.f32 %v5846_v44, %v5846_v44 }
 0x4ab   : > { %v2810_v52 = vadd.f32 %v2809_v48, %v2747_v61  ;;  %6393 = vst [vmem:[#allocation35_spill] sm:$0xff] %v5852_v54  ;;  %v5858_v48 = vsub.f32 %v5530_v36, %v5588_v35  ;;  %v2754_v29 = vmul.f32 %v5852_v54, %v5852_v54 }
 0x4ad   : > { %v2811_v25 = vadd.f32 %v2810_v52, %v2748_v32  ;;  %6394 = vst [vmem:[#allocation36_spill] sm:$0xff] %v5858_v48  ;;  %v5864_v52 = vsub.f32 %v5533_v57, %v5588_v35  ;;  %v2755_v36 = vmul.f32 %v5858_v48, %v5858_v48 }
 0x4af   : > { %v2812_v27 = vadd.f32 %v2811_v25, %v2749_v4  ;;  %6395 = vst [vmem:[#allocation37_spill] sm:$0xff] %v5864_v52  ;;  %v5870_v25 = vsub.f32 %v5536_v42, %v5588_v35  ;;  %v2756_v57 = vmul.f32 %v5864_v52, %v5864_v52 }
 0x4b1   : > { %v2813_v61 = vadd.f32 %v2812_v27, %v2750_v47  ;;  %6396 = vst [vmem:[#allocation38_spill] sm:$0xff] %v5870_v25  ;;  %v6397_v27 = vld [vmem:[#allocation21_spill] sm:$0xff]  ;;  %v2757_v42 = vmul.f32 %v5870_v25, %v5870_v25 }
 0x4b2   : > { %v5876_v44 = vsub.f32 %v6397_v27, %v5588_v35  ;;  %v6403_v27 = vld [vmem:[#allocation24_spill] sm:$0xff] }
 0x4b3   : > { %v2814_v32 = vadd.f32 %v2813_v61, %v2751_v6  ;;  %v6399_v61 = vld [vmem:[#allocation22_spill] sm:$0xff]  ;;  %v5894_v52 = vsub.f32 %v6403_v27, %v5588_v35  ;;  %v6409_v27 = vld [vmem:[#allocation27_spill] sm:$0xff] }
 0x4b4   : > { %6398 = vst [vmem:[#allocation21_spill] sm:$0xff] %v5876_v44  ;;  %v5882_v54 = vsub.f32 %v6399_v61, %v5588_v35  ;;  %v6405_v61 = vld [vmem:[#allocation25_spill] sm:$0xff] }
 0x4b5   : > { %v2815_v4 = vadd.f32 %v2814_v32, %v2752_v34  ;;  %v6401_v32 = vld [vmem:[#allocation23_spill] sm:$0xff]  ;;  %6404 = vst [vmem:[#allocation24_spill] sm:$0xff] %v5894_v52  ;;  %v5900_v25 = vsub.f32 %v6405_v61, %v5588_v35  ;;  %v6411_v61 = vld [vmem:[#allocation28_spill] sm:$0xff] }
 0x4b6   : > { %6400 = vst [vmem:[#allocation22_spill] sm:$0xff] %v5882_v54  ;;  %v5888_v48 = vsub.f32 %v6401_v32, %v5588_v35  ;;  %v6407_v32 = vld [vmem:[#allocation26_spill] sm:$0xff] }
 0x4b7   : > { %v2816_v47 = vadd.f32 %v2815_v4, %v2753_v9  ;;  %v2758_v9 = vmul.f32 %v5876_v44, %v5876_v44  ;;  %6406 = vst [vmem:[#allocation25_spill] sm:$0xff] %v5900_v25  ;;  %v5906_v44 = vsub.f32 %v6407_v32, %v5588_v35  ;;  %v6413_v32 = vld [vmem:[#allocation29_spill] sm:$0xff] }
 0x4b8   : > { %6402 = vst [vmem:[#allocation23_spill] sm:$0xff] %v5888_v48 }
 0x4b9   : > { %v2817_v6 = vadd.f32 %v2816_v47, %v2754_v29  ;;  %v2759_v29 = vmul.f32 %v5882_v54, %v5882_v54  ;;  %6408 = vst [vmem:[#allocation26_spill] sm:$0xff] %v5906_v44  ;;  %v5912_v54 = vsub.f32 %v6409_v27, %v5588_v35  ;;  %v6415_v27 = vld [vmem:[#allocation30_spill] sm:$0xff] }
 0x4bb   : > { %v2818_v34 = vadd.f32 %v2817_v6, %v2755_v36  ;;  %v2760_v36 = vmul.f32 %v5888_v48, %v5888_v48  ;;  %6410 = vst [vmem:[#allocation27_spill] sm:$0xff] %v5912_v54  ;;  %v5918_v48 = vsub.f32 %v6411_v61, %v5588_v35  ;;  %v6417_v61 = vld [vmem:[#allocation31_spill] sm:$0xff] }
 0x4bd   : > { %v2819_v4 = vadd.f32 %v2818_v34, %v2756_v57  ;;  %v2761_v57 = vmul.f32 %v5894_v52, %v5894_v52  ;;  %6412 = vst [vmem:[#allocation28_spill] sm:$0xff] %v5918_v48  ;;  %v5924_v52 = vsub.f32 %v6413_v32, %v5588_v35  ;;  %v6419_v32 = vld [vmem:[#allocation32_spill] sm:$0xff] }
 0x4bf   : > { %v2820_v47 = vadd.f32 %v2819_v4, %v2757_v42  ;;  %v2762_v42 = vmul.f32 %v5900_v25, %v5900_v25  ;;  %6414 = vst [vmem:[#allocation29_spill] sm:$0xff] %v5924_v52  ;;  %v5930_v25 = vsub.f32 %v6415_v27, %v5588_v35  ;;  %v5948_v27 = vsub.f32 %v5576_v51, %v5588_v35 }
 0x4c1   : > { %v2821_v6 = vadd.f32 %v2820_v47, %v2758_v9  ;;  %v2763_v9 = vmul.f32 %v5906_v44, %v5906_v44  ;;  %6416 = vst [vmem:[#allocation30_spill] sm:$0xff] %v5930_v25  ;;  %v5936_v44 = vsub.f32 %v6417_v61, %v5588_v35  ;;  %v5954_v61 = vsub.f32 %v5579_v15, %v5588_v35 }
 0x4c2   : > { %6421 = vst [vmem:[#allocation39_spill] sm:$0xff] %v5948_v27  ;;  %v2770_v51 = vmul.f32 %v5948_v27, %v5948_v27 }
 0x4c3   : > { %v2822_v34 = vadd.f32 %v2821_v6, %v2759_v29  ;;  %v2764_v29 = vmul.f32 %v5912_v54, %v5912_v54  ;;  %6418 = vst [vmem:[#allocation31_spill] sm:$0xff] %v5936_v44  ;;  %v5942_v54 = vsub.f32 %v6419_v32, %v5588_v35  ;;  %v5960_v32 = vsub.f32 %v5582_v26, %v5588_v35 }
 0x4c4   : > { %6422 = vst [vmem:[#allocation40_spill] sm:$0xff] %v5954_v61  ;;  %v2771_v15 = vmul.f32 %v5954_v61, %v5954_v61 }
 0x4c5   : > { %v2823_v4 = vadd.f32 %v2822_v34, %v2760_v36  ;;  %v2765_v36 = vmul.f32 %v5918_v48, %v5918_v48  ;;  %6420 = vst [vmem:[#allocation32_spill] sm:$0xff] %v5942_v54 }
 0x4c6   : > { %6423 = vst [vmem:[#allocation41_spill] sm:$0xff] %v5960_v32 }
 0x4c7   : > { %v2824_v47 = vadd.f32 %v2823_v4, %v2761_v57  ;;  %v2766_v57 = vmul.f32 %v5924_v52, %v5924_v52 }
 0x4c9   : > { %v2825_v6 = vadd.f32 %v2824_v47, %v2762_v42  ;;  %v2767_v42 = vmul.f32 %v5930_v25, %v5930_v25 }
 0x4cb   : > { %v2826_v34 = vadd.f32 %v2825_v6, %v2763_v9  ;;  %v2768_v9 = vmul.f32 %v5936_v44, %v5936_v44 }
 0x4cd   : > { %v2827_v4 = vadd.f32 %v2826_v34, %v2764_v29  ;;  %v2769_v29 = vmul.f32 %v5942_v54, %v5942_v54 }
 0x4cf   : > { %v2828_v47 = vadd.f32 %v2827_v4, %v2765_v36  ;;  %v5966_v4 = vsub.f32 %v5585_v50, %v5588_v35  ;;  %v2843_v50 = vmul.f32 0.0, %v5588_v35 }
 0x4d1   : > { %v2829_v6 = vadd.f32 %v2828_v47, %v2766_v57  ;;  %6424 = vst [vmem:[#allocation42_spill] sm:$0xff] %v5966_v4  ;;  %v2772_v47 = vmul.f32 %v5960_v32, %v5960_v32  ;;  %v2773_v26 = vmul.f32 %v5966_v4, %v5966_v4  ;;  %v2844_v61 = vmul.f32 %v2843_v50, %v5588_v35 }
 0x4d3   : > { %v2830_v34 = vadd.f32 %v2829_v6, %v2767_v42 }
 0x4d5   : > { %v2831_v36 = vadd.f32 %v2830_v34, %v2768_v9 }
 0x4d7   : > { %v2832_v57 = vadd.f32 %v2831_v36, %v2769_v29 }
 0x4d9   : > { %v2833_v42 = vadd.f32 %v2832_v57, %v2770_v51 }
 0x4db   : > { %v2834_v6 = vadd.f32 %v2833_v42, %v2771_v15 }
 0x4dd   : > { %v2835_v54 = vadd.f32 %v2834_v6, %v2772_v47 }
 0x4df   : > { %v2836_v44 = vadd.f32 %v2835_v54, %v2773_v26 }
 0x4e1   : > { %v2837_v27 = vrot.slane %v2836_v44, 4 }
 0x4e3   : > { %v2838_v9 = vadd.f32 %v2837_v27, %v2836_v44  ;;  %v2858_v27 = vld [vmem:[%s6291_s2] sm:$0x1] }
 0x4e5   : > { %v2839_v34 = vrot.slane %v2838_v9, 2 }
 0x4e7   : > { %v2840_v25 = vadd.f32 %v2839_v34, %v2838_v9 }
 0x4e9   : > { %v2841_v52 = vrot.slane %v2840_v25, 1 }
 0x4eb   : > { %v2842_v29 = vadd.f32 %v2841_v52, %v2840_v25 }
 0x4ed   : > { %v2845_v36 = vsub.f32 %v2842_v29, %v2844_v61 }
 0x4ef   : > { %v2846_v48 = vmul.f32 0.001953125, %v2845_v36 }
 0x4f1   : > { %v2847_v32 = vadd.f32 1e-05, %v2846_v48  ;;  %v5984_v48 = vld [vmem:[%s6292_s3] ss:$0 sm:$0xff] }
 0x4f3   : > { %4468 = vrsqrt.f32 %v2847_v32  ;;  %vm2854_vm0 = vweird.f32 %v2847_v32 }
 0x4f9   : > { %v4469_v51 = vpop.eup %4468 }
 0x4fa   : > { %v2849_v57 = vmul.f32 %v4469_v51, %v2847_v32  ;;  %vm2855_vm1 = vweird.f32 %v4469_v51 }
 0x4fb   : > { %vm2856_vm2 = vmor %vm2854_vm0, %vm2855_vm1 }
 0x4fc   : > { %v2850_v4 = vmul.f32 %v4469_v51, %v2849_v57 }
 0x4fe   : > { %v2851_v15 = vmul.f32 0.5, %v2850_v4  ;;  %v6425_v4 = vld [vmem:[#allocation33_spill] sm:$0xff] }
 0x500   : > { %v2852_v54 = vsub.f32 1.5, %v2851_v15 }
 0x502   : > { %v2853_v44 = vmul.f32 %v4469_v51, %v2852_v54 }
 0x504   : > { %v2857_v47 = vsel %vm2856_vm2, %v4469_v51, %v2853_v44 }
 0x505   : > { %v2859_v35 = vmul.f32 %v2858_v27, %v2857_v47 }
 0x507   : > { %v5979_v52 = vperm.slane %v2859_v35, 0 }
 0x509   : > { %v2861_v25 = vmul.f32 %v5979_v52, %v5592_v45  ;;  %v2862_v61 = vmul.f32 %v5979_v52, %v5596_v19  ;;  %v2863_v32 = vmul.f32 %v5979_v52, %v5600_v22  ;;  %v2864_v42 = vmul.f32 %v5979_v52, %v6425_v4 }
 0x50a   : > { %v2865_v26 = vmul.f32 %v5979_v52, %v5612_v30  ;;  %v2866_v6 = vmul.f32 %v5979_v52, %v5618_v33  ;;  %v2867_v9 = vmul.f32 %v5979_v52, %v5624_v18  ;;  %v2868_v45 = vmul.f32 %v5979_v52, %v5630_v2 }
 0x50b   : > { %v2929_v19 = vadd.f32 %v5984_v48, %v2861_v25  ;;  %v2930_v34 = vadd.f32 %v5984_v48, %v2862_v61  ;;  %v2931_v22 = vadd.f32 %v5984_v48, %v2863_v32  ;;  %v2932_v50 = vadd.f32 %v5984_v48, %v2864_v42 }
 0x50c   : > { %v2933_v29 = vadd.f32 %v5984_v48, %v2865_v26  ;;  %v2934_v30 = vadd.f32 %v5984_v48, %v2866_v6  ;;  %v2935_v33 = vadd.f32 %v5984_v48, %v2867_v9  ;;  %v2936_v36 = vadd.f32 %v5984_v48, %v2868_v45 }
 0x50d   : > { %vm2993_vm3 = vcmp.gt.f32.partialorder %v2929_v19, 0.0  ;;  %vm2994_vm4 = vcmp.gt.f32.partialorder %v2930_v34, 0.0  ;;  %v3057_v18 = vmul.f32 0.2, %v2929_v19  ;;  %v3058_v2 = vmul.f32 0.2, %v2930_v34 }
 0x50e   : > { %vm2995_vm5 = vcmp.gt.f32.partialorder %v2931_v22, 0.0  ;;  %vm2996_vm6 = vcmp.gt.f32.partialorder %v2932_v50, 0.0  ;;  %v3059_v51 = vmul.f32 0.2, %v2931_v22  ;;  %v3060_v57 = vmul.f32 0.2, %v2932_v50 }
 0x50f   : > { %v3121_v15 = vsel %vm2993_vm3, %v2929_v19, %v3057_v18  ;;  %v3122_v54 = vsel %vm2994_vm4, %v2930_v34, %v3058_v2  ;;  %vm2997_vm7 = vcmp.gt.f32.partialorder %v2933_v29, 0.0  ;;  %vm2998_vm8 = vcmp.gt.f32.partialorder %v2934_v30, 0.0 }
 0x510   : > { %v4239_v44 = vpack.c.bf16 %v3122_v54, %v3121_v15  ;;  %v3123_v27 = vsel %vm2995_vm5, %v2931_v22, %v3059_v51  ;;  %v3124_v47 = vsel %vm2996_vm6, %v2932_v50, %v3060_v57  ;;  %v3061_v35 = vmul.f32 0.2, %v2933_v29 }
 0x511   : > { %v4244_v25 = vpack.c.bf16 %v3124_v47, %v3123_v27  ;;  %v3062_v61 = vmul.f32 0.2, %v2934_v30  ;;  %vm2999_vm9 = vcmp.gt.f32.partialorder %v2935_v33, 0.0  ;;  %vm3000_vm10 = vcmp.gt.f32.partialorder %v2936_v36, 0.0 }
 0x512   : > { %4240 = vst [vmem:[%s6293_s4] sm:$0xff] %v4239_v44   ;;  %v3125_v32 = vsel %vm2997_vm7, %v2933_v29, %v3061_v35  ;;  %v3063_v4 = vmul.f32 0.2, %v2935_v33  ;;  %v3064_v42 = vmul.f32 0.2, %v2936_v36  ;;  %v2869_v26 = vmul.f32 %v5979_v52, %v5636_v20 }
 0x513   : > { %4396 = vst [vmem:[%s6293_s4 + $0x8] sm:$0xff] %v4244_v25   ;;  %v3126_v6 = vsel %vm2998_vm8, %v2934_v30, %v3062_v61  ;;  %v2870_v9 = vmul.f32 %v5979_v52, %v5642_v56  ;;  %v2871_v45 = vmul.f32 %v5979_v52, %v5648_v5  ;;  %v2872_v19 = vmul.f32 %v5979_v52, %v5654_v23 }
 0x514   : > { %v4249_v34 = vpack.c.bf16 %v3126_v6, %v3125_v32  ;;  %v3127_v22 = vsel %vm2999_vm9, %v2935_v33, %v3063_v4  ;;  %v3128_v50 = vsel %vm3000_vm10, %v2936_v36, %v3064_v42  ;;  %v2937_v29 = vadd.f32 %v5984_v48, %v2869_v26 }
 0x515   : > { %v4254_v20 = vpack.c.bf16 %v3128_v50, %v3127_v22  ;;  %v2938_v18 = vadd.f32 %v5984_v48, %v2870_v9  ;;  %v2939_v2 = vadd.f32 %v5984_v48, %v2871_v45  ;;  %v2940_v30 = vadd.f32 %v5984_v48, %v2872_v19 }
 0x516   : > { %4397 = vst [vmem:[%s6293_s4 + $0x10] sm:$0xff] %v4249_v34   ;;  %vm3001_vm11 = vcmp.gt.f32.partialorder %v2937_v29, 0.0  ;;  %v3065_v56 = vmul.f32 0.2, %v2937_v29  ;;  %v2873_v5 = vmul.f32 %v5979_v52, %v5660_v10  ;;  %v2874_v23 = vmul.f32 %v5979_v52, %v5666_v1 }
 0x517   : > { %4398 = vst [vmem:[%s6293_s4 + $0x18] sm:$0xff] %v4254_v20   ;;  %vm3002_vm12 = vcmp.gt.f32.partialorder %v2938_v18, 0.0  ;;  %v3066_v33 = vmul.f32 0.2, %v2938_v18  ;;  %vm3003_vm13 = vcmp.gt.f32.partialorder %v2939_v2, 0.0  ;;  %vm3004_vm14 = vcmp.gt.f32.partialorder %v2940_v30, 0.0 }
 0x518   : > { %v3129_v36 = vsel %vm3001_vm11, %v2937_v29, %v3065_v56  ;;  %v3067_v51 = vmul.f32 0.2, %v2939_v2  ;;  %v3068_v57 = vmul.f32 0.2, %v2940_v30  ;;  %v2941_v15 = vadd.f32 %v5984_v48, %v2873_v5 }
 0x519   : > { %v3130_v54 = vsel %vm3002_vm12, %v2938_v18, %v3066_v33  ;;  %v2942_v44 = vadd.f32 %v5984_v48, %v2874_v23  ;;  %v2875_v10 = vmul.f32 %v5979_v52, %v5672_v28  ;;  %v2876_v1 = vmul.f32 %v5979_v52, %v5678_v58 }
 0x51a   : > { %v4259_v27 = vpack.c.bf16 %v3130_v54, %v3129_v36  ;;  %v3131_v47 = vsel %vm3003_vm13, %v2939_v2, %v3067_v51  ;;  %v3132_v35 = vsel %vm3004_vm14, %v2940_v30, %v3068_v57  ;;  %vm3005_vm15 = vcmp.gt.f32.partialorder %v2941_v15, 0.0 }
 0x51b   : > { %v4264_v25 = vpack.c.bf16 %v3132_v35, %v3131_v47  ;;  %vm3006_vm0 = vcmp.gt.f32.partialorder %v2942_v44, 0.0  ;;  %v3069_v61 = vmul.f32 0.2, %v2941_v15  ;;  %v3070_v32 = vmul.f32 0.2, %v2942_v44 }
 0x51c   : > { %4399 = vst [vmem:[%s6293_s4 + $0x20] sm:$0xff] %v4259_v27   ;;  %v2943_v4 = vadd.f32 %v5984_v48, %v2875_v10  ;;  %v2944_v42 = vadd.f32 %v5984_v48, %v2876_v1  ;;  %v2877_v28 = vmul.f32 %v5979_v52, %v5684_v31  ;;  %v2878_v58 = vmul.f32 %v5979_v52, %v5690_v46 }
 0x51d   : > { %4400 = vst [vmem:[%s6293_s4 + $0x28] sm:$0xff] %v4264_v25   ;;  %v3133_v26 = vsel %vm3005_vm15, %v2941_v15, %v3069_v61  ;;  %v3134_v6 = vsel %vm3006_vm0, %v2942_v44, %v3070_v32  ;;  %v2879_v9 = vmul.f32 %v5979_v52, %v5696_v60  ;;  %v2880_v45 = vmul.f32 %v5979_v52, %v5702_v38 }
 0x51e   : > { %v4269_v19 = vpack.c.bf16 %v3134_v6, %v3133_v26  ;;  %vm3007_vm1 = vcmp.gt.f32.partialorder %v2943_v4, 0.0  ;;  %vm3008_vm2 = vcmp.gt.f32.partialorder %v2944_v42, 0.0  ;;  %v3071_v34 = vmul.f32 0.2, %v2943_v4 }
 0x51f   : > { %v3072_v31 = vmul.f32 0.2, %v2944_v42  ;;  %v2945_v22 = vadd.f32 %v5984_v48, %v2877_v28  ;;  %v2946_v46 = vadd.f32 %v5984_v48, %v2878_v58  ;;  %v2947_v50 = vadd.f32 %v5984_v48, %v2879_v9 }
 0x520   : > { %4401 = vst [vmem:[%s6293_s4 + $0x30] sm:$0xff] %v4269_v19   ;;  %v3135_v29 = vsel %vm3007_vm1, %v2943_v4, %v3071_v34  ;;  %v2948_v60 = vadd.f32 %v5984_v48, %v2880_v45  ;;  %v2881_v38 = vmul.f32 %v5979_v52, %v5708_v59  ;;  %v2882_v20 = vmul.f32 %v5979_v52, %v5714_v62 }
 0x521   : > { %v3136_v18 = vsel %vm3008_vm2, %v2944_v42, %v3072_v31  ;;  %vm3009_vm3 = vcmp.gt.f32.partialorder %v2945_v22, 0.0  ;;  %vm3010_vm4 = vcmp.gt.f32.partialorder %v2946_v46, 0.0  ;;  %v3073_v2 = vmul.f32 0.2, %v2945_v22 }
 0x522   : > { %v4274_v30 = vpack.c.bf16 %v3136_v18, %v3135_v29  ;;  %v3074_v56 = vmul.f32 0.2, %v2946_v46  ;;  %vm3011_vm5 = vcmp.gt.f32.partialorder %v2947_v50, 0.0  ;;  %vm3012_vm6 = vcmp.gt.f32.partialorder %v2948_v60, 0.0 }
 0x523   : > { %v3137_v5 = vsel %vm3009_vm3, %v2945_v22, %v3073_v2  ;;  %v3075_v23 = vmul.f32 0.2, %v2947_v50  ;;  %v3076_v33 = vmul.f32 0.2, %v2948_v60  ;;  %v2949_v36 = vadd.f32 %v5984_v48, %v2881_v38 }
 0x524   : > { %4402 = vst [vmem:[%s6293_s4 + $0x38] sm:$0xff] %v4274_v30   ;;  %v3138_v59 = vsel %vm3010_vm4, %v2946_v46, %v3074_v56  ;;  %v2950_v62 = vadd.f32 %v5984_v48, %v2882_v20  ;;  %v2883_v51 = vmul.f32 %v5979_v52, %v5720_v63  ;;  %v2884_v57 = vmul.f32 %v5979_v52, %v5726_v8 }
 0x525   : > { %v4279_v15 = vpack.c.bf16 %v3138_v59, %v3137_v5  ;;  %v3139_v54 = vsel %vm3011_vm5, %v2947_v50, %v3075_v23  ;;  %v3140_v44 = vsel %vm3012_vm6, %v2948_v60, %v3076_v33  ;;  %vm3013_vm7 = vcmp.gt.f32.partialorder %v2949_v36, 0.0 }
 0x526   : > { %v4284_v10 = vpack.c.bf16 %v3140_v44, %v3139_v54  ;;  %vm3014_vm8 = vcmp.gt.f32.partialorder %v2950_v62, 0.0  ;;  %v3077_v1 = vmul.f32 0.2, %v2949_v36  ;;  %v3078_v27 = vmul.f32 0.2, %v2950_v62 }
 0x527   : > { %4403 = vst [vmem:[%s6293_s4 + $0x40] sm:$0xff] %v4279_v15   ;;  %v2951_v47 = vadd.f32 %v5984_v48, %v2883_v51  ;;  %v2952_v35 = vadd.f32 %v5984_v48, %v2884_v57  ;;  %v2885_v63 = vmul.f32 %v5979_v52, %v5732_v11  ;;  %v2886_v8 = vmul.f32 %v5979_v52, %v5738_v12 }
 0x528   : > { %4404 = vst [vmem:[%s6293_s4 + $0x48] sm:$0xff] %v4284_v10   ;;  %v3141_v25 = vsel %vm3013_vm7, %v2949_v36, %v3077_v1  ;;  %v3142_v61 = vsel %vm3014_vm8, %v2950_v62, %v3078_v27  ;;  %v2887_v32 = vmul.f32 %v5979_v52, %v5744_v21  ;;  %v2888_v4 = vmul.f32 %v5979_v52, %v5750_v40 }
 0x529   : > { %v4289_v42 = vpack.c.bf16 %v3142_v61, %v3141_v25  ;;  %vm3015_vm9 = vcmp.gt.f32.partialorder %v2951_v47, 0.0  ;;  %vm3016_vm10 = vcmp.gt.f32.partialorder %v2952_v35, 0.0  ;;  %v3079_v28 = vmul.f32 0.2, %v2951_v47 }
 0x52a   : > { %v3080_v11 = vmul.f32 0.2, %v2952_v35  ;;  %v2953_v58 = vadd.f32 %v5984_v48, %v2885_v63  ;;  %v2954_v12 = vadd.f32 %v5984_v48, %v2886_v8  ;;  %v2955_v26 = vadd.f32 %v5984_v48, %v2887_v32 }
 0x52b   : > { %4405 = vst [vmem:[%s6293_s4 + $0x50] sm:$0xff] %v4289_v42   ;;  %v3143_v6 = vsel %vm3015_vm9, %v2951_v47, %v3079_v28  ;;  %v2956_v21 = vadd.f32 %v5984_v48, %v2888_v4  ;;  %v2889_v40 = vmul.f32 %v5979_v52, %v5756_v49  ;;  %v2890_v9 = vmul.f32 %v5979_v52, %v5762_v41 }
 0x52c   : > { %v3144_v45 = vsel %vm3016_vm10, %v2952_v35, %v3080_v11  ;;  %vm3017_vm11 = vcmp.gt.f32.partialorder %v2953_v58, 0.0  ;;  %vm3018_vm12 = vcmp.gt.f32.partialorder %v2954_v12, 0.0  ;;  %v3081_v19 = vmul.f32 0.2, %v2953_v58 }
 0x52d   : > { %v4294_v34 = vpack.c.bf16 %v3144_v45, %v3143_v6  ;;  %v3082_v31 = vmul.f32 0.2, %v2954_v12  ;;  %vm3019_vm13 = vcmp.gt.f32.partialorder %v2955_v26, 0.0  ;;  %vm3020_vm14 = vcmp.gt.f32.partialorder %v2956_v21, 0.0 }
 0x52e   : > { %v3145_v22 = vsel %vm3017_vm11, %v2953_v58, %v3081_v19  ;;  %v3083_v46 = vmul.f32 0.2, %v2955_v26  ;;  %v3084_v50 = vmul.f32 0.2, %v2956_v21  ;;  %v2957_v29 = vadd.f32 %v5984_v48, %v2889_v40 }
 0x52f   : > { %4406 = vst [vmem:[%s6293_s4 + $0x58] sm:$0xff] %v4294_v34   ;;  %v3146_v49 = vsel %vm3018_vm12, %v2954_v12, %v3082_v31  ;;  %v2958_v41 = vadd.f32 %v5984_v48, %v2890_v9  ;;  %v2891_v60 = vmul.f32 %v5979_v52, %v5768_v13  ;;  %v2892_v38 = vmul.f32 %v5979_v52, %v5774_v39  ;;  %v6426_v34 = vld [vmem:[#allocation34_spill] sm:$0xff] }
 0x530   : > { %v4299_v20 = vpack.c.bf16 %v3146_v49, %v3145_v22  ;;  %v3147_v18 = vsel %vm3019_vm13, %v2955_v26, %v3083_v46  ;;  %v3148_v2 = vsel %vm3020_vm14, %v2956_v21, %v3084_v50  ;;  %vm3021_vm15 = vcmp.gt.f32.partialorder %v2957_v29, 0.0 }
 0x531   : > { %v4304_v30 = vpack.c.bf16 %v3148_v2, %v3147_v18  ;;  %vm3022_vm0 = vcmp.gt.f32.partialorder %v2958_v41, 0.0  ;;  %v3085_v56 = vmul.f32 0.2, %v2957_v29  ;;  %v3086_v5 = vmul.f32 0.2, %v2958_v41 }
 0x532   : > { %4407 = vst [vmem:[%s6293_s4 + $0x60] sm:$0xff] %v4299_v20   ;;  %v2959_v23 = vadd.f32 %v5984_v48, %v2891_v60  ;;  %v2960_v33 = vadd.f32 %v5984_v48, %v2892_v38  ;;  %v2893_v13 = vmul.f32 %v5979_v52, %v5780_v14  ;;  %v2894_v39 = vmul.f32 %v5979_v52, %v5786_v17  ;;  %v6428_v38 = vld [vmem:[#allocation36_spill] sm:$0xff] }
 0x533   : > { %4408 = vst [vmem:[%s6293_s4 + $0x68] sm:$0xff] %v4304_v30   ;;  %v3149_v36 = vsel %vm3021_vm15, %v2957_v29, %v3085_v56  ;;  %v3150_v59 = vsel %vm3022_vm0, %v2958_v41, %v3086_v5  ;;  %v2895_v62 = vmul.f32 %v5979_v52, %v5792_v43  ;;  %v2896_v51 = vmul.f32 %v5979_v52, %v5798_v55  ;;  %v6427_v41 = vld [vmem:[#allocation35_spill] sm:$0xff] }
 0x534   : > { %v4309_v57 = vpack.c.bf16 %v3150_v59, %v3149_v36  ;;  %vm3023_vm1 = vcmp.gt.f32.partialorder %v2959_v23, 0.0  ;;  %vm3024_vm2 = vcmp.gt.f32.partialorder %v2960_v33, 0.0  ;;  %v3087_v15 = vmul.f32 0.2, %v2959_v23  ;;  %v6429_v59 = vld [vmem:[#allocation37_spill] sm:$0xff] }
 0x535   : > { %v3088_v14 = vmul.f32 0.2, %v2960_v33  ;;  %v2961_v54 = vadd.f32 %v5984_v48, %v2893_v13  ;;  %v2962_v17 = vadd.f32 %v5984_v48, %v2894_v39  ;;  %v2963_v44 = vadd.f32 %v5984_v48, %v2895_v62 }
 0x536   : > { %4409 = vst [vmem:[%s6293_s4 + $0x70] sm:$0xff] %v4309_v57   ;;  %v3151_v10 = vsel %vm3023_vm1, %v2959_v23, %v3087_v15  ;;  %v2964_v43 = vadd.f32 %v5984_v48, %v2896_v51  ;;  %v2897_v55 = vmul.f32 %v5979_v52, %v5804_v24  ;;  %v2898_v1 = vmul.f32 %v5979_v52, %v5810_v37  ;;  %v6430_v51 = vld [vmem:[#allocation38_spill] sm:$0xff] }
 0x537   : > { %v3152_v27 = vsel %vm3024_vm2, %v2960_v33, %v3088_v14  ;;  %vm3025_vm3 = vcmp.gt.f32.partialorder %v2961_v54, 0.0  ;;  %vm3026_vm4 = vcmp.gt.f32.partialorder %v2962_v17, 0.0  ;;  %v3089_v47 = vmul.f32 0.2, %v2961_v54 }
 0x538   : > { %v4314_v35 = vpack.c.bf16 %v3152_v27, %v3151_v10  ;;  %v3090_v63 = vmul.f32 0.2, %v2962_v17  ;;  %vm3027_vm5 = vcmp.gt.f32.partialorder %v2963_v44, 0.0  ;;  %vm3028_vm6 = vcmp.gt.f32.partialorder %v2964_v43, 0.0 }
 0x539   : > { %v3153_v8 = vsel %vm3025_vm3, %v2961_v54, %v3089_v47  ;;  %v3091_v25 = vmul.f32 0.2, %v2963_v44  ;;  %v3092_v61 = vmul.f32 0.2, %v2964_v43  ;;  %v2965_v32 = vadd.f32 %v5984_v48, %v2897_v55  ;;  %v6432_v47 = vld [vmem:[#allocation22_spill] sm:$0xff] }
 0x53a   : > { %4410 = vst [vmem:[%s6293_s4 + $0x78] sm:$0xff] %v4314_v35   ;;  %v3154_v24 = vsel %vm3026_vm4, %v2962_v17, %v3090_v63  ;;  %v2966_v37 = vadd.f32 %v5984_v48, %v2898_v1  ;;  %v2899_v4 = vmul.f32 %v5979_v52, %v5816_v7  ;;  %v2900_v42 = vmul.f32 %v5979_v52, %v5822_v16  ;;  %v6431_v1 = vld [vmem:[#allocation21_spill] sm:$0xff] }
 0x53b   : > { %v4319_v28 = vpack.c.bf16 %v3154_v24, %v3153_v8  ;;  %v3155_v11 = vsel %vm3027_vm5, %v2963_v44, %v3091_v25  ;;  %v3156_v58 = vsel %vm3028_vm6, %v2964_v43, %v3092_v61  ;;  %vm3029_vm7 = vcmp.gt.f32.partialorder %v2965_v32, 0.0  ;;  %v6433_v25 = vld [vmem:[#allocation23_spill] sm:$0xff] }
 0x53c   : > { %v4324_v12 = vpack.c.bf16 %v3156_v58, %v3155_v11  ;;  %vm3030_vm8 = vcmp.gt.f32.partialorder %v2966_v37, 0.0  ;;  %v3093_v26 = vmul.f32 0.2, %v2965_v32  ;;  %v3094_v6 = vmul.f32 0.2, %v2966_v37 }
 0x53d   : > { %4411 = vst [vmem:[%s6293_s4 + $0x80] sm:$0xff] %v4319_v28   ;;  %v2967_v21 = vadd.f32 %v5984_v48, %v2899_v4  ;;  %v2968_v40 = vadd.f32 %v5984_v48, %v2900_v42  ;;  %v2901_v7 = vmul.f32 %v5979_v52, %v5828_v53  ;;  %v2902_v16 = vmul.f32 %v5979_v52, %v5834_v3 }
 0x53e   : > { %4412 = vst [vmem:[%s6293_s4 + $0x88] sm:$0xff] %v4324_v12   ;;  %v3157_v9 = vsel %vm3029_vm7, %v2965_v32, %v3093_v26  ;;  %v3158_v45 = vsel %vm3030_vm8, %v2966_v37, %v3094_v6  ;;  %v2903_v19 = vmul.f32 %v5979_v52, %v5840_v0  ;;  %v2904_v31 = vmul.f32 %v5979_v52, %v6426_v34  ;;  %v6434_v32 = vld [vmem:[#allocation24_spill] sm:$0xff]  ;;  %v6435_v6 = vld [vmem:[#allocation25_spill] sm:$0xff] }
 0x53f   : > { %v4329_v22 = vpack.c.bf16 %v3158_v45, %v3157_v9  ;;  %vm3031_vm9 = vcmp.gt.f32.partialorder %v2967_v21, 0.0  ;;  %vm3032_vm10 = vcmp.gt.f32.partialorder %v2968_v40, 0.0  ;;  %v3095_v46 = vmul.f32 0.2, %v2967_v21 }
 0x540   : > { %v3096_v53 = vmul.f32 0.2, %v2968_v40  ;;  %v2969_v50 = vadd.f32 %v5984_v48, %v2901_v7  ;;  %v2970_v3 = vadd.f32 %v5984_v48, %v2902_v16  ;;  %v2971_v29 = vadd.f32 %v5984_v48, %v2903_v19 }
 0x541   : > { %4413 = vst [vmem:[%s6293_s4 + $0x90] sm:$0xff] %v4329_v22   ;;  %v3159_v49 = vsel %vm3031_vm9, %v2967_v21, %v3095_v46  ;;  %v2972_v0 = vadd.f32 %v5984_v48, %v2904_v31  ;;  %v2905_v60 = vmul.f32 %v5979_v52, %v6427_v41  ;;  %v2906_v20 = vmul.f32 %v5979_v52, %v6428_v38 }
 0x542   : > { %v3160_v18 = vsel %vm3032_vm10, %v2968_v40, %v3096_v53  ;;  %vm3033_vm11 = vcmp.gt.f32.partialorder %v2969_v50, 0.0  ;;  %vm3034_vm12 = vcmp.gt.f32.partialorder %v2970_v3, 0.0  ;;  %v3097_v2 = vmul.f32 0.2, %v2969_v50  ;;  %v6436_v40 = vld [vmem:[#allocation26_spill] sm:$0xff] }
 0x543   : > { %v4334_v30 = vpack.c.bf16 %v3160_v18, %v3159_v49  ;;  %v3098_v56 = vmul.f32 0.2, %v2970_v3  ;;  %vm3035_vm13 = vcmp.gt.f32.partialorder %v2971_v29, 0.0  ;;  %vm3036_vm14 = vcmp.gt.f32.partialorder %v2972_v0, 0.0  ;;  %v6438_v49 = vld [vmem:[#allocation28_spill] sm:$0xff] }
 0x544   : > { %v3161_v5 = vsel %vm3033_vm11, %v2969_v50, %v3097_v2  ;;  %v3099_v23 = vmul.f32 0.2, %v2971_v29  ;;  %v3100_v33 = vmul.f32 0.2, %v2972_v0  ;;  %v2973_v13 = vadd.f32 %v5984_v48, %v2905_v60 }
 0x545   : > { %4414 = vst [vmem:[%s6293_s4 + $0x98] sm:$0xff] %v4334_v30   ;;  %v3162_v39 = vsel %vm3034_vm12, %v2970_v3, %v3098_v56  ;;  %v2974_v36 = vadd.f32 %v5984_v48, %v2906_v20  ;;  %v2907_v62 = vmul.f32 %v5979_v52, %v6429_v59  ;;  %v2908_v57 = vmul.f32 %v5979_v52, %v6430_v51  ;;  %v6437_v3 = vld [vmem:[#allocation27_spill] sm:$0xff]  ;;  %v6442_v51 = vld [vmem:[#allocation32_spill] sm:$0xff] }
 0x546   : > { %v4339_v15 = vpack.c.bf16 %v3162_v39, %v3161_v5  ;;  %v3163_v14 = vsel %vm3035_vm13, %v2971_v29, %v3099_v23  ;;  %v3164_v54 = vsel %vm3036_vm14, %v2972_v0, %v3100_v33  ;;  %vm3037_vm15 = vcmp.gt.f32.partialorder %v2973_v13, 0.0  ;;  %v6439_v5 = vld [vmem:[#allocation29_spill] sm:$0xff]  ;;  %v6440_v33 = vld [vmem:[#allocation30_spill] sm:$0xff]  ;;  %v6441_v59 = vld [vmem:[#allocation31_spill] sm:$0xff] }
 0x547   : > { %v4344_v17 = vpack.c.bf16 %v3164_v54, %v3163_v14  ;;  %vm3038_vm0 = vcmp.gt.f32.partialorder %v2974_v36, 0.0  ;;  %v3101_v44 = vmul.f32 0.2, %v2973_v13  ;;  %v3102_v10 = vmul.f32 0.2, %v2974_v36 }
 0x548   : > { %4415 = vst [vmem:[%s6293_s4 + $0xa0] sm:$0xff] %v4339_v15   ;;  %v2975_v43 = vadd.f32 %v5984_v48, %v2907_v62  ;;  %v2976_v55 = vadd.f32 %v5984_v48, %v2908_v57  ;;  %v2909_v27 = vmul.f32 %v5979_v52, %v6431_v1  ;;  %v2910_v35 = vmul.f32 %v5979_v52, %v6432_v47  ;;  %v6443_v1 = vld [vmem:[#allocation39_spill] sm:$0xff]  ;;  %v6444_v47 = vld [vmem:[#allocation40_spill] sm:$0xff] }
 0x549   : > { %4416 = vst [vmem:[%s6293_s4 + $0xa8] sm:$0xff] %v4344_v17   ;;  %v3165_v63 = vsel %vm3037_vm15, %v2973_v13, %v3101_v44  ;;  %v3166_v8 = vsel %vm3038_vm0, %v2974_v36, %v3102_v10  ;;  %v2911_v61 = vmul.f32 %v5979_v52, %v6433_v25  ;;  %v2912_v24 = vmul.f32 %v5979_v52, %v6434_v32 }
 0x54a   : > { %v4349_v37 = vpack.c.bf16 %v3166_v8, %v3165_v63  ;;  %vm3039_vm1 = vcmp.gt.f32.partialorder %v2975_v43, 0.0  ;;  %vm3040_vm2 = vcmp.gt.f32.partialorder %v2976_v55, 0.0  ;;  %v3103_v4 = vmul.f32 0.2, %v2975_v43 }
 0x54b   : > { %v3104_v42 = vmul.f32 0.2, %v2976_v55  ;;  %v2977_v28 = vadd.f32 %v5984_v48, %v2909_v27  ;;  %v2978_v11 = vadd.f32 %v5984_v48, %v2910_v35  ;;  %v2979_v58 = vadd.f32 %v5984_v48, %v2911_v61 }
 0x54c   : > { %4417 = vst [vmem:[%s6293_s4 + $0xb0] sm:$0xff] %v4349_v37   ;;  %v3167_v12 = vsel %vm3039_vm1, %v2975_v43, %v3103_v4  ;;  %v2980_v26 = vadd.f32 %v5984_v48, %v2912_v24  ;;  %v2913_v21 = vmul.f32 %v5979_v52, %v6435_v6  ;;  %v2914_v7 = vmul.f32 %v5979_v52, %v6436_v40 }
 0x54d   : > { %v3168_v16 = vsel %vm3040_vm2, %v2976_v55, %v3104_v42  ;;  %vm3041_vm3 = vcmp.gt.f32.partialorder %v2977_v28, 0.0  ;;  %vm3042_vm4 = vcmp.gt.f32.partialorder %v2978_v11, 0.0  ;;  %v3105_v9 = vmul.f32 0.2, %v2977_v28 }
 0x54e   : > { %v4354_v45 = vpack.c.bf16 %v3168_v16, %v3167_v12  ;;  %v3106_v19 = vmul.f32 0.2, %v2978_v11  ;;  %vm3043_vm5 = vcmp.gt.f32.partialorder %v2979_v58, 0.0  ;;  %vm3044_vm6 = vcmp.gt.f32.partialorder %v2980_v26, 0.0  ;;  %v6446_v12 = vld [vmem:[#allocation42_spill] sm:$0xff] }
 0x54f   : > { %v3169_v34 = vsel %vm3041_vm3, %v2977_v28, %v3105_v9  ;;  %v3107_v31 = vmul.f32 0.2, %v2979_v58  ;;  %v3108_v22 = vmul.f32 0.2, %v2980_v26  ;;  %v2981_v46 = vadd.f32 %v5984_v48, %v2913_v21 }
 0x550   : > { %4418 = vst [vmem:[%s6293_s4 + $0xb8] sm:$0xff] %v4354_v45   ;;  %v3170_v53 = vsel %vm3042_vm4, %v2978_v11, %v3106_v19  ;;  %v2982_v50 = vadd.f32 %v5984_v48, %v2914_v7  ;;  %v2915_v29 = vmul.f32 %v5979_v52, %v6437_v3  ;;  %v2916_v0 = vmul.f32 %v5979_v52, %v6438_v49  ;;  %v6445_v11 = vld [vmem:[#allocation41_spill] sm:$0xff] }
 0x551   : > { %v4359_v41 = vpack.c.bf16 %v3170_v53, %v3169_v34  ;;  %v3171_v60 = vsel %vm3043_vm5, %v2979_v58, %v3107_v31  ;;  %v3172_v38 = vsel %vm3044_vm6, %v2980_v26, %v3108_v22  ;;  %vm3045_vm7 = vcmp.gt.f32.partialorder %v2981_v46, 0.0 }
 0x552   : > { %v4364_v20 = vpack.c.bf16 %v3172_v38, %v3171_v60  ;;  %vm3046_vm8 = vcmp.gt.f32.partialorder %v2982_v50, 0.0  ;;  %v3109_v18 = vmul.f32 0.2, %v2981_v46  ;;  %v3110_v2 = vmul.f32 0.2, %v2982_v50 }
 0x553   : > { %4419 = vst [vmem:[%s6293_s4 + $0xc0] sm:$0xff] %v4359_v41   ;;  %v2983_v30 = vadd.f32 %v5984_v48, %v2915_v29  ;;  %v2984_v56 = vadd.f32 %v5984_v48, %v2916_v0  ;;  %v2917_v23 = vmul.f32 %v5979_v52, %v6439_v5  ;;  %v2918_v13 = vmul.f32 %v5979_v52, %v6440_v33 }
 0x554   : > { %4420 = vst [vmem:[%s6293_s4 + $0xc8] sm:$0xff] %v4364_v20   ;;  %v3173_v39 = vsel %vm3045_vm7, %v2981_v46, %v3109_v18  ;;  %v3174_v36 = vsel %vm3046_vm8, %v2982_v50, %v3110_v2  ;;  %v2919_v62 = vmul.f32 %v5979_v52, %v6441_v59  ;;  %v2920_v57 = vmul.f32 %v5979_v52, %v6442_v51 }
 0x555   : > { %v4369_v15 = vpack.c.bf16 %v3174_v36, %v3173_v39  ;;  %vm3047_vm9 = vcmp.gt.f32.partialorder %v2983_v30, 0.0  ;;  %vm3048_vm10 = vcmp.gt.f32.partialorder %v2984_v56, 0.0  ;;  %v3111_v14 = vmul.f32 0.2, %v2983_v30 }
 0x556   : > { %v3112_v54 = vmul.f32 0.2, %v2984_v56  ;;  %v2985_v17 = vadd.f32 %v5984_v48, %v2917_v23  ;;  %v2986_v44 = vadd.f32 %v5984_v48, %v2918_v13  ;;  %v2987_v10 = vadd.f32 %v5984_v48, %v2919_v62 }
 0x557   : > { %4421 = vst [vmem:[%s6293_s4 + $0xd0] sm:$0xff] %v4369_v15   ;;  %v3175_v43 = vsel %vm3047_vm9, %v2983_v30, %v3111_v14  ;;  %v2988_v55 = vadd.f32 %v5984_v48, %v2920_v57  ;;  %v2921_v27 = vmul.f32 %v5979_v52, %v6443_v1  ;;  %v2922_v35 = vmul.f32 %v5979_v52, %v6444_v47 }
 0x558   : > { %v3176_v63 = vsel %vm3048_vm10, %v2984_v56, %v3112_v54  ;;  %vm3049_vm11 = vcmp.gt.f32.partialorder %v2985_v17, 0.0  ;;  %vm3050_vm12 = vcmp.gt.f32.partialorder %v2986_v44, 0.0  ;;  %v3113_v8 = vmul.f32 0.2, %v2985_v17 }
 0x559   : > { %v4374_v25 = vpack.c.bf16 %v3176_v63, %v3175_v43  ;;  %v3114_v61 = vmul.f32 0.2, %v2986_v44  ;;  %vm3051_vm13 = vcmp.gt.f32.partialorder %v2987_v10, 0.0  ;;  %vm3052_vm14 = vcmp.gt.f32.partialorder %v2988_v55, 0.0 }
 0x55a   : > { %v3177_v32 = vsel %vm3049_vm11, %v2985_v17, %v3113_v8  ;;  %v3115_v24 = vmul.f32 0.2, %v2987_v10  ;;  %v3116_v37 = vmul.f32 0.2, %v2988_v55  ;;  %v2989_v4 = vadd.f32 %v5984_v48, %v2921_v27 }
 0x55b   : > { %4422 = vst [vmem:[%s6293_s4 + $0xd8] sm:$0xff] %v4374_v25   ;;  %v3178_v42 = vsel %vm3050_vm12, %v2986_v44, %v3114_v61  ;;  %v2990_v28 = vadd.f32 %v5984_v48, %v2922_v35  ;;  %v2923_v58 = vmul.f32 %v5979_v52, %v6445_v11  ;;  %v2924_v26 = vmul.f32 %v5979_v52, %v6446_v12 }
 0x55c   : > { %v4379_v6 = vpack.c.bf16 %v3178_v42, %v3177_v32  ;;  %v3179_v21 = vsel %vm3051_vm13, %v2987_v10, %v3115_v24  ;;  %v3180_v40 = vsel %vm3052_vm14, %v2988_v55, %v3116_v37  ;;  %vm3053_vm15 = vcmp.gt.f32.partialorder %v2989_v4, 0.0 }
 0x55d   : > { %v4384_v7 = vpack.c.bf16 %v3180_v40, %v3179_v21  ;;  %vm3054_vm0 = vcmp.gt.f32.partialorder %v2990_v28, 0.0  ;;  %v3117_v16 = vmul.f32 0.2, %v2989_v4  ;;  %v3118_v9 = vmul.f32 0.2, %v2990_v28 }
 0x55e   : > { %4423 = vst [vmem:[%s6293_s4 + $0xe0] sm:$0xff] %v4379_v6   ;;  %v2991_v45 = vadd.f32 %v5984_v48, %v2923_v58  ;;  %v2992_v19 = vadd.f32 %v5984_v48, %v2924_v26 }
 0x55f   : > { %4424 = vst [vmem:[%s6293_s4 + $0xe8] sm:$0xff] %v4384_v7   ;;  %v3181_v52 = vsel %vm3053_vm15, %v2989_v4, %v3117_v16  ;;  %v3182_v34 = vsel %vm3054_vm0, %v2990_v28, %v3118_v9 }
 0x560   : > { %v4389_v31 = vpack.c.bf16 %v3182_v34, %v3181_v52  ;;  %vm3055_vm1 = vcmp.gt.f32.partialorder %v2991_v45, 0.0  ;;  %vm3056_vm2 = vcmp.gt.f32.partialorder %v2992_v19, 0.0  ;;  %v3119_v22 = vmul.f32 0.2, %v2991_v45 }
 0x561   : > { %v3120_v46 = vmul.f32 0.2, %v2992_v19 }
 0x562   : > { %4425 = vst [vmem:[%s6293_s4 + $0xf0] sm:$0xff] %v4389_v31   ;;  %v3183_v53 = vsel %vm3055_vm1, %v2991_v45, %v3119_v22 }
 0x563   : > { %v3184_v50 = vsel %vm3056_vm2, %v2992_v19, %v3120_v46 }
 0x564   : > { %v4394_v3 = vpack.c.bf16 %v3184_v50, %v3183_v53 }
 0x566   : > { %4426 = vst [vmem:[%s6293_s4 + $0xf8] sm:$0xff] %v4394_v3  }
 0x567 PF: > { %s14_s19 = sadd.s32 1, %s4508_s19   ;;  %s6447_s15 = smov %s4496_s16 }
 0x568   : > { %p11_p13 = scmp.ge.s32.totalorder %s14_s19, 4   ;;  %s6448_s16 = smov %s4570_s23 }
 0x569   : > { %s6449_s17 = smov %s4504_s18  ;;  %s6450_s18 = smov %s6452_s20 }
 0x56a   :  { %13 = sbr.rel (!%p11_p13) target bundleno = 3 (0x3), region = 115 }

// kernel: color_discriminator.7
= control target key start
LH: loop header
LB: loop body
LE: loop exit
PB: predicated region body
PF: predicated region fallthrough
CT: control target
= control target key end

     0   :  { %s3084_s0 = inlined_call_operand.vmem [shape: bf16[128,2048], index: 0, kind: input, shape index: {}]   ;;  %s3085_s1 = inlined_call_operand.vmem [shape: bf16[2048,256], index: 1, kind: input, shape index: {}]   ;;  %s3086_s2 = inlined_call_operand.vmem [shape: f32[1,256], index: 2, kind: input, shape index: {}]   ;;  %s3087_s3 = inlined_call_operand.vmem [shape: f32[1,256], index: 3, kind: input, shape index: {}]   ;;  %s3088_s4 = inlined_call_operand.vmem [shape: bf16[128,256], index: 4, kind: output, shape index: {}]  }
   0x1   :  { %3090 = sst [smem:[#allocation7_spill]] %s3084_s0 }
   0x2   :  { %s2392_s15 = smov 0   ;;  %s2394_s16 = smov 0  }
   0x3   :  { %s2396_s17 = smov 0   ;;  %s2398_s18 = smov 0  }
   0x4   :  { %s2400_s19 = smov 0   ;;  %s2402_s20 = smov 0  }
   0x5   :  { %s2404_s21 = smov 0   ;;  %s2406_s22 = smov 0  }
   0x6   :  { %s2408_s23 = smov 0   ;;  %s2410_s24 = smov 0  }
   0x7   :  { %s2412_s25 = smov 0  }
   0x8 LB: > { %s1797_s26 = sadd.s32 4294967295, %s2365_s25   ;;  %s23_s27 = sadd.s32 1, %s2357_s23  ;;  %s2365_s25 = sphi %s2412_s25, %s14_s25   ;;  %s2361_s24 = sphi %s2410_s24, %s3106_s24   ;;  %s2357_s23 = sphi %s2408_s23, %s3105_s23   ;;  %s2353_s22 = sphi %s2406_s22, %s3104_s22   ;;  %s2349_s21 = sphi %s2404_s21, %s3103_s21   ;;  %s2345_s20 = sphi %s2402_s20, %s3102_s20   ;;  %s2341_s19 = sphi %s2400_s19, %s3101_s19   ;;  %s2337_s18 = sphi %s2398_s18, %s3100_s18   ;;  %s2333_s17 = sphi %s2396_s17, %s3099_s17   ;;  %s2329_s16 = sphi %s2394_s16, %s3098_s16   ;;  %s2325_s15 = sphi %s2392_s15, %s3097_s15  }
   0x9   : > { %p24_p0 = scmp.ge.s32.totalorder %s23_s27, 4  ;;  %s26_s28 = sadd.s32 1, %s2361_s24 }
   0xa   : > { %s33_s29 = sadd.s32 1, %s2345_s20  ;;  %p40_p1 = scmp.ne.s32.totalorder %s2345_s20, %s2341_s19 }
   0xb   : > { %s3108_s27 = smov (%p24_p0, %s23_s27), 0  ;;  %s3110_s28 = smov (!%p24_p0, %s26_s28), %s2361_s24 }
   0xc   : > { %s30_s30 = ssub.s32 %s2357_s23, %s3108_s27  ;;  %p41_p2 = scmp.eq.s32.totalorder %s2365_s25, 0 }
   0xd   : > { %p28_p3 = scmp.ge.s32.totalorder %s3110_s28, 2  ;;  %p31_p4 = scmp.eq.s32.totalorder %s30_s30, 0 }
   0xe   : > { %p2459_p5 = por %p41_p2, %p40_p1  ;;  %s61_s6 = sadd.s32 1, %s2337_s18 }
   0xf   : > { %s3112_s28 = smov (%p28_p3, %s3110_s28), 0  ;;  %p68_p6 = scmp.ne.s32.totalorder %s2337_s18, %s2333_s17 }
  0x10   : > { %3092 = sst [smem:[#allocation6_spill]] %s3112_s28  ;;  %s57_s8 = ssub.s32 %s2361_s24, %s3112_s28 }
  0x11   : > { %s2467_s7 = scalar_select %p31_p4, %s2345_s20, %s33_s29  }
  0x12   : > { %s58_s9 = sor.u32 %s57_s8, %s30_s30  ;;  %p137_p7 = scmp.eq.s32.totalorder %s57_s8, 0 }
  0x13   : > { %p59_p8 = scmp.eq.s32.totalorder %s58_s9, 0  ;;  %p2473_p9 = por %p68_p6, %p41_p2 }
  0x14   : > { %s139_s11 = sadd.s32 1, %s2329_s16  ;;  %p149_p10 = scmp.ne.s32.totalorder %s2329_s16, %s2325_s15 }
  0x15   : > { %s2481_s12 = scalar_select %p59_p8, %s2337_s18, %s61_s6  }
  0x16   : > { %s2484_s13 = scalar_select %p137_p7, %s2329_s16, %s139_s11  }
  0x17   : > { %p150_p11 = scmp.eq.s32.totalorder %s1797_s26, 7  ;;  %p1800_p13 = scmp.ge.s32.totalorder %s2365_s25, 8 }
  0x19   : > { %p2486_p12 = por %p150_p11, %p149_p10  ;;  %172 = sbr.rel (%p1800_p13) target bundleno = 142 (0x8e), region = 16 }
  0x1e   : > { %175 = sbr.rel (!%p2459_p5) target bundleno = 72 (0x48), region = 20  ;;  %s177_s29 = sand.u32 (%p2459_p5), 1, %s2345_s20  }
  0x1f   : > { %s2075_s30 = sshll.u32 (%p2459_p5), %s2357_s23, 4  ;;  %s1801_s8 = sshll.u32 (%p2459_p5), %s177_s29, 8 }
  0x20   : > { %s3095_s0 = sld [smem:[#allocation7_spill]] (%p2459_p5)  ;;  %s2503_s26 = scalar_lea.vmem (%p2459_p5), [#allocation3], %s1801_s8 }
  0x26   : > { %s2498_s11 = scalar_lea.vmem %s3095_s0, %s2075_s30 }
  0x27   : > { %v195_v0 = vld [vmem:[%s2498_s11] sm:$0xff]  ;;  %v197_v1 = vld [vmem:[%s2498_s11 + $0x8] sm:$0xff] }
  0x28   : > { %v199_v2 = vld [vmem:[%s2498_s11 + $0x40] sm:$0xff]  ;;  %196 = vst [vmem:[%s2503_s26] sm:$0xff] %v195_v0  ;;  %v201_v3 = vld [vmem:[%s2498_s11 + $0x48] sm:$0xff] }
  0x29   : > { %198 = vst [vmem:[%s2503_s26 + $0x8] sm:$0xff] %v197_v1  ;;  %v203_v4 = vld [vmem:[%s2498_s11 + $0x80] sm:$0xff]  ;;  %v205_v5 = vld [vmem:[%s2498_s11 + $0x88] sm:$0xff] }
  0x2a   : > { %200 = vst [vmem:[%s2503_s26 + $0x10] sm:$0xff] %v199_v2  ;;  %v207_v6 = vld [vmem:[%s2498_s11 + $0xc0] sm:$0xff]  ;;  %v209_v7 = vld [vmem:[%s2498_s11 + $0xc8] sm:$0xff] }
  0x2b   : > { %202 = vst [vmem:[%s2503_s26 + $0x18] sm:$0xff] %v201_v3  ;;  %v211_v8 = vld [vmem:[%s2498_s11 + $0x100] sm:$0xff]  ;;  %v213_v9 = vld [vmem:[%s2498_s11 + $0x108] sm:$0xff] }
  0x2c   : > { %204 = vst [vmem:[%s2503_s26 + $0x20] sm:$0xff] %v203_v4  ;;  %v215_v10 = vld [vmem:[%s2498_s11 + $0x140] sm:$0xff]  ;;  %v217_v11 = vld [vmem:[%s2498_s11 + $0x148] sm:$0xff] }
  0x2d   : > { %206 = vst [vmem:[%s2503_s26 + $0x28] sm:$0xff] %v205_v5  ;;  %v219_v12 = vld [vmem:[%s2498_s11 + $0x180] sm:$0xff]  ;;  %v221_v13 = vld [vmem:[%s2498_s11 + $0x188] sm:$0xff] }
  0x2e   : > { %208 = vst [vmem:[%s2503_s26 + $0x30] sm:$0xff] %v207_v6  ;;  %v223_v14 = vld [vmem:[%s2498_s11 + $0x1c0] sm:$0xff]  ;;  %v225_v15 = vld [vmem:[%s2498_s11 + $0x1c8] sm:$0xff] }
  0x2f   : > { %210 = vst [vmem:[%s2503_s26 + $0x38] sm:$0xff] %v209_v7  ;;  %v227_v16 = vld [vmem:[%s2498_s11 + $0x200] sm:$0xff]  ;;  %v229_v17 = vld [vmem:[%s2498_s11 + $0x208] sm:$0xff] }
  0x30   : > { %212 = vst [vmem:[%s2503_s26 + $0x40] sm:$0xff] %v211_v8  ;;  %v231_v18 = vld [vmem:[%s2498_s11 + $0x240] sm:$0xff]  ;;  %v233_v19 = vld [vmem:[%s2498_s11 + $0x248] sm:$0xff] }
  0x31   : > { %214 = vst [vmem:[%s2503_s26 + $0x48] sm:$0xff] %v213_v9  ;;  %v235_v20 = vld [vmem:[%s2498_s11 + $0x280] sm:$0xff]  ;;  %v237_v21 = vld [vmem:[%s2498_s11 + $0x288] sm:$0xff] }
  0x32   : > { %216 = vst [vmem:[%s2503_s26 + $0x50] sm:$0xff] %v215_v10  ;;  %v239_v22 = vld [vmem:[%s2498_s11 + $0x2c0] sm:$0xff]  ;;  %v241_v23 = vld [vmem:[%s2498_s11 + $0x2c8] sm:$0xff] }
  0x33   : > { %218 = vst [vmem:[%s2503_s26 + $0x58] sm:$0xff] %v217_v11  ;;  %v243_v24 = vld [vmem:[%s2498_s11 + $0x300] sm:$0xff]  ;;  %v245_v25 = vld [vmem:[%s2498_s11 + $0x308] sm:$0xff] }
  0x34   : > { %220 = vst [vmem:[%s2503_s26 + $0x60] sm:$0xff] %v219_v12  ;;  %v247_v26 = vld [vmem:[%s2498_s11 + $0x340] sm:$0xff]  ;;  %v249_v27 = vld [vmem:[%s2498_s11 + $0x348] sm:$0xff] }
  0x35   : > { %222 = vst [vmem:[%s2503_s26 + $0x68] sm:$0xff] %v221_v13  ;;  %v251_v28 = vld [vmem:[%s2498_s11 + $0x380] sm:$0xff]  ;;  %v253_v29 = vld [vmem:[%s2498_s11 + $0x388] sm:$0xff] }
  0x36   : > { %224 = vst [vmem:[%s2503_s26 + $0x70] sm:$0xff] %v223_v14  ;;  %v255_v30 = vld [vmem:[%s2498_s11 + $0x3c0] sm:$0xff]  ;;  %v257_v31 = vld [vmem:[%s2498_s11 + $0x3c8] sm:$0xff] }
  0x37   : > { %226 = vst [vmem:[%s2503_s26 + $0x78] sm:$0xff] %v225_v15 }
  0x38   : > { %228 = vst [vmem:[%s2503_s26 + $0x80] sm:$0xff] %v227_v16 }
  0x39   : > { %230 = vst [vmem:[%s2503_s26 + $0x88] sm:$0xff] %v229_v17 }
  0x3a   : > { %232 = vst [vmem:[%s2503_s26 + $0x90] sm:$0xff] %v231_v18 }
  0x3b   : > { %234 = vst [vmem:[%s2503_s26 + $0x98] sm:$0xff] %v233_v19 }
  0x3c   : > { %236 = vst [vmem:[%s2503_s26 + $0xa0] sm:$0xff] %v235_v20 }
  0x3d   : > { %238 = vst [vmem:[%s2503_s26 + $0xa8] sm:$0xff] %v237_v21 }
  0x3e   : > { %240 = vst [vmem:[%s2503_s26 + $0xb0] sm:$0xff] %v239_v22 }
  0x3f   : > { %242 = vst [vmem:[%s2503_s26 + $0xb8] sm:$0xff] %v241_v23 }
  0x40   : > { %244 = vst [vmem:[%s2503_s26 + $0xc0] sm:$0xff] %v243_v24 }
  0x41   : > { %246 = vst [vmem:[%s2503_s26 + $0xc8] sm:$0xff] %v245_v25 }
  0x42   : > { %248 = vst [vmem:[%s2503_s26 + $0xd0] sm:$0xff] %v247_v26 }
  0x43   : > { %250 = vst [vmem:[%s2503_s26 + $0xd8] sm:$0xff] %v249_v27 }
  0x44   : > { %252 = vst [vmem:[%s2503_s26 + $0xe0] sm:$0xff] %v251_v28 }
  0x45   : > { %254 = vst [vmem:[%s2503_s26 + $0xe8] sm:$0xff] %v253_v29 }
  0x46   : > { %256 = vst [vmem:[%s2503_s26 + $0xf0] sm:$0xff] %v255_v30 }
  0x47   : > { %258 = vst [vmem:[%s2503_s26 + $0xf8] sm:$0xff] %v257_v31 }
  0x48 PF: > { %264 = sbr.rel (!%p2473_p9) target bundleno = 142 (0x8e), region = 43  ;;  %s266_s5 = sand.u32 (%p2473_p9), 1, %s2337_s18  }
  0x49   : > { %s2076_s29 = sshll.u32 (%p2473_p9), %s2357_s23, 7  ;;  %s1804_s30 = sshll.u32 (%p2473_p9), %s266_s5, 8 }
  0x4a   : > { %s271_s8 = sadd.s32 (%p2473_p9), %s2361_s24, %s2076_s29  ;;  %s2579_s10 = scalar_lea.vmem (%p2473_p9), [#allocation4], %s1804_s30 }
  0x4b   : > { %s1807_s6 = sshll.u32 (%p2473_p9), %s271_s8, 2 }
  0x4c   : > { %s2574_s28 = scalar_lea.vmem (%p2473_p9), %s3085_s1, %s1807_s6 }
  0x4d   : > { %v290_v32 = vld [vmem:[%s2574_s28] sm:$0xf]  ;;  %v292_v33 = vld [vmem:[%s2574_s28 + $0x8] sm:$0xf]  ;;  %v294_v34 = vld [vmem:[%s2574_s28 + $0x10] sm:$0xf] }
  0x4e   : > { %291 = vst [vmem:[%s2579_s10] sm:$0xf] %v290_v32  ;;  %v296_v35 = vld [vmem:[%s2574_s28 + $0x18] sm:$0xf]  ;;  %v298_v36 = vld [vmem:[%s2574_s28 + $0x20] sm:$0xf] }
  0x4f   : > { %293 = vst [vmem:[%s2579_s10 + $0x4] sm:$0xf] %v292_v33  ;;  %v300_v37 = vld [vmem:[%s2574_s28 + $0x28] sm:$0xf]  ;;  %v302_v38 = vld [vmem:[%s2574_s28 + $0x30] sm:$0xf] }
  0x50   : > { %295 = vst [vmem:[%s2579_s10 + $0x8] sm:$0xf] %v294_v34  ;;  %v304_v39 = vld [vmem:[%s2574_s28 + $0x38] sm:$0xf]  ;;  %v306_v40 = vld [vmem:[%s2574_s28 + $0x40] sm:$0xf] }
  0x51   : > { %297 = vst [vmem:[%s2579_s10 + $0xc] sm:$0xf] %v296_v35  ;;  %v308_v41 = vld [vmem:[%s2574_s28 + $0x48] sm:$0xf]  ;;  %v310_v42 = vld [vmem:[%s2574_s28 + $0x50] sm:$0xf] }
  0x52   : > { %299 = vst [vmem:[%s2579_s10 + $0x10] sm:$0xf] %v298_v36  ;;  %v312_v43 = vld [vmem:[%s2574_s28 + $0x58] sm:$0xf]  ;;  %v314_v44 = vld [vmem:[%s2574_s28 + $0x60] sm:$0xf] }
  0x53   : > { %301 = vst [vmem:[%s2579_s10 + $0x14] sm:$0xf] %v300_v37  ;;  %v316_v45 = vld [vmem:[%s2574_s28 + $0x68] sm:$0xf]  ;;  %v318_v46 = vld [vmem:[%s2574_s28 + $0x70] sm:$0xf] }
  0x54   : > { %303 = vst [vmem:[%s2579_s10 + $0x18] sm:$0xf] %v302_v38  ;;  %v320_v47 = vld [vmem:[%s2574_s28 + $0x78] sm:$0xf]  ;;  %v322_v48 = vld [vmem:[%s2574_s28 + $0x80] sm:$0xf] }
  0x55   : > { %305 = vst [vmem:[%s2579_s10 + $0x1c] sm:$0xf] %v304_v39  ;;  %v324_v49 = vld [vmem:[%s2574_s28 + $0x88] sm:$0xf]  ;;  %v326_v50 = vld [vmem:[%s2574_s28 + $0x90] sm:$0xf] }
  0x56   : > { %307 = vst [vmem:[%s2579_s10 + $0x20] sm:$0xf] %v306_v40  ;;  %v328_v51 = vld [vmem:[%s2574_s28 + $0x98] sm:$0xf]  ;;  %v330_v52 = vld [vmem:[%s2574_s28 + $0xa0] sm:$0xf] }
  0x57   : > { %309 = vst [vmem:[%s2579_s10 + $0x24] sm:$0xf] %v308_v41  ;;  %v332_v53 = vld [vmem:[%s2574_s28 + $0xa8] sm:$0xf]  ;;  %v334_v54 = vld [vmem:[%s2574_s28 + $0xb0] sm:$0xf] }
  0x58   : > { %311 = vst [vmem:[%s2579_s10 + $0x28] sm:$0xf] %v310_v42  ;;  %v336_v55 = vld [vmem:[%s2574_s28 + $0xb8] sm:$0xf]  ;;  %v338_v56 = vld [vmem:[%s2574_s28 + $0xc0] sm:$0xf] }
  0x59   : > { %313 = vst [vmem:[%s2579_s10 + $0x2c] sm:$0xf] %v312_v43  ;;  %v340_v57 = vld [vmem:[%s2574_s28 + $0xc8] sm:$0xf]  ;;  %v342_v58 = vld [vmem:[%s2574_s28 + $0xd0] sm:$0xf] }
  0x5a   : > { %315 = vst [vmem:[%s2579_s10 + $0x30] sm:$0xf] %v314_v44  ;;  %v344_v59 = vld [vmem:[%s2574_s28 + $0xd8] sm:$0xf]  ;;  %v346_v60 = vld [vmem:[%s2574_s28 + $0xe0] sm:$0xf] }
  0x5b   : > { %317 = vst [vmem:[%s2579_s10 + $0x34] sm:$0xf] %v316_v45  ;;  %v348_v61 = vld [vmem:[%s2574_s28 + $0xe8] sm:$0xf]  ;;  %v350_v62 = vld [vmem:[%s2574_s28 + $0xf0] sm:$0xf] }
  0x5c   : > { %319 = vst [vmem:[%s2579_s10 + $0x38] sm:$0xf] %v318_v46  ;;  %v352_v63 = vld [vmem:[%s2574_s28 + $0xf8] sm:$0xf]  ;;  %v354_v0 = vld [vmem:[%s2574_s28 + $0x100] sm:$0xf] }
  0x5d   : > { %321 = vst [vmem:[%s2579_s10 + $0x3c] sm:$0xf] %v320_v47  ;;  %v356_v1 = vld [vmem:[%s2574_s28 + $0x108] sm:$0xf]  ;;  %v358_v2 = vld [vmem:[%s2574_s28 + $0x110] sm:$0xf] }
  0x5e   : > { %323 = vst [vmem:[%s2579_s10 + $0x40] sm:$0xf] %v322_v48  ;;  %v360_v3 = vld [vmem:[%s2574_s28 + $0x118] sm:$0xf]  ;;  %v362_v4 = vld [vmem:[%s2574_s28 + $0x120] sm:$0xf] }
  0x5f   : > { %325 = vst [vmem:[%s2579_s10 + $0x44] sm:$0xf] %v324_v49  ;;  %v364_v5 = vld [vmem:[%s2574_s28 + $0x128] sm:$0xf]  ;;  %v366_v6 = vld [vmem:[%s2574_s28 + $0x130] sm:$0xf] }
  0x60   : > { %327 = vst [vmem:[%s2579_s10 + $0x48] sm:$0xf] %v326_v50  ;;  %v368_v7 = vld [vmem:[%s2574_s28 + $0x138] sm:$0xf]  ;;  %v370_v8 = vld [vmem:[%s2574_s28 + $0x140] sm:$0xf] }
  0x61   : > { %329 = vst [vmem:[%s2579_s10 + $0x4c] sm:$0xf] %v328_v51  ;;  %v372_v9 = vld [vmem:[%s2574_s28 + $0x148] sm:$0xf]  ;;  %v374_v10 = vld [vmem:[%s2574_s28 + $0x150] sm:$0xf] }
  0x62   : > { %331 = vst [vmem:[%s2579_s10 + $0x50] sm:$0xf] %v330_v52  ;;  %v376_v11 = vld [vmem:[%s2574_s28 + $0x158] sm:$0xf]  ;;  %v378_v12 = vld [vmem:[%s2574_s28 + $0x160] sm:$0xf] }
  0x63   : > { %333 = vst [vmem:[%s2579_s10 + $0x54] sm:$0xf] %v332_v53  ;;  %v380_v13 = vld [vmem:[%s2574_s28 + $0x168] sm:$0xf]  ;;  %v382_v14 = vld [vmem:[%s2574_s28 + $0x170] sm:$0xf] }
  0x64   : > { %335 = vst [vmem:[%s2579_s10 + $0x58] sm:$0xf] %v334_v54  ;;  %v384_v15 = vld [vmem:[%s2574_s28 + $0x178] sm:$0xf]  ;;  %v386_v16 = vld [vmem:[%s2574_s28 + $0x180] sm:$0xf] }
  0x65   : > { %337 = vst [vmem:[%s2579_s10 + $0x5c] sm:$0xf] %v336_v55  ;;  %v388_v17 = vld [vmem:[%s2574_s28 + $0x188] sm:$0xf]  ;;  %v390_v18 = vld [vmem:[%s2574_s28 + $0x190] sm:$0xf] }
  0x66   : > { %339 = vst [vmem:[%s2579_s10 + $0x60] sm:$0xf] %v338_v56  ;;  %v392_v19 = vld [vmem:[%s2574_s28 + $0x198] sm:$0xf]  ;;  %v394_v20 = vld [vmem:[%s2574_s28 + $0x1a0] sm:$0xf] }
  0x67   : > { %341 = vst [vmem:[%s2579_s10 + $0x64] sm:$0xf] %v340_v57  ;;  %v396_v21 = vld [vmem:[%s2574_s28 + $0x1a8] sm:$0xf]  ;;  %v398_v22 = vld [vmem:[%s2574_s28 + $0x1b0] sm:$0xf] }
  0x68   : > { %343 = vst [vmem:[%s2579_s10 + $0x68] sm:$0xf] %v342_v58  ;;  %v400_v23 = vld [vmem:[%s2574_s28 + $0x1b8] sm:$0xf]  ;;  %v402_v24 = vld [vmem:[%s2574_s28 + $0x1c0] sm:$0xf] }
  0x69   : > { %345 = vst [vmem:[%s2579_s10 + $0x6c] sm:$0xf] %v344_v59  ;;  %v404_v25 = vld [vmem:[%s2574_s28 + $0x1c8] sm:$0xf]  ;;  %v406_v26 = vld [vmem:[%s2574_s28 + $0x1d0] sm:$0xf] }
  0x6a   : > { %347 = vst [vmem:[%s2579_s10 + $0x70] sm:$0xf] %v346_v60  ;;  %v408_v27 = vld [vmem:[%s2574_s28 + $0x1d8] sm:$0xf]  ;;  %v410_v28 = vld [vmem:[%s2574_s28 + $0x1e0] sm:$0xf] }
  0x6b   : > { %349 = vst [vmem:[%s2579_s10 + $0x74] sm:$0xf] %v348_v61  ;;  %v412_v29 = vld [vmem:[%s2574_s28 + $0x1e8] sm:$0xf]  ;;  %v414_v30 = vld [vmem:[%s2574_s28 + $0x1f0] sm:$0xf] }
  0x6c   : > { %351 = vst [vmem:[%s2579_s10 + $0x78] sm:$0xf] %v350_v62  ;;  %v416_v31 = vld [vmem:[%s2574_s28 + $0x1f8] sm:$0xf] }
  0x6d   : > { %353 = vst [vmem:[%s2579_s10 + $0x7c] sm:$0xf] %v352_v63 }
  0x6e   : > { %355 = vst [vmem:[%s2579_s10 + $0x80] sm:$0xf] %v354_v0 }
  0x6f   : > { %357 = vst [vmem:[%s2579_s10 + $0x84] sm:$0xf] %v356_v1 }
  0x70   : > { %359 = vst [vmem:[%s2579_s10 + $0x88] sm:$0xf] %v358_v2 }
  0x71   : > { %361 = vst [vmem:[%s2579_s10 + $0x8c] sm:$0xf] %v360_v3 }
  0x72   : > { %363 = vst [vmem:[%s2579_s10 + $0x90] sm:$0xf] %v362_v4 }
  0x73   : > { %365 = vst [vmem:[%s2579_s10 + $0x94] sm:$0xf] %v364_v5 }
  0x74   : > { %367 = vst [vmem:[%s2579_s10 + $0x98] sm:$0xf] %v366_v6 }
  0x75   : > { %369 = vst [vmem:[%s2579_s10 + $0x9c] sm:$0xf] %v368_v7 }
  0x76   : > { %371 = vst [vmem:[%s2579_s10 + $0xa0] sm:$0xf] %v370_v8 }
  0x77   : > { %373 = vst [vmem:[%s2579_s10 + $0xa4] sm:$0xf] %v372_v9 }
  0x78   : > { %375 = vst [vmem:[%s2579_s10 + $0xa8] sm:$0xf] %v374_v10 }
  0x79   : > { %377 = vst [vmem:[%s2579_s10 + $0xac] sm:$0xf] %v376_v11 }
  0x7a   : > { %379 = vst [vmem:[%s2579_s10 + $0xb0] sm:$0xf] %v378_v12 }
  0x7b   : > { %381 = vst [vmem:[%s2579_s10 + $0xb4] sm:$0xf] %v380_v13 }
  0x7c   : > { %383 = vst [vmem:[%s2579_s10 + $0xb8] sm:$0xf] %v382_v14 }
  0x7d   : > { %385 = vst [vmem:[%s2579_s10 + $0xbc] sm:$0xf] %v384_v15 }
  0x7e   : > { %387 = vst [vmem:[%s2579_s10 + $0xc0] sm:$0xf] %v386_v16 }
  0x7f   : > { %389 = vst [vmem:[%s2579_s10 + $0xc4] sm:$0xf] %v388_v17 }
  0x80   : > { %391 = vst [vmem:[%s2579_s10 + $0xc8] sm:$0xf] %v390_v18 }
  0x81   : > { %393 = vst [vmem:[%s2579_s10 + $0xcc] sm:$0xf] %v392_v19 }
  0x82   : > { %395 = vst [vmem:[%s2579_s10 + $0xd0] sm:$0xf] %v394_v20 }
  0x83   : > { %397 = vst [vmem:[%s2579_s10 + $0xd4] sm:$0xf] %v396_v21 }
  0x84   : > { %399 = vst [vmem:[%s2579_s10 + $0xd8] sm:$0xf] %v398_v22 }
  0x85   : > { %401 = vst [vmem:[%s2579_s10 + $0xdc] sm:$0xf] %v400_v23 }
  0x86   : > { %403 = vst [vmem:[%s2579_s10 + $0xe0] sm:$0xf] %v402_v24 }
  0x87   : > { %405 = vst [vmem:[%s2579_s10 + $0xe4] sm:$0xf] %v404_v25 }
  0x88   : > { %407 = vst [vmem:[%s2579_s10 + $0xe8] sm:$0xf] %v406_v26 }
  0x89   : > { %409 = vst [vmem:[%s2579_s10 + $0xec] sm:$0xf] %v408_v27 }
  0x8a   : > { %411 = vst [vmem:[%s2579_s10 + $0xf0] sm:$0xf] %v410_v28 }
  0x8b   : > { %413 = vst [vmem:[%s2579_s10 + $0xf4] sm:$0xf] %v412_v29 }
  0x8c   : > { %415 = vst [vmem:[%s2579_s10 + $0xf8] sm:$0xf] %v414_v30 }
  0x8d   : > { %417 = vst [vmem:[%s2579_s10 + $0xfc] sm:$0xf] %v416_v31 }
  0x8e PF: > { %p1808_p0 = scmp.ge.s32.totalorder %s2365_s25, 1  ;;  %p580_p1 = scmp.lt.s32.totalorder %s2365_s25, 9 }
  0x90   : > { %p581_p2 = pnand %p1808_p0, %p580_p1 }
  0x91   : > { %s594_s0 = sand.u32 (!%p581_p2), 1, %s2333_s17   ;;  %s625_s11 = sand.u32 (!%p581_p2), 1, %s2325_s15  }
  0x92   : > { %584 = sbr.rel (%p581_p2) target bundleno = 654 (0x28e), region = 92  ;;  %s1810_s26 = sshll.u32 (!%p581_p2), %s594_s0, 8 }
  0x93   : > { %s2710_s5 = sshll.u32 (!%p581_p2), %s625_s11, 6  ;;  %p630_p3 = scmp.lt.s32.totalorder (!%p581_p2), %s2353_s22, 1 }
  0x94   : > { %s2713_s28 = scalar_lea.vmem (!%p581_p2), [#allocation4], %s1810_s26  ;;  %s587_s10 = sand.u32 (!%p581_p2), 1, %s2341_s19  }
  0x95   : > { %s1809_s0 = sshll.u32 (!%p581_p2), %s587_s10, 8  ;;  %s2858_s11 = scalar_lea.vmem (!%p581_p2), [#allocation5], %s2710_s5 }
  0x96   : > { %s2759_s19 = scalar_lea.vmem (!%p581_p2), [#allocation3], %s1809_s0  ;;  %p2068_p4 = scmp.ne.s32.totalorder (!%p581_p2), %s2349_s21, 0 }
  0x97   : > { %v2116_v32 = vld [vmem:[%s2713_s28 + $0x38] sm:$0xff]  ;;  %s2720_s15 = scalar_select %p630_p3, %s2353_s22, 1  ;;  %v2115_v36 = vld [vmem:[%s2713_s28 + $0x30] sm:$0xff]  ;;  %v2114_v40 = vld [vmem:[%s2713_s28 + $0x28] sm:$0xff] }
  0x98   : > { %v2124_v33 = vld [vmem:[%s2713_s28 + $0x78] sm:$0xff]  ;;  %1084 = vmatpush.bf16.msra.mxu0 %v2116_v32  ;;  %v2123_v37 = vld [vmem:[%s2713_s28 + $0x70] sm:$0xff]  ;;  %v2122_v41 = vld [vmem:[%s2713_s28 + $0x68] sm:$0xff] }
  0x99   : > { %v2132_v34 = vld [vmem:[%s2713_s28 + $0xb8] sm:$0xff]  ;;  %1133 = vmatpush.bf16.msra.mxu1 %v2124_v33  ;;  %v2131_v38 = vld [vmem:[%s2713_s28 + $0xb0] sm:$0xff]  ;;  %s632_s30 = scalar_lea.vmem %s3086_s2, %s2720_s15  ;;  %s635_s9 = scalar_lea.vmem %s3087_s3, %s2720_s15  ;;  %v2130_v42 = vld [vmem:[%s2713_s28 + $0xa8] sm:$0xff] }
  0x9a   : > { %v2140_v35 = vld [vmem:[%s2713_s28 + $0xf8] sm:$0xff]  ;;  %1182 = vmatpush.bf16.msra.mxu2 %v2132_v34  ;;  %v2139_v39 = vld [vmem:[%s2713_s28 + $0xf0] sm:$0xff]  ;;  %v2138_v43 = vld [vmem:[%s2713_s28 + $0xe8] sm:$0xff] }
  0x9b   : > { %1231 = vmatpush.bf16.msra.mxu3 %v2140_v35  ;;  %v2113_v44 = vld [vmem:[%s2713_s28 + $0x20] sm:$0xff]  ;;  %v2112_v48 = vld [vmem:[%s2713_s28 + $0x18] sm:$0xff]  ;;  %v2111_v52 = vld [vmem:[%s2713_s28 + $0x10] sm:$0xff] }
  0x9c   : > { %1085 = vmatpush.bf16.msra.mxu0 %v2115_v36  ;;  %v2121_v45 = vld [vmem:[%s2713_s28 + $0x60] sm:$0xff]  ;;  %v2120_v49 = vld [vmem:[%s2713_s28 + $0x58] sm:$0xff]  ;;  %v2119_v53 = vld [vmem:[%s2713_s28 + $0x50] sm:$0xff] }
  0x9d   : > { %1134 = vmatpush.bf16.msra.mxu1 %v2123_v37  ;;  %v2129_v46 = vld [vmem:[%s2713_s28 + $0xa0] sm:$0xff]  ;;  %v2128_v50 = vld [vmem:[%s2713_s28 + $0x98] sm:$0xff]  ;;  %v2127_v54 = vld [vmem:[%s2713_s28 + $0x90] sm:$0xff] }
  0x9e   : > { %1183 = vmatpush.bf16.msra.mxu2 %v2131_v38  ;;  %v2137_v47 = vld [vmem:[%s2713_s28 + $0xe0] sm:$0xff]  ;;  %v2136_v51 = vld [vmem:[%s2713_s28 + $0xd8] sm:$0xff]  ;;  %v2135_v55 = vld [vmem:[%s2713_s28 + $0xd0] sm:$0xff] }
  0x9f   : > { %1232 = vmatpush.bf16.msra.mxu3 %v2139_v39  ;;  %v2110_v56 = vld [vmem:[%s2713_s28 + $0x8] sm:$0xff]  ;;  %v2109_v60 = vld [vmem:[%s2713_s28] sm:$0xff]  ;;  %v2079_v1 = vld [vmem:[%s2759_s19 + $0xc] sm:$0xf0] }
  0xa0   : > { %1086 = vmatpush.bf16.msra.mxu0 %v2114_v40  ;;  %v2118_v57 = vld [vmem:[%s2713_s28 + $0x48] sm:$0xff]  ;;  %v2117_v61 = vld [vmem:[%s2713_s28 + $0x40] sm:$0xff]  ;;  %v1816_v3 = vld [vmem:[%s2759_s19 + $0x10] sm:$0xf0] }
  0xa1   : > { %1135 = vmatpush.bf16.msra.mxu1 %v2122_v41  ;;  %v2126_v58 = vld [vmem:[%s2713_s28 + $0x88] sm:$0xff]  ;;  %v2125_v62 = vld [vmem:[%s2713_s28 + $0x80] sm:$0xff]  ;;  %v2080_v5 = vld [vmem:[%s2759_s19 + $0x14] sm:$0xf0] }
  0xa2   : > { %1184 = vmatpush.bf16.msra.mxu2 %v2130_v42  ;;  %v2134_v59 = vld [vmem:[%s2713_s28 + $0xc8] sm:$0xff]  ;;  %v2133_v63 = vld [vmem:[%s2713_s28 + $0xc0] sm:$0xff]  ;;  %v1824_v7 = vld [vmem:[%s2759_s19 + $0x18] sm:$0xf0] }
  0xa3   : > { %1233 = vmatpush.bf16.msra.mxu3 %v2138_v43  ;;  %v1814_v0 = vld [vmem:[%s2759_s19] sm:$0xf]  ;;  %v2077_v2 = vld [vmem:[%s2759_s19 + $0x4] sm:$0xf]  ;;  %v1822_v4 = vld [vmem:[%s2759_s19 + $0x8] sm:$0xf] }
  0xa4   : > { %1087 = vmatpush.bf16.msra.mxu0 %v2113_v44  ;;  %v2078_v6 = vld [vmem:[%s2759_s19 + $0xc] sm:$0xf]  ;;  %v1815_v8 = vor.u32 %v2079_v1, %v1814_v0  ;;  %v1819_v9 = vor.u32 %v2077_v2, %v1816_v3  ;;  %v1823_v10 = vor.u32 %v2080_v5, %v1822_v4  ;;  %v1830_v12 = vld [vmem:[%s2759_s19 + $0x20] sm:$0xf]  ;;  %v2083_v13 = vld [vmem:[%s2759_s19 + $0x2c] sm:$0xf0] }
  0xa5   : > { %1136 = vmatpush.bf16.msra.mxu1 %v2121_v45  ;;  %v1827_v11 = vor.u32 %v2078_v6, %v1824_v7  ;;  %v2081_v14 = vld [vmem:[%s2759_s19 + $0x24] sm:$0xf]  ;;  %v1832_v15 = vld [vmem:[%s2759_s19 + $0x30] sm:$0xf0]  ;;  %v1838_v16 = vld [vmem:[%s2759_s19 + $0x28] sm:$0xf]  ;;  %v1831_v20 = vor.u32 %v2083_v13, %v1830_v12 }
  0xa6   : > { %1185 = vmatpush.bf16.msra.mxu2 %v2129_v46  ;;  %v2084_v17 = vld [vmem:[%s2759_s19 + $0x34] sm:$0xf0]  ;;  %v2082_v18 = vld [vmem:[%s2759_s19 + $0x2c] sm:$0xf]  ;;  %v1840_v19 = vld [vmem:[%s2759_s19 + $0x38] sm:$0xf0]  ;;  %v1835_v21 = vor.u32 %v2081_v14, %v1832_v15 }
  0xa7   : > { %1234 = vmatpush.bf16.msra.mxu3 %v2137_v47  ;;  %v1839_v22 = vor.u32 %v2084_v17, %v1838_v16  ;;  %v1843_v23 = vor.u32 %v2082_v18, %v1840_v19  ;;  %v1846_v24 = vld [vmem:[%s2759_s19 + $0x40] sm:$0xf]  ;;  %v2087_v25 = vld [vmem:[%s2759_s19 + $0x4c] sm:$0xf0]  ;;  %v2085_v26 = vld [vmem:[%s2759_s19 + $0x44] sm:$0xf] }
  0xa8   : > { %1088 = vmatpush.bf16.msra.mxu0 %v2112_v48  ;;  %v1848_v27 = vld [vmem:[%s2759_s19 + $0x50] sm:$0xf0]  ;;  %v1854_v28 = vld [vmem:[%s2759_s19 + $0x48] sm:$0xf]  ;;  %v2088_v29 = vld [vmem:[%s2759_s19 + $0x54] sm:$0xf0]  ;;  %v1847_v32 = vor.u32 %v2087_v25, %v1846_v24 }
  0xa9   : > { %1137 = vmatpush.bf16.msra.mxu1 %v2120_v49  ;;  %v2086_v30 = vld [vmem:[%s2759_s19 + $0x4c] sm:$0xf]  ;;  %v1856_v31 = vld [vmem:[%s2759_s19 + $0x58] sm:$0xf0]  ;;  %v1851_v33 = vor.u32 %v2085_v26, %v1848_v27  ;;  %v1855_v34 = vor.u32 %v2088_v29, %v1854_v28  ;;  %v1862_v36 = vld [vmem:[%s2759_s19 + $0x60] sm:$0xf] }
  0xaa   : > { %1186 = vmatpush.bf16.msra.mxu2 %v2128_v50  ;;  %v1859_v35 = vor.u32 %v2086_v30, %v1856_v31  ;;  %v2091_v37 = vld [vmem:[%s2759_s19 + $0x6c] sm:$0xf0]  ;;  %v2089_v38 = vld [vmem:[%s2759_s19 + $0x64] sm:$0xf]  ;;  %v1864_v39 = vld [vmem:[%s2759_s19 + $0x70] sm:$0xf0] }
  0xab   : > { %1235 = vmatpush.bf16.msra.mxu3 %v2136_v51  ;;  %v1870_v40 = vld [vmem:[%s2759_s19 + $0x68] sm:$0xf]  ;;  %v2092_v41 = vld [vmem:[%s2759_s19 + $0x74] sm:$0xf0]  ;;  %v2090_v42 = vld [vmem:[%s2759_s19 + $0x6c] sm:$0xf]  ;;  %v1863_v44 = vor.u32 %v2091_v37, %v1862_v36  ;;  %v1867_v45 = vor.u32 %v2089_v38, %v1864_v39 }
  0xac   : > { %1089 = vmatpush.bf16.msra.mxu0 %v2111_v52  ;;  %v1872_v43 = vld [vmem:[%s2759_s19 + $0x78] sm:$0xf0]  ;;  %v1871_v46 = vor.u32 %v2092_v41, %v1870_v40  ;;  %v1878_v48 = vld [vmem:[%s2759_s19 + $0x80] sm:$0xf]  ;;  %v2095_v49 = vld [vmem:[%s2759_s19 + $0x8c] sm:$0xf0] }
  0xad   : > { %1138 = vmatpush.bf16.msra.mxu1 %v2119_v53  ;;  %v1875_v47 = vor.u32 %v2090_v42, %v1872_v43  ;;  %v2093_v50 = vld [vmem:[%s2759_s19 + $0x84] sm:$0xf]  ;;  %v1880_v51 = vld [vmem:[%s2759_s19 + $0x90] sm:$0xf0]  ;;  %v1886_v52 = vld [vmem:[%s2759_s19 + $0x88] sm:$0xf] }
  0xae   : > { %1187 = vmatpush.bf16.msra.mxu2 %v2127_v54  ;;  %v2096_v53 = vld [vmem:[%s2759_s19 + $0x94] sm:$0xf0]  ;;  %v2094_v54 = vld [vmem:[%s2759_s19 + $0x8c] sm:$0xf]  ;;  %v1902_v0 = vld [vmem:[%s2759_s19 + $0xa8] sm:$0xf] }
  0xaf   : > { %1236 = vmatpush.bf16.msra.mxu3 %v2135_v55  ;;  %v1888_v55 = vld [vmem:[%s2759_s19 + $0x98] sm:$0xf0]  ;;  %v2100_v1 = vld [vmem:[%s2759_s19 + $0xb4] sm:$0xf0]  ;;  %v2098_v2 = vld [vmem:[%s2759_s19 + $0xac] sm:$0xf] }
  0xb0   : > { %1090 = vmatpush.bf16.msra.mxu0 %v2110_v56  ;;  %v1879_v56 = vor.u32 %v2095_v49, %v1878_v48  ;;  %v1904_v3 = vld [vmem:[%s2759_s19 + $0xb8] sm:$0xf0]  ;;  %v1903_v6 = vor.u32 %v2100_v1, %v1902_v0  ;;  %v1918_v12 = vld [vmem:[%s2759_s19 + $0xc8] sm:$0xf]  ;;  %v2104_v13 = vld [vmem:[%s2759_s19 + $0xd4] sm:$0xf0] }
  0xb1   : > { %1139 = vmatpush.bf16.msra.mxu1 %v2118_v57  ;;  %v1883_v57 = vor.u32 %v2093_v50, %v1880_v51  ;;  %v1907_v7 = vor.u32 %v2098_v2, %v1904_v3  ;;  %v2102_v14 = vld [vmem:[%s2759_s19 + $0xcc] sm:$0xf]  ;;  %v1920_v15 = vld [vmem:[%s2759_s19 + $0xd8] sm:$0xf0]  ;;  %v1919_v18 = vor.u32 %v2104_v13, %v1918_v12  ;;  %v1934_v24 = vld [vmem:[%s2759_s19 + $0xe8] sm:$0xf] }
  0xb2   : > { %1188 = vmatpush.bf16.msra.mxu2 %v2126_v58  ;;  %v1887_v58 = vor.u32 %v2096_v53, %v1886_v52  ;;  %v1923_v19 = vor.u32 %v2102_v14, %v1920_v15  ;;  %v2108_v25 = vld [vmem:[%s2759_s19 + $0xf4] sm:$0xf0]  ;;  %v2106_v26 = vld [vmem:[%s2759_s19 + $0xec] sm:$0xf]  ;;  %v1936_v27 = vld [vmem:[%s2759_s19 + $0xf8] sm:$0xf0] }
  0xb3   : > { %1237 = vmatpush.bf16.msra.mxu3 %v2134_v59  ;;  %v1891_v59 = vor.u32 %v2094_v54, %v1888_v55  ;;  %v1935_v30 = vor.u32 %v2108_v25, %v1934_v24  ;;  %v1939_v31 = vor.u32 %v2106_v26, %v1936_v27 }
  0xb4   : > { %1091 = vmatpush.bf16.msra.mxu0 %v2109_v60  ;;  %v1894_v60 = vld [vmem:[%s2759_s19 + $0xa0] sm:$0xf] }
  0xb5   : > { %1140 = vmatpush.bf16.msra.mxu1 %v2117_v61  ;;  %v2099_v61 = vld [vmem:[%s2759_s19 + $0xac] sm:$0xf0] }
  0xb6   : > { %1189 = vmatpush.bf16.msra.mxu2 %v2125_v62  ;;  %v2097_v62 = vld [vmem:[%s2759_s19 + $0xa4] sm:$0xf]  ;;  %v1895_v4 = vor.u32 %v2099_v61, %v1894_v60 }
  0xb7   : > { %1238 = vmatpush.bf16.msra.mxu3 %v2133_v63  ;;  %1092 = vmatmul.bf16.vlgmr.msra.gmra.mxu0 %v1815_v8  ;;  %v1896_v63 = vld [vmem:[%s2759_s19 + $0xb0] sm:$0xf0]  ;;  %v1910_v8 = vld [vmem:[%s2759_s19 + $0xc0] sm:$0xf] }
  0xb8   : > { %1141 = vmatmul.bf16.vlgmr.msra.gmra.mxu1 %v1819_v9  ;;  %v1899_v5 = vor.u32 %v2097_v62, %v1896_v63  ;;  %v2103_v9 = vld [vmem:[%s2759_s19 + $0xcc] sm:$0xf0] }
  0xb9   : > { %1190 = vmatmul.bf16.vlgmr.msra.gmra.mxu2 %v1823_v10  ;;  %v2101_v10 = vld [vmem:[%s2759_s19 + $0xc4] sm:$0xf]  ;;  %v1911_v16 = vor.u32 %v2103_v9, %v1910_v8 }
  0xba   : > { %1239 = vmatmul.bf16.vlgmr.msra.gmra.mxu3 %v1827_v11  ;;  %v1912_v11 = vld [vmem:[%s2759_s19 + $0xd0] sm:$0xf0] }
  0xbb   : > { %v1915_v17 = vor.u32 %v2101_v10, %v1912_v11 }
  0xc7   : > { %1097 = vmatmul.bf16.gmra.mxu0 %v1831_v20  ;;  %v1926_v20 = vld [vmem:[%s2759_s19 + $0xe0] sm:$0xf] }
  0xc8   : > { %1146 = vmatmul.bf16.gmra.mxu1 %v1835_v21  ;;  %v2107_v21 = vld [vmem:[%s2759_s19 + $0xec] sm:$0xf0] }
  0xc9   : > { %1195 = vmatmul.bf16.gmra.mxu2 %v1839_v22  ;;  %v2105_v22 = vld [vmem:[%s2759_s19 + $0xe4] sm:$0xf]  ;;  %v1927_v28 = vor.u32 %v2107_v21, %v1926_v20 }
  0xca   : > { %1244 = vmatmul.bf16.gmra.mxu3 %v1843_v23  ;;  %v1928_v23 = vld [vmem:[%s2759_s19 + $0xf0] sm:$0xf0] }
  0xcb   : > { %v1931_v29 = vor.u32 %v2105_v22, %v1928_v23 }
  0xd7   : > { %1102 = vmatmul.bf16.gmra.mxu0 %v1847_v32 }
  0xd8   : > { %1151 = vmatmul.bf16.gmra.mxu1 %v1851_v33 }
  0xd9   : > { %1200 = vmatmul.bf16.gmra.mxu2 %v1855_v34 }
  0xda   : > { %1249 = vmatmul.bf16.gmra.mxu3 %v1859_v35 }
  0xe7   : > { %1107 = vmatmul.bf16.gmra.mxu0 %v1863_v44 }
  0xe8   : > { %1156 = vmatmul.bf16.gmra.mxu1 %v1867_v45 }
  0xe9   : > { %1205 = vmatmul.bf16.gmra.mxu2 %v1871_v46 }
  0xea   : > { %1254 = vmatmul.bf16.gmra.mxu3 %v1875_v47 }
  0xf7   : > { %1112 = vmatmul.bf16.gmra.mxu0 %v1879_v56 }
  0xf8   : > { %1161 = vmatmul.bf16.gmra.mxu1 %v1883_v57 }
  0xf9   : > { %1210 = vmatmul.bf16.gmra.mxu2 %v1887_v58 }
  0xfa   : > { %1259 = vmatmul.bf16.gmra.mxu3 %v1891_v59 }
 0x107   : > { %1117 = vmatmul.bf16.gmra.mxu0 %v1895_v4 }
 0x108   : > { %1166 = vmatmul.bf16.gmra.mxu1 %v1899_v5 }
 0x109   : > { %1215 = vmatmul.bf16.gmra.mxu2 %v1903_v6 }
 0x10a   : > { %1264 = vmatmul.bf16.gmra.mxu3 %v1907_v7 }
 0x117   : > { %1122 = vmatmul.bf16.gmra.mxu0 %v1911_v16 }
 0x118   : > { %1171 = vmatmul.bf16.gmra.mxu1 %v1915_v17 }
 0x119   : > { %1220 = vmatmul.bf16.gmra.mxu2 %v1919_v18 }
 0x11a   : > { %1269 = vmatmul.bf16.gmra.mxu3 %v1923_v19 }
 0x127   : > { %1127 = vmatmul.bf16.gmra.mxu0 %v1927_v28 }
 0x128   : > { %1176 = vmatmul.bf16.gmra.mxu1 %v1931_v29 }
 0x129   : > { %1225 = vmatmul.bf16.gmra.mxu2 %v1935_v30 }
 0x12a   : > { %1274 = vmatmul.bf16.gmra.mxu3 %v1939_v31 }
 0x134   : > { %v1093_v32 = vpop.f32.mrf.mxu0 }
 0x135   : > { %v1142_v33 = vpop.f32.mrf.mxu1 }
 0x136   : > { %v1143_v34 = vadd.f32 %v1142_v33, %v1093_v32 }
 0x13c   : > { %v1191_v35 = vpop.f32.mrf.mxu2  ;;  %v1095_v38 = vpop.f32.mrf.mxu0 }
 0x13d   : > { %v1240_v36 = vpop.f32.mrf.mxu3  ;;  %v1192_v37 = vadd.f32 %v1191_v35, %v1143_v34  ;;  %v1144_v39 = vpop.f32.mrf.mxu1 }
 0x13e   : > { %v1145_v40 = vadd.f32 %v1144_v39, %v1095_v38 }
 0x13f   : > { %v2825_v41 = vadd.f32 %v1240_v36, %v1192_v37 }
 0x144   : > { %v1193_v42 = vpop.f32.mrf.mxu2  ;;  %v1098_v45 = vpop.f32.mrf.mxu0 }
 0x145   : > { %v1242_v43 = vpop.f32.mrf.mxu3  ;;  %v1194_v44 = vadd.f32 %v1193_v42, %v1145_v40  ;;  %v1147_v46 = vpop.f32.mrf.mxu1 }
 0x146   : > { %v1148_v47 = vadd.f32 %v1147_v46, %v1098_v45 }
 0x147   : > { %v2827_v48 = vadd.f32 %v1242_v43, %v1194_v44 }
 0x14c   : > { %v1196_v49 = vpop.f32.mrf.mxu2  ;;  %v1100_v52 = vpop.f32.mrf.mxu0 }
 0x14d   : > { %v1245_v50 = vpop.f32.mrf.mxu3  ;;  %v1197_v51 = vadd.f32 %v1196_v49, %v1148_v47  ;;  %v1149_v53 = vpop.f32.mrf.mxu1 }
 0x14e   : > { %v1150_v54 = vadd.f32 %v1149_v53, %v1100_v52 }
 0x14f   : > { %v2829_v55 = vadd.f32 %v1245_v50, %v1197_v51 }
 0x154   : > { %v1198_v56 = vpop.f32.mrf.mxu2  ;;  %v1103_v59 = vpop.f32.mrf.mxu0 }
 0x155   : > { %v1247_v57 = vpop.f32.mrf.mxu3  ;;  %v1199_v58 = vadd.f32 %v1198_v56, %v1150_v54  ;;  %v1152_v60 = vpop.f32.mrf.mxu1 }
 0x156   : > { %v1153_v61 = vadd.f32 %v1152_v60, %v1103_v59 }
 0x157   : > { %v2831_v62 = vadd.f32 %v1247_v57, %v1199_v58 }
 0x15c   : > { %v1201_v63 = vpop.f32.mrf.mxu2  ;;  %v1105_v2 = vpop.f32.mrf.mxu0 }
 0x15d   : > { %v1250_v0 = vpop.f32.mrf.mxu3  ;;  %v1202_v1 = vadd.f32 %v1201_v63, %v1153_v61  ;;  %v1154_v3 = vpop.f32.mrf.mxu1 }
 0x15e   : > { %v1155_v4 = vadd.f32 %v1154_v3, %v1105_v2 }
 0x15f   : > { %v2833_v5 = vadd.f32 %v1250_v0, %v1202_v1 }
 0x164   : > { %v1203_v6 = vpop.f32.mrf.mxu2  ;;  %v1108_v9 = vpop.f32.mrf.mxu0 }
 0x165   : > { %v1252_v7 = vpop.f32.mrf.mxu3  ;;  %v1204_v8 = vadd.f32 %v1203_v6, %v1155_v4  ;;  %v1157_v10 = vpop.f32.mrf.mxu1 }
 0x166   : > { %v1158_v11 = vadd.f32 %v1157_v10, %v1108_v9 }
 0x167   : > { %v2835_v12 = vadd.f32 %v1252_v7, %v1204_v8 }
 0x16c   : > { %v1206_v13 = vpop.f32.mrf.mxu2  ;;  %v1110_v16 = vpop.f32.mrf.mxu0 }
 0x16d   : > { %v1255_v14 = vpop.f32.mrf.mxu3  ;;  %v1207_v15 = vadd.f32 %v1206_v13, %v1158_v11  ;;  %v1159_v17 = vpop.f32.mrf.mxu1 }
 0x16e   : > { %v1160_v18 = vadd.f32 %v1159_v17, %v1110_v16 }
 0x16f   : > { %v2837_v19 = vadd.f32 %v1255_v14, %v1207_v15 }
 0x174   : > { %v1208_v20 = vpop.f32.mrf.mxu2  ;;  %v1113_v23 = vpop.f32.mrf.mxu0 }
 0x175   : > { %v1257_v21 = vpop.f32.mrf.mxu3  ;;  %v1209_v22 = vadd.f32 %v1208_v20, %v1160_v18  ;;  %v1162_v24 = vpop.f32.mrf.mxu1 }
 0x176   : > { %v1163_v26 = vadd.f32 %v1162_v24, %v1113_v23 }
 0x177   : > { %v2839_v25 = vadd.f32 %v1257_v21, %v1209_v22 }
 0x17c   : > { %v1211_v27 = vpop.f32.mrf.mxu2  ;;  %v1115_v30 = vpop.f32.mrf.mxu0 }
 0x17d   : > { %v1260_v28 = vpop.f32.mrf.mxu3  ;;  %v1212_v29 = vadd.f32 %v1211_v27, %v1163_v26  ;;  %v1164_v31 = vpop.f32.mrf.mxu1 }
 0x17e   : > { %v1165_v33 = vadd.f32 %v1164_v31, %v1115_v30 }
 0x17f   : > { %v2841_v32 = vadd.f32 %v1260_v28, %v1212_v29 }
 0x184   : > { %v1213_v34 = vpop.f32.mrf.mxu2  ;;  %v1118_v37 = vpop.f32.mrf.mxu0 }
 0x185   : > { %v1262_v35 = vpop.f32.mrf.mxu3  ;;  %v1214_v36 = vadd.f32 %v1213_v34, %v1165_v33  ;;  %v1167_v38 = vpop.f32.mrf.mxu1 }
 0x186   : > { %v1168_v40 = vadd.f32 %v1167_v38, %v1118_v37 }
 0x187   : > { %v2843_v39 = vadd.f32 %v1262_v35, %v1214_v36 }
 0x18c   : > { %v1216_v42 = vpop.f32.mrf.mxu2  ;;  %v1120_v45 = vpop.f32.mrf.mxu0 }
 0x18d   : > { %v1265_v43 = vpop.f32.mrf.mxu3  ;;  %v1217_v44 = vadd.f32 %v1216_v42, %v1168_v40  ;;  %v1169_v46 = vpop.f32.mrf.mxu1 }
 0x18e   : > { %v1170_v49 = vadd.f32 %v1169_v46, %v1120_v45 }
 0x18f   : > { %v2845_v47 = vadd.f32 %v1265_v43, %v1217_v44 }
 0x194   : > { %v1218_v50 = vpop.f32.mrf.mxu2  ;;  %v1123_v53 = vpop.f32.mrf.mxu0 }
 0x195   : > { %v1267_v51 = vpop.f32.mrf.mxu3  ;;  %v1219_v52 = vadd.f32 %v1218_v50, %v1170_v49  ;;  %v1172_v54 = vpop.f32.mrf.mxu1 }
 0x196   : > { %v1173_v57 = vadd.f32 %v1172_v54, %v1123_v53 }
 0x197   : > { %v2847_v56 = vadd.f32 %v1267_v51, %v1219_v52 }
 0x19c   : > { %v1221_v58 = vpop.f32.mrf.mxu2  ;;  %v1125_v61 = vpop.f32.mrf.mxu0 }
 0x19d   : > { %v1270_v59 = vpop.f32.mrf.mxu3  ;;  %v1222_v60 = vadd.f32 %v1221_v58, %v1173_v57  ;;  %v1174_v63 = vpop.f32.mrf.mxu1 }
 0x19e   : > { %v1175_v1 = vadd.f32 %v1174_v63, %v1125_v61 }
 0x19f   : > { %v2849_v0 = vadd.f32 %v1270_v59, %v1222_v60 }
 0x1a4   : > { %v1223_v2 = vpop.f32.mrf.mxu2  ;;  %v1128_v6 = vpop.f32.mrf.mxu0 }
 0x1a5   : > { %v1272_v3 = vpop.f32.mrf.mxu3  ;;  %v1224_v4 = vadd.f32 %v1223_v2, %v1175_v1  ;;  %v1177_v7 = vpop.f32.mrf.mxu1 }
 0x1a6   : > { %v1178_v9 = vadd.f32 %v1177_v7, %v1128_v6 }
 0x1a7   : > { %v2851_v8 = vadd.f32 %v1272_v3, %v1224_v4 }
 0x1ac   : > { %v1226_v10 = vpop.f32.mrf.mxu2  ;;  %v1130_v15 = vpop.f32.mrf.mxu0 }
 0x1ad   : > { %v1275_v11 = vpop.f32.mrf.mxu3  ;;  %v1227_v13 = vadd.f32 %v1226_v10, %v1178_v9  ;;  %v1179_v16 = vpop.f32.mrf.mxu1 }
 0x1ae   : > { %v1180_v17 = vadd.f32 %v1179_v16, %v1130_v15 }
 0x1af   : > { %v2853_v14 = vadd.f32 %v1275_v11, %v1227_v13 }
 0x1b3   : > { %1283 = sbr.rel (%p2068_p4) target bundleno = 456 (0x1c8), region = 104 }
 0x1b4   : > { %v1228_v18 = vpop.f32.mrf.mxu2 }
 0x1b5   : > { %v1229_v20 = vadd.f32 %v1228_v18, %v1180_v17  ;;  %v1277_v21 = vpop.f32.mrf.mxu3 }
 0x1b7   : > { %v2855_v22 = vadd.f32 %v1277_v21, %v1229_v20 }
 0x1b8   : > { %1284 = vst [vmem:[#allocation2 + $0x30] sm:$0xff] %v2825_v41 }
 0x1b9   : > { %1285 = vst [vmem:[#allocation2] sm:$0xff] %v2827_v48 }
 0x1ba   : > { %1286 = vst [vmem:[#allocation2 + $0x58] sm:$0xff] %v2829_v55 }
 0x1bb   : > { %1287 = vst [vmem:[#allocation2 + $0x18] sm:$0xff] %v2831_v62 }
 0x1bc   : > { %1288 = vst [vmem:[#allocation2 + $0x50] sm:$0xff] %v2833_v5 }
 0x1bd   : > { %1289 = vst [vmem:[#allocation2 + $0x68] sm:$0xff] %v2835_v12 }
 0x1be   : > { %1290 = vst [vmem:[#allocation2 + $0x8] sm:$0xff] %v2837_v19 }
 0x1bf   : > { %1291 = vst [vmem:[#allocation2 + $0x48] sm:$0xff] %v2839_v25 }
 0x1c0   : > { %1292 = vst [vmem:[#allocation2 + $0x40] sm:$0xff] %v2841_v32 }
 0x1c1   : > { %1293 = vst [vmem:[#allocation2 + $0x20] sm:$0xff] %v2843_v39 }
 0x1c2   : > { %1294 = vst [vmem:[#allocation2 + $0x10] sm:$0xff] %v2845_v47 }
 0x1c3   : > { %1295 = vst [vmem:[#allocation2 + $0x38] sm:$0xff] %v2847_v56 }
 0x1c4   : > { %1296 = vst [vmem:[#allocation2 + $0x60] sm:$0xff] %v2849_v0 }
 0x1c5   : > { %1297 = vst [vmem:[#allocation2 + $0x70] sm:$0xff] %v2851_v8 }
 0x1c6   : > { %1298 = vst [vmem:[#allocation2 + $0x78] sm:$0xff] %v2853_v14 }
 0x1c7   : > { %1299 = vst [vmem:[#allocation2 + $0x28] sm:$0xff] %v2855_v22 }
 0x1c8 PF: > { %p2069_p5 = scmp.le.s32.totalorder %s2349_s21, 0 }
 0x1ca   : > { %1303 = sbr.rel (%p2069_p5) target bundleno = 482 (0x1e2), region = 108 }
 0x1cf   : > { %v1304_v23 = vld [vmem:[#allocation2 + $0x30] sm:$0xff]  ;;  %v1305_v24 = vld [vmem:[#allocation2] sm:$0xff]  ;;  %v1306_v26 = vld [vmem:[#allocation2 + $0x58] sm:$0xff] }
 0x1d0   : > { %v1320_v27 = vadd.f32 %v1304_v23, %v2825_v41  ;;  %v1321_v28 = vadd.f32 %v1305_v24, %v2827_v48  ;;  %v1322_v29 = vadd.f32 %v1306_v26, %v2829_v55  ;;  %v1307_v30 = vld [vmem:[#allocation2 + $0x18] sm:$0xff]  ;;  %v1308_v31 = vld [vmem:[#allocation2 + $0x50] sm:$0xff]  ;;  %v1309_v33 = vld [vmem:[#allocation2 + $0x68] sm:$0xff] }
 0x1d1   : > { %v1323_v34 = vadd.f32 %v1307_v30, %v2831_v62  ;;  %v1310_v35 = vld [vmem:[#allocation2 + $0x8] sm:$0xff]  ;;  %v1324_v36 = vadd.f32 %v1308_v31, %v2833_v5  ;;  %v1325_v38 = vadd.f32 %v1309_v33, %v2835_v12  ;;  %v1312_v40 = vld [vmem:[#allocation2 + $0x40] sm:$0xff]  ;;  %v1314_v42 = vld [vmem:[#allocation2 + $0x10] sm:$0xff] }
 0x1d2   : > { %1336 = vst [vmem:[#allocation2 + $0x30] sm:$0xff] %v1320_v27  ;;  %v1311_v37 = vld [vmem:[#allocation2 + $0x48] sm:$0xff]  ;;  %v1326_v41 = vadd.f32 %v1310_v35, %v2837_v19  ;;  %v1313_v48 = vld [vmem:[#allocation2 + $0x20] sm:$0xff]  ;;  %v1328_v62 = vadd.f32 %v1312_v40, %v2841_v32  ;;  %v1315_v43 = vld [vmem:[#allocation2 + $0x38] sm:$0xff]  ;;  %v1330_v12 = vadd.f32 %v1314_v42, %v2845_v47 }
 0x1d3   : > { %1337 = vst [vmem:[#allocation2] sm:$0xff] %v1321_v28  ;;  %v1327_v55 = vadd.f32 %v1311_v37, %v2839_v25  ;;  %v1329_v5 = vadd.f32 %v1313_v48, %v2843_v39  ;;  %v1316_v44 = vld [vmem:[#allocation2 + $0x60] sm:$0xff]  ;;  %v1317_v45 = vld [vmem:[#allocation2 + $0x70] sm:$0xff]  ;;  %v1331_v19 = vadd.f32 %v1315_v43, %v2847_v56  ;;  %v1318_v46 = vld [vmem:[#allocation2 + $0x78] sm:$0xff] }
 0x1d4   : > { %1338 = vst [vmem:[#allocation2 + $0x58] sm:$0xff] %v1322_v29  ;;  %v1332_v25 = vadd.f32 %v1316_v44, %v2849_v0  ;;  %v1319_v49 = vld [vmem:[#allocation2 + $0x28] sm:$0xff]  ;;  %v1333_v32 = vadd.f32 %v1317_v45, %v2851_v8  ;;  %v1334_v50 = vadd.f32 %v1318_v46, %v2853_v14 }
 0x1d5   : > { %1339 = vst [vmem:[#allocation2 + $0x18] sm:$0xff] %v1323_v34  ;;  %v1335_v39 = vadd.f32 %v1319_v49, %v2855_v22 }
 0x1d6   : > { %1340 = vst [vmem:[#allocation2 + $0x50] sm:$0xff] %v1324_v36 }
 0x1d7   : > { %1341 = vst [vmem:[#allocation2 + $0x68] sm:$0xff] %v1325_v38 }
 0x1d8   : > { %1342 = vst [vmem:[#allocation2 + $0x8] sm:$0xff] %v1326_v41 }
 0x1d9   : > { %1343 = vst [vmem:[#allocation2 + $0x48] sm:$0xff] %v1327_v55 }
 0x1da   : > { %1344 = vst [vmem:[#allocation2 + $0x40] sm:$0xff] %v1328_v62 }
 0x1db   : > { %1345 = vst [vmem:[#allocation2 + $0x20] sm:$0xff] %v1329_v5 }
 0x1dc   : > { %1346 = vst [vmem:[#allocation2 + $0x10] sm:$0xff] %v1330_v12 }
 0x1dd   : > { %1347 = vst [vmem:[#allocation2 + $0x38] sm:$0xff] %v1331_v19 }
 0x1de   : > { %1348 = vst [vmem:[#allocation2 + $0x60] sm:$0xff] %v1332_v25 }
 0x1df   : > { %1349 = vst [vmem:[#allocation2 + $0x70] sm:$0xff] %v1333_v32 }
 0x1e0   : > { %1350 = vst [vmem:[#allocation2 + $0x78] sm:$0xff] %v1334_v50 }
 0x1e1   : > { %1351 = vst [vmem:[#allocation2 + $0x28] sm:$0xff] %v1335_v39 }
 0x1e2 PF: > { %p2070_p6 = scmp.ne.s32.totalorder %s2349_s21, 3 }
 0x1e4   : > { %1355 = sbr.rel (%p2070_p6) target bundleno = 636 (0x27c), region = 112 }
 0x1e9   : > { %v1356_v47 = vld [vmem:[#allocation2 + $0x30] sm:$0xff]  ;;  %v1357_v51 = vld [vmem:[#allocation2] sm:$0xff]  ;;  %v1358_v52 = vld [vmem:[#allocation2 + $0x58] sm:$0xff] }
 0x1ea   : > { %v1372_v53 = vadd.f32 %v1357_v51, %v1356_v47  ;;  %v1359_v54 = vld [vmem:[#allocation2 + $0x18] sm:$0xff]  ;;  %v1360_v57 = vld [vmem:[#allocation2 + $0x50] sm:$0xff]  ;;  %v1361_v59 = vld [vmem:[#allocation2 + $0x68] sm:$0xff] }
 0x1eb   : > { %v1362_v61 = vld [vmem:[#allocation2 + $0x8] sm:$0xff]  ;;  %v1364_v2 = vld [vmem:[#allocation2 + $0x40] sm:$0xff]  ;;  %v1366_v7 = vld [vmem:[#allocation2 + $0x10] sm:$0xff] }
 0x1ec   : > { %v1373_v56 = vadd.f32 %v1372_v53, %v1358_v52  ;;  %v1363_v0 = vld [vmem:[#allocation2 + $0x48] sm:$0xff]  ;;  %v1365_v4 = vld [vmem:[#allocation2 + $0x20] sm:$0xff]  ;;  %v1367_v9 = vld [vmem:[#allocation2 + $0x38] sm:$0xff] }
 0x1ed   : > { %v1368_v11 = vld [vmem:[#allocation2 + $0x60] sm:$0xff]  ;;  %v1369_v14 = vld [vmem:[#allocation2 + $0x70] sm:$0xff]  ;;  %v1370_v16 = vld [vmem:[#allocation2 + $0x78] sm:$0xff] }
 0x1ee   : > { %v1374_v58 = vadd.f32 %v1373_v56, %v1359_v54  ;;  %v1371_v18 = vld [vmem:[#allocation2 + $0x28] sm:$0xff] }
 0x1f0   : > { %v1375_v60 = vadd.f32 %v1374_v58, %v1360_v57 }
 0x1f2   : > { %v1376_v63 = vadd.f32 %v1375_v60, %v1361_v59 }
 0x1f4   : > { %v1377_v1 = vadd.f32 %v1376_v63, %v1362_v61 }
 0x1f6   : > { %v1378_v3 = vadd.f32 %v1377_v1, %v1363_v0 }
 0x1f8   : > { %v1379_v6 = vadd.f32 %v1378_v3, %v1364_v2 }
 0x1fa   : > { %v1380_v8 = vadd.f32 %v1379_v6, %v1365_v4 }
 0x1fc   : > { %v1381_v10 = vadd.f32 %v1380_v8, %v1366_v7 }
 0x1fe   : > { %v1382_v13 = vadd.f32 %v1381_v10, %v1367_v9 }
 0x200   : > { %v1383_v15 = vadd.f32 %v1382_v13, %v1368_v11 }
 0x202   : > { %v1384_v17 = vadd.f32 %v1383_v15, %v1369_v14 }
 0x204   : > { %v1385_v20 = vadd.f32 %v1384_v17, %v1370_v16 }
 0x206   : > { %v1386_v21 = vadd.f32 %v1385_v20, %v1371_v18 }
 0x208   : > { %v1387_v22 = vrot.slane %v1386_v21, 4 }
 0x20a   : > { %v1388_v23 = vadd.f32 %v1387_v22, %v1386_v21 }
 0x20c   : > { %v1389_v24 = vrot.slane %v1388_v23, 2 }
 0x20e   : > { %v1390_v26 = vadd.f32 %v1389_v24, %v1388_v23 }
 0x210   : > { %v1391_v27 = vrot.slane %v1390_v26, 1 }
 0x212   : > { %v1392_v28 = vadd.f32 %v1391_v27, %v1390_v26 }
 0x214   : > { %v1393_v29 = vmul.f32 0.0078125, %v1392_v28 }
 0x216   : > { %v2895_v30 = vsub.f32 %v1356_v47, %v1393_v29  ;;  %v2897_v31 = vsub.f32 %v1357_v51, %v1393_v29  ;;  %v2899_v33 = vsub.f32 %v1358_v52, %v1393_v29  ;;  %v2901_v34 = vsub.f32 %v1359_v54, %v1393_v29 }
 0x217   : > { %v2907_v37 = vsub.f32 %v1360_v57, %v1393_v29  ;;  %v2911_v40 = vsub.f32 %v1361_v59, %v1393_v29  ;;  %v2915_v55 = vsub.f32 %v1362_v61, %v1393_v29  ;;  %v2919_v43 = vsub.f32 %v1363_v0, %v1393_v29 }
 0x218   : > { %v1410_v35 = vmul.f32 %v2895_v30, %v2895_v30  ;;  %v1411_v36 = vmul.f32 %v2897_v31, %v2897_v31  ;;  %v1412_v38 = vmul.f32 %v2899_v33, %v2899_v33  ;;  %v1413_v41 = vmul.f32 %v2901_v34, %v2901_v34 }
 0x219   : > { %v1414_v42 = vmul.f32 %v2907_v37, %v2907_v37  ;;  %v1415_v5 = vmul.f32 %v2911_v40, %v2911_v40  ;;  %v2923_v12 = vsub.f32 %v1364_v2, %v1393_v29  ;;  %v1416_v45 = vmul.f32 %v2915_v55, %v2915_v55 }
 0x21a   : > { %v1426_v48 = vadd.f32 %v1411_v36, %v1410_v35  ;;  %v2927_v46 = vsub.f32 %v1365_v4, %v1393_v29  ;;  %v1417_v25 = vmul.f32 %v2919_v43, %v2919_v43  ;;  %v2931_v32 = vsub.f32 %v1366_v7, %v1393_v29 }
 0x21b   : > { %v1418_v50 = vmul.f32 %v2923_v12, %v2923_v12  ;;  %v2935_v47 = vsub.f32 %v1367_v9, %v1393_v29  ;;  %v2939_v53 = vsub.f32 %v1368_v11, %v1393_v29  ;;  %v2943_v57 = vsub.f32 %v1369_v14, %v1393_v29 }
 0x21c   : > { %v1427_v62 = vadd.f32 %v1426_v48, %v1412_v38  ;;  %v1419_v51 = vmul.f32 %v2927_v46, %v2927_v46  ;;  %v1420_v54 = vmul.f32 %v2931_v32, %v2931_v32  ;;  %v2947_v60 = vsub.f32 %v1370_v16, %v1393_v29  ;;  %v2971_v48 = vld [vmem:[%s635_s9] ss:$0 sm:$0xff] }
 0x21d   : > { %v1421_v58 = vmul.f32 %v2935_v47, %v2935_v47  ;;  %v1422_v61 = vmul.f32 %v2939_v53, %v2939_v53  ;;  %v2951_v0 = vsub.f32 %v1371_v18, %v1393_v29  ;;  %v1423_v1 = vmul.f32 %v2943_v57, %v2943_v57 }
 0x21e   : > { %v1428_v44 = vadd.f32 %v1427_v62, %v1413_v41  ;;  %v1424_v3 = vmul.f32 %v2947_v60, %v2947_v60  ;;  %v1447_v14 = vmul.f32 0.0, %v1393_v29 }
 0x21f   : > { %v1425_v6 = vmul.f32 %v2951_v0, %v2951_v0 }
 0x220   : > { %v1429_v19 = vadd.f32 %v1428_v44, %v1414_v42  ;;  %v1448_v17 = vmul.f32 %v1447_v14, %v1393_v29  ;;  %v1462_v29 = vld [vmem:[%s632_s30] sm:$0x1] }
 0x222   : > { %v1430_v49 = vadd.f32 %v1429_v19, %v1415_v5 }
 0x224   : > { %v1431_v39 = vadd.f32 %v1430_v49, %v1416_v45 }
 0x226   : > { %v1432_v52 = vadd.f32 %v1431_v39, %v1417_v25 }
 0x228   : > { %v1433_v56 = vadd.f32 %v1432_v52, %v1418_v50 }
 0x22a   : > { %v1434_v59 = vadd.f32 %v1433_v56, %v1419_v51 }
 0x22c   : > { %v1435_v63 = vadd.f32 %v1434_v59, %v1420_v54 }
 0x22e   : > { %v1436_v2 = vadd.f32 %v1435_v63, %v1421_v58 }
 0x230   : > { %v1437_v4 = vadd.f32 %v1436_v2, %v1422_v61 }
 0x232   : > { %v1438_v7 = vadd.f32 %v1437_v4, %v1423_v1 }
 0x234   : > { %v1439_v8 = vadd.f32 %v1438_v7, %v1424_v3 }
 0x236   : > { %v1440_v9 = vadd.f32 %v1439_v8, %v1425_v6 }
 0x238   : > { %v1441_v10 = vrot.slane %v1440_v9, 4 }
 0x23a   : > { %v1442_v11 = vadd.f32 %v1441_v10, %v1440_v9 }
 0x23c   : > { %v1443_v13 = vrot.slane %v1442_v11, 2 }
 0x23e   : > { %v1444_v15 = vadd.f32 %v1443_v13, %v1442_v11 }
 0x240   : > { %v1445_v16 = vrot.slane %v1444_v15, 1 }
 0x242   : > { %v1446_v18 = vadd.f32 %v1445_v16, %v1444_v15 }
 0x244   : > { %v1449_v20 = vsub.f32 %v1446_v18, %v1448_v17 }
 0x246   : > { %v1450_v21 = vmul.f32 0.0078125, %v1449_v20 }
 0x248   : > { %v1451_v22 = vadd.f32 1e-05, %v1450_v21 }
 0x24a   : > { %2277 = vrsqrt.f32 %v1451_v22  ;;  %vm1458_vm0 = vweird.f32 %v1451_v22 }
 0x250   : > { %v2278_v23 = vpop.eup %2277 }
 0x251   : > { %v1453_v24 = vmul.f32 %v2278_v23, %v1451_v22  ;;  %vm1459_vm1 = vweird.f32 %v2278_v23 }
 0x252   : > { %vm1460_vm2 = vmor %vm1458_vm0, %vm1459_vm1 }
 0x253   : > { %v1454_v26 = vmul.f32 %v2278_v23, %v1453_v24 }
 0x255   : > { %v1455_v27 = vmul.f32 0.5, %v1454_v26 }
 0x257   : > { %v1456_v28 = vsub.f32 1.5, %v1455_v27 }
 0x259   : > { %v1457_v35 = vmul.f32 %v2278_v23, %v1456_v28 }
 0x25b   : > { %v1461_v36 = vsel %vm1460_vm2, %v2278_v23, %v1457_v35 }
 0x25c   : > { %v1463_v38 = vmul.f32 %v1462_v29, %v1461_v36 }
 0x25e   : > { %v2964_v41 = vperm.slane %v1463_v38, 0 }
 0x260   : > { %v1465_v42 = vmul.f32 %v2964_v41, %v2895_v30  ;;  %v1466_v62 = vmul.f32 %v2964_v41, %v2897_v31  ;;  %v1467_v5 = vmul.f32 %v2964_v41, %v2899_v33  ;;  %v1468_v44 = vmul.f32 %v2964_v41, %v2901_v34 }
 0x261   : > { %v1469_v45 = vmul.f32 %v2964_v41, %v2907_v37  ;;  %v1470_v19 = vmul.f32 %v2964_v41, %v2911_v40  ;;  %v1471_v25 = vmul.f32 %v2964_v41, %v2915_v55  ;;  %v1472_v30 = vmul.f32 %v2964_v41, %v2919_v43 }
 0x262   : > { %v1485_v31 = vadd.f32 %v2971_v48, %v1465_v42  ;;  %v1486_v49 = vadd.f32 %v2971_v48, %v1466_v62  ;;  %v1487_v33 = vadd.f32 %v2971_v48, %v1467_v5  ;;  %v1488_v34 = vadd.f32 %v2971_v48, %v1468_v44 }
 0x263   : > { %v1489_v50 = vadd.f32 %v2971_v48, %v1469_v45  ;;  %v1490_v37 = vadd.f32 %v2971_v48, %v1470_v19  ;;  %v1491_v40 = vadd.f32 %v2971_v48, %v1471_v25  ;;  %v1492_v39 = vadd.f32 %v2971_v48, %v1472_v30 }
 0x264   : > { %vm1501_vm3 = vcmp.gt.f32.partialorder %v1485_v31, 0.0  ;;  %vm1502_vm4 = vcmp.gt.f32.partialorder %v1486_v49, 0.0  ;;  %v1517_v55 = vmul.f32 0.2, %v1485_v31  ;;  %v1518_v43 = vmul.f32 0.2, %v1486_v49 }
 0x265   : > { %vm1503_vm5 = vcmp.gt.f32.partialorder %v1487_v33, 0.0  ;;  %vm1504_vm6 = vcmp.gt.f32.partialorder %v1488_v34, 0.0  ;;  %v1519_v51 = vmul.f32 0.2, %v1487_v33  ;;  %v1520_v52 = vmul.f32 0.2, %v1488_v34 }
 0x266   : > { %v1533_v54 = vsel %vm1501_vm3, %v1485_v31, %v1517_v55  ;;  %v1534_v56 = vsel %vm1502_vm4, %v1486_v49, %v1518_v43  ;;  %vm1505_vm7 = vcmp.gt.f32.partialorder %v1489_v50, 0.0  ;;  %vm1506_vm8 = vcmp.gt.f32.partialorder %v1490_v37, 0.0 }
 0x267   : > { %v2144_v58 = vpack.c.bf16 %v1534_v56, %v1533_v54  ;;  %v1535_v59 = vsel %vm1503_vm5, %v1487_v33, %v1519_v51  ;;  %v1536_v61 = vsel %vm1504_vm6, %v1488_v34, %v1520_v52  ;;  %v1521_v63 = vmul.f32 0.2, %v1489_v50 }
 0x268   : > { %v2149_v1 = vpack.c.bf16 %v1536_v61, %v1535_v59  ;;  %v1522_v2 = vmul.f32 0.2, %v1490_v37  ;;  %vm1507_vm9 = vcmp.gt.f32.partialorder %v1491_v40, 0.0  ;;  %vm1508_vm10 = vcmp.gt.f32.partialorder %v1492_v39, 0.0 }
 0x269   : > { %2145 = vst [vmem:[%s2858_s11] sm:$0xff] %v2144_v58   ;;  %v1537_v3 = vsel %vm1505_vm7, %v1489_v50, %v1521_v63  ;;  %v1523_v4 = vmul.f32 0.2, %v1491_v40  ;;  %v1524_v6 = vmul.f32 0.2, %v1492_v39  ;;  %v1473_v7 = vmul.f32 %v2964_v41, %v2923_v12 }
 0x26a   : > { %2181 = vst [vmem:[%s2858_s11 + $0x8] sm:$0xff] %v2149_v1   ;;  %v1538_v8 = vsel %vm1506_vm8, %v1490_v37, %v1522_v2  ;;  %v1474_v9 = vmul.f32 %v2964_v41, %v2927_v46  ;;  %v1475_v10 = vmul.f32 %v2964_v41, %v2931_v32  ;;  %v1476_v11 = vmul.f32 %v2964_v41, %v2935_v47 }
 0x26b   : > { %v2154_v13 = vpack.c.bf16 %v1538_v8, %v1537_v3  ;;  %v1539_v14 = vsel %vm1507_vm9, %v1491_v40, %v1523_v4  ;;  %v1540_v15 = vsel %vm1508_vm10, %v1492_v39, %v1524_v6  ;;  %v1493_v16 = vadd.f32 %v2971_v48, %v1473_v7 }
 0x26c   : > { %v2159_v17 = vpack.c.bf16 %v1540_v15, %v1539_v14  ;;  %v1494_v12 = vadd.f32 %v2971_v48, %v1474_v9  ;;  %v1495_v18 = vadd.f32 %v2971_v48, %v1475_v10  ;;  %v1496_v20 = vadd.f32 %v2971_v48, %v1476_v11 }
 0x26d   : > { %2182 = vst [vmem:[%s2858_s11 + $0x10] sm:$0xff] %v2154_v13   ;;  %vm1509_vm11 = vcmp.gt.f32.partialorder %v1493_v16, 0.0  ;;  %v1525_v46 = vmul.f32 0.2, %v1493_v16  ;;  %v1477_v32 = vmul.f32 %v2964_v41, %v2939_v53  ;;  %v1478_v47 = vmul.f32 %v2964_v41, %v2943_v57 }
 0x26e   : > { %2183 = vst [vmem:[%s2858_s11 + $0x18] sm:$0xff] %v2159_v17   ;;  %vm1510_vm12 = vcmp.gt.f32.partialorder %v1494_v12, 0.0  ;;  %v1526_v21 = vmul.f32 0.2, %v1494_v12  ;;  %vm1511_vm13 = vcmp.gt.f32.partialorder %v1495_v18, 0.0  ;;  %vm1512_vm14 = vcmp.gt.f32.partialorder %v1496_v20, 0.0 }
 0x26f   : > { %v1541_v22 = vsel %vm1509_vm11, %v1493_v16, %v1525_v46  ;;  %v1527_v23 = vmul.f32 0.2, %v1495_v18  ;;  %v1528_v24 = vmul.f32 0.2, %v1496_v20  ;;  %v1497_v26 = vadd.f32 %v2971_v48, %v1477_v32 }
 0x270   : > { %v1542_v27 = vsel %vm1510_vm12, %v1494_v12, %v1526_v21  ;;  %v1498_v28 = vadd.f32 %v2971_v48, %v1478_v47  ;;  %v1479_v53 = vmul.f32 %v2964_v41, %v2947_v60  ;;  %v1480_v57 = vmul.f32 %v2964_v41, %v2951_v0 }
 0x271   : > { %v2164_v35 = vpack.c.bf16 %v1542_v27, %v1541_v22  ;;  %v1543_v29 = vsel %vm1511_vm13, %v1495_v18, %v1527_v23  ;;  %v1544_v36 = vsel %vm1512_vm14, %v1496_v20, %v1528_v24  ;;  %vm1513_vm15 = vcmp.gt.f32.partialorder %v1497_v26, 0.0 }
 0x272   : > { %v2169_v38 = vpack.c.bf16 %v1544_v36, %v1543_v29  ;;  %vm1514_vm0 = vcmp.gt.f32.partialorder %v1498_v28, 0.0  ;;  %v1529_v42 = vmul.f32 0.2, %v1497_v26  ;;  %v1530_v62 = vmul.f32 0.2, %v1498_v28 }
 0x273   : > { %2184 = vst [vmem:[%s2858_s11 + $0x20] sm:$0xff] %v2164_v35   ;;  %v1499_v5 = vadd.f32 %v2971_v48, %v1479_v53  ;;  %v1500_v44 = vadd.f32 %v2971_v48, %v1480_v57 }
 0x274   : > { %2185 = vst [vmem:[%s2858_s11 + $0x28] sm:$0xff] %v2169_v38   ;;  %v1545_v60 = vsel %vm1513_vm15, %v1497_v26, %v1529_v42  ;;  %v1546_v45 = vsel %vm1514_vm0, %v1498_v28, %v1530_v62 }
 0x275   : > { %v2174_v19 = vpack.c.bf16 %v1546_v45, %v1545_v60  ;;  %vm1515_vm1 = vcmp.gt.f32.partialorder %v1499_v5, 0.0  ;;  %vm1516_vm2 = vcmp.gt.f32.partialorder %v1500_v44, 0.0  ;;  %v1531_v0 = vmul.f32 0.2, %v1499_v5 }
 0x276   : > { %v1532_v41 = vmul.f32 0.2, %v1500_v44 }
 0x277   : > { %2186 = vst [vmem:[%s2858_s11 + $0x30] sm:$0xff] %v2174_v19   ;;  %v1547_v25 = vsel %vm1515_vm1, %v1499_v5, %v1531_v0 }
 0x278   : > { %v1548_v30 = vsel %vm1516_vm2, %v1500_v44, %v1532_v41 }
 0x279   : > { %v2179_v31 = vpack.c.bf16 %v1548_v30, %v1547_v25 }
 0x27b   : > { %2187 = vst [vmem:[%s2858_s11 + $0x38] sm:$0xff] %v2179_v31  }
 0x27c PF: > { %1587 = sbr.rel (!%p2486_p12) target bundleno = 654 (0x28e), region = 116  ;;  %s2072_s15 = sshll.u32 (%p2486_p12), %s2353_s22, 2  ;;  %v1606_v48 = vld [vmem:[%s2858_s11] sm:$0xf] (%p2486_p12)  ;;  %v1608_v49 = vld [vmem:[%s2858_s11 + $0x4] sm:$0xf] (%p2486_p12) }
 0x27d   : > { %s1589_s30 = scalar_lea.vmem (%p2486_p12), %s3088_s4, %s2072_s15  ;;  %v1610_v33 = vld [vmem:[%s2858_s11 + $0x8] sm:$0xf] (%p2486_p12)  ;;  %v1612_v34 = vld [vmem:[%s2858_s11 + $0xc] sm:$0xf] (%p2486_p12)  ;;  %v1614_v50 = vld [vmem:[%s2858_s11 + $0x10] sm:$0xf] (%p2486_p12) }
 0x27e   : > { %1607 = vst [vmem:[%s1589_s30] sm:$0xf] (%p2486_p12), %v1606_v48  ;;  %v1616_v37 = vld [vmem:[%s2858_s11 + $0x14] sm:$0xf] (%p2486_p12)  ;;  %v1618_v40 = vld [vmem:[%s2858_s11 + $0x18] sm:$0xf] (%p2486_p12) }
 0x27f   : > { %1609 = vst [vmem:[%s1589_s30 + $0x8] sm:$0xf] (%p2486_p12), %v1608_v49  ;;  %v1620_v39 = vld [vmem:[%s2858_s11 + $0x1c] sm:$0xf] (%p2486_p12)  ;;  %v1622_v55 = vld [vmem:[%s2858_s11 + $0x20] sm:$0xf] (%p2486_p12) }
 0x280   : > { %1611 = vst [vmem:[%s1589_s30 + $0x10] sm:$0xf] (%p2486_p12), %v1610_v33  ;;  %v1624_v43 = vld [vmem:[%s2858_s11 + $0x24] sm:$0xf] (%p2486_p12)  ;;  %v1626_v51 = vld [vmem:[%s2858_s11 + $0x28] sm:$0xf] (%p2486_p12) }
 0x281   : > { %1613 = vst [vmem:[%s1589_s30 + $0x18] sm:$0xf] %v1612_v34  ;;  %v1628_v52 = vld [vmem:[%s2858_s11 + $0x2c] sm:$0xf]  ;;  %v1630_v54 = vld [vmem:[%s2858_s11 + $0x30] sm:$0xf] }
 0x282   : > { %1615 = vst [vmem:[%s1589_s30 + $0x20] sm:$0xf] %v1614_v50  ;;  %v1632_v56 = vld [vmem:[%s2858_s11 + $0x34] sm:$0xf]  ;;  %v1634_v58 = vld [vmem:[%s2858_s11 + $0x38] sm:$0xf] }
 0x283   : > { %1617 = vst [vmem:[%s1589_s30 + $0x28] sm:$0xf] %v1616_v37  ;;  %v1636_v59 = vld [vmem:[%s2858_s11 + $0x3c] sm:$0xf] }
 0x284   : > { %1619 = vst [vmem:[%s1589_s30 + $0x30] sm:$0xf] %v1618_v40 }
 0x285   : > { %1621 = vst [vmem:[%s1589_s30 + $0x38] sm:$0xf] %v1620_v39 }
 0x286   : > { %1623 = vst [vmem:[%s1589_s30 + $0x40] sm:$0xf] %v1622_v55 }
 0x287   : > { %1625 = vst [vmem:[%s1589_s30 + $0x48] sm:$0xf] %v1624_v43 }
 0x288   : > { %1627 = vst [vmem:[%s1589_s30 + $0x50] sm:$0xf] %v1626_v51 }
 0x289   : > { %1629 = vst [vmem:[%s1589_s30 + $0x58] sm:$0xf] %v1628_v52 }
 0x28a   : > { %1631 = vst [vmem:[%s1589_s30 + $0x60] sm:$0xf] %v1630_v54 }
 0x28b   : > { %1633 = vst [vmem:[%s1589_s30 + $0x68] sm:$0xf] %v1632_v56 }
 0x28c   : > { %1635 = vst [vmem:[%s1589_s30 + $0x70] sm:$0xf] %v1634_v58 }
 0x28d   : > { %1637 = vst [vmem:[%s1589_s30 + $0x78] sm:$0xf] %v1636_v59 }
 0x28e PF: > { %s14_s25 = sadd.s32 1, %s2365_s25   ;;  %s3096_s14 = sld [smem:[#allocation6_spill]] }
 0x28f   : > { %p11_p7 = scmp.ge.s32.totalorder %s14_s25, 10   ;;  %s3097_s15 = smov %s2329_s16 }
 0x290   : > { %s3098_s16 = smov %s2484_s13  ;;  %s3099_s17 = smov %s2337_s18 }
 0x291   : > { %s3100_s18 = smov %s2481_s12  ;;  %s3101_s19 = smov %s2345_s20 }
 0x292   : > { %s3102_s20 = smov %s2467_s7  ;;  %s3103_s21 = smov %s2357_s23 }
 0x293   : > { %s3104_s22 = smov %s2361_s24  ;;  %s3105_s23 = smov %s3108_s27 }
 0x294   : > { %s3106_s24 = smov %s3096_s14  ;;  %13 = sbr.rel (!%p11_p7) target bundleno = 8 (0x8), region = 202 }

// kernel: color_discriminator.9
= control target key start
LH: loop header
LB: loop body
LE: loop exit
PB: predicated region body
PF: predicated region fallthrough
CT: control target
= control target key end

     0   :  { %vm127_vm0 = vcmask 1041409   ;;  %vm136_vm1 = vcmask 1041408   ;;  %s237_s0 = inlined_call_operand.vmem [shape: bf16[2,16,512], index: 0, kind: input, shape index: {}]   ;;  %s238_s1 = inlined_call_operand.vmem [shape: bf16[16,512], index: 1, kind: input, shape index: {}]   ;;  %s239_s2 = inlined_call_operand.vmem [shape: f32[2,128], index: 2, kind: output, shape index: {}]  }
   0x1   :  { %v11_v0 = vld [vmem:[%s237_s0] sm:$0xff]  ;;  %v12_v1 = vld [vmem:[%s237_s0 + $0x8] sm:$0xff]  ;;  %v13_v2 = vld [vmem:[%s237_s0 + $0x10] sm:$0xff] }
   0x2   :  { %v14_v3 = vld [vmem:[%s237_s0 + $0x18] sm:$0xff]  ;;  %v15_v4 = vld [vmem:[%s237_s0 + $0x20] sm:$0xff]  ;;  %v16_v5 = vld [vmem:[%s237_s0 + $0x28] sm:$0xff]  ;;  %v19_v6 = vunpack.c.l.bf16 %v11_v0  ;;  %v20_v7 = vunpack.c.h.bf16 %v11_v0  ;;  %v21_v8 = vunpack.c.l.bf16 %v12_v1  ;;  %v22_v9 = vunpack.c.h.bf16 %v12_v1 }
   0x3   :  { %v17_v10 = vld [vmem:[%s237_s0 + $0x30] sm:$0xff]  ;;  %v18_v11 = vld [vmem:[%s237_s0 + $0x38] sm:$0xff]  ;;  %v23_v12 = vunpack.c.l.bf16 %v13_v2  ;;  %v24_v13 = vunpack.c.h.bf16 %v13_v2  ;;  %v25_v14 = vunpack.c.l.bf16 %v14_v3  ;;  %v26_v15 = vunpack.c.h.bf16 %v14_v3  ;;  %v35_v16 = vld [vmem:[%s238_s1] sm:$0xff] }
   0x4   :  { %v27_v17 = vunpack.c.l.bf16 %v15_v4  ;;  %v28_v18 = vunpack.c.h.bf16 %v15_v4  ;;  %v29_v19 = vunpack.c.l.bf16 %v16_v5  ;;  %v30_v20 = vunpack.c.h.bf16 %v16_v5  ;;  %v36_v21 = vld [vmem:[%s238_s1 + $0x8] sm:$0xff]  ;;  %v37_v22 = vld [vmem:[%s238_s1 + $0x10] sm:$0xff]  ;;  %v38_v23 = vld [vmem:[%s238_s1 + $0x18] sm:$0xff] }
   0x5   :  { %v31_v24 = vunpack.c.l.bf16 %v17_v10  ;;  %v32_v25 = vunpack.c.h.bf16 %v17_v10  ;;  %v33_v26 = vunpack.c.l.bf16 %v18_v11  ;;  %v34_v27 = vunpack.c.h.bf16 %v18_v11 }
   0x6   :  { %v39_v28 = vunpack.c.l.bf16 %v35_v16  ;;  %v40_v29 = vunpack.c.h.bf16 %v35_v16  ;;  %v41_v30 = vunpack.c.l.bf16 %v36_v21  ;;  %v42_v31 = vunpack.c.h.bf16 %v36_v21 }
   0x7   :  { %v43_v32 = vunpack.c.l.bf16 %v37_v22  ;;  %v44_v33 = vunpack.c.h.bf16 %v37_v22  ;;  %v45_v34 = vunpack.c.l.bf16 %v38_v23  ;;  %v46_v35 = vunpack.c.h.bf16 %v38_v23 }
   0x8   :  { %v47_v36 = vmul.f32 %v39_v28, %v19_v6  ;;  %v48_v37 = vmul.f32 %v40_v29, %v20_v7  ;;  %v49_v38 = vmul.f32 %v41_v30, %v21_v8  ;;  %v50_v39 = vmul.f32 %v42_v31, %v22_v9 }
   0x9   :  { %v51_v40 = vmul.f32 %v43_v32, %v23_v12  ;;  %v52_v41 = vmul.f32 %v44_v33, %v24_v13  ;;  %v53_v42 = vmul.f32 %v45_v34, %v25_v14  ;;  %v54_v43 = vmul.f32 %v46_v35, %v26_v15 }
   0xa   :  { %v55_v44 = vmul.f32 %v39_v28, %v27_v17  ;;  %v56_v45 = vmul.f32 %v40_v29, %v28_v18  ;;  %v57_v46 = vmul.f32 %v41_v30, %v29_v19  ;;  %v58_v47 = vmul.f32 %v42_v31, %v30_v20 }
   0xb   :  { %v59_v48 = vmul.f32 %v43_v32, %v31_v24  ;;  %v60_v49 = vmul.f32 %v44_v33, %v32_v25  ;;  %v61_v50 = vmul.f32 %v45_v34, %v33_v26  ;;  %v62_v51 = vmul.f32 %v46_v35, %v34_v27 }
   0xc   :  { %v63_v52 = vadd.f32 %v51_v40, %v47_v36  ;;  %v70_v53 = vadd.f32 %v52_v41, %v48_v37  ;;  %v77_v54 = vadd.f32 %v53_v42, %v49_v38  ;;  %v84_v55 = vadd.f32 %v54_v43, %v50_v39 }
   0xd   :  { %v91_v56 = vadd.f32 %v59_v48, %v55_v44  ;;  %v98_v57 = vadd.f32 %v60_v49, %v56_v45  ;;  %v105_v58 = vadd.f32 %v61_v50, %v57_v46  ;;  %v112_v59 = vadd.f32 %v62_v51, %v58_v47 }
   0xe   :  { %v64_v60 = vrot.slane %v63_v52, 4  ;;  %v71_v61 = vrot.slane %v70_v53, 4  ;;  %v78_v62 = vrot.slane %v77_v54, 4  ;;  %v85_v63 = vrot.slane %v84_v55, 4 }
   0xf   :  { %v92_v0 = vrot.slane %v91_v56, 4  ;;  %v99_v1 = vrot.slane %v98_v57, 4  ;;  %v106_v2 = vrot.slane %v105_v58, 4  ;;  %v113_v3 = vrot.slane %v112_v59, 4 }
  0x10   :  { %v65_v4 = vadd.f32 %v64_v60, %v63_v52  ;;  %v72_v5 = vadd.f32 %v71_v61, %v70_v53  ;;  %v79_v6 = vadd.f32 %v78_v62, %v77_v54  ;;  %v86_v7 = vadd.f32 %v85_v63, %v84_v55 }
  0x11   :  { %v93_v8 = vadd.f32 %v92_v0, %v91_v56  ;;  %v100_v9 = vadd.f32 %v99_v1, %v98_v57  ;;  %v107_v10 = vadd.f32 %v106_v2, %v105_v58  ;;  %v114_v11 = vadd.f32 %v113_v3, %v112_v59 }
  0x12   :  { %v66_v12 = vrot.slane %v65_v4, 2  ;;  %v73_v13 = vrot.slane %v72_v5, 2  ;;  %v80_v14 = vrot.slane %v79_v6, 2  ;;  %v87_v15 = vrot.slane %v86_v7, 2 }
  0x13   :  { %v94_v16 = vrot.slane %v93_v8, 2  ;;  %v101_v17 = vrot.slane %v100_v9, 2  ;;  %v108_v18 = vrot.slane %v107_v10, 2  ;;  %v115_v19 = vrot.slane %v114_v11, 2 }
  0x14   :  { %v67_v20 = vadd.f32 %v66_v12, %v65_v4  ;;  %v74_v21 = vadd.f32 %v73_v13, %v72_v5  ;;  %v81_v22 = vadd.f32 %v80_v14, %v79_v6  ;;  %v88_v23 = vadd.f32 %v87_v15, %v86_v7 }
  0x15   :  { %v95_v24 = vadd.f32 %v94_v16, %v93_v8  ;;  %v102_v25 = vadd.f32 %v101_v17, %v100_v9  ;;  %v109_v26 = vadd.f32 %v108_v18, %v107_v10  ;;  %v116_v27 = vadd.f32 %v115_v19, %v114_v11 }
  0x16   :  { %v68_v28 = vrot.slane %v67_v20, 1  ;;  %v75_v29 = vrot.slane %v74_v21, 1  ;;  %v82_v30 = vrot.slane %v81_v22, 1  ;;  %v89_v31 = vrot.slane %v88_v23, 1 }
  0x17   :  { %v96_v32 = vrot.slane %v95_v24, 1  ;;  %v103_v33 = vrot.slane %v102_v25, 1  ;;  %v110_v34 = vrot.slane %v109_v26, 1  ;;  %v117_v35 = vrot.slane %v116_v27, 1 }
  0x18   :  { %v69_v36 = vadd.f32 %v68_v28, %v67_v20  ;;  %v76_v37 = vadd.f32 %v75_v29, %v74_v21  ;;  %v83_v38 = vadd.f32 %v82_v30, %v81_v22  ;;  %v90_v39 = vadd.f32 %v89_v31, %v88_v23 }
  0x19   :  { %v97_v40 = vadd.f32 %v96_v32, %v95_v24  ;;  %v104_v41 = vadd.f32 %v103_v33, %v102_v25  ;;  %v111_v42 = vadd.f32 %v110_v34, %v109_v26  ;;  %v118_v43 = vadd.f32 %v117_v35, %v116_v27 }
  0x1b   :  { %v128_v44 = vsel %vm127_vm0, %v97_v40, %v69_v36  ;;  %v129_v45 = vsel %vm127_vm0, %v104_v41, %v76_v37  ;;  %v130_v46 = vsel %vm127_vm0, %v111_v42, %v83_v38  ;;  %v131_v47 = vsel %vm127_vm0, %v118_v43, %v90_v39 }
  0x1c   :  { %v137_v48 = vsel %vm136_vm1, %v128_v44, 0.0  ;;  %v138_v49 = vsel %vm136_vm1, %v129_v45, 0.0  ;;  %v140_v50 = vsel %vm136_vm1, %v130_v46, 0.0  ;;  %v142_v52 = vsel %vm136_vm1, %v131_v47, 0.0 }
  0x1d   :  { %v139_v51 = vadd.f32 %v138_v49, %v137_v48 }
  0x1f   :  { %v141_v53 = vadd.f32 %v140_v50, %v139_v51 }
  0x21   :  { %v143_v54 = vadd.f32 %v142_v52, %v141_v53 }
  0x23   :  { %144 = vadd.xlane.f32.xlu0 %v143_v54 }
  0x96   :  { %v145_v55 = vpop.xlane.xlu0 %144 }
  0x97   :  { %v170_v56 = vmul.f32 -1.442695, %v145_v55 }
  0x99   :  { %171 = vpow2.f32 %v170_v56 }
  0x9f   :  { %v172_v57 = vpop.eup %171 }
  0xa0   :  { %v149_v58 = vadd.f32 1.0, %v172_v57 }
  0xa2   :  { %173 = vrcp.f32 %v149_v58  ;;  %v161_v62 = vand.u32 2147483648, %v149_v58  ;;  %v159_v0 = vand.u32 2147483647, %v149_v58  ;;  %vm155_vm3 = vweird.f32 %v149_v58 }
  0xa4   :  { %v162_v2 = vor.u32 1.1754944e-38, %v161_v62  ;;  %vm160_vm5 = vcmp.eq.f32.partialorder %v159_v0, 8.507059e+37 }
  0xa8   :  { %v174_v59 = vpop.eup %173 }
  0xa9   :  { %v151_v60 = vmul.f32 %v174_v59, %v149_v58  ;;  %vm156_vm2 = vweird.f32 %v174_v59 }
  0xaa   :  { %vm157_vm4 = vmor %vm155_vm3, %vm156_vm2 }
  0xab   :  { %v152_v61 = vsub.f32 1.0, %v151_v60 }
  0xad   :  { %v153_v63 = vmul.f32 %v174_v59, %v152_v61 }
  0xaf   :  { %v154_v1 = vadd.f32 %v174_v59, %v153_v63 }
  0xb1   :  { %v158_v3 = vsel %vm157_vm4, %v174_v59, %v154_v1 }
  0xb2   :  { %v163_v4 = vsel %vm160_vm5, %v162_v2, %v158_v3 }
  0xb3   :  { %165 = vst [vmem:[%s239_s2] sm:$0x3] %v163_v4 }

// kernel: color_discriminator.8
= control target key start
LH: loop header
LB: loop body
LE: loop exit
PB: predicated region body
PF: predicated region fallthrough
CT: control target
= control target key end

     0   :  { %s2676_s0 = inlined_call_operand.vmem [shape: bf16[32,4096], index: 0, kind: input, shape index: {}]   ;;  %s2677_s1 = inlined_call_operand.vmem [shape: bf16[4096,512], index: 1, kind: input, shape index: {}]   ;;  %s2678_s2 = inlined_call_operand.vmem [shape: f32[1,512], index: 2, kind: input, shape index: {}]   ;;  %s2679_s3 = inlined_call_operand.vmem [shape: f32[1,512], index: 3, kind: input, shape index: {}]   ;;  %s2680_s4 = inlined_call_operand.vmem [shape: bf16[32,512], index: 4, kind: output, shape index: {}]  }
   0x1   :  { %2682 = sst [smem:[#allocation7_spill]] %s2676_s0 }
   0x2   :  { %s2133_s15 = smov 0   ;;  %s2135_s16 = smov 0  }
   0x3   :  { %s2137_s17 = smov 0   ;;  %s2139_s18 = smov 0  }
   0x4   :  { %s2141_s19 = smov 0   ;;  %s2143_s20 = smov 0  }
   0x5   :  { %s2145_s21 = smov 0   ;;  %s2147_s22 = smov 0  }
   0x6   :  { %s2149_s23 = smov 0   ;;  %s2151_s24 = smov 0  }
   0x7   :  { %s2153_s25 = smov 0  }
   0x8 LB: > { %s1539_s26 = sadd.s32 4294967295, %s2106_s25   ;;  %s23_s27 = sadd.s32 1, %s2098_s23  ;;  %s2106_s25 = sphi %s2153_s25, %s14_s25   ;;  %s2102_s24 = sphi %s2151_s24, %s2698_s24   ;;  %s2098_s23 = sphi %s2149_s23, %s2697_s23   ;;  %s2094_s22 = sphi %s2147_s22, %s2696_s22   ;;  %s2090_s21 = sphi %s2145_s21, %s2695_s21   ;;  %s2086_s20 = sphi %s2143_s20, %s2694_s20   ;;  %s2082_s19 = sphi %s2141_s19, %s2693_s19   ;;  %s2078_s18 = sphi %s2139_s18, %s2692_s18   ;;  %s2074_s17 = sphi %s2137_s17, %s2691_s17   ;;  %s2070_s16 = sphi %s2135_s16, %s2690_s16   ;;  %s2066_s15 = sphi %s2133_s15, %s2689_s15  }
   0x9   : > { %p24_p0 = scmp.ge.s32.totalorder %s23_s27, 8  ;;  %s26_s28 = sadd.s32 1, %s2102_s24 }
   0xa   : > { %s33_s29 = sadd.s32 1, %s2086_s20  ;;  %p40_p1 = scmp.ne.s32.totalorder %s2086_s20, %s2082_s19 }
   0xb   : > { %s2700_s27 = smov (%p24_p0, %s23_s27), 0  ;;  %s2702_s28 = smov (!%p24_p0, %s26_s28), %s2102_s24 }
   0xc   : > { %s30_s30 = ssub.s32 %s2098_s23, %s2700_s27  ;;  %p41_p2 = scmp.eq.s32.totalorder %s2106_s25, 0 }
   0xd   : > { %p28_p3 = scmp.ge.s32.totalorder %s2702_s28, 2  ;;  %p31_p4 = scmp.eq.s32.totalorder %s30_s30, 0 }
   0xe   : > { %p2200_p5 = por %p41_p2, %p40_p1  ;;  %s61_s6 = sadd.s32 1, %s2078_s18 }
   0xf   : > { %s2704_s28 = smov (%p28_p3, %s2702_s28), 0  ;;  %p68_p6 = scmp.ne.s32.totalorder %s2078_s18, %s2074_s17 }
  0x10   : > { %2684 = sst [smem:[#allocation6_spill]] %s2704_s28  ;;  %s57_s8 = ssub.s32 %s2102_s24, %s2704_s28 }
  0x11   : > { %s2208_s7 = scalar_select %p31_p4, %s2086_s20, %s33_s29  }
  0x12   : > { %s58_s9 = sor.u32 %s57_s8, %s30_s30  ;;  %p137_p7 = scmp.eq.s32.totalorder %s57_s8, 0 }
  0x13   : > { %p59_p8 = scmp.eq.s32.totalorder %s58_s9, 0  ;;  %p2214_p9 = por %p68_p6, %p41_p2 }
  0x14   : > { %s139_s11 = sadd.s32 1, %s2070_s16  ;;  %p149_p10 = scmp.ne.s32.totalorder %s2070_s16, %s2066_s15 }
  0x15   : > { %s2222_s12 = scalar_select %p59_p8, %s2078_s18, %s61_s6  }
  0x16   : > { %s2225_s13 = scalar_select %p137_p7, %s2070_s16, %s139_s11  }
  0x17   : > { %p150_p11 = scmp.eq.s32.totalorder %s1539_s26, 15  ;;  %p1542_p13 = scmp.ge.s32.totalorder %s2106_s25, 16 }
  0x19   : > { %p2227_p12 = por %p150_p11, %p149_p10  ;;  %172 = sbr.rel (%p1542_p13) target bundleno = 119 (0x77), region = 16 }
  0x1e   : > { %175 = sbr.rel (!%p2200_p5) target bundleno = 48 (0x30), region = 20  ;;  %s177_s29 = sand.u32 (%p2200_p5), 1, %s2086_s20  }
  0x1f   : > { %s1853_s30 = sshll.u32 (%p2200_p5), %s2098_s23, 4  ;;  %s1543_s8 = sshll.u32 (%p2200_p5), %s177_s29, 6 }
  0x20   : > { %s2687_s0 = sld [smem:[#allocation7_spill]] (%p2200_p5)  ;;  %s179_s26 = scalar_lea.vmem (%p2200_p5), [#allocation3], %s1543_s8 }
  0x26   : > { %s182_s11 = scalar_lea.vmem %s2687_s0, %s1853_s30 }
  0x27   : > { %v195_v0 = vld [vmem:[%s182_s11] sm:$0xff]  ;;  %v197_v1 = vld [vmem:[%s182_s11 + $0x8] sm:$0xff] }
  0x28   : > { %v199_v2 = vld [vmem:[%s182_s11 + $0x80] sm:$0xff]  ;;  %196 = vst [vmem:[%s179_s26] sm:$0xff] %v195_v0  ;;  %v201_v3 = vld [vmem:[%s182_s11 + $0x88] sm:$0xff] }
  0x29   : > { %198 = vst [vmem:[%s179_s26 + $0x8] sm:$0xff] %v197_v1  ;;  %v203_v4 = vld [vmem:[%s182_s11 + $0x100] sm:$0xff]  ;;  %v205_v5 = vld [vmem:[%s182_s11 + $0x108] sm:$0xff] }
  0x2a   : > { %200 = vst [vmem:[%s179_s26 + $0x10] sm:$0xff] %v199_v2  ;;  %v207_v6 = vld [vmem:[%s182_s11 + $0x180] sm:$0xff]  ;;  %v209_v7 = vld [vmem:[%s182_s11 + $0x188] sm:$0xff] }
  0x2b   : > { %202 = vst [vmem:[%s179_s26 + $0x18] sm:$0xff] %v201_v3 }
  0x2c   : > { %204 = vst [vmem:[%s179_s26 + $0x20] sm:$0xff] %v203_v4 }
  0x2d   : > { %206 = vst [vmem:[%s179_s26 + $0x28] sm:$0xff] %v205_v5 }
  0x2e   : > { %208 = vst [vmem:[%s179_s26 + $0x30] sm:$0xff] %v207_v6 }
  0x2f   : > { %210 = vst [vmem:[%s179_s26 + $0x38] sm:$0xff] %v209_v7 }
  0x30 PF: > { %216 = sbr.rel (!%p2214_p9) target bundleno = 119 (0x77), region = 43  ;;  %s218_s5 = sand.u32 (%p2214_p9), 1, %s2078_s18  }
  0x31   : > { %s1548_s29 = sshll.u32 (%p2214_p9), %s2102_s24, 1  ;;  %s1546_s30 = sshll.u32 (%p2214_p9), %s218_s5, 9 }
  0x32   : > { %s1854_s8 = sshll.u32 (%p2214_p9), %s2098_s23, 8  ;;  %s2252_s10 = scalar_lea.vmem (%p2214_p9), [#allocation4], %s1546_s30 }
  0x33   : > { %s224_s6 = sadd.s32 (%p2214_p9), %s1854_s8, %s1548_s29 }
  0x34   : > { %s1550_s9 = sshll.u32 (%p2214_p9), %s224_s6, 2 }
  0x35   : > { %s2247_s11 = scalar_lea.vmem %s2677_s1, %s1550_s9 }
  0x36   : > { %v381_v8 = vld [vmem:[%s2247_s11] sm:$0xff]  ;;  %v383_v9 = vld [vmem:[%s2247_s11 + $0x10] sm:$0xff] }
  0x37   : > { %v385_v10 = vld [vmem:[%s2247_s11 + $0x20] sm:$0xff]  ;;  %382 = vst [vmem:[%s2252_s10] sm:$0xff] %v381_v8  ;;  %v387_v11 = vld [vmem:[%s2247_s11 + $0x30] sm:$0xff] }
  0x38   : > { %384 = vst [vmem:[%s2252_s10 + $0x8] sm:$0xff] %v383_v9  ;;  %v389_v12 = vld [vmem:[%s2247_s11 + $0x40] sm:$0xff]  ;;  %v391_v13 = vld [vmem:[%s2247_s11 + $0x50] sm:$0xff] }
  0x39   : > { %386 = vst [vmem:[%s2252_s10 + $0x10] sm:$0xff] %v385_v10  ;;  %v393_v14 = vld [vmem:[%s2247_s11 + $0x60] sm:$0xff]  ;;  %v395_v15 = vld [vmem:[%s2247_s11 + $0x70] sm:$0xff] }
  0x3a   : > { %388 = vst [vmem:[%s2252_s10 + $0x18] sm:$0xff] %v387_v11  ;;  %v397_v16 = vld [vmem:[%s2247_s11 + $0x80] sm:$0xff]  ;;  %v399_v17 = vld [vmem:[%s2247_s11 + $0x90] sm:$0xff] }
  0x3b   : > { %390 = vst [vmem:[%s2252_s10 + $0x20] sm:$0xff] %v389_v12  ;;  %v401_v18 = vld [vmem:[%s2247_s11 + $0xa0] sm:$0xff]  ;;  %v403_v19 = vld [vmem:[%s2247_s11 + $0xb0] sm:$0xff] }
  0x3c   : > { %392 = vst [vmem:[%s2252_s10 + $0x28] sm:$0xff] %v391_v13  ;;  %v405_v20 = vld [vmem:[%s2247_s11 + $0xc0] sm:$0xff]  ;;  %v407_v21 = vld [vmem:[%s2247_s11 + $0xd0] sm:$0xff] }
  0x3d   : > { %394 = vst [vmem:[%s2252_s10 + $0x30] sm:$0xff] %v393_v14  ;;  %v409_v22 = vld [vmem:[%s2247_s11 + $0xe0] sm:$0xff]  ;;  %v411_v23 = vld [vmem:[%s2247_s11 + $0xf0] sm:$0xff] }
  0x3e   : > { %396 = vst [vmem:[%s2252_s10 + $0x38] sm:$0xff] %v395_v15  ;;  %v413_v24 = vld [vmem:[%s2247_s11 + $0x100] sm:$0xff]  ;;  %v415_v25 = vld [vmem:[%s2247_s11 + $0x110] sm:$0xff] }
  0x3f   : > { %398 = vst [vmem:[%s2252_s10 + $0x40] sm:$0xff] %v397_v16  ;;  %v417_v26 = vld [vmem:[%s2247_s11 + $0x120] sm:$0xff]  ;;  %v419_v27 = vld [vmem:[%s2247_s11 + $0x130] sm:$0xff] }
  0x40   : > { %400 = vst [vmem:[%s2252_s10 + $0x48] sm:$0xff] %v399_v17  ;;  %v421_v28 = vld [vmem:[%s2247_s11 + $0x140] sm:$0xff]  ;;  %v423_v29 = vld [vmem:[%s2247_s11 + $0x150] sm:$0xff] }
  0x41   : > { %402 = vst [vmem:[%s2252_s10 + $0x50] sm:$0xff] %v401_v18  ;;  %v425_v30 = vld [vmem:[%s2247_s11 + $0x160] sm:$0xff]  ;;  %v427_v31 = vld [vmem:[%s2247_s11 + $0x170] sm:$0xff] }
  0x42   : > { %404 = vst [vmem:[%s2252_s10 + $0x58] sm:$0xff] %v403_v19  ;;  %v429_v32 = vld [vmem:[%s2247_s11 + $0x180] sm:$0xff]  ;;  %v431_v33 = vld [vmem:[%s2247_s11 + $0x190] sm:$0xff] }
  0x43   : > { %406 = vst [vmem:[%s2252_s10 + $0x60] sm:$0xff] %v405_v20  ;;  %v433_v34 = vld [vmem:[%s2247_s11 + $0x1a0] sm:$0xff]  ;;  %v435_v35 = vld [vmem:[%s2247_s11 + $0x1b0] sm:$0xff] }
  0x44   : > { %408 = vst [vmem:[%s2252_s10 + $0x68] sm:$0xff] %v407_v21  ;;  %v437_v36 = vld [vmem:[%s2247_s11 + $0x1c0] sm:$0xff]  ;;  %v439_v37 = vld [vmem:[%s2247_s11 + $0x1d0] sm:$0xff] }
  0x45   : > { %410 = vst [vmem:[%s2252_s10 + $0x70] sm:$0xff] %v409_v22  ;;  %v441_v38 = vld [vmem:[%s2247_s11 + $0x1e0] sm:$0xff]  ;;  %v443_v39 = vld [vmem:[%s2247_s11 + $0x1f0] sm:$0xff] }
  0x46   : > { %412 = vst [vmem:[%s2252_s10 + $0x78] sm:$0xff] %v411_v23  ;;  %v445_v40 = vld [vmem:[%s2247_s11 + $0x200] sm:$0xff]  ;;  %v447_v41 = vld [vmem:[%s2247_s11 + $0x210] sm:$0xff] }
  0x47   : > { %414 = vst [vmem:[%s2252_s10 + $0x80] sm:$0xff] %v413_v24  ;;  %v449_v42 = vld [vmem:[%s2247_s11 + $0x220] sm:$0xff]  ;;  %v451_v43 = vld [vmem:[%s2247_s11 + $0x230] sm:$0xff] }
  0x48   : > { %416 = vst [vmem:[%s2252_s10 + $0x88] sm:$0xff] %v415_v25  ;;  %v453_v44 = vld [vmem:[%s2247_s11 + $0x240] sm:$0xff]  ;;  %v455_v45 = vld [vmem:[%s2247_s11 + $0x250] sm:$0xff] }
  0x49   : > { %418 = vst [vmem:[%s2252_s10 + $0x90] sm:$0xff] %v417_v26  ;;  %v457_v46 = vld [vmem:[%s2247_s11 + $0x260] sm:$0xff]  ;;  %v459_v47 = vld [vmem:[%s2247_s11 + $0x270] sm:$0xff] }
  0x4a   : > { %420 = vst [vmem:[%s2252_s10 + $0x98] sm:$0xff] %v419_v27  ;;  %v461_v48 = vld [vmem:[%s2247_s11 + $0x280] sm:$0xff]  ;;  %v463_v49 = vld [vmem:[%s2247_s11 + $0x290] sm:$0xff] }
  0x4b   : > { %422 = vst [vmem:[%s2252_s10 + $0xa0] sm:$0xff] %v421_v28  ;;  %v465_v50 = vld [vmem:[%s2247_s11 + $0x2a0] sm:$0xff]  ;;  %v467_v51 = vld [vmem:[%s2247_s11 + $0x2b0] sm:$0xff] }
  0x4c   : > { %424 = vst [vmem:[%s2252_s10 + $0xa8] sm:$0xff] %v423_v29  ;;  %v469_v52 = vld [vmem:[%s2247_s11 + $0x2c0] sm:$0xff]  ;;  %v471_v53 = vld [vmem:[%s2247_s11 + $0x2d0] sm:$0xff] }
  0x4d   : > { %426 = vst [vmem:[%s2252_s10 + $0xb0] sm:$0xff] %v425_v30  ;;  %v473_v54 = vld [vmem:[%s2247_s11 + $0x2e0] sm:$0xff]  ;;  %v475_v55 = vld [vmem:[%s2247_s11 + $0x2f0] sm:$0xff] }
  0x4e   : > { %428 = vst [vmem:[%s2252_s10 + $0xb8] sm:$0xff] %v427_v31  ;;  %v477_v56 = vld [vmem:[%s2247_s11 + $0x300] sm:$0xff]  ;;  %v479_v57 = vld [vmem:[%s2247_s11 + $0x310] sm:$0xff] }
  0x4f   : > { %430 = vst [vmem:[%s2252_s10 + $0xc0] sm:$0xff] %v429_v32  ;;  %v481_v58 = vld [vmem:[%s2247_s11 + $0x320] sm:$0xff]  ;;  %v483_v59 = vld [vmem:[%s2247_s11 + $0x330] sm:$0xff] }
  0x50   : > { %432 = vst [vmem:[%s2252_s10 + $0xc8] sm:$0xff] %v431_v33  ;;  %v485_v60 = vld [vmem:[%s2247_s11 + $0x340] sm:$0xff]  ;;  %v487_v61 = vld [vmem:[%s2247_s11 + $0x350] sm:$0xff] }
  0x51   : > { %434 = vst [vmem:[%s2252_s10 + $0xd0] sm:$0xff] %v433_v34  ;;  %v489_v62 = vld [vmem:[%s2247_s11 + $0x360] sm:$0xff]  ;;  %v491_v63 = vld [vmem:[%s2247_s11 + $0x370] sm:$0xff] }
  0x52   : > { %436 = vst [vmem:[%s2252_s10 + $0xd8] sm:$0xff] %v435_v35  ;;  %v493_v0 = vld [vmem:[%s2247_s11 + $0x380] sm:$0xff]  ;;  %v495_v1 = vld [vmem:[%s2247_s11 + $0x390] sm:$0xff] }
  0x53   : > { %438 = vst [vmem:[%s2252_s10 + $0xe0] sm:$0xff] %v437_v36  ;;  %v497_v2 = vld [vmem:[%s2247_s11 + $0x3a0] sm:$0xff]  ;;  %v499_v3 = vld [vmem:[%s2247_s11 + $0x3b0] sm:$0xff] }
  0x54   : > { %440 = vst [vmem:[%s2252_s10 + $0xe8] sm:$0xff] %v439_v37  ;;  %v501_v4 = vld [vmem:[%s2247_s11 + $0x3c0] sm:$0xff]  ;;  %v503_v5 = vld [vmem:[%s2247_s11 + $0x3d0] sm:$0xff] }
  0x55   : > { %442 = vst [vmem:[%s2252_s10 + $0xf0] sm:$0xff] %v441_v38  ;;  %v505_v6 = vld [vmem:[%s2247_s11 + $0x3e0] sm:$0xff]  ;;  %v507_v7 = vld [vmem:[%s2247_s11 + $0x3f0] sm:$0xff] }
  0x56   : > { %444 = vst [vmem:[%s2252_s10 + $0xf8] sm:$0xff] %v443_v39 }
  0x57   : > { %446 = vst [vmem:[%s2252_s10 + $0x100] sm:$0xff] %v445_v40 }
  0x58   : > { %448 = vst [vmem:[%s2252_s10 + $0x108] sm:$0xff] %v447_v41 }
  0x59   : > { %450 = vst [vmem:[%s2252_s10 + $0x110] sm:$0xff] %v449_v42 }
  0x5a   : > { %452 = vst [vmem:[%s2252_s10 + $0x118] sm:$0xff] %v451_v43 }
  0x5b   : > { %454 = vst [vmem:[%s2252_s10 + $0x120] sm:$0xff] %v453_v44 }
  0x5c   : > { %456 = vst [vmem:[%s2252_s10 + $0x128] sm:$0xff] %v455_v45 }
  0x5d   : > { %458 = vst [vmem:[%s2252_s10 + $0x130] sm:$0xff] %v457_v46 }
  0x5e   : > { %460 = vst [vmem:[%s2252_s10 + $0x138] sm:$0xff] %v459_v47 }
  0x5f   : > { %462 = vst [vmem:[%s2252_s10 + $0x140] sm:$0xff] %v461_v48 }
  0x60   : > { %464 = vst [vmem:[%s2252_s10 + $0x148] sm:$0xff] %v463_v49 }
  0x61   : > { %466 = vst [vmem:[%s2252_s10 + $0x150] sm:$0xff] %v465_v50 }
  0x62   : > { %468 = vst [vmem:[%s2252_s10 + $0x158] sm:$0xff] %v467_v51 }
  0x63   : > { %470 = vst [vmem:[%s2252_s10 + $0x160] sm:$0xff] %v469_v52 }
  0x64   : > { %472 = vst [vmem:[%s2252_s10 + $0x168] sm:$0xff] %v471_v53 }
  0x65   : > { %474 = vst [vmem:[%s2252_s10 + $0x170] sm:$0xff] %v473_v54 }
  0x66   : > { %476 = vst [vmem:[%s2252_s10 + $0x178] sm:$0xff] %v475_v55 }
  0x67   : > { %478 = vst [vmem:[%s2252_s10 + $0x180] sm:$0xff] %v477_v56 }
  0x68   : > { %480 = vst [vmem:[%s2252_s10 + $0x188] sm:$0xff] %v479_v57 }
  0x69   : > { %482 = vst [vmem:[%s2252_s10 + $0x190] sm:$0xff] %v481_v58 }
  0x6a   : > { %484 = vst [vmem:[%s2252_s10 + $0x198] sm:$0xff] %v483_v59 }
  0x6b   : > { %486 = vst [vmem:[%s2252_s10 + $0x1a0] sm:$0xff] %v485_v60 }
  0x6c   : > { %488 = vst [vmem:[%s2252_s10 + $0x1a8] sm:$0xff] %v487_v61 }
  0x6d   : > { %490 = vst [vmem:[%s2252_s10 + $0x1b0] sm:$0xff] %v489_v62 }
  0x6e   : > { %492 = vst [vmem:[%s2252_s10 + $0x1b8] sm:$0xff] %v491_v63 }
  0x6f   : > { %494 = vst [vmem:[%s2252_s10 + $0x1c0] sm:$0xff] %v493_v0 }
  0x70   : > { %496 = vst [vmem:[%s2252_s10 + $0x1c8] sm:$0xff] %v495_v1 }
  0x71   : > { %498 = vst [vmem:[%s2252_s10 + $0x1d0] sm:$0xff] %v497_v2 }
  0x72   : > { %500 = vst [vmem:[%s2252_s10 + $0x1d8] sm:$0xff] %v499_v3 }
  0x73   : > { %502 = vst [vmem:[%s2252_s10 + $0x1e0] sm:$0xff] %v501_v4 }
  0x74   : > { %504 = vst [vmem:[%s2252_s10 + $0x1e8] sm:$0xff] %v503_v5 }
  0x75   : > { %506 = vst [vmem:[%s2252_s10 + $0x1f0] sm:$0xff] %v505_v6 }
  0x76   : > { %508 = vst [vmem:[%s2252_s10 + $0x1f8] sm:$0xff] %v507_v7 }
  0x77 PF: > { %p1551_p0 = scmp.ge.s32.totalorder %s2106_s25, 1  ;;  %p529_p1 = scmp.lt.s32.totalorder %s2106_s25, 17 }
  0x79   : > { %p530_p2 = pnand %p1551_p0, %p529_p1 }
  0x7a   : > { %s543_s0 = sand.u32 (!%p530_p2), 1, %s2074_s17   ;;  %s576_s28 = sand.u32 (!%p530_p2), 1, %s2066_s15  }
  0x7b   : > { %533 = sbr.rel (%p530_p2) target bundleno = 482 (0x1e2), region = 89  ;;  %s1553_s26 = sshll.u32 (!%p530_p2), %s543_s0, 9 }
  0x7c   : > { %s2383_s5 = sshll.u32 (!%p530_p2), %s576_s28, 5  ;;  %s1555_s29 = sshll.u32 (!%p530_p2), %s2094_s22, 1 }
  0x7d   : > { %s2386_s30 = scalar_lea.vmem (!%p530_p2), [#allocation4], %s1553_s26  ;;  %p583_p3 = scmp.lt.s32.totalorder (!%p530_p2), %s1555_s29, 3 }
  0x7e   : > { %s536_s10 = sand.u32 (!%p530_p2), 1, %s2082_s19   ;;  %s2572_s28 = scalar_lea.vmem (!%p530_p2), [#allocation5], %s2383_s5 }
  0x7f   : > { %s1552_s19 = sshll.u32 (!%p530_p2), %s536_s10, 6  ;;  %p1845_p4 = scmp.ne.s32.totalorder (!%p530_p2), %s2090_s21, 0 }
  0x80   : > { %v1647_v8 = vld [vmem:[%s2386_s30 + $0x70] sm:$0xf]  ;;  %v1878_v9 = vld [vmem:[%s2386_s30 + $0x74] sm:$0xf0]  ;;  %s2706_s29 = smov (!%p583_p3, %s1555_s29), 3  ;;  %s2463_s0 = scalar_lea.vmem [#allocation3], %s1552_s19 }
  0x81   : > { %v1648_v10 = vor.u32 %v1878_v9, %v1647_v8  ;;  %v1711_v11 = vld [vmem:[%s2386_s30 + $0xf0] sm:$0xf]  ;;  %v1894_v12 = vld [vmem:[%s2386_s30 + $0xf4] sm:$0xf0]  ;;  %v1639_v19 = vld [vmem:[%s2386_s30 + $0x60] sm:$0xf]  ;;  %s585_s8 = scalar_lea.vmem %s2678_s2, %s2706_s29  ;;  %s590_s11 = scalar_lea.vmem %s2679_s3, %s2706_s29 }
  0x82   : > { %v1712_v13 = vor.u32 %v1894_v12, %v1711_v11  ;;  %v1775_v14 = vld [vmem:[%s2386_s30 + $0x170] sm:$0xf]  ;;  %v1910_v15 = vld [vmem:[%s2386_s30 + $0x174] sm:$0xf0]  ;;  %v1876_v21 = vld [vmem:[%s2386_s30 + $0x64] sm:$0xf0] }
  0x83   : > { %v1839_v16 = vld [vmem:[%s2386_s30 + $0x1f0] sm:$0xf]  ;;  %1025 = vmatpush.bf16.msra.mxu0 %v1648_v10  ;;  %v1776_v17 = vor.u32 %v1910_v15, %v1775_v14  ;;  %v1926_v18 = vld [vmem:[%s2386_s30 + $0x1f4] sm:$0xf0]  ;;  %v1703_v22 = vld [vmem:[%s2386_s30 + $0xe0] sm:$0xf]  ;;  %v1640_v24 = vor.u32 %v1876_v21, %v1639_v19 }
  0x84   : > { %1044 = vmatpush.bf16.msra.mxu1 %v1712_v13  ;;  %v1840_v20 = vor.u32 %v1926_v18, %v1839_v16  ;;  %v1892_v23 = vld [vmem:[%s2386_s30 + $0xe4] sm:$0xf0]  ;;  %v1767_v26 = vld [vmem:[%s2386_s30 + $0x160] sm:$0xf]  ;;  %v1631_v31 = vld [vmem:[%s2386_s30 + $0x50] sm:$0xf] }
  0x85   : > { %1063 = vmatpush.bf16.msra.mxu2 %v1776_v17  ;;  %v1704_v25 = vor.u32 %v1892_v23, %v1703_v22  ;;  %v1908_v27 = vld [vmem:[%s2386_s30 + $0x164] sm:$0xf0]  ;;  %v1831_v28 = vld [vmem:[%s2386_s30 + $0x1e0] sm:$0xf]  ;;  %v1874_v32 = vld [vmem:[%s2386_s30 + $0x54] sm:$0xf0] }
  0x86   : > { %1082 = vmatpush.bf16.msra.mxu3 %v1840_v20  ;;  %v1768_v29 = vor.u32 %v1908_v27, %v1767_v26  ;;  %v1924_v30 = vld [vmem:[%s2386_s30 + $0x1e4] sm:$0xf0]  ;;  %v1632_v34 = vor.u32 %v1874_v32, %v1631_v31  ;;  %v1695_v35 = vld [vmem:[%s2386_s30 + $0xd0] sm:$0xf]  ;;  %v1890_v36 = vld [vmem:[%s2386_s30 + $0xd4] sm:$0xf0] }
  0x87   : > { %1026 = vmatpush.bf16.msra.mxu0 %v1640_v24  ;;  %v1832_v33 = vor.u32 %v1924_v30, %v1831_v28  ;;  %v1759_v37 = vld [vmem:[%s2386_s30 + $0x150] sm:$0xf]  ;;  %v1696_v38 = vor.u32 %v1890_v36, %v1695_v35  ;;  %v1906_v39 = vld [vmem:[%s2386_s30 + $0x154] sm:$0xf0]  ;;  %v1623_v43 = vld [vmem:[%s2386_s30 + $0x40] sm:$0xf] }
  0x88   : > { %1045 = vmatpush.bf16.msra.mxu1 %v1704_v25  ;;  %v1823_v40 = vld [vmem:[%s2386_s30 + $0x1d0] sm:$0xf]  ;;  %v1922_v41 = vld [vmem:[%s2386_s30 + $0x1d4] sm:$0xf0]  ;;  %v1760_v42 = vor.u32 %v1906_v39, %v1759_v37  ;;  %v1872_v44 = vld [vmem:[%s2386_s30 + $0x44] sm:$0xf0] }
  0x89   : > { %1064 = vmatpush.bf16.msra.mxu2 %v1768_v29  ;;  %v1687_v45 = vld [vmem:[%s2386_s30 + $0xc0] sm:$0xf]  ;;  %v1824_v46 = vor.u32 %v1922_v41, %v1823_v40  ;;  %v1888_v47 = vld [vmem:[%s2386_s30 + $0xc4] sm:$0xf0]  ;;  %v1624_v50 = vor.u32 %v1872_v44, %v1623_v43  ;;  %v1615_v54 = vld [vmem:[%s2386_s30 + $0x30] sm:$0xf] }
  0x8a   : > { %1083 = vmatpush.bf16.msra.mxu3 %v1832_v33  ;;  %v1751_v48 = vld [vmem:[%s2386_s30 + $0x140] sm:$0xf]  ;;  %v1904_v49 = vld [vmem:[%s2386_s30 + $0x144] sm:$0xf0]  ;;  %v1688_v53 = vor.u32 %v1888_v47, %v1687_v45  ;;  %v1870_v55 = vld [vmem:[%s2386_s30 + $0x34] sm:$0xf0] }
  0x8b   : > { %1027 = vmatpush.bf16.msra.mxu0 %v1632_v34  ;;  %v1815_v51 = vld [vmem:[%s2386_s30 + $0x1c0] sm:$0xf]  ;;  %v1920_v52 = vld [vmem:[%s2386_s30 + $0x1c4] sm:$0xf0]  ;;  %v1752_v56 = vor.u32 %v1904_v49, %v1751_v48  ;;  %v1679_v57 = vld [vmem:[%s2386_s30 + $0xb0] sm:$0xf]  ;;  %v1616_v62 = vor.u32 %v1870_v55, %v1615_v54 }
  0x8c   : > { %1046 = vmatpush.bf16.msra.mxu1 %v1696_v38  ;;  %v1886_v58 = vld [vmem:[%s2386_s30 + $0xb4] sm:$0xf0]  ;;  %v1816_v59 = vor.u32 %v1920_v52, %v1815_v51  ;;  %v1743_v60 = vld [vmem:[%s2386_s30 + $0x130] sm:$0xf]  ;;  %v1607_v2 = vld [vmem:[%s2386_s30 + $0x20] sm:$0xf] }
  0x8d   : > { %1065 = vmatpush.bf16.msra.mxu2 %v1760_v42  ;;  %v1902_v61 = vld [vmem:[%s2386_s30 + $0x134] sm:$0xf0]  ;;  %v1807_v63 = vld [vmem:[%s2386_s30 + $0x1b0] sm:$0xf]  ;;  %v1680_v1 = vor.u32 %v1886_v58, %v1679_v57  ;;  %v1868_v3 = vld [vmem:[%s2386_s30 + $0x24] sm:$0xf0] }
  0x8e   : > { %1084 = vmatpush.bf16.msra.mxu3 %v1824_v46  ;;  %v1918_v0 = vld [vmem:[%s2386_s30 + $0x1b4] sm:$0xf0]  ;;  %v1744_v4 = vor.u32 %v1902_v61, %v1743_v60  ;;  %v1671_v5 = vld [vmem:[%s2386_s30 + $0xa0] sm:$0xf]  ;;  %v1884_v6 = vld [vmem:[%s2386_s30 + $0xa4] sm:$0xf0]  ;;  %v1608_v10 = vor.u32 %v1868_v3, %v1607_v2 }
  0x8f   : > { %1028 = vmatpush.bf16.msra.mxu0 %v1624_v50  ;;  %v1808_v7 = vor.u32 %v1918_v0, %v1807_v63  ;;  %v1735_v8 = vld [vmem:[%s2386_s30 + $0x120] sm:$0xf]  ;;  %v1900_v9 = vld [vmem:[%s2386_s30 + $0x124] sm:$0xf0]  ;;  %v1672_v13 = vor.u32 %v1884_v6, %v1671_v5  ;;  %v1599_v14 = vld [vmem:[%s2386_s30 + $0x10] sm:$0xf] }
  0x90   : > { %1047 = vmatpush.bf16.msra.mxu1 %v1688_v53  ;;  %v1799_v11 = vld [vmem:[%s2386_s30 + $0x1a0] sm:$0xf]  ;;  %v1916_v12 = vld [vmem:[%s2386_s30 + $0x1a4] sm:$0xf0]  ;;  %v1866_v15 = vld [vmem:[%s2386_s30 + $0x14] sm:$0xf0]  ;;  %v1736_v17 = vor.u32 %v1900_v9, %v1735_v8 }
  0x91   : > { %1066 = vmatpush.bf16.msra.mxu2 %v1752_v56  ;;  %v1663_v16 = vld [vmem:[%s2386_s30 + $0x90] sm:$0xf]  ;;  %v1882_v18 = vld [vmem:[%s2386_s30 + $0x94] sm:$0xf0]  ;;  %v1800_v21 = vor.u32 %v1916_v12, %v1799_v11  ;;  %v1600_v24 = vor.u32 %v1866_v15, %v1599_v14  ;;  %v1591_v25 = vld [vmem:[%s2386_s30] sm:$0xf] }
  0x92   : > { %1085 = vmatpush.bf16.msra.mxu3 %v1816_v59  ;;  %v1727_v19 = vld [vmem:[%s2386_s30 + $0x110] sm:$0xf]  ;;  %v1898_v20 = vld [vmem:[%s2386_s30 + $0x114] sm:$0xf0]  ;;  %v1864_v26 = vld [vmem:[%s2386_s30 + $0x4] sm:$0xf0]  ;;  %v1664_v28 = vor.u32 %v1882_v18, %v1663_v16 }
  0x93   : > { %1029 = vmatpush.bf16.msra.mxu0 %v1616_v62  ;;  %v1791_v22 = vld [vmem:[%s2386_s30 + $0x190] sm:$0xf]  ;;  %v1914_v23 = vld [vmem:[%s2386_s30 + $0x194] sm:$0xf0]  ;;  %v1655_v27 = vld [vmem:[%s2386_s30 + $0x80] sm:$0xf]  ;;  %v1728_v32 = vor.u32 %v1898_v20, %v1727_v19  ;;  %v1592_v42 = vor.u32 %v1864_v26, %v1591_v25 }
  0x94   : > { %1048 = vmatpush.bf16.msra.mxu1 %v1680_v1  ;;  %v1880_v29 = vld [vmem:[%s2386_s30 + $0x84] sm:$0xf0]  ;;  %v1719_v30 = vld [vmem:[%s2386_s30 + $0x100] sm:$0xf]  ;;  %v1857_v36 = vld [vmem:[%s2463_s0 + $0xc] sm:$0xf0]  ;;  %v1792_v37 = vor.u32 %v1914_v23, %v1791_v22 }
  0x95   : > { %1067 = vmatpush.bf16.msra.mxu2 %v1744_v4  ;;  %v1896_v31 = vld [vmem:[%s2386_s30 + $0x104] sm:$0xf0]  ;;  %v1783_v33 = vld [vmem:[%s2386_s30 + $0x180] sm:$0xf]  ;;  %v1909_v38 = vld [vmem:[%s2386_s30 + $0x174] sm:$0xf]  ;;  %v1656_v46 = vor.u32 %v1880_v29, %v1655_v27 }
  0x96   : > { %1086 = vmatpush.bf16.msra.mxu3 %v1808_v7  ;;  %v1912_v34 = vld [vmem:[%s2386_s30 + $0x184] sm:$0xf0]  ;;  %v1559_v35 = vld [vmem:[%s2463_s0] sm:$0xf]  ;;  %v1877_v39 = vld [vmem:[%s2386_s30 + $0x74] sm:$0xf]  ;;  %v1720_v51 = vor.u32 %v1896_v31, %v1719_v30 }
  0x97   : > { %1030 = vmatpush.bf16.msra.mxu0 %v1608_v10  ;;  %v1649_v40 = vld [vmem:[%s2386_s30 + $0x78] sm:$0xf0]  ;;  %v1893_v41 = vld [vmem:[%s2386_s30 + $0xf4] sm:$0xf]  ;;  %v1855_v43 = vld [vmem:[%s2463_s0 + $0x4] sm:$0xf]  ;;  %v1784_v56 = vor.u32 %v1912_v34, %v1783_v33  ;;  %v2480_v57 = vor.u32 %v1857_v36, %v1559_v35 }
  0x98   : > { %1049 = vmatpush.bf16.msra.mxu1 %v1672_v13  ;;  %v1561_v44 = vld [vmem:[%s2463_s0 + $0x10] sm:$0xf0]  ;;  %v1713_v45 = vld [vmem:[%s2386_s30 + $0xf8] sm:$0xf0]  ;;  %v1567_v47 = vld [vmem:[%s2463_s0 + $0x8] sm:$0xf]  ;;  %v1652_v50 = vor.u32 %v1877_v39, %v1649_v40 }
  0x99   : > { %1068 = vmatpush.bf16.msra.mxu2 %v1736_v17  ;;  %v1858_v48 = vld [vmem:[%s2463_s0 + $0x14] sm:$0xf0]  ;;  %v1777_v49 = vld [vmem:[%s2386_s30 + $0x178] sm:$0xf0]  ;;  %v1856_v52 = vld [vmem:[%s2463_s0 + $0xc] sm:$0xf]  ;;  %v1716_v53 = vor.u32 %v1893_v41, %v1713_v45  ;;  %v2485_v61 = vor.u32 %v1855_v43, %v1561_v44 }
  0x9a   : > { %1087 = vmatpush.bf16.msra.mxu3 %v1800_v21  ;;  %v1925_v54 = vld [vmem:[%s2386_s30 + $0x1f4] sm:$0xf]  ;;  %v1841_v55 = vld [vmem:[%s2386_s30 + $0x1f8] sm:$0xf0]  ;;  %v1875_v59 = vld [vmem:[%s2386_s30 + $0x64] sm:$0xf]  ;;  %v1780_v62 = vor.u32 %v1909_v38, %v1777_v49  ;;  %v2489_v1 = vor.u32 %v1858_v48, %v1567_v47 }
  0x9b   : > { %1031 = vmatpush.bf16.msra.mxu0 %v1600_v24  ;;  %v1569_v58 = vld [vmem:[%s2463_s0 + $0x18] sm:$0xf0]  ;;  %v1641_v60 = vld [vmem:[%s2386_s30 + $0x68] sm:$0xf0]  ;;  %v1891_v63 = vld [vmem:[%s2386_s30 + $0xe4] sm:$0xf]  ;;  %v1844_v2 = vor.u32 %v1925_v54, %v1841_v55 }
  0x9c   : > { %1050 = vmatpush.bf16.msra.mxu1 %v1664_v28  ;;  %v1705_v0 = vld [vmem:[%s2386_s30 + $0xe8] sm:$0xf0]  ;;  %v1907_v3 = vld [vmem:[%s2386_s30 + $0x164] sm:$0xf]  ;;  %v2493_v5 = vor.u32 %v1856_v52, %v1569_v58  ;;  %v1644_v6 = vor.u32 %v1875_v59, %v1641_v60  ;;  %v1873_v10 = vld [vmem:[%s2386_s30 + $0x54] sm:$0xf] }
  0x9d   : > { %1069 = vmatpush.bf16.msra.mxu2 %v1728_v32  ;;  %v1769_v4 = vld [vmem:[%s2386_s30 + $0x168] sm:$0xf0]  ;;  %v1923_v7 = vld [vmem:[%s2386_s30 + $0x1e4] sm:$0xf]  ;;  %v1708_v9 = vor.u32 %v1891_v63, %v1705_v0  ;;  %v1633_v11 = vld [vmem:[%s2386_s30 + $0x58] sm:$0xf0] }
  0x9e   : > { %1088 = vmatpush.bf16.msra.mxu3 %v1792_v37  ;;  %v1833_v8 = vld [vmem:[%s2386_s30 + $0x1e8] sm:$0xf0]  ;;  %v1772_v12 = vor.u32 %v1907_v3, %v1769_v4  ;;  %v1889_v13 = vld [vmem:[%s2386_s30 + $0xd4] sm:$0xf]  ;;  %v1697_v14 = vld [vmem:[%s2386_s30 + $0xd8] sm:$0xf0]  ;;  %v1636_v18 = vor.u32 %v1873_v10, %v1633_v11 }
  0x9f   : > { %1032 = vmatpush.bf16.msra.mxu0 %v1592_v42  ;;  %v1836_v15 = vor.u32 %v1923_v7, %v1833_v8  ;;  %v1905_v16 = vld [vmem:[%s2386_s30 + $0x154] sm:$0xf]  ;;  %v1761_v17 = vld [vmem:[%s2386_s30 + $0x158] sm:$0xf0]  ;;  %v1700_v21 = vor.u32 %v1889_v13, %v1697_v14  ;;  %v1871_v22 = vld [vmem:[%s2386_s30 + $0x44] sm:$0xf] }
  0xa0   : > { %1051 = vmatpush.bf16.msra.mxu1 %v1656_v46  ;;  %v1921_v19 = vld [vmem:[%s2386_s30 + $0x1d4] sm:$0xf]  ;;  %v1825_v20 = vld [vmem:[%s2386_s30 + $0x1d8] sm:$0xf0]  ;;  %v1625_v23 = vld [vmem:[%s2386_s30 + $0x48] sm:$0xf0]  ;;  %v1764_v24 = vor.u32 %v1905_v16, %v1761_v17 }
  0xa1   : > { %1070 = vmatpush.bf16.msra.mxu2 %v1720_v51  ;;  %v1887_v25 = vld [vmem:[%s2386_s30 + $0xc4] sm:$0xf]  ;;  %v1689_v26 = vld [vmem:[%s2386_s30 + $0xc8] sm:$0xf0]  ;;  %v1828_v27 = vor.u32 %v1921_v19, %v1825_v20  ;;  %v1628_v31 = vor.u32 %v1871_v22, %v1625_v23  ;;  %v1575_v33 = vld [vmem:[%s2463_s0 + $0x20] sm:$0xf] }
  0xa2   : > { %1089 = vmatpush.bf16.msra.mxu3 %v1784_v56  ;;  %1033 = vmatmul.bf16.vlgmr.msra.gmra.mxu0 %v2480_v57  ;;  %v1903_v28 = vld [vmem:[%s2386_s30 + $0x144] sm:$0xf]  ;;  %v1753_v29 = vld [vmem:[%s2386_s30 + $0x148] sm:$0xf0]  ;;  %v1861_v34 = vld [vmem:[%s2463_s0 + $0x2c] sm:$0xf0]  ;;  %v1692_v35 = vor.u32 %v1887_v25, %v1689_v26 }
  0xa3   : > { %1101 = vmatpush.bf16.msrb.mxu0 %v1652_v50  ;;  %1052 = vmatmul.bf16.vlgmr.msra.gmra.mxu1 %v2485_v61  ;;  %v1919_v30 = vld [vmem:[%s2386_s30 + $0x1c4] sm:$0xf]  ;;  %v1817_v32 = vld [vmem:[%s2386_s30 + $0x1c8] sm:$0xf0]  ;;  %v1577_v37 = vld [vmem:[%s2463_s0 + $0x30] sm:$0xf0]  ;;  %v1756_v40 = vor.u32 %v1903_v28, %v1753_v29  ;;  %v2532_v52 = vor.u32 %v1861_v34, %v1575_v33 }
  0xa4   : > { %1120 = vmatpush.bf16.msrb.mxu1 %v1716_v53  ;;  %1071 = vmatmul.bf16.vlgmr.msra.gmra.mxu2 %v2489_v1  ;;  %v1859_v36 = vld [vmem:[%s2463_s0 + $0x24] sm:$0xf]  ;;  %v1869_v38 = vld [vmem:[%s2386_s30 + $0x34] sm:$0xf]  ;;  %v1617_v39 = vld [vmem:[%s2386_s30 + $0x38] sm:$0xf0]  ;;  %v1820_v44 = vor.u32 %v1919_v30, %v1817_v32 }
  0xa5   : > { %1139 = vmatpush.bf16.msrb.mxu2 %v1780_v62  ;;  %1090 = vmatmul.bf16.vlgmr.msra.gmra.mxu3 %v2493_v5  ;;  %v1583_v41 = vld [vmem:[%s2463_s0 + $0x28] sm:$0xf]  ;;  %v1885_v42 = vld [vmem:[%s2386_s30 + $0xb4] sm:$0xf]  ;;  %v1681_v43 = vld [vmem:[%s2386_s30 + $0xb8] sm:$0xf0]  ;;  %v1620_v49 = vor.u32 %v1869_v38, %v1617_v39  ;;  %v2537_v58 = vor.u32 %v1859_v36, %v1577_v37 }
  0xa6   : > { %1158 = vmatpush.bf16.msrb.mxu3 %v1844_v2  ;;  %v1862_v45 = vld [vmem:[%s2463_s0 + $0x34] sm:$0xf0]  ;;  %v1901_v46 = vld [vmem:[%s2386_s30 + $0x134] sm:$0xf]  ;;  %v1745_v47 = vld [vmem:[%s2386_s30 + $0x138] sm:$0xf0]  ;;  %v1684_v54 = vor.u32 %v1885_v42, %v1681_v43 }
  0xa7   : > { %1102 = vmatpush.bf16.msrb.mxu0 %v1644_v6  ;;  %v1860_v48 = vld [vmem:[%s2463_s0 + $0x2c] sm:$0xf]  ;;  %v1917_v50 = vld [vmem:[%s2386_s30 + $0x1b4] sm:$0xf]  ;;  %v1809_v51 = vld [vmem:[%s2386_s30 + $0x1b8] sm:$0xf0]  ;;  %v1748_v59 = vor.u32 %v1901_v46, %v1745_v47  ;;  %v1584_v63 = vor.u32 %v1862_v45, %v1583_v41 }
  0xa8   : > { %1121 = vmatpush.bf16.msrb.mxu1 %v1708_v9  ;;  %v1585_v53 = vld [vmem:[%s2463_s0 + $0x38] sm:$0xf0]  ;;  %v1867_v55 = vld [vmem:[%s2386_s30 + $0x24] sm:$0xf]  ;;  %v1609_v56 = vld [vmem:[%s2386_s30 + $0x28] sm:$0xf0]  ;;  %v1812_v0 = vor.u32 %v1917_v50, %v1809_v51 }
  0xa9   : > { %1140 = vmatpush.bf16.msrb.mxu2 %v1772_v12  ;;  %v1883_v60 = vld [vmem:[%s2386_s30 + $0xa4] sm:$0xf]  ;;  %v1673_v62 = vld [vmem:[%s2386_s30 + $0xa8] sm:$0xf0]  ;;  %v1588_v4 = vor.u32 %v1860_v48, %v1585_v53  ;;  %v1612_v6 = vor.u32 %v1867_v55, %v1609_v56  ;;  %v1865_v10 = vld [vmem:[%s2386_s30 + $0x14] sm:$0xf] }
  0xaa   : > { %1159 = vmatpush.bf16.msrb.mxu3 %v1836_v15  ;;  %v1899_v2 = vld [vmem:[%s2386_s30 + $0x124] sm:$0xf]  ;;  %v1737_v3 = vld [vmem:[%s2386_s30 + $0x128] sm:$0xf0]  ;;  %v1676_v9 = vor.u32 %v1883_v60, %v1673_v62  ;;  %v1601_v11 = vld [vmem:[%s2386_s30 + $0x18] sm:$0xf0] }
  0xab   : > { %1103 = vmatpush.bf16.msrb.mxu0 %v1636_v18  ;;  %v1915_v7 = vld [vmem:[%s2386_s30 + $0x1a4] sm:$0xf]  ;;  %v1801_v8 = vld [vmem:[%s2386_s30 + $0x1a8] sm:$0xf0]  ;;  %v1740_v12 = vor.u32 %v1899_v2, %v1737_v3  ;;  %v1881_v13 = vld [vmem:[%s2386_s30 + $0x94] sm:$0xf]  ;;  %v1604_v18 = vor.u32 %v1865_v10, %v1601_v11 }
  0xac   : > { %1122 = vmatpush.bf16.msrb.mxu1 %v1700_v21  ;;  %v1665_v14 = vld [vmem:[%s2386_s30 + $0x98] sm:$0xf0]  ;;  %v1804_v15 = vor.u32 %v1915_v7, %v1801_v8  ;;  %v1897_v16 = vld [vmem:[%s2386_s30 + $0x114] sm:$0xf]  ;;  %v1863_v22 = vld [vmem:[%s2386_s30 + $0x4] sm:$0xf] }
  0xad   : > { %1141 = vmatpush.bf16.msrb.mxu2 %v1764_v24  ;;  %v1729_v17 = vld [vmem:[%s2386_s30 + $0x118] sm:$0xf0]  ;;  %v1913_v19 = vld [vmem:[%s2386_s30 + $0x194] sm:$0xf]  ;;  %v1668_v21 = vor.u32 %v1881_v13, %v1665_v14  ;;  %v1593_v23 = vld [vmem:[%s2386_s30 + $0x8] sm:$0xf0] }
  0xae   : > { %1160 = vmatpush.bf16.msrb.mxu3 %v1828_v27  ;;  %v1793_v20 = vld [vmem:[%s2386_s30 + $0x198] sm:$0xf0]  ;;  %v1732_v24 = vor.u32 %v1897_v16, %v1729_v17  ;;  %v1879_v25 = vld [vmem:[%s2386_s30 + $0x84] sm:$0xf]  ;;  %v1657_v26 = vld [vmem:[%s2386_s30 + $0x88] sm:$0xf0]  ;;  %v1596_v30 = vor.u32 %v1863_v22, %v1593_v23 }
  0xaf   : > { %1104 = vmatpush.bf16.msrb.mxu0 %v1628_v31  ;;  %v1796_v27 = vor.u32 %v1913_v19, %v1793_v20  ;;  %v1895_v28 = vld [vmem:[%s2386_s30 + $0x104] sm:$0xf]  ;;  %v1721_v29 = vld [vmem:[%s2386_s30 + $0x108] sm:$0xf0]  ;;  %v1660_v33 = vor.u32 %v1879_v25, %v1657_v26 }
  0xb0   : > { %1123 = vmatpush.bf16.msrb.mxu1 %v1692_v35  ;;  %v1911_v31 = vld [vmem:[%s2386_s30 + $0x184] sm:$0xf]  ;;  %v1785_v32 = vld [vmem:[%s2386_s30 + $0x188] sm:$0xf0]  ;;  %v1724_v34 = vor.u32 %v1895_v28, %v1721_v29 }
  0xb1   : > { %1142 = vmatpush.bf16.msrb.mxu2 %v1756_v40  ;;  %v1788_v35 = vor.u32 %v1911_v31, %v1785_v32 }
  0xb2   : > { %1161 = vmatpush.bf16.msrb.mxu3 %v1820_v44  ;;  %1038 = vmatmul.bf16.gmra.mxu0 %v2532_v52 }
  0xb3   : > { %1105 = vmatpush.bf16.msrb.mxu0 %v1620_v49  ;;  %1057 = vmatmul.bf16.gmra.mxu1 %v2537_v58 }
  0xb4   : > { %1124 = vmatpush.bf16.msrb.mxu1 %v1684_v54  ;;  %1076 = vmatmul.bf16.gmra.mxu2 %v1584_v63 }
  0xb5   : > { %1143 = vmatpush.bf16.msrb.mxu2 %v1748_v59  ;;  %1095 = vmatmul.bf16.gmra.mxu3 %v1588_v4 }
  0xb6   : > { %1162 = vmatpush.bf16.msrb.mxu3 %v1812_v0 }
  0xb7   : > { %1106 = vmatpush.bf16.msrb.mxu0 %v1612_v6 }
  0xb8   : > { %1125 = vmatpush.bf16.msrb.mxu1 %v1676_v9 }
  0xb9   : > { %1144 = vmatpush.bf16.msrb.mxu2 %v1740_v12 }
  0xba   : > { %1163 = vmatpush.bf16.msrb.mxu3 %v1804_v15 }
  0xbb   : > { %1107 = vmatpush.bf16.msrb.mxu0 %v1604_v18 }
  0xbc   : > { %1126 = vmatpush.bf16.msrb.mxu1 %v1668_v21 }
  0xbd   : > { %1145 = vmatpush.bf16.msrb.mxu2 %v1732_v24 }
  0xbe   : > { %1164 = vmatpush.bf16.msrb.mxu3 %v1796_v27 }
  0xbf   : > { %1108 = vmatpush.bf16.msrb.mxu0 %v1596_v30 }
  0xc0   : > { %1127 = vmatpush.bf16.msrb.mxu1 %v1660_v33 }
  0xc1   : > { %1146 = vmatpush.bf16.msrb.mxu2 %v1724_v34 }
  0xc2   : > { %1165 = vmatpush.bf16.msrb.mxu3 %v1788_v35  ;;  %1109 = vmatmul.bf16.vlgmr.msrb.gmra.mxu0 %v2480_v57 }
  0xc3   : > { %1128 = vmatmul.bf16.vlgmr.msrb.gmra.mxu1 %v2485_v61 }
  0xc4   : > { %1147 = vmatmul.bf16.vlgmr.msrb.gmra.mxu2 %v2489_v1 }
  0xc5   : > { %1166 = vmatmul.bf16.vlgmr.msrb.gmra.mxu3 %v2493_v5 }
  0xd2   : > { %1114 = vmatmul.bf16.gmra.mxu0 %v2532_v52 }
  0xd3   : > { %1133 = vmatmul.bf16.gmra.mxu1 %v2537_v58 }
  0xd4   : > { %1152 = vmatmul.bf16.gmra.mxu2 %v1584_v63 }
  0xd5   : > { %1171 = vmatmul.bf16.gmra.mxu3 %v1588_v4 }
 0x11f   : > { %v1034_v36 = vpop.f32.mrf.mxu0 }
 0x120   : > { %v1053_v37 = vpop.f32.mrf.mxu1 }
 0x121   : > { %v1054_v38 = vadd.f32 %v1053_v37, %v1034_v36 }
 0x127   : > { %v1072_v39 = vpop.f32.mrf.mxu2  ;;  %v1036_v40 = vpop.f32.mrf.mxu0 }
 0x128   : > { %v1073_v41 = vadd.f32 %v1072_v39, %v1054_v38  ;;  %v1091_v42 = vpop.f32.mrf.mxu3  ;;  %v1055_v57 = vpop.f32.mrf.mxu1 }
 0x129   : > { %v1056_v61 = vadd.f32 %v1055_v57, %v1036_v40 }
 0x12a   : > { %v2569_v43 = vadd.f32 %v1091_v42, %v1073_v41 }
 0x12f   : > { %v1074_v1 = vpop.f32.mrf.mxu2  ;;  %v1039_v44 = vpop.f32.mrf.mxu0 }
 0x130   : > { %v1075_v5 = vadd.f32 %v1074_v1, %v1056_v61  ;;  %v1093_v45 = vpop.f32.mrf.mxu3  ;;  %v1058_v46 = vpop.f32.mrf.mxu1 }
 0x131   : > { %v1059_v48 = vadd.f32 %v1058_v46, %v1039_v44 }
 0x132   : > { %v1094_v47 = vadd.f32 %v1093_v45, %v1075_v5 }
 0x137   : > { %v1077_v49 = vpop.f32.mrf.mxu2  ;;  %v1041_v50 = vpop.f32.mrf.mxu0 }
 0x138   : > { %v1078_v51 = vadd.f32 %v1077_v49, %v1059_v48  ;;  %v1096_v52 = vpop.f32.mrf.mxu3  ;;  %v1060_v53 = vpop.f32.mrf.mxu1 }
 0x139   : > { %v1061_v55 = vadd.f32 %v1060_v53, %v1041_v50 }
 0x13a   : > { %v1097_v54 = vadd.f32 %v1096_v52, %v1078_v51 }
 0x13f   : > { %v1079_v56 = vpop.f32.mrf.mxu2  ;;  %v1110_v58 = vpop.f32.mrf.mxu0 }
 0x140   : > { %v1080_v59 = vadd.f32 %v1079_v56, %v1061_v55  ;;  %v1098_v60 = vpop.f32.mrf.mxu3  ;;  %v1129_v62 = vpop.f32.mrf.mxu1 }
 0x141   : > { %v1130_v0 = vadd.f32 %v1129_v62, %v1110_v58 }
 0x142   : > { %v1099_v63 = vadd.f32 %v1098_v60, %v1080_v59 }
 0x147   : > { %v1148_v2 = vpop.f32.mrf.mxu2  ;;  %v1112_v3 = vpop.f32.mrf.mxu0 }
 0x148   : > { %v1149_v4 = vadd.f32 %v1148_v2, %v1130_v0  ;;  %v1167_v6 = vpop.f32.mrf.mxu3  ;;  %v1131_v7 = vpop.f32.mrf.mxu1 }
 0x149   : > { %v1132_v9 = vadd.f32 %v1131_v7, %v1112_v3 }
 0x14a   : > { %v1168_v8 = vadd.f32 %v1167_v6, %v1149_v4 }
 0x14f   : > { %v1150_v10 = vpop.f32.mrf.mxu2  ;;  %v1115_v13 = vpop.f32.mrf.mxu0 }
 0x150   : > { %v1151_v11 = vadd.f32 %v1150_v10, %v1132_v9  ;;  %v1169_v12 = vpop.f32.mrf.mxu3  ;;  %v1134_v14 = vpop.f32.mrf.mxu1 }
 0x151   : > { %v1135_v16 = vadd.f32 %v1134_v14, %v1115_v13 }
 0x152   : > { %v1170_v15 = vadd.f32 %v1169_v12, %v1151_v11 }
 0x157   : > { %v1153_v17 = vpop.f32.mrf.mxu2  ;;  %v1117_v21 = vpop.f32.mrf.mxu0 }
 0x158   : > { %v1154_v18 = vadd.f32 %v1153_v17, %v1135_v16  ;;  %v1172_v19 = vpop.f32.mrf.mxu3  ;;  %v1136_v22 = vpop.f32.mrf.mxu1 }
 0x159   : > { %v1137_v23 = vadd.f32 %v1136_v22, %v1117_v21 }
 0x15a   : > { %v1173_v20 = vadd.f32 %v1172_v19, %v1154_v18 }
 0x15e   : > { %1180 = sbr.rel (%p1845_p4) target bundleno = 363 (0x16b), region = 101 }
 0x15f   : > { %v1155_v24 = vpop.f32.mrf.mxu2 }
 0x160   : > { %v1156_v25 = vadd.f32 %v1155_v24, %v1137_v23  ;;  %v1174_v26 = vpop.f32.mrf.mxu3 }
 0x162   : > { %v1175_v27 = vadd.f32 %v1174_v26, %v1156_v25 }
 0x163   : > { %1181 = vst [vmem:[#allocation2 + $0x30] sm:$0xff] %v2569_v43 }
 0x164   : > { %1182 = vst [vmem:[#allocation2] sm:$0xff] %v1168_v8 }
 0x165   : > { %1183 = vst [vmem:[#allocation2 + $0x18] sm:$0xff] %v1094_v47 }
 0x166   : > { %1184 = vst [vmem:[#allocation2 + $0x10] sm:$0xff] %v1170_v15 }
 0x167   : > { %1185 = vst [vmem:[#allocation2 + $0x8] sm:$0xff] %v1097_v54 }
 0x168   : > { %1186 = vst [vmem:[#allocation2 + $0x20] sm:$0xff] %v1173_v20 }
 0x169   : > { %1187 = vst [vmem:[#allocation2 + $0x28] sm:$0xff] %v1099_v63 }
 0x16a   : > { %1188 = vst [vmem:[#allocation2 + $0x38] sm:$0xff] %v1175_v27 }
 0x16b PF: > { %p1846_p5 = scmp.le.s32.totalorder %s2090_s21, 0 }
 0x16d   : > { %1192 = sbr.rel (%p1846_p5) target bundleno = 381 (0x17d), region = 105 }
 0x172   : > { %v1193_v28 = vld [vmem:[#allocation2 + $0x30] sm:$0xff]  ;;  %v1194_v29 = vld [vmem:[#allocation2] sm:$0xff]  ;;  %v1195_v30 = vld [vmem:[#allocation2 + $0x18] sm:$0xff] }
 0x173   : > { %v1201_v31 = vadd.f32 %v1193_v28, %v2569_v43  ;;  %v1202_v32 = vadd.f32 %v1194_v29, %v1168_v8  ;;  %v1203_v33 = vadd.f32 %v1195_v30, %v1094_v47  ;;  %v1196_v34 = vld [vmem:[#allocation2 + $0x10] sm:$0xff]  ;;  %v1197_v35 = vld [vmem:[#allocation2 + $0x8] sm:$0xff]  ;;  %v1198_v36 = vld [vmem:[#allocation2 + $0x20] sm:$0xff] }
 0x174   : > { %v1204_v37 = vadd.f32 %v1196_v34, %v1170_v15  ;;  %v1199_v38 = vld [vmem:[#allocation2 + $0x28] sm:$0xff]  ;;  %v1205_v39 = vadd.f32 %v1197_v35, %v1097_v54  ;;  %v1200_v40 = vld [vmem:[#allocation2 + $0x38] sm:$0xff]  ;;  %v1206_v41 = vadd.f32 %v1198_v36, %v1173_v20 }
 0x175   : > { %1209 = vst [vmem:[#allocation2 + $0x30] sm:$0xff] %v1201_v31  ;;  %v1207_v42 = vadd.f32 %v1199_v38, %v1099_v63  ;;  %v1208_v57 = vadd.f32 %v1200_v40, %v1175_v27 }
 0x176   : > { %1210 = vst [vmem:[#allocation2] sm:$0xff] %v1202_v32 }
 0x177   : > { %1211 = vst [vmem:[#allocation2 + $0x18] sm:$0xff] %v1203_v33 }
 0x178   : > { %1212 = vst [vmem:[#allocation2 + $0x10] sm:$0xff] %v1204_v37 }
 0x179   : > { %1213 = vst [vmem:[#allocation2 + $0x8] sm:$0xff] %v1205_v39 }
 0x17a   : > { %1214 = vst [vmem:[#allocation2 + $0x20] sm:$0xff] %v1206_v41 }
 0x17b   : > { %1215 = vst [vmem:[#allocation2 + $0x28] sm:$0xff] %v1207_v42 }
 0x17c   : > { %1216 = vst [vmem:[#allocation2 + $0x38] sm:$0xff] %v1208_v57 }
 0x17d PF: > { %p1847_p6 = scmp.ne.s32.totalorder %s2090_s21, 7 }
 0x17f   : > { %1220 = sbr.rel (%p1847_p6) target bundleno = 474 (0x1da), region = 109 }
 0x184   : > { %v1221_v43 = vld [vmem:[#allocation2 + $0x30] sm:$0xff]  ;;  %v1222_v61 = vld [vmem:[#allocation2] sm:$0xff]  ;;  %v1223_v1 = vld [vmem:[#allocation2 + $0x18] sm:$0xff] }
 0x185   : > { %v1224_v44 = vld [vmem:[#allocation2 + $0x10] sm:$0xff]  ;;  %v1225_v5 = vld [vmem:[#allocation2 + $0x8] sm:$0xff]  ;;  %v1226_v45 = vld [vmem:[#allocation2 + $0x20] sm:$0xff]  ;;  %v1229_v46 = vadd.f32 %v1223_v1, %v1221_v43 }
 0x186   : > { %v1227_v47 = vld [vmem:[#allocation2 + $0x28] sm:$0xff]  ;;  %v1238_v48 = vadd.f32 %v1224_v44, %v1222_v61  ;;  %v1228_v49 = vld [vmem:[#allocation2 + $0x38] sm:$0xff] }
 0x187   : > { %v1230_v50 = vadd.f32 %v1229_v46, %v1225_v5 }
 0x188   : > { %v1239_v51 = vadd.f32 %v1238_v48, %v1226_v45 }
 0x189   : > { %v1231_v52 = vadd.f32 %v1230_v50, %v1227_v47 }
 0x18a   : > { %v1240_v53 = vadd.f32 %v1239_v51, %v1228_v49 }
 0x18b   : > { %v1232_v54 = vrot.slane %v1231_v52, 4 }
 0x18c   : > { %v1241_v55 = vrot.slane %v1240_v53, 4 }
 0x18d   : > { %v1233_v56 = vadd.f32 %v1232_v54, %v1231_v52 }
 0x18e   : > { %v1242_v58 = vadd.f32 %v1241_v55, %v1240_v53  ;;  %v1313_v55 = vld [vmem:[%s585_s8] sm:$0x3] }
 0x18f   : > { %v1234_v59 = vrot.slane %v1233_v56, 2 }
 0x190   : > { %v1243_v60 = vrot.slane %v1242_v58, 2 }
 0x191   : > { %v1235_v62 = vadd.f32 %v1234_v59, %v1233_v56 }
 0x192   : > { %v1244_v63 = vadd.f32 %v1243_v60, %v1242_v58  ;;  %v1315_v60 = vperm.slane %v1313_v55, 0 }
 0x193   : > { %v1236_v0 = vrot.slane %v1235_v62, 1 }
 0x194   : > { %v1245_v2 = vrot.slane %v1244_v63, 1 }
 0x195   : > { %v1237_v3 = vadd.f32 %v1236_v0, %v1235_v62 }
 0x196   : > { %v1246_v4 = vadd.f32 %v1245_v2, %v1244_v63  ;;  %v1316_v63 = vperm.slane %v1313_v55, 1 }
 0x197   : > { %v1247_v6 = vmul.f32 0.03125, %v1237_v3  ;;  %v1331_v3 = vld [vmem:[%s590_s11] sm:$0x3] }
 0x198   : > { %v1248_v7 = vmul.f32 0.03125, %v1246_v4 }
 0x199   : > { %v2579_v8 = vsub.f32 %v1221_v43, %v1247_v6  ;;  %v2581_v9 = vsub.f32 %v1223_v1, %v1247_v6  ;;  %v2583_v10 = vsub.f32 %v1225_v5, %v1247_v6  ;;  %v2585_v11 = vsub.f32 %v1227_v47, %v1247_v6 }
 0x19a   : > { %v2587_v12 = vsub.f32 %v1222_v61, %v1248_v7  ;;  %v2589_v13 = vsub.f32 %v1224_v44, %v1248_v7  ;;  %v2591_v14 = vsub.f32 %v1226_v45, %v1248_v7  ;;  %v2593_v15 = vsub.f32 %v1228_v49, %v1248_v7 }
 0x19b   : > { %v1257_v16 = vmul.f32 %v2579_v8, %v2579_v8  ;;  %v1259_v17 = vmul.f32 %v2581_v9, %v2581_v9  ;;  %v1261_v18 = vmul.f32 %v2583_v10, %v2583_v10  ;;  %v1263_v22 = vmul.f32 %v2585_v11, %v2585_v11 }
 0x19c   : > { %v1258_v19 = vmul.f32 %v2587_v12, %v2587_v12  ;;  %v1260_v20 = vmul.f32 %v2589_v13, %v2589_v13  ;;  %v1262_v21 = vmul.f32 %v2591_v14, %v2591_v14  ;;  %v1264_v24 = vmul.f32 %v2593_v15, %v2593_v15 }
 0x19d   : > { %v1265_v23 = vadd.f32 %v1259_v17, %v1257_v16  ;;  %v1283_v35 = vmul.f32 0.0, %v1247_v6  ;;  %v1284_v37 = vmul.f32 0.0, %v1248_v7  ;;  %v1333_v17 = vperm.slane %v1331_v3, 0 }
 0x19e   : > { %v1274_v25 = vadd.f32 %v1260_v20, %v1258_v19  ;;  %v1334_v19 = vperm.slane %v1331_v3, 1 }
 0x19f   : > { %v1266_v26 = vadd.f32 %v1265_v23, %v1261_v18  ;;  %v1285_v41 = vmul.f32 %v1283_v35, %v1247_v6  ;;  %v1286_v57 = vmul.f32 %v1284_v37, %v1248_v7 }
 0x1a0   : > { %v1275_v27 = vadd.f32 %v1274_v25, %v1262_v21 }
 0x1a1   : > { %v1267_v28 = vadd.f32 %v1266_v26, %v1263_v22 }
 0x1a2   : > { %v1276_v29 = vadd.f32 %v1275_v27, %v1264_v24 }
 0x1a3   : > { %v1268_v30 = vrot.slane %v1267_v28, 4 }
 0x1a4   : > { %v1277_v31 = vrot.slane %v1276_v29, 4 }
 0x1a5   : > { %v1269_v32 = vadd.f32 %v1268_v30, %v1267_v28 }
 0x1a6   : > { %v1278_v33 = vadd.f32 %v1277_v31, %v1276_v29 }
 0x1a7   : > { %v1270_v34 = vrot.slane %v1269_v32, 2 }
 0x1a8   : > { %v1279_v36 = vrot.slane %v1278_v33, 2 }
 0x1a9   : > { %v1271_v38 = vadd.f32 %v1270_v34, %v1269_v32 }
 0x1aa   : > { %v1280_v39 = vadd.f32 %v1279_v36, %v1278_v33 }
 0x1ab   : > { %v1272_v40 = vrot.slane %v1271_v38, 1 }
 0x1ac   : > { %v1281_v42 = vrot.slane %v1280_v39, 1 }
 0x1ad   : > { %v1273_v43 = vadd.f32 %v1272_v40, %v1271_v38 }
 0x1ae   : > { %v1282_v61 = vadd.f32 %v1281_v42, %v1280_v39 }
 0x1af   : > { %v1287_v1 = vsub.f32 %v1273_v43, %v1285_v41 }
 0x1b0   : > { %v1288_v44 = vsub.f32 %v1282_v61, %v1286_v57 }
 0x1b1   : > { %v1289_v5 = vmul.f32 0.03125, %v1287_v1 }
 0x1b2   : > { %v1290_v45 = vmul.f32 0.03125, %v1288_v44 }
 0x1b3   : > { %v1291_v46 = vadd.f32 1e-05, %v1289_v5 }
 0x1b4   : > { %v1292_v47 = vadd.f32 1e-05, %v1290_v45 }
 0x1b5   : > { %2016 = vrsqrt.f32 %v1291_v46  ;;  %vm1299_vm0 = vweird.f32 %v1291_v46 }
 0x1b6   : > { %2018 = vrsqrt.f32 %v1292_v47  ;;  %vm1309_vm2 = vweird.f32 %v1292_v47 }
 0x1bb   : > { %v2017_v48 = vpop.eup %2016 }
 0x1bc   : > { %v2019_v49 = vpop.eup %2018  ;;  %v1294_v50 = vmul.f32 %v2017_v48, %v1291_v46  ;;  %vm1300_vm1 = vweird.f32 %v2017_v48 }
 0x1bd   : > { %v1304_v51 = vmul.f32 %v2019_v49, %v1292_v47  ;;  %vm1310_vm3 = vweird.f32 %v2019_v49  ;;  %vm1301_vm4 = vmor %vm1299_vm0, %vm1300_vm1 }
 0x1be   : > { %v1295_v52 = vmul.f32 %v2017_v48, %v1294_v50  ;;  %vm1311_vm5 = vmor %vm1309_vm2, %vm1310_vm3 }
 0x1bf   : > { %v1305_v53 = vmul.f32 %v2019_v49, %v1304_v51 }
 0x1c0   : > { %v1296_v54 = vmul.f32 0.5, %v1295_v52 }
 0x1c1   : > { %v1306_v56 = vmul.f32 0.5, %v1305_v53 }
 0x1c2   : > { %v1297_v58 = vsub.f32 1.5, %v1296_v54 }
 0x1c3   : > { %v1307_v59 = vsub.f32 1.5, %v1306_v56 }
 0x1c4   : > { %v1298_v62 = vmul.f32 %v2017_v48, %v1297_v58 }
 0x1c5   : > { %v1308_v0 = vmul.f32 %v2019_v49, %v1307_v59 }
 0x1c6   : > { %v1302_v2 = vsel %vm1301_vm4, %v2017_v48, %v1298_v62 }
 0x1c7   : > { %v1312_v4 = vsel %vm1311_vm5, %v2019_v49, %v1308_v0  ;;  %v1319_v6 = vmul.f32 %v1315_v60, %v1302_v2 }
 0x1c8   : > { %v1320_v7 = vmul.f32 %v1316_v63, %v1312_v4 }
 0x1c9   : > { %v1321_v16 = vperm.slane %v1319_v6, 0 }
 0x1ca   : > { %v1322_v18 = vperm.slane %v1320_v7, 0 }
 0x1cb   : > { %v1323_v20 = vmul.f32 %v1321_v16, %v2579_v8  ;;  %v1325_v21 = vmul.f32 %v1321_v16, %v2581_v9  ;;  %v1327_v22 = vmul.f32 %v1321_v16, %v2583_v10  ;;  %v1329_v23 = vmul.f32 %v1321_v16, %v2585_v11 }
 0x1cc   : > { %v1324_v24 = vmul.f32 %v1322_v18, %v2587_v12  ;;  %v1326_v25 = vmul.f32 %v1322_v18, %v2589_v13  ;;  %v1328_v26 = vmul.f32 %v1322_v18, %v2591_v14  ;;  %v1330_v27 = vmul.f32 %v1322_v18, %v2593_v15 }
 0x1cd   : > { %v1337_v28 = vadd.f32 %v1333_v17, %v1323_v20  ;;  %v1339_v29 = vadd.f32 %v1333_v17, %v1325_v21  ;;  %v1341_v30 = vadd.f32 %v1333_v17, %v1327_v22  ;;  %v1343_v31 = vadd.f32 %v1333_v17, %v1329_v23 }
 0x1ce   : > { %v1338_v32 = vadd.f32 %v1334_v19, %v1324_v24  ;;  %v1340_v8 = vadd.f32 %v1334_v19, %v1326_v25  ;;  %v1342_v33 = vadd.f32 %v1334_v19, %v1328_v26  ;;  %v1344_v9 = vadd.f32 %v1334_v19, %v1330_v27 }
 0x1cf   : > { %vm1345_vm6 = vcmp.gt.f32.partialorder %v1337_v28, 0.0  ;;  %v1353_v10 = vmul.f32 0.2, %v1337_v28  ;;  %vm1347_vm7 = vcmp.gt.f32.partialorder %v1339_v29, 0.0  ;;  %v1355_v11 = vmul.f32 0.2, %v1339_v29 }
 0x1d0   : > { %vm1346_vm8 = vcmp.gt.f32.partialorder %v1338_v32, 0.0  ;;  %v1354_v12 = vmul.f32 0.2, %v1338_v32  ;;  %vm1348_vm9 = vcmp.gt.f32.partialorder %v1340_v8, 0.0  ;;  %v1356_v13 = vmul.f32 0.2, %v1340_v8 }
 0x1d1   : > { %v1361_v34 = vsel %vm1345_vm6, %v1337_v28, %v1353_v10  ;;  %v1363_v14 = vsel %vm1347_vm7, %v1339_v29, %v1355_v11  ;;  %vm1349_vm10 = vcmp.gt.f32.partialorder %v1341_v30, 0.0  ;;  %vm1350_vm11 = vcmp.gt.f32.partialorder %v1342_v33, 0.0 }
 0x1d2   : > { %v1362_v15 = vsel %vm1346_vm8, %v1338_v32, %v1354_v12  ;;  %v1364_v35 = vsel %vm1348_vm9, %v1340_v8, %v1356_v13  ;;  %v1357_v36 = vmul.f32 0.2, %v1341_v30  ;;  %v1358_v37 = vmul.f32 0.2, %v1342_v33 }
 0x1d3   : > { %v1369_v38 = vpack.c.bf16 %v1362_v15, %v1361_v34  ;;  %v1370_v39 = vpack.c.bf16 %v1364_v35, %v1363_v14  ;;  %vm1351_vm12 = vcmp.gt.f32.partialorder %v1343_v31, 0.0  ;;  %vm1352_vm13 = vcmp.gt.f32.partialorder %v1344_v9, 0.0 }
 0x1d4   : > { %v1365_v40 = vsel %vm1349_vm10, %v1341_v30, %v1357_v36  ;;  %v1366_v41 = vsel %vm1350_vm11, %v1342_v33, %v1358_v37  ;;  %v1359_v42 = vmul.f32 0.2, %v1343_v31  ;;  %v1360_v57 = vmul.f32 0.2, %v1344_v9 }
 0x1d5   : > { %1373 = vst [vmem:[%s2572_s28] sm:$0xff] %v1369_v38  ;;  %v1371_v43 = vpack.c.bf16 %v1366_v41, %v1365_v40 }
 0x1d6   : > { %1374 = vst [vmem:[%s2572_s28 + $0x8] sm:$0xff] %v1370_v39  ;;  %v1367_v61 = vsel %vm1351_vm12, %v1343_v31, %v1359_v42  ;;  %v1368_v1 = vsel %vm1352_vm13, %v1344_v9, %v1360_v57 }
 0x1d7   : > { %1375 = vst [vmem:[%s2572_s28 + $0x10] sm:$0xff] %v1371_v43  ;;  %v1372_v44 = vpack.c.bf16 %v1368_v1, %v1367_v61 }
 0x1d9   : > { %1376 = vst [vmem:[%s2572_s28 + $0x18] sm:$0xff] %v1372_v44 }
 0x1da PF: > { %1383 = sbr.rel (!%p2227_p12) target bundleno = 482 (0x1e2), region = 113  ;;  %s1927_s29 = sshll.u32 (%p2227_p12), %s2094_s22, 3 }
 0x1db   : > { %s1386_s8 = scalar_lea.vmem (%p2227_p12), %s2680_s4, %s1927_s29 }
 0x1dc   : > { %v1421_v5 = vld [vmem:[%s2572_s28] sm:$0xff] (%p2227_p12) }
 0x1dd   : > { %v1423_v45 = vld [vmem:[%s2572_s28 + $0x8] sm:$0xff] (%p2227_p12)  ;;  %1422 = vst [vmem:[%s1386_s8] sm:$0xff] (%p2227_p12), %v1421_v5 }
 0x1de   : > { %v1425_v46 = vld [vmem:[%s2572_s28 + $0x10] sm:$0xff] (%p2227_p12)  ;;  %1424 = vst [vmem:[%s1386_s8 + $0x10] sm:$0xff] (%p2227_p12), %v1423_v45 }
 0x1df   : > { %1426 = vst [vmem:[%s1386_s8 + $0x20] sm:$0xff] %v1425_v46 }
 0x1e0   : > { %v1427_v47 = vld [vmem:[%s2572_s28 + $0x18] sm:$0xff] }
 0x1e1   : > { %1428 = vst [vmem:[%s1386_s8 + $0x30] sm:$0xff] %v1427_v47 }
 0x1e2 PF: > { %s14_s25 = sadd.s32 1, %s2106_s25   ;;  %s2688_s14 = sld [smem:[#allocation6_spill]] }
 0x1e3   : > { %p11_p7 = scmp.ge.s32.totalorder %s14_s25, 18   ;;  %s2689_s15 = smov %s2070_s16 }
 0x1e4   : > { %s2690_s16 = smov %s2225_s13  ;;  %s2691_s17 = smov %s2078_s18 }
 0x1e5   : > { %s2692_s18 = smov %s2222_s12  ;;  %s2693_s19 = smov %s2086_s20 }
 0x1e6   : > { %s2694_s20 = smov %s2208_s7  ;;  %s2695_s21 = smov %s2098_s23 }
 0x1e7   : > { %s2696_s22 = smov %s2102_s24  ;;  %s2697_s23 = smov %s2700_s27 }
 0x1e8   : > { %s2698_s24 = smov %s2688_s14  ;;  %13 = sbr.rel (!%p11_p7) target bundleno = 8 (0x8), region = 196 }

</bundles_post_ra>
